<compile_context>
chip_gen: v7x
topology: tpu7x:2x2x1
jax: 0.10.0
libtpu: 0.0.40
codegen_flags: <defaults>
</compile_context>

<pallas_src>
import functools

import jax
import jax.numpy as jnp
from jax.experimental import pallas as pl
from jax.experimental.pallas import tpu as pltpu

EPS = 1e-5
SLOPE = 0.2
LANE = 128
TM = 256              # max rows per M tile (bias/act matmul path)
TK_MAX = 4096         # max contraction tile -> 1 K step for every layer here
TN_MAX = 512          # max output-channel tile
MAX_FUSED_ROWS = 1024  # BN-fused epilogue requires all rows in one M tile


# ----------------------------- chip-aware knobs -----------------------------

@functools.lru_cache(maxsize=None)
def _device_kind():
    try:
        return jax.devices()[0].device_kind.lower()
    except Exception:
        return ""


def _is_multi_core_chip():
    # v7x has 2 TensorCores per chip; v5e/v6e have 1.
    return "v7" in _device_kind()


def _vmem_limit_bytes():
    # v7x: 64 MiB physical VMEM -> cap scoped limit at 48 MiB; v5e/v6e: 128 MiB.
    return (48 if _is_multi_core_chip() else 64) * 1024 * 1024


def _mm_compiler_params():
    return pltpu.CompilerParams(
        dimension_semantics=("parallel", "parallel", "arbitrary"),
        vmem_limit_bytes=_vmem_limit_bytes())


# ----------------------------- Pallas kernels ------------------------------

def _mm_bias_act_kernel(x_ref, w_ref, b_ref, o_ref, acc_ref, *, slope):
    """o = act(x @ w + b); K is the innermost ('arbitrary') grid axis."""
    k = pl.program_id(2)

    @pl.when(k == 0)
    def _():
        acc_ref[...] = jnp.zeros_like(acc_ref)

    acc_ref[...] += jnp.dot(x_ref[...], w_ref[...],
                            preferred_element_type=jnp.float32)

    @pl.when(k == pl.num_programs(2) - 1)
    def _():
        y = acc_ref[...] + b_ref[...]
        if slope is not None:
            y = jnp.maximum(y, slope * y)          # LeakyReLU (VPU)
        o_ref[...] = y.astype(o_ref.dtype)


def _mm_bn_lrelu_kernel(x_ref, w_ref, g_ref, b_ref, o_ref, acc_ref, *,
                        slope, eps):
    """o = LeakyReLU(BatchNorm(x @ w)).  The M grid axis has extent 1, so the
    whole row dimension of this layer lives in the accumulator tile and batch
    statistics are computed in the epilogue — no extra pass or launch.
    The conv bias is omitted: it is exactly cancelled by mean subtraction."""
    k = pl.program_id(2)

    @pl.when(k == 0)
    def _():
        acc_ref[...] = jnp.zeros_like(acc_ref)

    acc_ref[...] += jnp.dot(x_ref[...], w_ref[...],
                            preferred_element_type=jnp.float32)

    @pl.when(k == pl.num_programs(2) - 1)
    def _():
        y = acc_ref[...]                                    # (M, tn) f32
        mean = jnp.mean(y, axis=0, keepdims=True)
        d = y - mean
        var = jnp.mean(d * d, axis=0, keepdims=True)        # two-pass, biased
        z = d * (g_ref[...] * jax.lax.rsqrt(var + eps)) + b_ref[...]
        o_ref[...] = jnp.maximum(z, slope * z).astype(o_ref.dtype)


# ----------------------------- tiling helpers -------------------------------

def _round_up(n, m):
    return ((n + m - 1) // m) * m


def _pad2d(a, rows, cols):
    pr, pc = rows - a.shape[0], cols - a.shape[1]
    if pr == 0 and pc == 0:
        return a
    return jnp.pad(a, ((0, pr), (0, pc)))


def _largest_divisor_tile(n, cap, step=LANE):
    """Largest multiple of `step` that divides `n` and is <= cap (n % step == 0)."""
    t = max(step, (min(n, cap) // step) * step)
    while n % t != 0:
        t -= step
    return t


def _pick_tn(np_cols):
    cap = TN_MAX
    if _is_multi_core_chip() and np_cols >= 2 * LANE:
        # Give the parallel 'j' axis extent >= 2 so both TensorCores work.
        cap = min(cap, max(np_cols // 2, LANE))
    return _largest_divisor_tile(np_cols, cap)


# ----------------------------- Pallas wrappers ------------------------------

def matmul_bias_act(x, w, b, *, slope=None, out_dtype=jnp.float32):
    """act(x @ w + b).  bf16 MXU inputs, f32 accumulation.  Returns (M, Np)
    with the column dim zero-padded to a multiple of 128 (padded columns are
    exactly zero; callers may carry or slice them)."""
    M, K = x.shape
    K2, N = w.shape
    assert K == K2
    Kp = _round_up(K, LANE)
    Np = _round_up(N, LANE)
    tm = M if M <= TM else TM
    Mp = _round_up(M, tm)
    tk = _largest_divisor_tile(Kp, TK_MAX)
    tn = _pick_tn(Np)
    xp = _pad2d(x.astype(jnp.bfloat16), Mp, Kp)
    wp = _pad2d(w.astype(jnp.bfloat16), Kp, Np)
    bp = jnp.pad(b.astype(jnp.float32), (0, Np - N)).reshape(1, Np)
    grid = (Mp // tm, Np // tn, Kp // tk)
    out = pl.pallas_call(
        functools.partial(_mm_bias_act_kernel, slope=slope),
        out_shape=jax.ShapeDtypeStruct((Mp, Np), out_dtype),
        grid_spec=pltpu.PrefetchScalarGridSpec(
            num_scalar_prefetch=0,
            grid=grid,
            in_specs=[
                pl.BlockSpec((tm, tk), lambda i, j, k: (i, k)),
                pl.BlockSpec((tk, tn), lambda i, j, k: (k, j)),
                pl.BlockSpec((1, tn), lambda i, j, k: (0, j)),
            ],
            out_specs=pl.BlockSpec((tm, tn), lambda i, j, k: (i, j)),
            scratch_shapes=[pltpu.VMEM((tm, tn), jnp.float32)]),
        compiler_params=_mm_compiler_params(),
    )(xp, wp, bp)
    return out[:M]


def matmul_bn_lrelu(x, w, gamma, beta, *, slope=SLOPE, eps=EPS,
                    out_dtype=jnp.bfloat16):
    """LeakyReLU(BatchNorm(x @ w)) with batch statistics, fused into a single
    pallas_call whenever all M rows fit one tile (always true at these shapes)."""
    M, K = x.shape
    K2, N = w.shape
    assert K == K2
    Kp = _round_up(K, LANE)
    Np = _round_up(N, LANE)

    if M > MAX_FUSED_ROWS:
        # Rare large-batch fallback: Pallas matmul + XLA batch-norm epilogue.
        # TODO(synk): tiled stats-accumulating Pallas pass for very large M.
        y = matmul_bias_act(x, w, jnp.zeros((N,), jnp.float32), slope=None,
                            out_dtype=jnp.float32)[:, :N]
        mean = jnp.mean(y, axis=0)
        var = jnp.mean(jnp.square(y - mean), axis=0)
        z = (y - mean) * (gamma * jax.lax.rsqrt(var + eps)) + beta
        z = jnp.maximum(z, slope * z).astype(out_dtype)
        return jnp.pad(z, ((0, 0), (0, Np - N)))

    tk = _largest_divisor_tile(Kp, TK_MAX)
    tn = _pick_tn(Np)
    xp = _pad2d(x.astype(jnp.bfloat16), M, Kp)      # no row padding (real stats)
    wp = _pad2d(w.astype(jnp.bfloat16), Kp, Np)
    gp = jnp.pad(gamma.astype(jnp.float32), (0, Np - N)).reshape(1, Np)
    bp = jnp.pad(beta.astype(jnp.float32), (0, Np - N)).reshape(1, Np)
    grid = (1, Np // tn, Kp // tk)
    return pl.pallas_call(
        functools.partial(_mm_bn_lrelu_kernel, slope=slope, eps=eps),
        out_shape=jax.ShapeDtypeStruct((M, Np), out_dtype),
        grid_spec=pltpu.PrefetchScalarGridSpec(
            num_scalar_prefetch=0,
            grid=grid,
            in_specs=[
                pl.BlockSpec((M, tk), lambda i, j, k: (0, k)),
                pl.BlockSpec((tk, tn), lambda i, j, k: (k, j)),
                pl.BlockSpec((1, tn), lambda i, j, k: (0, j)),
                pl.BlockSpec((1, tn), lambda i, j, k: (0, j)),
            ],
            out_specs=pl.BlockSpec((M, tn), lambda i, j, k: (0, j)),
            scratch_shapes=[pltpu.VMEM((M, tn), jnp.float32)]),
        compiler_params=_mm_compiler_params(),
    )(xp, wp, gp, bp)


# ----------------------------- glue (plain JAX) -----------------------------

def im2col_nhwc(x, kernel=4, stride=2, pad=1):
    """NHWC -> (N*Hout*Wout, k*k*C).  Column order (kh, kw, C).
    TODO(synk): replace with an in-kernel stride-2 read of the padded NHWC
    activation (pl.ds strided slabs) to avoid the ~4x im2col duplication."""
    N, H, W, C = x.shape
    Hout = (H + 2 * pad - kernel) // stride + 1
    Wout = (W + 2 * pad - kernel) // stride + 1
    xp = jnp.pad(x, ((0, 0), (pad, pad), (pad, pad), (0, 0)))
    patches = []
    for kh in range(kernel):
        for kw in range(kernel):
            patches.append(
                xp[:, kh:kh + stride * Hout:stride,
                   kw:kw + stride * Wout:stride, :])
    p = jnp.stack(patches, axis=3)                    # (N, Ho, Wo, k*k, C)
    p = p.reshape(N, Hout, Wout, kernel * kernel * C)
    return p.reshape(N * Hout * Wout, kernel * kernel * C), (N, Hout, Wout)


def conv_block(x_nhwc, w, b, bn=None):
    """Conv2d(k=4, s=2, p=1) [+ BatchNorm2d(batch stats)] + LeakyReLU(0.2).
    x_nhwc's channel dim may be zero-padded past w's Cin; the output keeps its
    channel dim lane-padded (multiple of 128) so the next layer can consume it
    without a slicing copy (padded channels are exactly zero)."""
    cout, cin, kh, kw = w.shape
    cin_pad = x_nhwc.shape[-1]
    cols, (n, ho, wo) = im2col_nhwc(x_nhwc, kernel=kh)
    w2 = jnp.transpose(w, (2, 3, 1, 0))               # (kh, kw, Cin, Cout)
    if cin_pad > cin:
        w2 = jnp.pad(w2, ((0, 0), (0, 0), (0, cin_pad - cin), (0, 0)))
    w2 = w2.reshape(kh * kw * cin_pad, cout)
    if bn is None:
        y = matmul_bias_act(cols, w2, b, slope=SLOPE, out_dtype=jnp.bfloat16)
    else:
        gamma, beta = bn
        y = matmul_bn_lrelu(cols, w2, gamma, beta, out_dtype=jnp.bfloat16)
    return y.reshape(n, ho, wo, y.shape[1]), cout


def init_params(key, in_size):
    """Deterministic DCGAN-style init (same parameter shapes as the module)."""
    cin, H, W = in_size
    chans = [cin, 64, 128, 256, 512]
    keys = jax.random.split(key, 5)
    params = {}
    for i in range(4):
        w = 0.02 * jax.random.normal(
            keys[i], (chans[i + 1], chans[i], 4, 4), jnp.float32)
        params[f"conv{i + 1}"] = (w, jnp.zeros((chans[i + 1],), jnp.float32))
    for layer, c in zip((2, 3, 4), (128, 256, 512)):
        params[f"bn{layer}"] = (jnp.ones((c,), jnp.float32),
                                jnp.zeros((c,), jnp.float32))
    num_feat = 512 * (H // 16) * (W // 16)            # == self.num_cnn_features
    wl = 0.02 * jax.random.normal(keys[4], (num_feat, 1), jnp.float32)
    params["linear"] = (wl, jnp.zeros((1,), jnp.float32))
    return params


def discriminator_forward(params, x):
    """x: (N, C, H, W) float32 -> class scores of shape (N, 1)."""
    h = jnp.transpose(x, (0, 2, 3, 1))                # NCHW -> NHWC once
    h, _ = conv_block(h, *params["conv1"])
    h, _ = conv_block(h, *params["conv2"], bn=params["bn2"])
    h, _ = conv_block(h, *params["conv3"], bn=params["bn3"])
    h, c4 = conv_block(h, *params["conv4"], bn=params["bn4"])
    n = h.shape[0]
    # torch flattens in NCHW order; conv4's channel dim (512) is not padded.
    flat = jnp.transpose(h[..., :c4], (0, 3, 1, 2)).reshape(n, -1)
    wl, bl = params["linear"]
    y = matmul_bias_act(flat, wl, bl, slope=None, out_dtype=jnp.float32)
    return y[:, :1]


if __name__ == "__main__":
    in_size = (3, 16, 16)    # (C, H, W): 16x16 -> 1x1 after four stride-2 convs
    batch = 2
    key = jax.random.PRNGKey(0)
    k_param, k_x = jax.random.split(key)
    params = init_params(k_param, in_size)
    x = jax.random.normal(k_x, (batch, *in_size), jnp.float32)

    y = jax.jit(discriminator_forward)(params, x)
    jax.block_until_ready(y)
    assert y.shape == (batch, 1)
    assert bool(jnp.all(jnp.isfinite(y)))
    print("KERNEL_OK")
</pallas_src>

<mosaic_0001>
module attributes {stable_mosaic.version = 11 : i64} {
  func.func @_mm_bias_act_kernel(%arg0: i32, %arg1: i32, %arg2: i32, %arg3: memref<128x128xbf16, #tpu.memory_space<vmem>>, %arg4: memref<128x128xbf16, #tpu.memory_space<vmem>>, %arg5: memref<1x128xf32, #tpu.memory_space<vmem>>, %arg6: memref<128x128xbf16, #tpu.memory_space<vmem>>, %arg7: memref<128x128xf32, #tpu.memory_space<vmem>>) attributes {dimension_semantics = [#tpu.dimension_semantics<parallel>, #tpu.dimension_semantics<parallel>, #tpu.dimension_semantics<arbitrary>], iteration_bounds = array<i64: 1, 1, 1>, scalar_prefetch = 0 : i64, scratch_operands = 1 : i64, tpu.core_type = #tpu.core_type<tc>, window_params = [{transform_indices = @transform_0, window_bounds = array<i64: 128, 128>}, {transform_indices = @transform_1, window_bounds = array<i64: 128, 128>}, {transform_indices = @transform_2, window_bounds = array<i64: 1, 128>}, {transform_indices = @transform_3, window_bounds = array<i64: 128, 128>}]} {
    %c0_i32 = arith.constant 0 : i32
    %0 = arith.cmpi eq, %arg2, %c0_i32 : i32
    %1 = arith.extui %0 : i1 to i32
    %c0_i32_0 = arith.constant 0 : i32
    %2 = arith.cmpi ne, %1, %c0_i32_0 : i32
    scf.if %2 {
      %cst_10 = arith.constant 0.000000e+00 : f32
      %12 = vector.broadcast %cst_10 : f32 to vector<128x128xf32>
      %c0_11 = arith.constant 0 : index
      %c0_12 = arith.constant 0 : index
      %13 = vector.load %arg7[%c0_11, %c0_12] : memref<128x128xf32, #tpu.memory_space<vmem>>, vector<128x128xf32>
      tpu.vector_store %arg7[%c0_11, %c0_12], %12 {strides = array<i32>} : memref<128x128xf32, #tpu.memory_space<vmem>>, vector<128x128xf32>,
    } else {
    }
    %c0 = arith.constant 0 : index
    %c0_1 = arith.constant 0 : index
    %3 = vector.load %arg7[%c0, %c0_1] : memref<128x128xf32, #tpu.memory_space<vmem>>, vector<128x128xf32>
    %c0_2 = arith.constant 0 : index
    %c0_3 = arith.constant 0 : index
    %4 = vector.load %arg3[%c0_2, %c0_3] : memref<128x128xbf16, #tpu.memory_space<vmem>>, vector<128x128xbf16>
    %c0_4 = arith.constant 0 : index
    %c0_5 = arith.constant 0 : index
    %5 = vector.load %arg4[%c0_4, %c0_5] : memref<128x128xbf16, #tpu.memory_space<vmem>>, vector<128x128xbf16>
    %cst = arith.constant dense<0.000000e+00> : vector<128x128xf32>
    %6 = tpu.matmul %4, %5, %cst {dimension_numbers = #tpu.dot_dimension_numbers<[1], [0], [0], [1], [0, 0, 1, 1], [], []>} : vector<128x128xbf16>, vector<128x128xbf16>, vector<128x128xf32> -> vector<128x128xf32>
    %7 = arith.addf %3, %6 : vector<128x128xf32>
    %c0_6 = arith.constant 0 : index
    %c0_7 = arith.constant 0 : index
    %8 = vector.load %arg7[%c0_6, %c0_7] : memref<128x128xf32, #tpu.memory_space<vmem>>, vector<128x128xf32>
    tpu.vector_store %arg7[%c0_6, %c0_7], %7 {strides = array<i32>} : memref<128x128xf32, #tpu.memory_space<vmem>>, vector<128x128xf32>,
    %c0_i32_8 = arith.constant 0 : i32
    %9 = arith.cmpi eq, %arg2, %c0_i32_8 : i32
    %10 = arith.extui %9 : i1 to i32
    %c0_i32_9 = arith.constant 0 : i32
    %11 = arith.cmpi ne, %10, %c0_i32_9 : i32
    scf.if %11 {
      %c0_10 = arith.constant 0 : index
      %c0_11 = arith.constant 0 : index
      %12 = vector.load %arg7[%c0_10, %c0_11] : memref<128x128xf32, #tpu.memory_space<vmem>>, vector<128x128xf32>
      %c0_12 = arith.constant 0 : index
      %c0_13 = arith.constant 0 : index
      %13 = vector.load %arg5[%c0_12, %c0_13] : memref<1x128xf32, #tpu.memory_space<vmem>>, vector<1x128xf32>
      %14 = vector.broadcast %13 : vector<1x128xf32> to vector<128x128xf32>
      %15 = arith.addf %12, %14 : vector<128x128xf32>
      %cst_14 = arith.constant 2.000000e-01 : f32
      %16 = vector.broadcast %cst_14 : f32 to vector<128x128xf32>
      %17 = arith.mulf %16, %15 : vector<128x128xf32>
      %18 = arith.maximumf %15, %17 : vector<128x128xf32>
      %19 = arith.truncf %18 : vector<128x128xf32> to vector<128x128xbf16>
      %c0_15 = arith.constant 0 : index
      %c0_16 = arith.constant 0 : index
      %20 = vector.load %arg6[%c0_15, %c0_16] : memref<128x128xbf16, #tpu.memory_space<vmem>>, vector<128x128xbf16>
      tpu.vector_store %arg6[%c0_15, %c0_16], %19 {strides = array<i32>} : memref<128x128xbf16, #tpu.memory_space<vmem>>, vector<128x128xbf16>,
    } else {
    }
    return
  }
  func.func @transform_0(%arg0: i32, %arg1: i32, %arg2: i32) -> (i32, i32) {
    %c0_i32 = arith.constant 0 : i32
    return %arg0, %arg2 : i32, i32
  }
  func.func @transform_1(%arg0: i32, %arg1: i32, %arg2: i32) -> (i32, i32) {
    %c0_i32 = arith.constant 0 : i32
    return %arg2, %arg1 : i32, i32
  }
  func.func @transform_2(%arg0: i32, %arg1: i32, %arg2: i32) -> (i32, i32) {
    %c0_i32 = arith.constant 0 : i32
    %c0_i32_0 = arith.constant 0 : i32
    return %c0_i32, %arg1 : i32, i32
  }
  func.func @transform_3(%arg0: i32, %arg1: i32, %arg2: i32) -> (i32, i32) {
    %c0_i32 = arith.constant 0 : i32
    return %arg0, %arg1 : i32, i32
  }
}

module attributes {stable_mosaic.version = 11 : i64} {
  func.func @_mm_bn_lrelu_kernel(%arg0: i32, %arg1: i32, %arg2: i32, %arg3: memref<32x2048xbf16, #tpu.memory_space<vmem>>, %arg4: memref<2048x128xbf16, #tpu.memory_space<vmem>>, %arg5: memref<1x128xf32, #tpu.memory_space<vmem>>, %arg6: memref<1x128xf32, #tpu.memory_space<vmem>>, %arg7: memref<32x128xbf16, #tpu.memory_space<vmem>>, %arg8: memref<32x128xf32, #tpu.memory_space<vmem>>) attributes {dimension_semantics = [#tpu.dimension_semantics<parallel>, #tpu.dimension_semantics<parallel>, #tpu.dimension_semantics<arbitrary>], iteration_bounds = array<i64: 1, 1, 1>, scalar_prefetch = 0 : i64, scratch_operands = 1 : i64, tpu.core_type = #tpu.core_type<tc>, window_params = [{transform_indices = @transform_0, window_bounds = array<i64: 32, 2048>}, {transform_indices = @transform_1, window_bounds = array<i64: 2048, 128>}, {transform_indices = @transform_2, window_bounds = array<i64: 1, 128>}, {transform_indices = @transform_3, window_bounds = array<i64: 1, 128>}, {transform_indices = @transform_4, window_bounds = array<i64: 32, 128>}]} {
    %c0_i32 = arith.constant 0 : i32
    %0 = arith.cmpi eq, %arg2, %c0_i32 : i32
    %1 = arith.extui %0 : i1 to i32
    %c0_i32_0 = arith.constant 0 : i32
    %2 = arith.cmpi ne, %1, %c0_i32_0 : i32
    scf.if %2 {
      %cst_10 = arith.constant 0.000000e+00 : f32
      %12 = vector.broadcast %cst_10 : f32 to vector<32x128xf32>
      %c0_11 = arith.constant 0 : index
      %c0_12 = arith.constant 0 : index
      %13 = vector.load %arg8[%c0_11, %c0_12] : memref<32x128xf32, #tpu.memory_space<vmem>>, vector<32x128xf32>
      tpu.vector_store %arg8[%c0_11, %c0_12], %12 {strides = array<i32>} : memref<32x128xf32, #tpu.memory_space<vmem>>, vector<32x128xf32>,
    } else {
    }
    %c0 = arith.constant 0 : index
    %c0_1 = arith.constant 0 : index
    %3 = vector.load %arg8[%c0, %c0_1] : memref<32x128xf32, #tpu.memory_space<vmem>>, vector<32x128xf32>
    %c0_2 = arith.constant 0 : index
    %c0_3 = arith.constant 0 : index
    %4 = vector.load %arg3[%c0_2, %c0_3] : memref<32x2048xbf16, #tpu.memory_space<vmem>>, vector<32x2048xbf16>
    %c0_4 = arith.constant 0 : index
    %c0_5 = arith.constant 0 : index
    %5 = vector.load %arg4[%c0_4, %c0_5] : memref<2048x128xbf16, #tpu.memory_space<vmem>>, vector<2048x128xbf16>
    %cst = arith.constant dense<0.000000e+00> : vector<32x128xf32>
    %6 = tpu.matmul %4, %5, %cst {dimension_numbers = #tpu.dot_dimension_numbers<[1], [0], [0], [1], [0, 0, 1, 1], [], []>} : vector<32x2048xbf16>, vector<2048x128xbf16>, vector<32x128xf32> -> vector<32x128xf32>
    %7 = arith.addf %3, %6 : vector<32x128xf32>
    %c0_6 = arith.constant 0 : index
    %c0_7 = arith.constant 0 : index
    %8 = vector.load %arg8[%c0_6, %c0_7] : memref<32x128xf32, #tpu.memory_space<vmem>>, vector<32x128xf32>
    tpu.vector_store %arg8[%c0_6, %c0_7], %7 {strides = array<i32>} : memref<32x128xf32, #tpu.memory_space<vmem>>, vector<32x128xf32>,
    %c0_i32_8 = arith.constant 0 : i32
    %9 = arith.cmpi eq, %arg2, %c0_i32_8 : i32
    %10 = arith.extui %9 : i1 to i32
    %c0_i32_9 = arith.constant 0 : i32
    %11 = arith.cmpi ne, %10, %c0_i32_9 : i32
    scf.if %11 {
      %c0_10 = arith.constant 0 : index
      %c0_11 = arith.constant 0 : index
      %12 = vector.load %arg8[%c0_10, %c0_11] : memref<32x128xf32, #tpu.memory_space<vmem>>, vector<32x128xf32>
      %cst_12 = arith.constant dense<0.000000e+00> : vector<128xf32>
      %13 = vector.multi_reduction <add>, %12, %cst_12 [0] : vector<32x128xf32> to vector<128xf32>
      %14 = vector.shape_cast %13 : vector<128xf32> to vector<1x128xf32>
      %cst_13 = arith.constant 3.200000e+01 : f32
      %15 = vector.broadcast %cst_13 : f32 to vector<1x128xf32>
      %16 = arith.divf %14, %15 : vector<1x128xf32>
      %17 = vector.broadcast %16 : vector<1x128xf32> to vector<32x128xf32>
      %18 = arith.subf %12, %17 : vector<32x128xf32>
      %19 = arith.mulf %18, %18 : vector<32x128xf32>
      %cst_14 = arith.constant dense<0.000000e+00> : vector<128xf32>
      %20 = vector.multi_reduction <add>, %19, %cst_14 [0] : vector<32x128xf32> to vector<128xf32>
      %21 = vector.shape_cast %20 : vector<128xf32> to vector<1x128xf32>
      %cst_15 = arith.constant 3.200000e+01 : f32
      %22 = vector.broadcast %cst_15 : f32 to vector<1x128xf32>
      %23 = arith.divf %21, %22 : vector<1x128xf32>
      %c0_16 = arith.constant 0 : index
      %c0_17 = arith.constant 0 : index
      %24 = vector.load %arg5[%c0_16, %c0_17] : memref<1x128xf32, #tpu.memory_space<vmem>>, vector<1x128xf32>
      %cst_18 = arith.constant 9.99999974E-6 : f32
      %25 = vector.broadcast %cst_18 : f32 to vector<1x128xf32>
      %26 = arith.addf %23, %25 : vector<1x128xf32>
      %27 = math.rsqrt %26 : vector<1x128xf32>
      %28 = arith.mulf %24, %27 : vector<1x128xf32>
      %29 = vector.broadcast %28 : vector<1x128xf32> to vector<32x128xf32>
      %30 = arith.mulf %18, %29 : vector<32x128xf32>
      %c0_19 = arith.constant 0 : index
      %c0_20 = arith.constant 0 : index
      %31 = vector.load %arg6[%c0_19, %c0_20] : memref<1x128xf32, #tpu.memory_space<vmem>>, vector<1x128xf32>
      %32 = vector.broadcast %31 : vector<1x128xf32> to vector<32x128xf32>
      %33 = arith.addf %30, %32 : vector<32x128xf32>
      %cst_21 = arith.constant 2.000000e-01 : f32
      %34 = vector.broadcast %cst_21 : f32 to vector<32x128xf32>
      %35 = arith.mulf %34, %33 : vector<32x128xf32>
      %36 = arith.maximumf %33, %35 : vector<32x128xf32>
      %37 = arith.truncf %36 : vector<32x128xf32> to vector<32x128xbf16>
      %c0_22 = arith.constant 0 : index
      %c0_23 = arith.constant 0 : index
      %38 = vector.load %arg7[%c0_22, %c0_23] : memref<32x128xbf16, #tpu.memory_space<vmem>>, vector<32x128xbf16>
      tpu.vector_store %arg7[%c0_22, %c0_23], %37 {strides = array<i32>} : memref<32x128xbf16, #tpu.memory_space<vmem>>, vector<32x128xbf16>,
    } else {
    }
    return
  }
  func.func @transform_0(%arg0: i32, %arg1: i32, %arg2: i32) -> (i32, i32) {
    %c0_i32 = arith.constant 0 : i32
    %c0_i32_0 = arith.constant 0 : i32
    return %c0_i32, %arg2 : i32, i32
  }
  func.func @transform_1(%arg0: i32, %arg1: i32, %arg2: i32) -> (i32, i32) {
    %c0_i32 = arith.constant 0 : i32
    return %arg2, %arg1 : i32, i32
  }
  func.func @transform_2(%arg0: i32, %arg1: i32, %arg2: i32) -> (i32, i32) {
    %c0_i32 = arith.constant 0 : i32
    %c0_i32_0 = arith.constant 0 : i32
    return %c0_i32, %arg1 : i32, i32
  }
  func.func @transform_3(%arg0: i32, %arg1: i32, %arg2: i32) -> (i32, i32) {
    %c0_i32 = arith.constant 0 : i32
    %c0_i32_0 = arith.constant 0 : i32
    return %c0_i32, %arg1 : i32, i32
  }
  func.func @transform_4(%arg0: i32, %arg1: i32, %arg2: i32) -> (i32, i32) {
    %c0_i32 = arith.constant 0 : i32
    %c0_i32_0 = arith.constant 0 : i32
    return %c0_i32, %arg1 : i32, i32
  }
}

module attributes {stable_mosaic.version = 11 : i64} {
  func.func @_mm_bn_lrelu_kernel(%arg0: i32, %arg1: i32, %arg2: i32, %arg3: memref<8x2048xbf16, #tpu.memory_space<vmem>>, %arg4: memref<2048x256xbf16, #tpu.memory_space<vmem>>, %arg5: memref<1x256xf32, #tpu.memory_space<vmem>>, %arg6: memref<1x256xf32, #tpu.memory_space<vmem>>, %arg7: memref<8x256xbf16, #tpu.memory_space<vmem>>, %arg8: memref<8x256xf32, #tpu.memory_space<vmem>>) attributes {dimension_semantics = [#tpu.dimension_semantics<parallel>, #tpu.dimension_semantics<parallel>, #tpu.dimension_semantics<arbitrary>], iteration_bounds = array<i64: 1, 1, 1>, scalar_prefetch = 0 : i64, scratch_operands = 1 : i64, tpu.core_type = #tpu.core_type<tc>, window_params = [{transform_indices = @transform_0, window_bounds = array<i64: 8, 2048>}, {transform_indices = @transform_1, window_bounds = array<i64: 2048, 256>}, {transform_indices = @transform_2, window_bounds = array<i64: 1, 256>}, {transform_indices = @transform_3, window_bounds = array<i64: 1, 256>}, {transform_indices = @transform_4, window_bounds = array<i64: 8, 256>}]} {
    %c0_i32 = arith.constant 0 : i32
    %0 = arith.cmpi eq, %arg2, %c0_i32 : i32
    %1 = arith.extui %0 : i1 to i32
    %c0_i32_0 = arith.constant 0 : i32
    %2 = arith.cmpi ne, %1, %c0_i32_0 : i32
    scf.if %2 {
      %cst_10 = arith.constant 0.000000e+00 : f32
      %12 = vector.broadcast %cst_10 : f32 to vector<8x256xf32>
      %c0_11 = arith.constant 0 : index
      %c0_12 = arith.constant 0 : index
      %13 = vector.load %arg8[%c0_11, %c0_12] : memref<8x256xf32, #tpu.memory_space<vmem>>, vector<8x256xf32>
      tpu.vector_store %arg8[%c0_11, %c0_12], %12 {strides = array<i32>} : memref<8x256xf32, #tpu.memory_space<vmem>>, vector<8x256xf32>,
    } else {
    }
    %c0 = arith.constant 0 : index
    %c0_1 = arith.constant 0 : index
    %3 = vector.load %arg8[%c0, %c0_1] : memref<8x256xf32, #tpu.memory_space<vmem>>, vector<8x256xf32>
    %c0_2 = arith.constant 0 : index
    %c0_3 = arith.constant 0 : index
    %4 = vector.load %arg3[%c0_2, %c0_3] : memref<8x2048xbf16, #tpu.memory_space<vmem>>, vector<8x2048xbf16>
    %c0_4 = arith.constant 0 : index
    %c0_5 = arith.constant 0 : index
    %5 = vector.load %arg4[%c0_4, %c0_5] : memref<2048x256xbf16, #tpu.memory_space<vmem>>, vector<2048x256xbf16>
    %cst = arith.constant dense<0.000000e+00> : vector<8x256xf32>
    %6 = tpu.matmul %4, %5, %cst {dimension_numbers = #tpu.dot_dimension_numbers<[1], [0], [0], [1], [0, 0, 1, 1], [], []>} : vector<8x2048xbf16>, vector<2048x256xbf16>, vector<8x256xf32> -> vector<8x256xf32>
    %7 = arith.addf %3, %6 : vector<8x256xf32>
    %c0_6 = arith.constant 0 : index
    %c0_7 = arith.constant 0 : index
    %8 = vector.load %arg8[%c0_6, %c0_7] : memref<8x256xf32, #tpu.memory_space<vmem>>, vector<8x256xf32>
    tpu.vector_store %arg8[%c0_6, %c0_7], %7 {strides = array<i32>} : memref<8x256xf32, #tpu.memory_space<vmem>>, vector<8x256xf32>,
    %c0_i32_8 = arith.constant 0 : i32
    %9 = arith.cmpi eq, %arg2, %c0_i32_8 : i32
    %10 = arith.extui %9 : i1 to i32
    %c0_i32_9 = arith.constant 0 : i32
    %11 = arith.cmpi ne, %10, %c0_i32_9 : i32
    scf.if %11 {
      %c0_10 = arith.constant 0 : index
      %c0_11 = arith.constant 0 : index
      %12 = vector.load %arg8[%c0_10, %c0_11] : memref<8x256xf32, #tpu.memory_space<vmem>>, vector<8x256xf32>
      %cst_12 = arith.constant dense<0.000000e+00> : vector<256xf32>
      %13 = vector.multi_reduction <add>, %12, %cst_12 [0] : vector<8x256xf32> to vector<256xf32>
      %14 = vector.shape_cast %13 : vector<256xf32> to vector<1x256xf32>
      %cst_13 = arith.constant 8.000000e+00 : f32
      %15 = vector.broadcast %cst_13 : f32 to vector<1x256xf32>
      %16 = arith.divf %14, %15 : vector<1x256xf32>
      %17 = vector.broadcast %16 : vector<1x256xf32> to vector<8x256xf32>
      %18 = arith.subf %12, %17 : vector<8x256xf32>
      %19 = arith.mulf %18, %18 : vector<8x256xf32>
      %cst_14 = arith.constant dense<0.000000e+00> : vector<256xf32>
      %20 = vector.multi_reduction <add>, %19, %cst_14 [0] : vector<8x256xf32> to vector<256xf32>
      %21 = vector.shape_cast %20 : vector<256xf32> to vector<1x256xf32>
      %cst_15 = arith.constant 8.000000e+00 : f32
      %22 = vector.broadcast %cst_15 : f32 to vector<1x256xf32>
      %23 = arith.divf %21, %22 : vector<1x256xf32>
      %c0_16 = arith.constant 0 : index
      %c0_17 = arith.constant 0 : index
      %24 = vector.load %arg5[%c0_16, %c0_17] : memref<1x256xf32, #tpu.memory_space<vmem>>, vector<1x256xf32>
      %cst_18 = arith.constant 9.99999974E-6 : f32
      %25 = vector.broadcast %cst_18 : f32 to vector<1x256xf32>
      %26 = arith.addf %23, %25 : vector<1x256xf32>
      %27 = math.rsqrt %26 : vector<1x256xf32>
      %28 = arith.mulf %24, %27 : vector<1x256xf32>
      %29 = vector.broadcast %28 : vector<1x256xf32> to vector<8x256xf32>
      %30 = arith.mulf %18, %29 : vector<8x256xf32>
      %c0_19 = arith.constant 0 : index
      %c0_20 = arith.constant 0 : index
      %31 = vector.load %arg6[%c0_19, %c0_20] : memref<1x256xf32, #tpu.memory_space<vmem>>, vector<1x256xf32>
      %32 = vector.broadcast %31 : vector<1x256xf32> to vector<8x256xf32>
      %33 = arith.addf %30, %32 : vector<8x256xf32>
      %cst_21 = arith.constant 2.000000e-01 : f32
      %34 = vector.broadcast %cst_21 : f32 to vector<8x256xf32>
      %35 = arith.mulf %34, %33 : vector<8x256xf32>
      %36 = arith.maximumf %33, %35 : vector<8x256xf32>
      %37 = arith.truncf %36 : vector<8x256xf32> to vector<8x256xbf16>
      %c0_22 = arith.constant 0 : index
      %c0_23 = arith.constant 0 : index
      %38 = vector.load %arg7[%c0_22, %c0_23] : memref<8x256xbf16, #tpu.memory_space<vmem>>, vector<8x256xbf16>
      tpu.vector_store %arg7[%c0_22, %c0_23], %37 {strides = array<i32>} : memref<8x256xbf16, #tpu.memory_space<vmem>>, vector<8x256xbf16>,
    } else {
    }
    return
  }
  func.func @transform_0(%arg0: i32, %arg1: i32, %arg2: i32) -> (i32, i32) {
    %c0_i32 = arith.constant 0 : i32
    %c0_i32_0 = arith.constant 0 : i32
    return %c0_i32, %arg2 : i32, i32
  }
  func.func @transform_1(%arg0: i32, %arg1: i32, %arg2: i32) -> (i32, i32) {
    %c0_i32 = arith.constant 0 : i32
    return %arg2, %arg1 : i32, i32
  }
  func.func @transform_2(%arg0: i32, %arg1: i32, %arg2: i32) -> (i32, i32) {
    %c0_i32 = arith.constant 0 : i32
    %c0_i32_0 = arith.constant 0 : i32
    return %c0_i32, %arg1 : i32, i32
  }
  func.func @transform_3(%arg0: i32, %arg1: i32, %arg2: i32) -> (i32, i32) {
    %c0_i32 = arith.constant 0 : i32
    %c0_i32_0 = arith.constant 0 : i32
    return %c0_i32, %arg1 : i32, i32
  }
  func.func @transform_4(%arg0: i32, %arg1: i32, %arg2: i32) -> (i32, i32) {
    %c0_i32 = arith.constant 0 : i32
    %c0_i32_0 = arith.constant 0 : i32
    return %c0_i32, %arg1 : i32, i32
  }
}

module attributes {stable_mosaic.version = 11 : i64} {
  func.func @_mm_bn_lrelu_kernel(%arg0: i32, %arg1: i32, %arg2: i32, %arg3: memref<2x4096xbf16, #tpu.memory_space<vmem>>, %arg4: memref<4096x512xbf16, #tpu.memory_space<vmem>>, %arg5: memref<1x512xf32, #tpu.memory_space<vmem>>, %arg6: memref<1x512xf32, #tpu.memory_space<vmem>>, %arg7: memref<2x512xbf16, #tpu.memory_space<vmem>>, %arg8: memref<2x512xf32, #tpu.memory_space<vmem>>) attributes {dimension_semantics = [#tpu.dimension_semantics<parallel>, #tpu.dimension_semantics<parallel>, #tpu.dimension_semantics<arbitrary>], iteration_bounds = array<i64: 1, 1, 1>, scalar_prefetch = 0 : i64, scratch_operands = 1 : i64, tpu.core_type = #tpu.core_type<tc>, window_params = [{transform_indices = @transform_0, window_bounds = array<i64: 2, 4096>}, {transform_indices = @transform_1, window_bounds = array<i64: 4096, 512>}, {transform_indices = @transform_2, window_bounds = array<i64: 1, 512>}, {transform_indices = @transform_3, window_bounds = array<i64: 1, 512>}, {transform_indices = @transform_4, window_bounds = array<i64: 2, 512>}]} {
    %c0_i32 = arith.constant 0 : i32
    %0 = arith.cmpi eq, %arg2, %c0_i32 : i32
    %1 = arith.extui %0 : i1 to i32
    %c0_i32_0 = arith.constant 0 : i32
    %2 = arith.cmpi ne, %1, %c0_i32_0 : i32
    scf.if %2 {
      %cst_10 = arith.constant 0.000000e+00 : f32
      %12 = vector.broadcast %cst_10 : f32 to vector<2x512xf32>
      %c0_11 = arith.constant 0 : index
      %c0_12 = arith.constant 0 : index
      %13 = vector.load %arg8[%c0_11, %c0_12] : memref<2x512xf32, #tpu.memory_space<vmem>>, vector<2x512xf32>
      tpu.vector_store %arg8[%c0_11, %c0_12], %12 {strides = array<i32>} : memref<2x512xf32, #tpu.memory_space<vmem>>, vector<2x512xf32>,
    } else {
    }
    %c0 = arith.constant 0 : index
    %c0_1 = arith.constant 0 : index
    %3 = vector.load %arg8[%c0, %c0_1] : memref<2x512xf32, #tpu.memory_space<vmem>>, vector<2x512xf32>
    %c0_2 = arith.constant 0 : index
    %c0_3 = arith.constant 0 : index
    %4 = vector.load %arg3[%c0_2, %c0_3] : memref<2x4096xbf16, #tpu.memory_space<vmem>>, vector<2x4096xbf16>
    %c0_4 = arith.constant 0 : index
    %c0_5 = arith.constant 0 : index
    %5 = vector.load %arg4[%c0_4, %c0_5] : memref<4096x512xbf16, #tpu.memory_space<vmem>>, vector<4096x512xbf16>
    %cst = arith.constant dense<0.000000e+00> : vector<2x512xf32>
    %6 = tpu.matmul %4, %5, %cst {dimension_numbers = #tpu.dot_dimension_numbers<[1], [0], [0], [1], [0, 0, 1, 1], [], []>} : vector<2x4096xbf16>, vector<4096x512xbf16>, vector<2x512xf32> -> vector<2x512xf32>
    %7 = arith.addf %3, %6 : vector<2x512xf32>
    %c0_6 = arith.constant 0 : index
    %c0_7 = arith.constant 0 : index
    %8 = vector.load %arg8[%c0_6, %c0_7] : memref<2x512xf32, #tpu.memory_space<vmem>>, vector<2x512xf32>
    tpu.vector_store %arg8[%c0_6, %c0_7], %7 {strides = array<i32>} : memref<2x512xf32, #tpu.memory_space<vmem>>, vector<2x512xf32>,
    %c0_i32_8 = arith.constant 0 : i32
    %9 = arith.cmpi eq, %arg2, %c0_i32_8 : i32
    %10 = arith.extui %9 : i1 to i32
    %c0_i32_9 = arith.constant 0 : i32
    %11 = arith.cmpi ne, %10, %c0_i32_9 : i32
    scf.if %11 {
      %c0_10 = arith.constant 0 : index
      %c0_11 = arith.constant 0 : index
      %12 = vector.load %arg8[%c0_10, %c0_11] : memref<2x512xf32, #tpu.memory_space<vmem>>, vector<2x512xf32>
      %cst_12 = arith.constant dense<0.000000e+00> : vector<512xf32>
      %13 = vector.multi_reduction <add>, %12, %cst_12 [0] : vector<2x512xf32> to vector<512xf32>
      %14 = vector.shape_cast %13 : vector<512xf32> to vector<1x512xf32>
      %cst_13 = arith.constant 2.000000e+00 : f32
      %15 = vector.broadcast %cst_13 : f32 to vector<1x512xf32>
      %16 = arith.divf %14, %15 : vector<1x512xf32>
      %17 = vector.broadcast %16 : vector<1x512xf32> to vector<2x512xf32>
      %18 = arith.subf %12, %17 : vector<2x512xf32>
      %19 = arith.mulf %18, %18 : vector<2x512xf32>
      %cst_14 = arith.constant dense<0.000000e+00> : vector<512xf32>
      %20 = vector.multi_reduction <add>, %19, %cst_14 [0] : vector<2x512xf32> to vector<512xf32>
      %21 = vector.shape_cast %20 : vector<512xf32> to vector<1x512xf32>
      %cst_15 = arith.constant 2.000000e+00 : f32
      %22 = vector.broadcast %cst_15 : f32 to vector<1x512xf32>
      %23 = arith.divf %21, %22 : vector<1x512xf32>
      %c0_16 = arith.constant 0 : index
      %c0_17 = arith.constant 0 : index
      %24 = vector.load %arg5[%c0_16, %c0_17] : memref<1x512xf32, #tpu.memory_space<vmem>>, vector<1x512xf32>
      %cst_18 = arith.constant 9.99999974E-6 : f32
      %25 = vector.broadcast %cst_18 : f32 to vector<1x512xf32>
      %26 = arith.addf %23, %25 : vector<1x512xf32>
      %27 = math.rsqrt %26 : vector<1x512xf32>
      %28 = arith.mulf %24, %27 : vector<1x512xf32>
      %29 = vector.broadcast %28 : vector<1x512xf32> to vector<2x512xf32>
      %30 = arith.mulf %18, %29 : vector<2x512xf32>
      %c0_19 = arith.constant 0 : index
      %c0_20 = arith.constant 0 : index
      %31 = vector.load %arg6[%c0_19, %c0_20] : memref<1x512xf32, #tpu.memory_space<vmem>>, vector<1x512xf32>
      %32 = vector.broadcast %31 : vector<1x512xf32> to vector<2x512xf32>
      %33 = arith.addf %30, %32 : vector<2x512xf32>
      %cst_21 = arith.constant 2.000000e-01 : f32
      %34 = vector.broadcast %cst_21 : f32 to vector<2x512xf32>
      %35 = arith.mulf %34, %33 : vector<2x512xf32>
      %36 = arith.maximumf %33, %35 : vector<2x512xf32>
      %37 = arith.truncf %36 : vector<2x512xf32> to vector<2x512xbf16>
      %c0_22 = arith.constant 0 : index
      %c0_23 = arith.constant 0 : index
      %38 = vector.load %arg7[%c0_22, %c0_23] : memref<2x512xbf16, #tpu.memory_space<vmem>>, vector<2x512xbf16>
      tpu.vector_store %arg7[%c0_22, %c0_23], %37 {strides = array<i32>} : memref<2x512xbf16, #tpu.memory_space<vmem>>, vector<2x512xbf16>,
    } else {
    }
    return
  }
  func.func @transform_0(%arg0: i32, %arg1: i32, %arg2: i32) -> (i32, i32) {
    %c0_i32 = arith.constant 0 : i32
    %c0_i32_0 = arith.constant 0 : i32
    return %c0_i32, %arg2 : i32, i32
  }
  func.func @transform_1(%arg0: i32, %arg1: i32, %arg2: i32) -> (i32, i32) {
    %c0_i32 = arith.constant 0 : i32
    return %arg2, %arg1 : i32, i32
  }
  func.func @transform_2(%arg0: i32, %arg1: i32, %arg2: i32) -> (i32, i32) {
    %c0_i32 = arith.constant 0 : i32
    %c0_i32_0 = arith.constant 0 : i32
    return %c0_i32, %arg1 : i32, i32
  }
  func.func @transform_3(%arg0: i32, %arg1: i32, %arg2: i32) -> (i32, i32) {
    %c0_i32 = arith.constant 0 : i32
    %c0_i32_0 = arith.constant 0 : i32
    return %c0_i32, %arg1 : i32, i32
  }
  func.func @transform_4(%arg0: i32, %arg1: i32, %arg2: i32) -> (i32, i32) {
    %c0_i32 = arith.constant 0 : i32
    %c0_i32_0 = arith.constant 0 : i32
    return %c0_i32, %arg1 : i32, i32
  }
}

module attributes {stable_mosaic.version = 11 : i64} {
  func.func @_mm_bias_act_kernel(%arg0: i32, %arg1: i32, %arg2: i32, %arg3: memref<2x512xbf16, #tpu.memory_space<vmem>>, %arg4: memref<512x128xbf16, #tpu.memory_space<vmem>>, %arg5: memref<1x128xf32, #tpu.memory_space<vmem>>, %arg6: memref<2x128xf32, #tpu.memory_space<vmem>>, %arg7: memref<2x128xf32, #tpu.memory_space<vmem>>) attributes {dimension_semantics = [#tpu.dimension_semantics<parallel>, #tpu.dimension_semantics<parallel>, #tpu.dimension_semantics<arbitrary>], iteration_bounds = array<i64: 1, 1, 1>, scalar_prefetch = 0 : i64, scratch_operands = 1 : i64, tpu.core_type = #tpu.core_type<tc>, window_params = [{transform_indices = @transform_0, window_bounds = array<i64: 2, 512>}, {transform_indices = @transform_1, window_bounds = array<i64: 512, 128>}, {transform_indices = @transform_2, window_bounds = array<i64: 1, 128>}, {transform_indices = @transform_3, window_bounds = array<i64: 2, 128>}]} {
    %c0_i32 = arith.constant 0 : i32
    %0 = arith.cmpi eq, %arg2, %c0_i32 : i32
    %1 = arith.extui %0 : i1 to i32
    %c0_i32_0 = arith.constant 0 : i32
    %2 = arith.cmpi ne, %1, %c0_i32_0 : i32
    scf.if %2 {
      %cst_10 = arith.constant 0.000000e+00 : f32
      %12 = vector.broadcast %cst_10 : f32 to vector<2x128xf32>
      %c0_11 = arith.constant 0 : index
      %c0_12 = arith.constant 0 : index
      %13 = vector.load %arg7[%c0_11, %c0_12] : memref<2x128xf32, #tpu.memory_space<vmem>>, vector<2x128xf32>
      tpu.vector_store %arg7[%c0_11, %c0_12], %12 {strides = array<i32>} : memref<2x128xf32, #tpu.memory_space<vmem>>, vector<2x128xf32>,
    } else {
    }
    %c0 = arith.constant 0 : index
    %c0_1 = arith.constant 0 : index
    %3 = vector.load %arg7[%c0, %c0_1] : memref<2x128xf32, #tpu.memory_space<vmem>>, vector<2x128xf32>
    %c0_2 = arith.constant 0 : index
    %c0_3 = arith.constant 0 : index
    %4 = vector.load %arg3[%c0_2, %c0_3] : memref<2x512xbf16, #tpu.memory_space<vmem>>, vector<2x512xbf16>
    %c0_4 = arith.constant 0 : index
    %c0_5 = arith.constant 0 : index
    %5 = vector.load %arg4[%c0_4, %c0_5] : memref<512x128xbf16, #tpu.memory_space<vmem>>, vector<512x128xbf16>
    %cst = arith.constant dense<0.000000e+00> : vector<2x128xf32>
    %6 = tpu.matmul %4, %5, %cst {dimension_numbers = #tpu.dot_dimension_numbers<[1], [0], [0], [1], [0, 0, 1, 1], [], []>} : vector<2x512xbf16>, vector<512x128xbf16>, vector<2x128xf32> -> vector<2x128xf32>
    %7 = arith.addf %3, %6 : vector<2x128xf32>
    %c0_6 = arith.constant 0 : index
    %c0_7 = arith.constant 0 : index
    %8 = vector.load %arg7[%c0_6, %c0_7] : memref<2x128xf32, #tpu.memory_space<vmem>>, vector<2x128xf32>
    tpu.vector_store %arg7[%c0_6, %c0_7], %7 {strides = array<i32>} : memref<2x128xf32, #tpu.memory_space<vmem>>, vector<2x128xf32>,
    %c0_i32_8 = arith.constant 0 : i32
    %9 = arith.cmpi eq, %arg2, %c0_i32_8 : i32
    %10 = arith.extui %9 : i1 to i32
    %c0_i32_9 = arith.constant 0 : i32
    %11 = arith.cmpi ne, %10, %c0_i32_9 : i32
    scf.if %11 {
      %c0_10 = arith.constant 0 : index
      %c0_11 = arith.constant 0 : index
      %12 = vector.load %arg7[%c0_10, %c0_11] : memref<2x128xf32, #tpu.memory_space<vmem>>, vector<2x128xf32>
      %c0_12 = arith.constant 0 : index
      %c0_13 = arith.constant 0 : index
      %13 = vector.load %arg5[%c0_12, %c0_13] : memref<1x128xf32, #tpu.memory_space<vmem>>, vector<1x128xf32>
      %14 = vector.broadcast %13 : vector<1x128xf32> to vector<2x128xf32>
      %15 = arith.addf %12, %14 : vector<2x128xf32>
      %c0_14 = arith.constant 0 : index
      %c0_15 = arith.constant 0 : index
      %16 = vector.load %arg6[%c0_14, %c0_15] : memref<2x128xf32, #tpu.memory_space<vmem>>, vector<2x128xf32>
      tpu.vector_store %arg6[%c0_14, %c0_15], %15 {strides = array<i32>} : memref<2x128xf32, #tpu.memory_space<vmem>>, vector<2x128xf32>,
    } else {
    }
    return
  }
  func.func @transform_0(%arg0: i32, %arg1: i32, %arg2: i32) -> (i32, i32) {
    %c0_i32 = arith.constant 0 : i32
    return %arg0, %arg2 : i32, i32
  }
  func.func @transform_1(%arg0: i32, %arg1: i32, %arg2: i32) -> (i32, i32) {
    %c0_i32 = arith.constant 0 : i32
    return %arg2, %arg1 : i32, i32
  }
  func.func @transform_2(%arg0: i32, %arg1: i32, %arg2: i32) -> (i32, i32) {
    %c0_i32 = arith.constant 0 : i32
    %c0_i32_0 = arith.constant 0 : i32
    return %c0_i32, %arg1 : i32, i32
  }
  func.func @transform_3(%arg0: i32, %arg1: i32, %arg2: i32) -> (i32, i32) {
    %c0_i32 = arith.constant 0 : i32
    return %arg0, %arg1 : i32, i32
  }
}

</mosaic_0001>

<bundles_post_ra>
// kernel: discriminator_forward.5
= control target key start
LH: loop header
LB: loop body
LE: loop exit
PB: predicated region body
PF: predicated region fallthrough
CT: control target
= control target key end

     0   :  { %8 = vsyncpa [#allocation4], 0  ;;  %s886_s0 = inlined_call_operand.hbm [shape: bf16[128,128], index: 0, kind: input, shape index: {}]   ;;  %s887_s1 = inlined_call_operand.hbm [shape: bf16[128,128], index: 1, kind: input, shape index: {}]   ;;  %s888_s2 = inlined_call_operand.hbm [shape: f32[1,128], index: 2, kind: input, shape index: {}]   ;;  %s889_s3 = inlined_call_operand.hbm [shape: bf16[128,128], index: 3, kind: output, shape index: {}]  }
   0x1   :  { %9 = vsyncpa [#allocation7], 0 }
   0x2   :  { %10 = vsyncpa [#allocation5], 0  ;;  %s796_s12 = smov [#allocation6]   ;;  %s797_s14 = smov [#allocation3]  }
   0x3   :  { %s28_s13 = sshll.u32 %s796_s12, 4  ;;  %s16_s15 = sshll.u32 %s797_s14, 4  ;;  %s29_s13 = int_to_ptr.vmem [resolvable:$true] %s28_s13  ;;  %s822_s15 = int_to_ptr.vmem [resolvable:$true] %s16_s15 }
   0x4   :  { %s702_s18 = scalar_lea.hbm %s887_s1, 1024 }
   0x5   :  { %p703_p0 = scmp.ne.s32.totalorder %s887_s1, %s702_s18  ;;  %p706_p1 = scmp.lt.u32.totalorder %s702_s18, %s887_s1 }
   0x7   :  { %p708_p2 = pnand %p706_p1, %p703_p0 }
   0x9   :  { %711 = shalt.err (!%p708_p2)
}
   0xa   :  { %s712_s23 = scalar_lea.vmem %s29_s13, 1024  ;;  %p717_p4 = scmp.lt.s32.totalorder %s29_s13, %s29_s13 }
   0xb   :  { %p713_p3 = scmp.ne.s32.totalorder %s29_s13, %s712_s23  ;;  %p718_p5 = scmp.lt.s32.totalorder %s712_s23, %s712_s23 }
   0xd   :  { %p719_p6 = por %p718_p5, %p717_p4 }
   0xf   :  { %p720_p7 = pnand %p719_p6, %p713_p3 }
  0x11   :  { %723 = shalt.err (!%p720_p7)
}
  0x12   :  { %s798_s24 = smov 64   ;;  %s799_s25 = smov 4  }
  0x13   :  { %34 = dma.hbm_to_vmem [thread:$0]  %s887_s1, 1024, %s29_s13, [#allocation7], %s798_s24, %s798_s24, %s799_s25  }
  0x14   :  { %s724_s30 = scalar_lea.hbm %s886_s0, 1024 }
  0x15   :  { %p725_p8 = scmp.ne.s32.totalorder %s886_s0, %s724_s30  ;;  %p728_p9 = scmp.lt.u32.totalorder %s724_s30, %s886_s0 }
  0x17   :  { %p730_p10 = pnand %p728_p9, %p725_p8 }
  0x19   :  { %733 = shalt.err (!%p730_p10)
}
  0x1a   :  { %s734_s8 = scalar_lea.vmem %s822_s15, 1024  ;;  %p739_p12 = scmp.lt.s32.totalorder %s822_s15, %s822_s15 }
  0x1b   :  { %p735_p11 = scmp.ne.s32.totalorder %s822_s15, %s734_s8  ;;  %p740_p13 = scmp.lt.s32.totalorder %s734_s8, %s734_s8 }
  0x1d   :  { %p741_p0 = por %p740_p13, %p739_p12 }
  0x1f   :  { %p742_p1 = pnand %p741_p0, %p735_p11 }
  0x21   :  { %745 = shalt.err (!%p742_p1)
}
  0x22   :  { %22 = dma.hbm_to_vmem [thread:$0]  %s886_s0, 1024, %s822_s15, [#allocation4], %s798_s24, %s798_s24, %s799_s25  }
  0x23   :  { %s800_s10 = smov [#allocation8]   ;;  %s746_s14 = scalar_lea.hbm %s888_s2, 16 }
  0x24   :  { %s41_s11 = sshll.u32 %s800_s10, 4  ;;  %p747_p2 = scmp.ne.s32.totalorder %s888_s2, %s746_s14  ;;  %s42_s11 = int_to_ptr.vmem [resolvable:$true] %s41_s11 }
  0x25   :  { %p750_p3 = scmp.lt.u32.totalorder %s746_s14, %s888_s2 }
  0x27   :  { %p752_p4 = pnand %p750_p3, %p747_p2 }
  0x29   :  { %755 = shalt.err (!%p752_p4)
}
  0x2a   :  { %s756_s20 = scalar_lea.vmem %s42_s11, 16  ;;  %s760_s0 = scalar_lea.vmem %s42_s11, 32 }
  0x2b   :  { %p757_p5 = scmp.ne.s32.totalorder %s42_s11, %s756_s20  ;;  %p761_p6 = scmp.lt.s32.totalorder %s42_s11, %s42_s11 }
  0x2c   :  { %p762_p7 = scmp.lt.s32.totalorder %s760_s0, %s756_s20 }
  0x2e   :  { %p763_p8 = por %p762_p7, %p761_p6 }
  0x30   :  { %p764_p9 = pnand %p763_p8, %p757_p5 }
  0x32   :  { %767 = shalt.err (!%p764_p9)
}
  0x33   :  { %44 = dma.hbm_to_vmem [thread:$0]  %s888_s2, 16, %s42_s11, [#allocation7]  }
  0x34   :  { %790 = dma.done.wait [#allocation4], 1024  }
  0x35   :  { %791 = vsyncadd [#allocation4], 4294966272 }
  0x36   :  { %792 = dma.done.wait [#allocation7], 1040  }
  0x37   :  { %793 = vsyncadd [#allocation7], 4294966256  ;;  %v686_v0 = vld [vmem:[#allocation6] sm:$0xff]   ;;  %v687_v1 = vld [vmem:[#allocation6 + $0x8] sm:$0xff]   ;;  %s801_s2 = smov [#allocation9]  }
  0x38   :  { %632 = vmatprep.subr.bf16.mxu0 %v686_v0  ;;  %664 = vmatprep.subr.bf16.mxu1 %v686_v0  ;;  %v688_v2 = vld [vmem:[#allocation6 + $0x10] sm:$0xff]   ;;  %v689_v3 = vld [vmem:[#allocation6 + $0x18] sm:$0xff]   ;;  %v694_v4 = vld [vmem:[#allocation3] sm:$0xff]   ;;  %s507_s22 = sshll.u32 %s801_s2, 4  ;;  %s508_s22 = int_to_ptr.vmem [resolvable:$true] %s507_s22 }
  0x39   :  { %633 = vmatpush3.bf16.msra.mxu0 %v686_v0  ;;  %672 = vmatpush3.bf16.msra.mxu1 %v686_v0  ;;  %v695_v5 = vld [vmem:[#allocation3 + $0x20] sm:$0xff]   ;;  %v691_v7 = vld [vmem:[#allocation6 + $0x28] sm:$0xff]   ;;  %v692_v8 = vld [vmem:[#allocation6 + $0x30] sm:$0xff]   ;;  %s768_s23 = scalar_lea.vmem %s508_s22, 1024  ;;  %p773_p11 = scmp.lt.s32.totalorder %s508_s22, %s508_s22 }
  0x3a   :  { %634 = vmatprep.subr.bf16.mxu0 %v687_v1  ;;  %665 = vmatprep.subr.bf16.mxu1 %v687_v1  ;;  %v690_v6 = vld [vmem:[#allocation6 + $0x20] sm:$0xff]   ;;  %v693_v9 = vld [vmem:[#allocation6 + $0x38] sm:$0xff]   ;;  %v696_v10 = vld [vmem:[#allocation3 + $0x8] sm:$0xff]   ;;  %p769_p10 = scmp.ne.s32.totalorder %s508_s22, %s768_s23  ;;  %p774_p12 = scmp.lt.s32.totalorder %s768_s23, %s768_s23 }
  0x3b   :  { %648 = vmatprep.mubr.bf16.mxu0 %v694_v4  ;;  %656 = vmatprep.mubr.bf16.mxu1 %v695_v5  ;;  %v697_v11 = vld [vmem:[#allocation3 + $0x28] sm:$0xff]   ;;  %v698_v12 = vld [vmem:[#allocation3 + $0x10] sm:$0xff]   ;;  %v700_v14 = vld [vmem:[#allocation3 + $0x18] sm:$0xff]  }
  0x3c   :  { %v699_v13 = vld [vmem:[#allocation3 + $0x30] sm:$0xff]   ;;  %v701_v15 = vld [vmem:[#allocation3 + $0x38] sm:$0xff]   ;;  %v536_v16 = vld [vmem:[#allocation8] ss:$0 sm:$0xff]  ;;  %p775_p13 = por %p774_p12, %p773_p11 }
  0x3d   :  { %635 = vmatpush3.bf16.msra.mxu0 %v687_v1  ;;  %673 = vmatpush3.bf16.msra.mxu1 %v687_v1 }
  0x3e   :  { %636 = vmatprep.subr.bf16.mxu0 %v688_v2  ;;  %666 = vmatprep.subr.bf16.mxu1 %v688_v2  ;;  %p776_p0 = pnand %p775_p13, %p769_p10 }
  0x41   :  { %637 = vmatpush3.bf16.msra.mxu0 %v688_v2  ;;  %674 = vmatpush3.bf16.msra.mxu1 %v688_v2 }
  0x42   :  { %638 = vmatprep.subr.bf16.mxu0 %v689_v3  ;;  %667 = vmatprep.subr.bf16.mxu1 %v689_v3 }
  0x45   :  { %639 = vmatpush3.bf16.msra.mxu0 %v689_v3  ;;  %675 = vmatpush3.bf16.msra.mxu1 %v689_v3 }
  0x46   :  { %640 = vmatprep.subr.bf16.mxu0 %v690_v6  ;;  %668 = vmatprep.subr.bf16.mxu1 %v690_v6 }
  0x49   :  { %641 = vmatpush3.bf16.msra.mxu0 %v690_v6  ;;  %676 = vmatpush3.bf16.msra.mxu1 %v690_v6 }
  0x4a   :  { %642 = vmatprep.subr.bf16.mxu0 %v691_v7  ;;  %669 = vmatprep.subr.bf16.mxu1 %v691_v7 }
  0x4d   :  { %643 = vmatpush3.bf16.msra.mxu0 %v691_v7  ;;  %677 = vmatpush3.bf16.msra.mxu1 %v691_v7 }
  0x4e   :  { %644 = vmatprep.subr.bf16.mxu0 %v692_v8  ;;  %670 = vmatprep.subr.bf16.mxu1 %v692_v8 }
  0x51   :  { %645 = vmatpush3.bf16.msra.mxu0 %v692_v8  ;;  %678 = vmatpush3.bf16.msra.mxu1 %v692_v8 }
  0x52   :  { %646 = vmatprep.subr.bf16.mxu0 %v693_v9  ;;  %671 = vmatprep.subr.bf16.mxu1 %v693_v9 }
  0x55   :  { %647 = vmatpush3.bf16.msra.mxu0 %v693_v9  ;;  %679 = vmatpush3.bf16.msra.mxu1 %v693_v9 }
  0x58   :  { %649 = vmatmul.mubr.bf16.vlgmr.msra.gmra.mrb[0].mxu0 %v696_v10  ;;  %657 = vmatmul.mubr.bf16.vlgmr.msra.gmra.mrb[0].mxu1 %v697_v11 }
  0x59   :  { %652 = vmatprep.mubr.bf16.mxu0 %v698_v12  ;;  %660 = vmatprep.mubr.bf16.mxu1 %v699_v13 }
  0x60   :  { %653 = vmatmul.mubr.bf16.gmra.mrb[4].mxu0 %v700_v14  ;;  %661 = vmatmul.mubr.bf16.gmra.mrb[4].mxu1 %v701_v15 }
 0x12b   :  { %v650_v17 = vpop.f32.mrb[0].mxu0  ;;  %v658_v18 = vpop.f32.mrb[0].mxu1 }
 0x12c   :  { %v376_v19 = vadd.f32 %v650_v17, %v536_v16  ;;  %v384_v20 = vadd.f32 %v658_v18, %v536_v16  ;;  %v253_v21 = vpop.f32.mrb[1].mxu0  ;;  %v285_v22 = vpop.f32.mrb[1].mxu1 }
 0x12d   :  { %v374_v23 = vadd.f32 %v536_v16, %v253_v21  ;;  %v382_v24 = vadd.f32 %v536_v16, %v285_v22  ;;  %v651_v25 = vpop.f32.mrb[2].mxu0  ;;  %v659_v26 = vpop.f32.mrb[2].mxu1 }
 0x12e   :  { %v392_v27 = vmul.f32 0.2, %v376_v19  ;;  %v400_v28 = vmul.f32 0.2, %v384_v20  ;;  %v377_v29 = vadd.f32 %v651_v25, %v536_v16  ;;  %v385_v30 = vadd.f32 %v659_v26, %v536_v16  ;;  %v256_v31 = vpop.f32.mrb[3].mxu0  ;;  %v288_v32 = vpop.f32.mrb[3].mxu1 }
 0x12f   :  { %v390_v33 = vmul.f32 0.2, %v374_v23  ;;  %v398_v34 = vmul.f32 0.2, %v382_v24  ;;  %v375_v35 = vadd.f32 %v536_v16, %v256_v31  ;;  %v383_v36 = vadd.f32 %v536_v16, %v288_v32 }
 0x130   :  { %v393_v37 = vmul.f32 0.2, %v377_v29  ;;  %v401_v38 = vmul.f32 0.2, %v385_v30  ;;  %v408_v41 = vmax.f32 %v376_v19, %v392_v27  ;;  %v416_v42 = vmax.f32 %v384_v20, %v400_v28 }
 0x131   :  { %v391_v39 = vmul.f32 0.2, %v375_v35  ;;  %v399_v40 = vmul.f32 0.2, %v383_v36  ;;  %v406_v45 = vmax.f32 %v374_v23, %v390_v33  ;;  %v414_v46 = vmax.f32 %v382_v24, %v398_v34 }
 0x132   :  { %v409_v43 = vmax.f32 %v377_v29, %v393_v37  ;;  %v417_v44 = vmax.f32 %v385_v30, %v401_v38 }
 0x133   :  { %v407_v47 = vmax.f32 %v375_v35, %v391_v39  ;;  %v415_v48 = vmax.f32 %v383_v36, %v399_v40  ;;  %v654_v49 = vpop.f32.mrb[4].mxu0  ;;  %v662_v50 = vpop.f32.mrb[4].mxu1 }
 0x134   :  { %v577_v51 = vpack.c.bf16 %v409_v43, %v408_v41  ;;  %v597_v52 = vpack.c.bf16 %v417_v44, %v416_v42  ;;  %v380_v53 = vadd.f32 %v654_v49, %v536_v16  ;;  %v388_v54 = vadd.f32 %v662_v50, %v536_v16  ;;  %v269_v55 = vpop.f32.mrb[5].mxu0  ;;  %v301_v56 = vpop.f32.mrb[5].mxu1 }
 0x135   :  { %v572_v57 = vpack.c.bf16 %v407_v47, %v406_v45  ;;  %v592_v58 = vpack.c.bf16 %v415_v48, %v414_v46  ;;  %v378_v59 = vadd.f32 %v536_v16, %v269_v55  ;;  %v386_v60 = vadd.f32 %v536_v16, %v301_v56  ;;  %v655_v61 = vpop.f32.mrb[6].mxu0  ;;  %v663_v62 = vpop.f32.mrb[6].mxu1 }
 0x136   :  { %609 = vst [vmem:[#allocation9 + $0x8] sm:$0xff] %v577_v51   ;;  %613 = vst [vmem:[#allocation9 + $0x28] sm:$0xff] %v597_v52   ;;  %v396_v63 = vmul.f32 0.2, %v380_v53  ;;  %v404_v0 = vmul.f32 0.2, %v388_v54  ;;  %v381_v1 = vadd.f32 %v655_v61, %v536_v16  ;;  %v389_v2 = vadd.f32 %v663_v62, %v536_v16 }
 0x137   :  { %v272_v3 = vpop.f32.mrb[7].mxu0  ;;  %v304_v4 = vpop.f32.mrb[7].mxu1  ;;  %573 = vst [vmem:[#allocation9] sm:$0xff] %v572_v57   ;;  %612 = vst [vmem:[#allocation9 + $0x20] sm:$0xff] %v592_v58   ;;  %v394_v5 = vmul.f32 0.2, %v378_v59 }
 0x138   :  { %v402_v6 = vmul.f32 0.2, %v386_v60  ;;  %v379_v7 = vadd.f32 %v536_v16, %v272_v3  ;;  %v387_v8 = vadd.f32 %v536_v16, %v304_v4  ;;  %v397_v9 = vmul.f32 0.2, %v381_v1 }
 0x139   :  { %v405_v10 = vmul.f32 0.2, %v389_v2  ;;  %v412_v13 = vmax.f32 %v380_v53, %v396_v63  ;;  %v420_v14 = vmax.f32 %v388_v54, %v404_v0  ;;  %v410_v18 = vmax.f32 %v378_v59, %v394_v5 }
 0x13a   :  { %v395_v11 = vmul.f32 0.2, %v379_v7  ;;  %v403_v12 = vmul.f32 0.2, %v387_v8  ;;  %v413_v15 = vmax.f32 %v381_v1, %v397_v9  ;;  %v418_v19 = vmax.f32 %v386_v60, %v402_v6 }
 0x13b   :  { %v421_v17 = vmax.f32 %v389_v2, %v405_v10 }
 0x13c   :  { %v411_v20 = vmax.f32 %v379_v7, %v395_v11  ;;  %v419_v21 = vmax.f32 %v387_v8, %v403_v12  ;;  %v587_v22 = vpack.c.bf16 %v413_v15, %v412_v13 }
 0x13d   :  { %v607_v23 = vpack.c.bf16 %v421_v17, %v420_v14 }
 0x13e   :  { %v582_v24 = vpack.c.bf16 %v411_v20, %v410_v18  ;;  %v602_v25 = vpack.c.bf16 %v419_v21, %v418_v19  ;;  %611 = vst [vmem:[#allocation9 + $0x18] sm:$0xff] %v587_v22  }
 0x13f   :  { %615 = vst [vmem:[#allocation9 + $0x38] sm:$0xff] %v607_v23  }
 0x140   :  { %610 = vst [vmem:[#allocation9 + $0x10] sm:$0xff] %v582_v24   ;;  %614 = vst [vmem:[#allocation9 + $0x30] sm:$0xff] %v602_v25  }
 0x141   :  { %779 = shalt.err (!%p776_p0)
}
 0x142   :  { %s780_s28 = scalar_lea.hbm %s889_s3, 1024 }
 0x143   :  { %p781_p1 = scmp.ne.s32.totalorder %s889_s3, %s780_s28  ;;  %p784_p2 = scmp.lt.u32.totalorder %s780_s28, %s889_s3 }
 0x145   :  { %p786_p3 = pnand %p784_p2, %p781_p1 }
 0x147   :  { %789 = shalt.err (!%p786_p3)
}
 0x148   :  { %513 = dma.vmem_to_hbm [thread:$0]  %s508_s22, 1024, %s889_s3, [#allocation5], %s798_s24, %s798_s24, %s799_s25  }
 0x149   :  { %794 = dma.done.wait [#allocation5], 1024  }
 0x14a   :  { %795 = vsyncadd [#allocation5], 4294966272 }
 0x14b   :  { %517 = vsyncpa [#allocation4], 1 }
 0x14c   :  { %518 = vsyncpa [#allocation7], 1 }
 0x14d   :  { %519 = vsyncpa [#allocation5], 1 }

// kernel: discriminator_forward.6
= control target key start
LH: loop header
LB: loop body
LE: loop exit
PB: predicated region body
PF: predicated region fallthrough
CT: control target
= control target key end

     0   :  { %9 = vsyncpa [#allocation4], 0  ;;  %s2566_s0 = inlined_call_operand.hbm [shape: bf16[32,2048], index: 0, kind: input, shape index: {}]   ;;  %s2567_s1 = inlined_call_operand.hbm [shape: bf16[2048,128], index: 1, kind: input, shape index: {}]   ;;  %s2568_s2 = inlined_call_operand.hbm [shape: f32[1,128], index: 2, kind: input, shape index: {}]   ;;  %s2569_s3 = inlined_call_operand.hbm [shape: f32[1,128], index: 3, kind: input, shape index: {}]   ;;  %s2570_s4 = inlined_call_operand.hbm [shape: bf16[32,128], index: 4, kind: output, shape index: {}]  }
   0x1   :  { %10 = vsyncpa [#allocation7], 0 }
   0x2   :  { %11 = vsyncpa [#allocation10], 0 }
   0x3   :  { %12 = vsyncpa [#allocation5], 0  ;;  %s2466_s15 = smov [#allocation6]   ;;  %s2348_s19 = scalar_lea.hbm %s2567_s1, 16384 }
   0x4   :  { %s30_s16 = sshll.u32 %s2466_s15, 4  ;;  %p2349_p0 = scmp.ne.s32.totalorder %s2567_s1, %s2348_s19  ;;  %s31_s16 = int_to_ptr.vmem [resolvable:$true] %s30_s16 }
   0x5   :  { %p2352_p1 = scmp.lt.u32.totalorder %s2348_s19, %s2567_s1 }
   0x7   :  { %p2354_p2 = pnand %p2352_p1, %p2349_p0 }
   0x9   :  { %2357 = shalt.err (!%p2354_p2)
}
   0xa   :  { %s2358_s24 = scalar_lea.vmem %s31_s16, 16384  ;;  %p2363_p4 = scmp.lt.s32.totalorder %s31_s16, %s31_s16 }
   0xb   :  { %p2359_p3 = scmp.ne.s32.totalorder %s31_s16, %s2358_s24  ;;  %p2364_p5 = scmp.lt.s32.totalorder %s2358_s24, %s2358_s24 }
   0xd   :  { %p2365_p6 = por %p2364_p5, %p2363_p4 }
   0xf   :  { %p2366_p7 = pnand %p2365_p6, %p2359_p3 }
  0x11   :  { %2369 = shalt.err (!%p2366_p7)
}
  0x12   :  { %s2467_s25 = smov 64   ;;  %s2468_s26 = smov 4  }
  0x13   :  { %36 = dma.hbm_to_vmem [thread:$0]  %s2567_s1, 16384, %s31_s16, [#allocation7], %s2467_s25, %s2467_s25, %s2468_s26  }
  0x14   :  { %s2469_s29 = smov [#allocation3]   ;;  %s2370_s7 = scalar_lea.hbm %s2566_s0, 4096 }
  0x15   :  { %s18_s30 = sshll.u32 %s2469_s29, 4  ;;  %p2371_p8 = scmp.ne.s32.totalorder %s2566_s0, %s2370_s7  ;;  %s19_s30 = int_to_ptr.vmem [resolvable:$true] %s18_s30 }
  0x16   :  { %p2374_p9 = scmp.lt.u32.totalorder %s2370_s7, %s2566_s0 }
  0x18   :  { %p2376_p10 = pnand %p2374_p9, %p2371_p8 }
  0x1a   :  { %2379 = shalt.err (!%p2376_p10)
}
  0x1b   :  { %s2380_s12 = scalar_lea.vmem %s19_s30, 4096  ;;  %p2385_p12 = scmp.lt.s32.totalorder %s19_s30, %s19_s30 }
  0x1c   :  { %p2381_p11 = scmp.ne.s32.totalorder %s19_s30, %s2380_s12  ;;  %p2386_p13 = scmp.lt.s32.totalorder %s2380_s12, %s2380_s12 }
  0x1e   :  { %p2387_p0 = por %p2386_p13, %p2385_p12 }
  0x20   :  { %p2388_p1 = pnand %p2387_p0, %p2381_p11 }
  0x22   :  { %2391 = shalt.err (!%p2388_p1)
}
  0x23   :  { %s2470_s1 = smov 1024   ;;  %s2471_s15 = smov [#allocation8]  }
  0x24   :  { %24 = dma.hbm_to_vmem [thread:$0]  %s2566_s0, 4096, %s19_s30, [#allocation4], %s2470_s1, %s2470_s1, %s2467_s25  }
  0x25   :  { %s43_s16 = sshll.u32 %s2471_s15, 4  ;;  %s2472_s17 = smov [#allocation9]   ;;  %s44_s16 = int_to_ptr.vmem [resolvable:$true] %s43_s16 }
  0x26   :  { %s53_s18 = sshll.u32 %s2472_s17, 4  ;;  %s2392_s21 = scalar_lea.hbm %s2568_s2, 16  ;;  %s54_s18 = int_to_ptr.vmem [resolvable:$true] %s53_s18 }
  0x27   :  { %p2393_p2 = scmp.ne.s32.totalorder %s2568_s2, %s2392_s21  ;;  %p2396_p3 = scmp.lt.u32.totalorder %s2392_s21, %s2568_s2 }
  0x29   :  { %p2398_p4 = pnand %p2396_p3, %p2393_p2 }
  0x2b   :  { %2401 = shalt.err (!%p2398_p4)
}
  0x2c   :  { %s2402_s0 = scalar_lea.vmem %s44_s16, 16  ;;  %s2406_s28 = scalar_lea.vmem %s44_s16, 32 }
  0x2d   :  { %p2403_p5 = scmp.ne.s32.totalorder %s44_s16, %s2402_s0  ;;  %p2407_p6 = scmp.lt.s32.totalorder %s44_s16, %s44_s16 }
  0x2e   :  { %p2408_p7 = scmp.lt.s32.totalorder %s2406_s28, %s2402_s0 }
  0x30   :  { %p2409_p8 = por %p2408_p7, %p2407_p6 }
  0x32   :  { %p2410_p9 = pnand %p2409_p8, %p2403_p5 }
  0x34   :  { %2413 = shalt.err (!%p2410_p9)
}
  0x35   :  { %46 = dma.hbm_to_vmem [thread:$0]  %s2568_s2, 16, %s44_s16, [#allocation7]  }
  0x36   :  { %s2414_s7 = scalar_lea.hbm %s2569_s3, 16 }
  0x37   :  { %p2415_p10 = scmp.ne.s32.totalorder %s2569_s3, %s2414_s7  ;;  %p2418_p11 = scmp.lt.u32.totalorder %s2414_s7, %s2569_s3 }
  0x39   :  { %p2420_p12 = pnand %p2418_p11, %p2415_p10 }
  0x3b   :  { %2423 = shalt.err (!%p2420_p12)
}
  0x3c   :  { %s2424_s12 = scalar_lea.vmem %s54_s18, 16  ;;  %s2428_s1 = scalar_lea.vmem %s54_s18, 32 }
  0x3d   :  { %p2425_p13 = scmp.ne.s32.totalorder %s54_s18, %s2424_s12  ;;  %p2429_p0 = scmp.lt.s32.totalorder %s54_s18, %s54_s18 }
  0x3e   :  { %p2430_p1 = scmp.lt.s32.totalorder %s2428_s1, %s2424_s12 }
  0x40   :  { %p2431_p2 = por %p2430_p1, %p2429_p0 }
  0x42   :  { %p2432_p3 = pnand %p2431_p2, %p2425_p13 }
  0x44   :  { %2435 = shalt.err (!%p2432_p3)
}
  0x45   :  { %56 = dma.hbm_to_vmem [thread:$0]  %s2569_s3, 16, %s54_s18, [#allocation10]  }
  0x46   :  { %2458 = dma.done.wait [#allocation4], 4096  }
  0x47   :  { %2459 = vsyncadd [#allocation4], 4294963200 }
  0x48   :  { %2460 = dma.done.wait [#allocation7], 16400  }
  0x49   :  { %2461 = vsyncadd [#allocation7], 4294950896 }
  0x4a   :  { %2462 = dma.done.wait [#allocation10], 16  }
  0x4b   :  { %2463 = vsyncadd [#allocation10], 4294967280  ;;  %v2218_v0 = vld [vmem:[#allocation6 + $0x40] sm:$0xff]   ;;  %v2222_v4 = vld [vmem:[#allocation6 + $0x48] sm:$0xff]   ;;  %s2473_s3 = smov [#allocation11]  }
  0x4c   :  { %v2219_v1 = vld [vmem:[#allocation6 + $0xc0] sm:$0xff]   ;;  %1986 = vmatprep.subr.bf16.mxu0 %v2218_v0  ;;  %v2223_v5 = vld [vmem:[#allocation6 + $0xc8] sm:$0xff]   ;;  %v2226_v8 = vld [vmem:[#allocation6 + $0x50] sm:$0xff]   ;;  %s1792_s14 = sshll.u32 %s2473_s3, 4  ;;  %s1793_s14 = int_to_ptr.vmem [resolvable:$true] %s1792_s14 }
  0x4d   :  { %v2220_v2 = vld [vmem:[#allocation6] sm:$0xff]   ;;  %2014 = vmatprep.subr.bf16.mxu1 %v2219_v1  ;;  %v2224_v6 = vld [vmem:[#allocation6 + $0x8] sm:$0xff]   ;;  %v2227_v9 = vld [vmem:[#allocation6 + $0xd0] sm:$0xff]   ;;  %s2436_s15 = scalar_lea.vmem %s1793_s14, 256  ;;  %p2441_p5 = scmp.lt.s32.totalorder %s1793_s14, %s1793_s14 }
  0x4e   :  { %v2221_v3 = vld [vmem:[#allocation6 + $0x80] sm:$0xff]   ;;  %1987 = vmatpush3.bf16.msra.mxu0 %v2220_v2  ;;  %v2225_v7 = vld [vmem:[#allocation6 + $0x88] sm:$0xff]   ;;  %v2228_v10 = vld [vmem:[#allocation6 + $0x10] sm:$0xff]   ;;  %p2437_p4 = scmp.ne.s32.totalorder %s1793_s14, %s2436_s15  ;;  %p2442_p6 = scmp.lt.s32.totalorder %s2436_s15, %s2436_s15 }
  0x4f   :  { %2015 = vmatpush3.bf16.msra.mxu1 %v2221_v3  ;;  %1988 = vmatprep.subr.bf16.mxu0 %v2222_v4  ;;  %v2229_v11 = vld [vmem:[#allocation6 + $0x90] sm:$0xff]   ;;  %v2230_v12 = vld [vmem:[#allocation6 + $0x58] sm:$0xff]   ;;  %v2234_v16 = vld [vmem:[#allocation6 + $0x60] sm:$0xff]  }
  0x50   :  { %2016 = vmatprep.subr.bf16.mxu1 %v2223_v5  ;;  %v2231_v13 = vld [vmem:[#allocation6 + $0xd8] sm:$0xff]   ;;  %v2235_v17 = vld [vmem:[#allocation6 + $0xe0] sm:$0xff]   ;;  %v2238_v20 = vld [vmem:[#allocation6 + $0x68] sm:$0xff]   ;;  %p2443_p7 = por %p2442_p6, %p2441_p5 }
  0x51   :  { %v2232_v14 = vld [vmem:[#allocation6 + $0x18] sm:$0xff]   ;;  %v2236_v18 = vld [vmem:[#allocation6 + $0x20] sm:$0xff]   ;;  %v2239_v21 = vld [vmem:[#allocation6 + $0xe8] sm:$0xff]  }
  0x52   :  { %1989 = vmatpush3.bf16.msra.mxu0 %v2224_v6  ;;  %v2233_v15 = vld [vmem:[#allocation6 + $0x98] sm:$0xff]   ;;  %v2237_v19 = vld [vmem:[#allocation6 + $0xa0] sm:$0xff]   ;;  %v2240_v22 = vld [vmem:[#allocation6 + $0x28] sm:$0xff]   ;;  %p2444_p8 = pnand %p2443_p7, %p2437_p4 }
  0x53   :  { %2017 = vmatpush3.bf16.msra.mxu1 %v2225_v7  ;;  %1990 = vmatprep.subr.bf16.mxu0 %v2226_v8  ;;  %v2241_v23 = vld [vmem:[#allocation6 + $0xa8] sm:$0xff]   ;;  %v2242_v24 = vld [vmem:[#allocation6 + $0x70] sm:$0xff]   ;;  %v2246_v28 = vld [vmem:[#allocation6 + $0x78] sm:$0xff]  }
  0x54   :  { %2018 = vmatprep.subr.bf16.mxu1 %v2227_v9  ;;  %v2243_v25 = vld [vmem:[#allocation6 + $0xf0] sm:$0xff]   ;;  %v2247_v29 = vld [vmem:[#allocation6 + $0xf8] sm:$0xff]   ;;  %v82_v32 = vld [vmem:[#allocation3] sm:$0xff] }
  0x55   :  { %v2244_v26 = vld [vmem:[#allocation6 + $0x30] sm:$0xff]   ;;  %v2248_v30 = vld [vmem:[#allocation6 + $0x38] sm:$0xff]   ;;  %v90_v33 = vld [vmem:[#allocation3 + $0x40] sm:$0xff] }
  0x56   :  { %1991 = vmatpush3.bf16.msra.mxu0 %v2228_v10  ;;  %v2245_v27 = vld [vmem:[#allocation6 + $0xb0] sm:$0xff]   ;;  %v2249_v31 = vld [vmem:[#allocation6 + $0xb8] sm:$0xff]   ;;  %v83_v34 = vld [vmem:[#allocation3 + $0x8] sm:$0xff]  ;;  %v1806_v35 = vcombine.low %v82_v32, %v90_v33  ;;  %v1807_v36 = vcombine.high %v82_v32, %v90_v33 }
  0x57   :  { %2019 = vmatpush3.bf16.msra.mxu1 %v2229_v11  ;;  %1992 = vmatprep.subr.bf16.mxu0 %v2230_v12  ;;  %v91_v37 = vld [vmem:[#allocation3 + $0x48] sm:$0xff]  ;;  %v2250_v40 = vld [vmem:[#allocation6 + $0x140] sm:$0xff]   ;;  %v2258_v48 = vld [vmem:[#allocation6 + $0x150] sm:$0xff]  }
  0x58   :  { %2020 = vmatprep.subr.bf16.mxu1 %v2231_v13  ;;  %v1808_v38 = vcombine.low %v83_v34, %v91_v37  ;;  %v1809_v39 = vcombine.high %v83_v34, %v91_v37  ;;  %1330 = vmatprep.mubr.bf16.mxu0 %v1807_v36  ;;  %v2251_v41 = vld [vmem:[#allocation6 + $0x1c0] sm:$0xff]   ;;  %v2254_v44 = vld [vmem:[#allocation6 + $0x148] sm:$0xff]   ;;  %v2259_v49 = vld [vmem:[#allocation6 + $0x1d0] sm:$0xff]  }
  0x59   :  { %v2252_v42 = vld [vmem:[#allocation6 + $0x100] sm:$0xff]   ;;  %v2255_v45 = vld [vmem:[#allocation6 + $0x1c8] sm:$0xff]   ;;  %v2260_v50 = vld [vmem:[#allocation6 + $0x110] sm:$0xff]  }
  0x5a   :  { %1993 = vmatpush3.bf16.msra.mxu0 %v2232_v14  ;;  %1379 = vmatprep.mubr.bf16.mxu1 %v1809_v39  ;;  %v2253_v43 = vld [vmem:[#allocation6 + $0x180] sm:$0xff]   ;;  %v2256_v46 = vld [vmem:[#allocation6 + $0x108] sm:$0xff]   ;;  %v2261_v51 = vld [vmem:[#allocation6 + $0x190] sm:$0xff]  }
  0x5b   :  { %2021 = vmatpush3.bf16.msra.mxu1 %v2233_v15  ;;  %1994 = vmatprep.subr.bf16.mxu0 %v2234_v16  ;;  %v2257_v47 = vld [vmem:[#allocation6 + $0x188] sm:$0xff]   ;;  %v2262_v52 = vld [vmem:[#allocation6 + $0x158] sm:$0xff]   ;;  %v2266_v56 = vld [vmem:[#allocation6 + $0x160] sm:$0xff]  }
  0x5c   :  { %2022 = vmatprep.subr.bf16.mxu1 %v2235_v17  ;;  %v2263_v53 = vld [vmem:[#allocation6 + $0x1d8] sm:$0xff]   ;;  %v2267_v57 = vld [vmem:[#allocation6 + $0x1e0] sm:$0xff]   ;;  %v2270_v60 = vld [vmem:[#allocation6 + $0x168] sm:$0xff]  }
  0x5d   :  { %v2264_v54 = vld [vmem:[#allocation6 + $0x118] sm:$0xff]   ;;  %v2268_v58 = vld [vmem:[#allocation6 + $0x120] sm:$0xff]   ;;  %v2271_v61 = vld [vmem:[#allocation6 + $0x1e8] sm:$0xff]  }
  0x5e   :  { %1995 = vmatpush3.bf16.msra.mxu0 %v2236_v18  ;;  %v2265_v55 = vld [vmem:[#allocation6 + $0x198] sm:$0xff]   ;;  %v2269_v59 = vld [vmem:[#allocation6 + $0x1a0] sm:$0xff]   ;;  %v99_v1 = vld [vmem:[#allocation3 + $0x88] sm:$0xff] }
  0x5f   :  { %2023 = vmatpush3.bf16.msra.mxu1 %v2237_v19  ;;  %1996 = vmatprep.subr.bf16.mxu0 %v2238_v20  ;;  %v98_v62 = vld [vmem:[#allocation3 + $0x80] sm:$0xff]  ;;  %v107_v2 = vld [vmem:[#allocation3 + $0xc8] sm:$0xff]  ;;  %v2274_v8 = vld [vmem:[#allocation6 + $0x170] sm:$0xff]  }
  0x60   :  { %2024 = vmatprep.subr.bf16.mxu1 %v2239_v21  ;;  %v106_v63 = vld [vmem:[#allocation3 + $0xc0] sm:$0xff]  ;;  %v1825_v4 = vcombine.high %v99_v1, %v107_v2  ;;  %v2272_v5 = vld [vmem:[#allocation6 + $0x128] sm:$0xff]   ;;  %v1824_v6 = vcombine.low %v99_v1, %v107_v2  ;;  %v2275_v9 = vld [vmem:[#allocation6 + $0x1f0] sm:$0xff]  }
  0x61   :  { %v1823_v0 = vcombine.high %v98_v62, %v106_v63  ;;  %v1822_v3 = vcombine.low %v98_v62, %v106_v63  ;;  %v2273_v7 = vld [vmem:[#allocation6 + $0x1a8] sm:$0xff]   ;;  %v2276_v10 = vld [vmem:[#allocation6 + $0x130] sm:$0xff]   ;;  %v2278_v12 = vld [vmem:[#allocation6 + $0x178] sm:$0xff]  }
  0x62   :  { %1997 = vmatpush3.bf16.msra.mxu0 %v2240_v22  ;;  %v2277_v11 = vld [vmem:[#allocation6 + $0x1b0] sm:$0xff]   ;;  %v2279_v13 = vld [vmem:[#allocation6 + $0x1f8] sm:$0xff]   ;;  %v94_v1 = vld [vmem:[#allocation3 + $0x60] sm:$0xff] }
  0x63   :  { %2025 = vmatpush3.bf16.msra.mxu1 %v2241_v23  ;;  %1998 = vmatprep.subr.bf16.mxu0 %v2242_v24  ;;  %v2280_v14 = vld [vmem:[#allocation6 + $0x138] sm:$0xff]   ;;  %v84_v16 = vld [vmem:[#allocation3 + $0x10] sm:$0xff]  ;;  %v2282_v24 = vld [vmem:[#allocation6 + $0x240] sm:$0xff]  }
  0x64   :  { %2026 = vmatprep.subr.bf16.mxu1 %v2243_v25  ;;  %v2281_v15 = vld [vmem:[#allocation6 + $0x1b8] sm:$0xff]   ;;  %v92_v17 = vld [vmem:[#allocation3 + $0x50] sm:$0xff]  ;;  %v2283_v25 = vld [vmem:[#allocation6 + $0x2c0] sm:$0xff]  }
  0x65   :  { %v85_v18 = vld [vmem:[#allocation3 + $0x18] sm:$0xff]  ;;  %v1810_v20 = vcombine.low %v84_v16, %v92_v17  ;;  %v1811_v21 = vcombine.high %v84_v16, %v92_v17  ;;  %v100_v32 = vld [vmem:[#allocation3 + $0x90] sm:$0xff]  ;;  %v102_v16 = vld [vmem:[#allocation3 + $0xa0] sm:$0xff] }
  0x66   :  { %1999 = vmatpush3.bf16.msra.mxu0 %v2244_v26  ;;  %v93_v19 = vld [vmem:[#allocation3 + $0x58] sm:$0xff]  ;;  %v2284_v26 = vld [vmem:[#allocation6 + $0x200] sm:$0xff]   ;;  %v108_v33 = vld [vmem:[#allocation3 + $0xd0] sm:$0xff] }
  0x67   :  { %2027 = vmatpush3.bf16.msra.mxu1 %v2245_v27  ;;  %2000 = vmatprep.subr.bf16.mxu0 %v2246_v28  ;;  %v1812_v22 = vcombine.low %v85_v18, %v93_v19  ;;  %v1813_v23 = vcombine.high %v85_v18, %v93_v19  ;;  %v2285_v27 = vld [vmem:[#allocation6 + $0x280] sm:$0xff]   ;;  %v2286_v28 = vld [vmem:[#allocation6 + $0x248] sm:$0xff]   ;;  %v1827_v34 = vcombine.high %v100_v32, %v108_v33  ;;  %v2290_v36 = vld [vmem:[#allocation6 + $0x250] sm:$0xff]  }
  0x68   :  { %2028 = vmatprep.subr.bf16.mxu1 %v2247_v29  ;;  %v2287_v29 = vld [vmem:[#allocation6 + $0x2c8] sm:$0xff]   ;;  %v2291_v37 = vld [vmem:[#allocation6 + $0x2d0] sm:$0xff]   ;;  %v109_v39 = vld [vmem:[#allocation3 + $0xd8] sm:$0xff] }
  0x69   :  { %v2312_v62 = vld [vmem:[#allocation6 + $0x238] sm:$0xff]   ;;  %v110_v17 = vld [vmem:[#allocation3 + $0xe0] sm:$0xff] }
  0x6a   :  { %2001 = vmatpush3.bf16.msra.mxu0 %v2248_v30  ;;  %v2288_v30 = vld [vmem:[#allocation6 + $0x208] sm:$0xff]   ;;  %v2313_v63 = vld [vmem:[#allocation6 + $0x2b8] sm:$0xff]   ;;  %v1831_v18 = vcombine.high %v102_v16, %v110_v17  ;;  %v1830_v19 = vcombine.low %v102_v16, %v110_v17 }
  0x6b   :  { %2029 = vmatpush3.bf16.msra.mxu1 %v2249_v31  ;;  %2042 = vmatprep.subr.bf16.mxu0 %v2250_v40  ;;  %v2289_v31 = vld [vmem:[#allocation6 + $0x288] sm:$0xff]  }
  0x6c   :  { %2070 = vmatprep.subr.bf16.mxu1 %v2251_v41  ;;  %v2292_v41 = vld [vmem:[#allocation6 + $0x210] sm:$0xff]  }
  0x6d   :  { %1331 = vmatmul.mubr.bf16.vlgmr.msra.gmra.mrb[0].mxu0 %v1806_v35  ;;  %v1826_v35 = vcombine.low %v100_v32, %v108_v33  ;;  %v2330_v32 = vld [vmem:[#allocation6 + $0x360] sm:$0xff]  }
  0x6e   :  { %1380 = vmatmul.mubr.bf16.vlgmr.msra.gmra.mrb[0].mxu1 %v1808_v38  ;;  %2043 = vmatpush3.bf16.msra.mxu0 %v2252_v42  ;;  %v101_v38 = vld [vmem:[#allocation3 + $0x98] sm:$0xff]  ;;  %v2331_v33 = vld [vmem:[#allocation6 + $0x3e0] sm:$0xff]  }
  0x6f   :  { %2071 = vmatpush3.bf16.msra.mxu1 %v2253_v43  ;;  %2044 = vmatprep.subr.bf16.mxu0 %v2254_v44  ;;  %v1829_v40 = vcombine.high %v101_v38, %v109_v39  ;;  %v1828_v42 = vcombine.low %v101_v38, %v109_v39  ;;  %v2293_v43 = vld [vmem:[#allocation6 + $0x290] sm:$0xff]   ;;  %v2294_v44 = vld [vmem:[#allocation6 + $0x258] sm:$0xff]   ;;  %v2336_v38 = vld [vmem:[#allocation6 + $0x328] sm:$0xff]  }
  0x70   :  { %2072 = vmatprep.subr.bf16.mxu1 %v2255_v45  ;;  %1338 = vmatprep.mubr.bf16.mxu0 %v1823_v0  ;;  %v2295_v45 = vld [vmem:[#allocation6 + $0x2d8] sm:$0xff]   ;;  %v86_v0 = vld [vmem:[#allocation3 + $0x20] sm:$0xff]  ;;  %v2337_v39 = vld [vmem:[#allocation6 + $0x3a8] sm:$0xff]  }
  0x71   :  { %1387 = vmatprep.mubr.bf16.mxu1 %v1825_v4  ;;  %v1814_v2 = vcombine.low %v86_v0, %v94_v1  ;;  %v87_v4 = vld [vmem:[#allocation3 + $0x28] sm:$0xff] }
  0x72   :  { %2045 = vmatpush3.bf16.msra.mxu0 %v2256_v46  ;;  %v2296_v46 = vld [vmem:[#allocation6 + $0x218] sm:$0xff]  }
  0x73   :  { %2073 = vmatpush3.bf16.msra.mxu1 %v2257_v47  ;;  %2046 = vmatprep.subr.bf16.mxu0 %v2258_v48  ;;  %v2297_v47 = vld [vmem:[#allocation6 + $0x298] sm:$0xff]   ;;  %v2298_v48 = vld [vmem:[#allocation6 + $0x260] sm:$0xff]  }
  0x74   :  { %2074 = vmatprep.subr.bf16.mxu1 %v2259_v49  ;;  %v2299_v49 = vld [vmem:[#allocation6 + $0x2e0] sm:$0xff]  }
  0x75   :  { %1339 = vmatmul.mubr.bf16.gmra.mrb[4].mxu0 %v1822_v3  ;;  %v1815_v3 = vcombine.high %v86_v0, %v94_v1 }
  0x76   :  { %2047 = vmatpush3.bf16.msra.mxu0 %v2260_v50  ;;  %1388 = vmatmul.mubr.bf16.gmra.mrb[4].mxu1 %v1824_v6  ;;  %v2300_v50 = vld [vmem:[#allocation6 + $0x220] sm:$0xff]  }
  0x77   :  { %2075 = vmatpush3.bf16.msra.mxu1 %v2261_v51  ;;  %2048 = vmatprep.subr.bf16.mxu0 %v2262_v52  ;;  %v2301_v51 = vld [vmem:[#allocation6 + $0x2a0] sm:$0xff]   ;;  %v2302_v52 = vld [vmem:[#allocation6 + $0x268] sm:$0xff]  }
  0x78   :  { %2076 = vmatprep.subr.bf16.mxu1 %v2263_v53  ;;  %1428 = vmatprep.mubr.bf16.mxu0 %v1811_v21  ;;  %v2303_v53 = vld [vmem:[#allocation6 + $0x2e8] sm:$0xff]   ;;  %v2323_v21 = vld [vmem:[#allocation6 + $0x3d0] sm:$0xff]  }
  0x79   :  { %1477 = vmatprep.mubr.bf16.mxu1 %v1813_v23  ;;  %v111_v23 = vld [vmem:[#allocation3 + $0xe8] sm:$0xff] }
  0x7a   :  { %2049 = vmatpush3.bf16.msra.mxu0 %v2264_v54  ;;  %v2304_v54 = vld [vmem:[#allocation6 + $0x228] sm:$0xff]  }
  0x7b   :  { %2077 = vmatpush3.bf16.msra.mxu1 %v2265_v55  ;;  %2050 = vmatprep.subr.bf16.mxu0 %v2266_v56  ;;  %v2305_v55 = vld [vmem:[#allocation6 + $0x2a8] sm:$0xff]   ;;  %v2306_v56 = vld [vmem:[#allocation6 + $0x270] sm:$0xff]  }
  0x7c   :  { %2078 = vmatprep.subr.bf16.mxu1 %v2267_v57  ;;  %v2307_v57 = vld [vmem:[#allocation6 + $0x2f0] sm:$0xff]  }
  0x7e   :  { %2051 = vmatpush3.bf16.msra.mxu0 %v2268_v58  ;;  %v2308_v58 = vld [vmem:[#allocation6 + $0x230] sm:$0xff]  }
  0x7f   :  { %2079 = vmatpush3.bf16.msra.mxu1 %v2269_v59  ;;  %2052 = vmatprep.subr.bf16.mxu0 %v2270_v60  ;;  %v2309_v59 = vld [vmem:[#allocation6 + $0x2b0] sm:$0xff]   ;;  %v2310_v60 = vld [vmem:[#allocation6 + $0x278] sm:$0xff]  }
  0x80   :  { %2080 = vmatprep.subr.bf16.mxu1 %v2271_v61  ;;  %v2311_v61 = vld [vmem:[#allocation6 + $0x2f8] sm:$0xff]  }
  0x82   :  { %2053 = vmatpush3.bf16.msra.mxu0 %v2272_v5  ;;  %v95_v5 = vld [vmem:[#allocation3 + $0x68] sm:$0xff] }
  0x83   :  { %2081 = vmatpush3.bf16.msra.mxu1 %v2273_v7  ;;  %2054 = vmatprep.subr.bf16.mxu0 %v2274_v8  ;;  %v1816_v6 = vcombine.low %v87_v4, %v95_v5  ;;  %v1817_v7 = vcombine.high %v87_v4, %v95_v5  ;;  %v2314_v8 = vld [vmem:[#allocation6 + $0x340] sm:$0xff]  }
  0x84   :  { %2082 = vmatprep.subr.bf16.mxu1 %v2275_v9  ;;  %v2315_v9 = vld [vmem:[#allocation6 + $0x3c0] sm:$0xff]  }
  0x86   :  { %2055 = vmatpush3.bf16.msra.mxu0 %v2276_v10  ;;  %v2316_v10 = vld [vmem:[#allocation6 + $0x300] sm:$0xff]  }
  0x87   :  { %2083 = vmatpush3.bf16.msra.mxu1 %v2277_v11  ;;  %2056 = vmatprep.subr.bf16.mxu0 %v2278_v12  ;;  %v2317_v11 = vld [vmem:[#allocation6 + $0x380] sm:$0xff]   ;;  %v2318_v12 = vld [vmem:[#allocation6 + $0x348] sm:$0xff]  }
  0x88   :  { %2084 = vmatprep.subr.bf16.mxu1 %v2279_v13  ;;  %v2319_v13 = vld [vmem:[#allocation6 + $0x3c8] sm:$0xff]  }
  0x8a   :  { %2057 = vmatpush3.bf16.msra.mxu0 %v2280_v14  ;;  %v2320_v14 = vld [vmem:[#allocation6 + $0x308] sm:$0xff]  }
  0x8b   :  { %2085 = vmatpush3.bf16.msra.mxu1 %v2281_v15  ;;  %2098 = vmatprep.subr.bf16.mxu0 %v2282_v24  ;;  %v2321_v15 = vld [vmem:[#allocation6 + $0x388] sm:$0xff]  }
  0x8c   :  { %2126 = vmatprep.subr.bf16.mxu1 %v2283_v25  ;;  %v2324_v25 = vld [vmem:[#allocation6 + $0x310] sm:$0xff]  }
  0x8d   :  { %1429 = vmatmul.mubr.bf16.vlgmr.msra.gmra.mrb[8].mxu0 %v1810_v20  ;;  %v2322_v20 = vld [vmem:[#allocation6 + $0x350] sm:$0xff]  }
  0x8e   :  { %1478 = vmatmul.mubr.bf16.vlgmr.msra.gmra.mrb[8].mxu1 %v1812_v22  ;;  %2099 = vmatpush3.bf16.msra.mxu0 %v2284_v26  ;;  %v103_v22 = vld [vmem:[#allocation3 + $0xa8] sm:$0xff] }
  0x8f   :  { %2127 = vmatpush3.bf16.msra.mxu1 %v2285_v27  ;;  %2100 = vmatprep.subr.bf16.mxu0 %v2286_v28  ;;  %v1833_v24 = vcombine.high %v103_v22, %v111_v23  ;;  %v1832_v26 = vcombine.low %v103_v22, %v111_v23  ;;  %v2325_v27 = vld [vmem:[#allocation6 + $0x390] sm:$0xff]   ;;  %v2326_v28 = vld [vmem:[#allocation6 + $0x358] sm:$0xff]  }
  0x90   :  { %2128 = vmatprep.subr.bf16.mxu1 %v2287_v29  ;;  %1436 = vmatprep.mubr.bf16.mxu0 %v1827_v34  ;;  %v2327_v29 = vld [vmem:[#allocation6 + $0x3d8] sm:$0xff]   ;;  %v2332_v34 = vld [vmem:[#allocation6 + $0x320] sm:$0xff]  }
  0x91   :  { %1485 = vmatprep.mubr.bf16.mxu1 %v1829_v40  ;;  %v2338_v40 = vld [vmem:[#allocation6 + $0x370] sm:$0xff]  }
  0x92   :  { %2101 = vmatpush3.bf16.msra.mxu0 %v2288_v30  ;;  %v2328_v30 = vld [vmem:[#allocation6 + $0x318] sm:$0xff]  }
  0x93   :  { %2129 = vmatpush3.bf16.msra.mxu1 %v2289_v31  ;;  %2102 = vmatprep.subr.bf16.mxu0 %v2290_v36  ;;  %v2329_v31 = vld [vmem:[#allocation6 + $0x398] sm:$0xff]   ;;  %v2334_v36 = vld [vmem:[#allocation6 + $0x368] sm:$0xff]  }
  0x94   :  { %2130 = vmatprep.subr.bf16.mxu1 %v2291_v37  ;;  %v2335_v37 = vld [vmem:[#allocation6 + $0x3e8] sm:$0xff]  }
  0x95   :  { %1437 = vmatmul.mubr.bf16.gmra.mrb[12].mxu0 %v1826_v35  ;;  %v2333_v35 = vld [vmem:[#allocation6 + $0x3a0] sm:$0xff]  }
  0x96   :  { %2103 = vmatpush3.bf16.msra.mxu0 %v2292_v41  ;;  %1486 = vmatmul.mubr.bf16.gmra.mrb[12].mxu1 %v1828_v42  ;;  %v2339_v41 = vld [vmem:[#allocation6 + $0x3f0] sm:$0xff]  }
  0x97   :  { %2131 = vmatpush3.bf16.msra.mxu1 %v2293_v43  ;;  %2104 = vmatprep.subr.bf16.mxu0 %v2294_v44  ;;  %v2340_v42 = vld [vmem:[#allocation6 + $0x330] sm:$0xff]   ;;  %v2342_v44 = vld [vmem:[#allocation6 + $0x378] sm:$0xff]  }
  0x98   :  { %2132 = vmatprep.subr.bf16.mxu1 %v2295_v45  ;;  %1526 = vmatprep.mubr.bf16.mxu0 %v1815_v3  ;;  %v2341_v43 = vld [vmem:[#allocation6 + $0x3b0] sm:$0xff]   ;;  %v2343_v45 = vld [vmem:[#allocation6 + $0x3f8] sm:$0xff]  }
  0x99   :  { %1575 = vmatprep.mubr.bf16.mxu1 %v1817_v7 }
  0x9a   :  { %2105 = vmatpush3.bf16.msra.mxu0 %v2296_v46  ;;  %v2344_v46 = vld [vmem:[#allocation6 + $0x338] sm:$0xff]  }
  0x9b   :  { %2133 = vmatpush3.bf16.msra.mxu1 %v2297_v47  ;;  %2106 = vmatprep.subr.bf16.mxu0 %v2298_v48  ;;  %v2345_v47 = vld [vmem:[#allocation6 + $0x3b8] sm:$0xff]   ;;  %v88_v48 = vld [vmem:[#allocation3 + $0x30] sm:$0xff] }
  0x9c   :  { %2134 = vmatprep.subr.bf16.mxu1 %v2299_v49  ;;  %v96_v49 = vld [vmem:[#allocation3 + $0x70] sm:$0xff] }
  0x9e   :  { %2107 = vmatpush3.bf16.msra.mxu0 %v2300_v50  ;;  %v89_v50 = vld [vmem:[#allocation3 + $0x38] sm:$0xff] }
  0x9f   :  { %2135 = vmatpush3.bf16.msra.mxu1 %v2301_v51  ;;  %2108 = vmatprep.subr.bf16.mxu0 %v2302_v52  ;;  %v1818_v51 = vcombine.low %v88_v48, %v96_v49  ;;  %v1819_v52 = vcombine.high %v88_v48, %v96_v49 }
  0xa0   :  { %2136 = vmatprep.subr.bf16.mxu1 %v2303_v53  ;;  %v97_v53 = vld [vmem:[#allocation3 + $0x78] sm:$0xff] }
  0xa2   :  { %2109 = vmatpush3.bf16.msra.mxu0 %v2304_v54  ;;  %v104_v54 = vld [vmem:[#allocation3 + $0xb0] sm:$0xff] }
  0xa3   :  { %2137 = vmatpush3.bf16.msra.mxu1 %v2305_v55  ;;  %2110 = vmatprep.subr.bf16.mxu0 %v2306_v56  ;;  %v112_v55 = vld [vmem:[#allocation3 + $0xf0] sm:$0xff]  ;;  %v1820_v56 = vcombine.low %v89_v50, %v97_v53 }
  0xa4   :  { %2138 = vmatprep.subr.bf16.mxu1 %v2307_v57  ;;  %v1821_v57 = vcombine.high %v89_v50, %v97_v53 }
  0xa6   :  { %2111 = vmatpush3.bf16.msra.mxu0 %v2308_v58  ;;  %v1835_v58 = vcombine.high %v104_v54, %v112_v55 }
  0xa7   :  { %2139 = vmatpush3.bf16.msra.mxu1 %v2309_v59  ;;  %2112 = vmatprep.subr.bf16.mxu0 %v2310_v60  ;;  %v105_v59 = vld [vmem:[#allocation3 + $0xb8] sm:$0xff] }
  0xa8   :  { %2140 = vmatprep.subr.bf16.mxu1 %v2311_v61  ;;  %v113_v60 = vld [vmem:[#allocation3 + $0xf8] sm:$0xff] }
  0xa9   :  { %v1837_v61 = vcombine.high %v105_v59, %v113_v60 }
  0xaa   :  { %2113 = vmatpush3.bf16.msra.mxu0 %v2312_v62  ;;  %v1834_v62 = vcombine.low %v104_v54, %v112_v55 }
  0xab   :  { %2141 = vmatpush3.bf16.msra.mxu1 %v2313_v63  ;;  %2154 = vmatprep.subr.bf16.mxu0 %v2314_v8  ;;  %v1836_v63 = vcombine.low %v105_v59, %v113_v60 }
  0xac   :  { %2182 = vmatprep.subr.bf16.mxu1 %v2315_v9 }
  0xad   :  { %1527 = vmatmul.mubr.bf16.vlgmr.msra.gmra.mrb[16].mxu0 %v1814_v2 }
  0xae   :  { %1576 = vmatmul.mubr.bf16.vlgmr.msra.gmra.mrb[16].mxu1 %v1816_v6  ;;  %2155 = vmatpush3.bf16.msra.mxu0 %v2316_v10 }
  0xaf   :  { %2183 = vmatpush3.bf16.msra.mxu1 %v2317_v11  ;;  %2156 = vmatprep.subr.bf16.mxu0 %v2318_v12 }
  0xb0   :  { %2184 = vmatprep.subr.bf16.mxu1 %v2319_v13  ;;  %1534 = vmatprep.mubr.bf16.mxu0 %v1831_v18 }
  0xb1   :  { %1583 = vmatprep.mubr.bf16.mxu1 %v1833_v24 }
  0xb2   :  { %2157 = vmatpush3.bf16.msra.mxu0 %v2320_v14 }
  0xb3   :  { %2185 = vmatpush3.bf16.msra.mxu1 %v2321_v15  ;;  %2158 = vmatprep.subr.bf16.mxu0 %v2322_v20 }
  0xb4   :  { %2186 = vmatprep.subr.bf16.mxu1 %v2323_v21 }
  0xb5   :  { %1535 = vmatmul.mubr.bf16.gmra.mrb[20].mxu0 %v1830_v19 }
  0xb6   :  { %2159 = vmatpush3.bf16.msra.mxu0 %v2324_v25  ;;  %1584 = vmatmul.mubr.bf16.gmra.mrb[20].mxu1 %v1832_v26 }
  0xb7   :  { %2187 = vmatpush3.bf16.msra.mxu1 %v2325_v27  ;;  %2160 = vmatprep.subr.bf16.mxu0 %v2326_v28 }
  0xb8   :  { %2188 = vmatprep.subr.bf16.mxu1 %v2327_v29  ;;  %1624 = vmatprep.mubr.bf16.mxu0 %v1819_v52 }
  0xb9   :  { %1673 = vmatprep.mubr.bf16.mxu1 %v1821_v57 }
  0xba   :  { %2161 = vmatpush3.bf16.msra.mxu0 %v2328_v30 }
  0xbb   :  { %2189 = vmatpush3.bf16.msra.mxu1 %v2329_v31  ;;  %2162 = vmatprep.subr.bf16.mxu0 %v2330_v32 }
  0xbc   :  { %2190 = vmatprep.subr.bf16.mxu1 %v2331_v33 }
  0xbe   :  { %2163 = vmatpush3.bf16.msra.mxu0 %v2332_v34 }
  0xbf   :  { %2191 = vmatpush3.bf16.msra.mxu1 %v2333_v35  ;;  %2164 = vmatprep.subr.bf16.mxu0 %v2334_v36 }
  0xc0   :  { %2192 = vmatprep.subr.bf16.mxu1 %v2335_v37 }
  0xc2   :  { %2165 = vmatpush3.bf16.msra.mxu0 %v2336_v38 }
  0xc3   :  { %2193 = vmatpush3.bf16.msra.mxu1 %v2337_v39  ;;  %2166 = vmatprep.subr.bf16.mxu0 %v2338_v40 }
  0xc4   :  { %2194 = vmatprep.subr.bf16.mxu1 %v2339_v41 }
  0xc6   :  { %2167 = vmatpush3.bf16.msra.mxu0 %v2340_v42 }
  0xc7   :  { %2195 = vmatpush3.bf16.msra.mxu1 %v2341_v43  ;;  %2168 = vmatprep.subr.bf16.mxu0 %v2342_v44 }
  0xc8   :  { %2196 = vmatprep.subr.bf16.mxu1 %v2343_v45 }
  0xca   :  { %2169 = vmatpush3.bf16.msra.mxu0 %v2344_v46 }
  0xcb   :  { %2197 = vmatpush3.bf16.msra.mxu1 %v2345_v47 }
  0xcd   :  { %1625 = vmatmul.mubr.bf16.vlgmr.msra.gmra.mrb[24].mxu0 %v1818_v51 }
  0xce   :  { %1674 = vmatmul.mubr.bf16.vlgmr.msra.gmra.mrb[24].mxu1 %v1820_v56  ;;  %1632 = vmatprep.mubr.bf16.mxu0 %v1835_v58 }
  0xcf   :  { %1681 = vmatprep.mubr.bf16.mxu1 %v1837_v61 }
  0xd5   :  { %1633 = vmatmul.mubr.bf16.gmra.mrb[28].mxu0 %v1834_v62 }
  0xd6   :  { %1682 = vmatmul.mubr.bf16.gmra.mrb[28].mxu1 %v1836_v63 }
 0x140   :  { %v2002_v0 = vpop.f32.mrb[0].mxu0 }
 0x141   :  { %v2030_v1 = vpop.f32.mrb[0].mxu1  ;;  %v2003_v2 = vpop.f32.mrb[1].mxu0 }
 0x142   :  { %v2004_v3 = vadd.f32 %v2003_v2, %v2002_v0  ;;  %v2031_v4 = vpop.f32.mrb[1].mxu1  ;;  %v2005_v5 = vpop.f32.mrb[2].mxu0 }
 0x143   :  { %v2032_v6 = vadd.f32 %v2031_v4, %v2030_v1  ;;  %v2033_v7 = vpop.f32.mrb[2].mxu1  ;;  %v2006_v8 = vpop.f32.mrb[3].mxu0 }
 0x144   :  { %v2007_v9 = vadd.f32 %v2006_v8, %v2005_v5  ;;  %v2034_v10 = vpop.f32.mrb[3].mxu1 }
 0x145   :  { %v1382_v11 = vadd.f32 %v2032_v6, %v2004_v3  ;;  %v2035_v12 = vadd.f32 %v2034_v10, %v2033_v7 }
 0x147   :  { %v1385_v13 = vadd.f32 %v2035_v12, %v2007_v9 }
 0x148   :  { %v2008_v14 = vpop.f32.mrb[4].mxu0 }
 0x149   :  { %v2036_v15 = vpop.f32.mrb[4].mxu1  ;;  %v2009_v16 = vpop.f32.mrb[5].mxu0 }
 0x14a   :  { %v2010_v17 = vadd.f32 %v2009_v16, %v2008_v14  ;;  %v2037_v18 = vpop.f32.mrb[5].mxu1  ;;  %v2011_v19 = vpop.f32.mrb[6].mxu0 }
 0x14b   :  { %v2038_v20 = vadd.f32 %v2037_v18, %v2036_v15  ;;  %v2039_v21 = vpop.f32.mrb[6].mxu1  ;;  %v2012_v22 = vpop.f32.mrb[7].mxu0 }
 0x14c   :  { %v2013_v23 = vadd.f32 %v2012_v22, %v2011_v19  ;;  %v2040_v24 = vpop.f32.mrb[7].mxu1 }
 0x14d   :  { %v1390_v25 = vadd.f32 %v2038_v20, %v2010_v17  ;;  %v2041_v26 = vadd.f32 %v2040_v24, %v2039_v21 }
 0x14f   :  { %v1393_v27 = vadd.f32 %v2041_v26, %v2013_v23 }
 0x160   :  { %v2058_v28 = vpop.f32.mrb[8].mxu0 }
 0x161   :  { %v2086_v29 = vpop.f32.mrb[8].mxu1  ;;  %v2059_v30 = vpop.f32.mrb[9].mxu0 }
 0x162   :  { %v2087_v31 = vpop.f32.mrb[9].mxu1  ;;  %v2060_v32 = vadd.f32 %v2059_v30, %v2058_v28  ;;  %v2061_v34 = vpop.f32.mrb[10].mxu0 }
 0x163   :  { %v2088_v33 = vadd.f32 %v2087_v31, %v2086_v29  ;;  %v2089_v35 = vpop.f32.mrb[10].mxu1  ;;  %v2062_v36 = vpop.f32.mrb[11].mxu0 }
 0x164   :  { %v2090_v37 = vpop.f32.mrb[11].mxu1  ;;  %v1431_v38 = vadd.f32 %v2060_v32, %v1382_v11  ;;  %v2063_v39 = vadd.f32 %v2062_v36, %v2061_v34 }
 0x165   :  { %v2091_v40 = vadd.f32 %v2090_v37, %v2089_v35 }
 0x166   :  { %v1480_v41 = vadd.f32 %v2088_v33, %v1431_v38  ;;  %v1434_v42 = vadd.f32 %v2063_v39, %v1385_v13 }
 0x168   :  { %v1483_v43 = vadd.f32 %v2091_v40, %v1434_v42  ;;  %v2064_v44 = vpop.f32.mrb[12].mxu0 }
 0x169   :  { %v2065_v45 = vpop.f32.mrb[13].mxu0  ;;  %v2092_v50 = vpop.f32.mrb[12].mxu1 }
 0x16a   :  { %v2066_v46 = vadd.f32 %v2065_v45, %v2064_v44  ;;  %v2067_v47 = vpop.f32.mrb[14].mxu0  ;;  %v2093_v52 = vpop.f32.mrb[13].mxu1 }
 0x16b   :  { %v2068_v48 = vpop.f32.mrb[15].mxu0  ;;  %v2094_v54 = vadd.f32 %v2093_v52, %v2092_v50  ;;  %v2095_v55 = vpop.f32.mrb[14].mxu1 }
 0x16c   :  { %v1439_v49 = vadd.f32 %v2066_v46, %v1390_v25  ;;  %v2069_v51 = vadd.f32 %v2068_v48, %v2067_v47  ;;  %v2096_v56 = vpop.f32.mrb[15].mxu1 }
 0x16d   :  { %v2097_v58 = vadd.f32 %v2096_v56, %v2095_v55 }
 0x16e   :  { %v1442_v53 = vadd.f32 %v2069_v51, %v1393_v27  ;;  %v1488_v57 = vadd.f32 %v2094_v54, %v1439_v49 }
 0x170   :  { %v1491_v59 = vadd.f32 %v2097_v58, %v1442_v53 }
 0x180   :  { %v2114_v60 = vpop.f32.mrb[16].mxu0 }
 0x181   :  { %v2142_v61 = vpop.f32.mrb[16].mxu1  ;;  %v2115_v62 = vpop.f32.mrb[17].mxu0 }
 0x182   :  { %v2116_v63 = vadd.f32 %v2115_v62, %v2114_v60  ;;  %v2143_v0 = vpop.f32.mrb[17].mxu1  ;;  %v2117_v1 = vpop.f32.mrb[18].mxu0 }
 0x183   :  { %v2144_v2 = vadd.f32 %v2143_v0, %v2142_v61  ;;  %v2145_v3 = vpop.f32.mrb[18].mxu1  ;;  %v2118_v4 = vpop.f32.mrb[19].mxu0 }
 0x184   :  { %v1529_v5 = vadd.f32 %v2116_v63, %v1480_v41  ;;  %v2119_v6 = vadd.f32 %v2118_v4, %v2117_v1  ;;  %v2146_v7 = vpop.f32.mrb[19].mxu1 }
 0x185   :  { %v2147_v8 = vadd.f32 %v2146_v7, %v2145_v3 }
 0x186   :  { %v1578_v9 = vadd.f32 %v2144_v2, %v1529_v5  ;;  %v1532_v10 = vadd.f32 %v2119_v6, %v1483_v43 }
 0x188   :  { %v1581_v11 = vadd.f32 %v2147_v8, %v1532_v10  ;;  %v2120_v12 = vpop.f32.mrb[20].mxu0 }
 0x189   :  { %v2121_v13 = vpop.f32.mrb[21].mxu0  ;;  %v2148_v16 = vpop.f32.mrb[20].mxu1 }
 0x18a   :  { %v2122_v14 = vadd.f32 %v2121_v13, %v2120_v12  ;;  %v2123_v15 = vpop.f32.mrb[22].mxu0  ;;  %v2149_v20 = vpop.f32.mrb[21].mxu1 }
 0x18b   :  { %v2124_v17 = vpop.f32.mrb[23].mxu0  ;;  %v2150_v21 = vadd.f32 %v2149_v20, %v2148_v16  ;;  %v2151_v22 = vpop.f32.mrb[22].mxu1 }
 0x18c   :  { %v1537_v18 = vadd.f32 %v2122_v14, %v1488_v57  ;;  %v2125_v19 = vadd.f32 %v2124_v17, %v2123_v15  ;;  %v2152_v24 = vpop.f32.mrb[23].mxu1 }
 0x18d   :  { %v2153_v26 = vadd.f32 %v2152_v24, %v2151_v22 }
 0x18e   :  { %v1540_v23 = vadd.f32 %v2125_v19, %v1491_v59  ;;  %v1586_v25 = vadd.f32 %v2150_v21, %v1537_v18 }
 0x190   :  { %v1589_v27 = vadd.f32 %v2153_v26, %v1540_v23 }
 0x1a0   :  { %v2170_v28 = vpop.f32.mrb[24].mxu0 }
 0x1a1   :  { %v2198_v29 = vpop.f32.mrb[24].mxu1  ;;  %v2171_v30 = vpop.f32.mrb[25].mxu0 }
 0x1a2   :  { %v2172_v31 = vadd.f32 %v2171_v30, %v2170_v28  ;;  %v2199_v32 = vpop.f32.mrb[25].mxu1  ;;  %v2173_v33 = vpop.f32.mrb[26].mxu0 }
 0x1a3   :  { %v2200_v34 = vadd.f32 %v2199_v32, %v2198_v29  ;;  %v2201_v35 = vpop.f32.mrb[26].mxu1  ;;  %v2174_v36 = vpop.f32.mrb[27].mxu0  ;;  %v1966_v32 = vld [vmem:[#allocation9] ss:$0 sm:$0xff] }
 0x1a4   :  { %v1627_v37 = vadd.f32 %v2172_v31, %v1578_v9  ;;  %v2175_v38 = vadd.f32 %v2174_v36, %v2173_v33  ;;  %v2202_v39 = vpop.f32.mrb[27].mxu1 }
 0x1a5   :  { %v2203_v40 = vadd.f32 %v2202_v39, %v2201_v35 }
 0x1a6   :  { %v1676_v41 = vadd.f32 %v2200_v34, %v1627_v37  ;;  %v1630_v42 = vadd.f32 %v2175_v38, %v1581_v11 }
 0x1a8   :  { %v1679_v43 = vadd.f32 %v2203_v40, %v1630_v42  ;;  %v2176_v44 = vpop.f32.mrb[28].mxu0 }
 0x1a9   :  { %v2204_v45 = vpop.f32.mrb[28].mxu1  ;;  %v2177_v46 = vpop.f32.mrb[29].mxu0 }
 0x1aa   :  { %v1705_v47 = vadd.f32 %v1679_v43, %v1676_v41  ;;  %v2178_v48 = vadd.f32 %v2177_v46, %v2176_v44  ;;  %v2205_v49 = vpop.f32.mrb[29].mxu1  ;;  %v2179_v50 = vpop.f32.mrb[30].mxu0 }
 0x1ab   :  { %v2206_v51 = vadd.f32 %v2205_v49, %v2204_v45  ;;  %v2207_v52 = vpop.f32.mrb[30].mxu1  ;;  %v2180_v53 = vpop.f32.mrb[31].mxu0 }
 0x1ac   :  { %v1635_v54 = vadd.f32 %v2178_v48, %v1586_v25  ;;  %v2181_v55 = vadd.f32 %v2180_v53, %v2179_v50  ;;  %v2208_v56 = vpop.f32.mrb[31].mxu1  ;;  %v1739_v25 = vlaneseq }
 0x1ad   :  { %v2209_v57 = vadd.f32 %v2208_v56, %v2207_v52 }
 0x1ae   :  { %v1684_v58 = vadd.f32 %v2206_v51, %v1635_v54  ;;  %v1638_v59 = vadd.f32 %v2181_v55, %v1589_v27  ;;  %v1740_v26 = vshrl.u32 %v1739_v25, 7  ;;  %v1734_v27 = vld [vmem:[#allocation8] sm:$0x1] }
 0x1b0   :  { %v1706_v60 = vadd.f32 %v1705_v47, %v1684_v58  ;;  %v1687_v61 = vadd.f32 %v2209_v57, %v1638_v59  ;;  %v1741_v28 = vsub.s32 0, %v1740_v26 }
 0x1b2   :  { %v1707_v62 = vadd.f32 %v1706_v60, %v1687_v61 }
 0x1b4   :  { %v1708_v63 = vrot.slane %v1707_v62, 4 }
 0x1b6   :  { %v1709_v0 = vadd.f32 %v1708_v63, %v1707_v62 }
 0x1b8   :  { %v1710_v1 = vrot.slane %v1709_v0, 2 }
 0x1ba   :  { %v1711_v2 = vadd.f32 %v1710_v1, %v1709_v0 }
 0x1bc   :  { %v1712_v3 = vrot.slane %v1711_v2, 1 }
 0x1be   :  { %v1713_v4 = vadd.f32 %v1712_v3, %v1711_v2 }
 0x1c0   :  { %v1715_v5 = vmul.f32 0.03125, %v1713_v4 }
 0x1c2   :  { %v1716_v6 = vsub.f32 %v1676_v41, %v1715_v5  ;;  %v1717_v7 = vsub.f32 %v1679_v43, %v1715_v5  ;;  %v1718_v8 = vsub.f32 %v1684_v58, %v1715_v5  ;;  %v1719_v9 = vsub.f32 %v1687_v61, %v1715_v5 }
 0x1c4   :  { %v1720_v10 = vmul.f32 %v1716_v6, %v1716_v6  ;;  %v1721_v11 = vmul.f32 %v1717_v7, %v1717_v7  ;;  %v1722_v12 = vmul.f32 %v1718_v8, %v1718_v8  ;;  %v1723_v14 = vmul.f32 %v1719_v9, %v1719_v9 }
 0x1c6   :  { %v1724_v13 = vadd.f32 %v1721_v11, %v1720_v10 }
 0x1c8   :  { %v1725_v15 = vadd.f32 %v1724_v13, %v1722_v12 }
 0x1ca   :  { %v1726_v16 = vadd.f32 %v1725_v15, %v1723_v14 }
 0x1cc   :  { %v1727_v17 = vrot.slane %v1726_v16, 4 }
 0x1ce   :  { %v1728_v18 = vadd.f32 %v1727_v17, %v1726_v16 }
 0x1d0   :  { %v1729_v19 = vrot.slane %v1728_v18, 2 }
 0x1d2   :  { %v1730_v20 = vadd.f32 %v1729_v19, %v1728_v18 }
 0x1d4   :  { %v1731_v21 = vrot.slane %v1730_v20, 1 }
 0x1d6   :  { %v1732_v22 = vadd.f32 %v1731_v21, %v1730_v20 }
 0x1d8   :  { %v1733_v23 = vmul.f32 0.03125, %v1732_v22 }
 0x1da   :  { %v1735_v24 = vadd.f32 1e-05, %v1733_v23 }
 0x1dc   :  { %2346 = vrsqrt.f32 %v1735_v24 }
 0x1e6   :  { %v2347_v29 = vpop.eup %2346 }
 0x1e7   :  { %v1737_v30 = vmul.f32 %v2347_v29, %v1734_v27 }
 0x1e9   :  { %v1742_v31 = vrot.slane %v1737_v30, %v1741_v28 }
 0x1eb   :  { %v1747_v33 = vmul.f32 %v1742_v31, %v1719_v9  ;;  %v1744_v34 = vmul.f32 %v1742_v31, %v1716_v6  ;;  %v1745_v35 = vmul.f32 %v1742_v31, %v1717_v7  ;;  %v1746_v36 = vmul.f32 %v1742_v31, %v1718_v8 }
 0x1ed   :  { %v1758_v37 = vadd.f32 %v1966_v32, %v1747_v33  ;;  %v1755_v38 = vadd.f32 %v1966_v32, %v1744_v34  ;;  %v1756_v39 = vadd.f32 %v1966_v32, %v1745_v35  ;;  %v1757_v40 = vadd.f32 %v1966_v32, %v1746_v36 }
 0x1ef   :  { %v1759_v41 = vmul.f32 0.2, %v1755_v38  ;;  %v1760_v42 = vmul.f32 0.2, %v1756_v39  ;;  %v1761_v43 = vmul.f32 0.2, %v1757_v40 }
 0x1f0   :  { %v1762_v44 = vmul.f32 0.2, %v1758_v37 }
 0x1f1   :  { %v1763_v45 = vmax.f32 %v1755_v38, %v1759_v41  ;;  %v1764_v46 = vmax.f32 %v1756_v39, %v1760_v42  ;;  %v1765_v47 = vmax.f32 %v1757_v40, %v1761_v43 }
 0x1f2   :  { %v1766_v48 = vmax.f32 %v1758_v37, %v1762_v44 }
 0x1f3   :  { %v1978_v49 = vpack.c.bf16 %v1764_v46, %v1763_v45 }
 0x1f4   :  { %v1983_v50 = vpack.c.bf16 %v1766_v48, %v1765_v47 }
 0x1f5   :  { %1979 = vst [vmem:[#allocation11] sm:$0xff] %v1978_v49  }
 0x1f6   :  { %1985 = vst [vmem:[#allocation11 + $0x8] sm:$0xff] %v1983_v50  }
 0x1f7   :  { %2447 = shalt.err (!%p2444_p8)
}
 0x1f8   :  { %s2448_s18 = scalar_lea.hbm %s2570_s4, 256 }
 0x1f9   :  { %p2449_p9 = scmp.ne.s32.totalorder %s2570_s4, %s2448_s18  ;;  %p2452_p10 = scmp.lt.u32.totalorder %s2448_s18, %s2570_s4 }
 0x1fb   :  { %p2454_p11 = pnand %p2452_p10, %p2449_p9 }
 0x1fd   :  { %2457 = shalt.err (!%p2454_p11)
}
 0x1fe   :  { %1798 = dma.vmem_to_hbm [thread:$0]  %s1793_s14, 256, %s2570_s4, [#allocation5], %s2467_s25, %s2467_s25, %s2468_s26  }
 0x1ff   :  { %2464 = dma.done.wait [#allocation5], 256  }
 0x200   :  { %2465 = vsyncadd [#allocation5], 4294967040 }
 0x201   :  { %1802 = vsyncpa [#allocation4], 1 }
 0x202   :  { %1803 = vsyncpa [#allocation7], 1 }
 0x203   :  { %1804 = vsyncpa [#allocation10], 1 }
 0x204   :  { %1805 = vsyncpa [#allocation5], 1 }

// kernel: discriminator_forward.7
= control target key start
LH: loop header
LB: loop body
LE: loop exit
PB: predicated region body
PF: predicated region fallthrough
CT: control target
= control target key end

     0   :  { %9 = vsyncpa [#allocation4], 0  ;;  %s3085_s0 = inlined_call_operand.hbm [shape: bf16[8,2048], index: 0, kind: input, shape index: {}]   ;;  %s3086_s1 = inlined_call_operand.hbm [shape: bf16[2048,256], index: 1, kind: input, shape index: {}]   ;;  %s3087_s2 = inlined_call_operand.hbm [shape: f32[1,256], index: 2, kind: input, shape index: {}]   ;;  %s3088_s3 = inlined_call_operand.hbm [shape: f32[1,256], index: 3, kind: input, shape index: {}]   ;;  %s3089_s4 = inlined_call_operand.hbm [shape: bf16[8,256], index: 4, kind: output, shape index: {}]  }
   0x1   :  { %10 = vsyncpa [#allocation7], 0 }
   0x2   :  { %11 = vsyncpa [#allocation10], 0 }
   0x3   :  { %12 = vsyncpa [#allocation5], 0  ;;  %s2956_s15 = smov [#allocation6]   ;;  %s2838_s19 = scalar_lea.hbm %s3086_s1, 32768 }
   0x4   :  { %s28_s16 = sshll.u32 %s2956_s15, 4  ;;  %p2839_p0 = scmp.ne.s32.totalorder %s3086_s1, %s2838_s19  ;;  %s29_s16 = int_to_ptr.vmem [resolvable:$true] %s28_s16 }
   0x5   :  { %p2842_p1 = scmp.lt.u32.totalorder %s2838_s19, %s3086_s1 }
   0x7   :  { %p2844_p2 = pnand %p2842_p1, %p2839_p0 }
   0x9   :  { %2847 = shalt.err (!%p2844_p2)
}
   0xa   :  { %s2848_s24 = scalar_lea.vmem %s29_s16, 32768  ;;  %p2853_p4 = scmp.lt.s32.totalorder %s29_s16, %s29_s16 }
   0xb   :  { %p2849_p3 = scmp.ne.s32.totalorder %s29_s16, %s2848_s24  ;;  %p2854_p5 = scmp.lt.s32.totalorder %s2848_s24, %s2848_s24 }
   0xd   :  { %p2855_p6 = por %p2854_p5, %p2853_p4 }
   0xf   :  { %p2856_p7 = pnand %p2855_p6, %p2849_p3 }
  0x11   :  { %2859 = shalt.err (!%p2856_p7)
}
  0x12   :  { %s2957_s25 = smov 128   ;;  %s2958_s26 = smov 8  }
  0x13   :  { %34 = dma.hbm_to_vmem [thread:$0]  %s3086_s1, 32768, %s29_s16, [#allocation7], %s2957_s25, %s2957_s25, %s2958_s26  }
  0x14   :  { %s2959_s29 = smov [#allocation3]   ;;  %s2960_s5 = smov [#allocation8]  }
  0x15   :  { %s19_s30 = sshll.u32 %s2959_s29, 4  ;;  %s41_s6 = sshll.u32 %s2960_s5, 4  ;;  %s20_s30 = int_to_ptr.vmem [resolvable:$true] %s19_s30  ;;  %s42_s6 = int_to_ptr.vmem [resolvable:$true] %s41_s6 }
  0x16   :  { %s2860_s9 = scalar_lea.hbm %s3085_s0, 1024 }
  0x17   :  { %p2861_p8 = scmp.ne.s32.totalorder %s3085_s0, %s2860_s9  ;;  %p2864_p9 = scmp.lt.u32.totalorder %s2860_s9, %s3085_s0 }
  0x19   :  { %p2866_p10 = pnand %p2864_p9, %p2861_p8 }
  0x1b   :  { %2869 = shalt.err (!%p2866_p10)
}
  0x1c   :  { %s2870_s1 = scalar_lea.vmem %s20_s30, 1024  ;;  %p2875_p12 = scmp.lt.s32.totalorder %s20_s30, %s20_s30 }
  0x1d   :  { %p2871_p11 = scmp.ne.s32.totalorder %s20_s30, %s2870_s1  ;;  %p2876_p13 = scmp.lt.s32.totalorder %s2870_s1, %s2870_s1 }
  0x1f   :  { %p2877_p0 = por %p2876_p13, %p2875_p12 }
  0x21   :  { %p2878_p1 = pnand %p2877_p0, %p2871_p11 }
  0x23   :  { %2881 = shalt.err (!%p2878_p1)
}
  0x24   :  { %22 = dma.hbm_to_vmem [thread:$0]  %s3085_s0, 1024, %s20_s30, [#allocation4]  }
  0x25   :  { %s2882_s18 = scalar_lea.hbm %s3087_s2, 32 }
  0x26   :  { %p2883_p2 = scmp.ne.s32.totalorder %s3087_s2, %s2882_s18  ;;  %p2886_p3 = scmp.lt.u32.totalorder %s2882_s18, %s3087_s2 }
  0x28   :  { %p2888_p4 = pnand %p2886_p3, %p2883_p2 }
  0x2a   :  { %2891 = shalt.err (!%p2888_p4)
}
  0x2b   :  { %s2892_s23 = scalar_lea.vmem %s42_s6, 32  ;;  %p2897_p6 = scmp.lt.s32.totalorder %s42_s6, %s42_s6 }
  0x2c   :  { %p2893_p5 = scmp.ne.s32.totalorder %s42_s6, %s2892_s23  ;;  %p2898_p7 = scmp.lt.s32.totalorder %s2892_s23, %s2892_s23 }
  0x2e   :  { %p2899_p8 = por %p2898_p7, %p2897_p6 }
  0x30   :  { %p2900_p9 = pnand %p2899_p8, %p2893_p5 }
  0x32   :  { %2903 = shalt.err (!%p2900_p9)
}
  0x33   :  { %44 = dma.hbm_to_vmem [thread:$0]  %s3087_s2, 32, %s42_s6, [#allocation7]  }
  0x34   :  { %s2961_s25 = smov [#allocation9]   ;;  %s2904_s29 = scalar_lea.hbm %s3088_s3, 32 }
  0x35   :  { %s51_s26 = sshll.u32 %s2961_s25, 4  ;;  %p2905_p10 = scmp.ne.s32.totalorder %s3088_s3, %s2904_s29  ;;  %s52_s26 = int_to_ptr.vmem [resolvable:$true] %s51_s26 }
  0x36   :  { %p2908_p11 = scmp.lt.u32.totalorder %s2904_s29, %s3088_s3 }
  0x38   :  { %p2910_p12 = pnand %p2908_p11, %p2905_p10 }
  0x3a   :  { %2913 = shalt.err (!%p2910_p12)
}
  0x3b   :  { %s2914_s9 = scalar_lea.vmem %s52_s26, 32  ;;  %p2919_p0 = scmp.lt.s32.totalorder %s52_s26, %s52_s26 }
  0x3c   :  { %p2915_p13 = scmp.ne.s32.totalorder %s52_s26, %s2914_s9  ;;  %p2920_p1 = scmp.lt.s32.totalorder %s2914_s9, %s2914_s9 }
  0x3e   :  { %p2921_p2 = por %p2920_p1, %p2919_p0 }
  0x40   :  { %p2922_p3 = pnand %p2921_p2, %p2915_p13 }
  0x42   :  { %2925 = shalt.err (!%p2922_p3)
}
  0x43   :  { %54 = dma.hbm_to_vmem [thread:$0]  %s3088_s3, 32, %s52_s26, [#allocation10]  }
  0x44   :  { %2948 = dma.done.wait [#allocation4], 1024  }
  0x45   :  { %2949 = vsyncadd [#allocation4], 4294966272 }
  0x46   :  { %2950 = dma.done.wait [#allocation7], 32800  }
  0x47   :  { %2951 = vsyncadd [#allocation7], 4294934496 }
  0x48   :  { %2952 = dma.done.wait [#allocation10], 32  }
  0x49   :  { %2953 = vsyncadd [#allocation10], 4294967264  ;;  %v2434_v0 = vld [vmem:[#allocation6 + $0x4] ss:$8 sps:$4 sm:$0xff]   ;;  %v2438_v2 = vld [vmem:[#allocation6] ss:$8 sps:$4 sm:$0xff]  }
  0x4a   :  { %v2436_v1 = vld [vmem:[#allocation6 + $0x404] ss:$8 sps:$4 sm:$0xff]   ;;  %1675 = vmatprep.subr.bf16.mxu1 %v2434_v0  ;;  %v2439_v3 = vld [vmem:[#allocation6 + $0x400] ss:$8 sps:$4 sm:$0xff]   ;;  %v2440_v4 = vld [vmem:[#allocation6 + $0x14] ss:$8 sps:$4 sm:$0xff]  }
  0x4b   :  { %1839 = vmatprep.subr.bf16.mxu0 %v2436_v1  ;;  %1676 = vmatpush1.bf16.msra.mxu1 %v2438_v2  ;;  %v2442_v5 = vld [vmem:[#allocation6 + $0x414] ss:$8 sps:$4 sm:$0xff]   ;;  %v2444_v6 = vld [vmem:[#allocation6 + $0x10] ss:$8 sps:$4 sm:$0xff]   ;;  %v2446_v8 = vld [vmem:[#allocation6 + $0x24] ss:$8 sps:$4 sm:$0xff]  }
  0x4c   :  { %1840 = vmatpush1.bf16.msra.mxu0 %v2439_v3  ;;  %1677 = vmatprep.subr.bf16.mxu1 %v2440_v4  ;;  %v2445_v7 = vld [vmem:[#allocation6 + $0x410] ss:$8 sps:$4 sm:$0xff]   ;;  %v2448_v9 = vld [vmem:[#allocation6 + $0x424] ss:$8 sps:$4 sm:$0xff]   ;;  %v2450_v10 = vld [vmem:[#allocation6 + $0x20] ss:$8 sps:$4 sm:$0xff]  }
  0x4d   :  { %1841 = vmatprep.subr.bf16.mxu0 %v2442_v5  ;;  %v2451_v11 = vld [vmem:[#allocation6 + $0x420] ss:$8 sps:$4 sm:$0xff]   ;;  %v2452_v12 = vld [vmem:[#allocation6 + $0x34] ss:$8 sps:$4 sm:$0xff]   ;;  %v2456_v14 = vld [vmem:[#allocation6 + $0x30] ss:$8 sps:$4 sm:$0xff]  }
  0x4e   :  { %v2454_v13 = vld [vmem:[#allocation6 + $0x434] ss:$8 sps:$4 sm:$0xff]   ;;  %v2457_v15 = vld [vmem:[#allocation6 + $0x430] ss:$8 sps:$4 sm:$0xff]   ;;  %v2458_v16 = vld [vmem:[#allocation6 + $0x44] ss:$8 sps:$4 sm:$0xff]  }
  0x4f   :  { %1678 = vmatpush1.bf16.msra.mxu1 %v2444_v6  ;;  %v2460_v17 = vld [vmem:[#allocation6 + $0x444] ss:$8 sps:$4 sm:$0xff]   ;;  %v2462_v18 = vld [vmem:[#allocation6 + $0x40] ss:$8 sps:$4 sm:$0xff]   ;;  %v2464_v20 = vld [vmem:[#allocation6 + $0x54] ss:$8 sps:$4 sm:$0xff]  }
  0x50   :  { %1842 = vmatpush1.bf16.msra.mxu0 %v2445_v7  ;;  %1679 = vmatprep.subr.bf16.mxu1 %v2446_v8  ;;  %v2463_v19 = vld [vmem:[#allocation6 + $0x440] ss:$8 sps:$4 sm:$0xff]   ;;  %v2466_v21 = vld [vmem:[#allocation6 + $0x454] ss:$8 sps:$4 sm:$0xff]   ;;  %v2468_v22 = vld [vmem:[#allocation6 + $0x50] ss:$8 sps:$4 sm:$0xff]  }
  0x51   :  { %1843 = vmatprep.subr.bf16.mxu0 %v2448_v9  ;;  %v2469_v23 = vld [vmem:[#allocation6 + $0x450] ss:$8 sps:$4 sm:$0xff]   ;;  %v2470_v24 = vld [vmem:[#allocation6 + $0x64] ss:$8 sps:$4 sm:$0xff]   ;;  %v2474_v26 = vld [vmem:[#allocation6 + $0x60] ss:$8 sps:$4 sm:$0xff]  }
  0x52   :  { %v2472_v25 = vld [vmem:[#allocation6 + $0x464] ss:$8 sps:$4 sm:$0xff]   ;;  %v2475_v27 = vld [vmem:[#allocation6 + $0x460] ss:$8 sps:$4 sm:$0xff]   ;;  %v2476_v28 = vld [vmem:[#allocation6 + $0x74] ss:$8 sps:$4 sm:$0xff]  }
  0x53   :  { %1680 = vmatpush1.bf16.msra.mxu1 %v2450_v10  ;;  %v2478_v29 = vld [vmem:[#allocation6 + $0x474] ss:$8 sps:$4 sm:$0xff]   ;;  %v2480_v30 = vld [vmem:[#allocation6 + $0x70] ss:$8 sps:$4 sm:$0xff]   ;;  %v2482_v32 = vld [vmem:[#allocation6 + $0x84] ss:$8 sps:$4 sm:$0xff]  }
  0x54   :  { %1844 = vmatpush1.bf16.msra.mxu0 %v2451_v11  ;;  %1681 = vmatprep.subr.bf16.mxu1 %v2452_v12  ;;  %v2481_v31 = vld [vmem:[#allocation6 + $0x470] ss:$8 sps:$4 sm:$0xff]   ;;  %v2484_v33 = vld [vmem:[#allocation6 + $0x484] ss:$8 sps:$4 sm:$0xff]   ;;  %v2486_v34 = vld [vmem:[#allocation6 + $0x80] ss:$8 sps:$4 sm:$0xff]  }
  0x55   :  { %1845 = vmatprep.subr.bf16.mxu0 %v2454_v13  ;;  %v2487_v35 = vld [vmem:[#allocation6 + $0x480] ss:$8 sps:$4 sm:$0xff]   ;;  %v2488_v36 = vld [vmem:[#allocation6 + $0x94] ss:$8 sps:$4 sm:$0xff]   ;;  %v2492_v38 = vld [vmem:[#allocation6 + $0x90] ss:$8 sps:$4 sm:$0xff]  }
  0x56   :  { %v2490_v37 = vld [vmem:[#allocation6 + $0x494] ss:$8 sps:$4 sm:$0xff]   ;;  %v2493_v39 = vld [vmem:[#allocation6 + $0x490] ss:$8 sps:$4 sm:$0xff]   ;;  %v2494_v40 = vld [vmem:[#allocation6 + $0xa4] ss:$8 sps:$4 sm:$0xff]  }
  0x57   :  { %1682 = vmatpush1.bf16.msra.mxu1 %v2456_v14  ;;  %v2496_v41 = vld [vmem:[#allocation6 + $0x4a4] ss:$8 sps:$4 sm:$0xff]   ;;  %v2498_v42 = vld [vmem:[#allocation6 + $0xa0] ss:$8 sps:$4 sm:$0xff]   ;;  %v2500_v44 = vld [vmem:[#allocation6 + $0xb4] ss:$8 sps:$4 sm:$0xff]  }
  0x58   :  { %1846 = vmatpush1.bf16.msra.mxu0 %v2457_v15  ;;  %1683 = vmatprep.subr.bf16.mxu1 %v2458_v16  ;;  %v2499_v43 = vld [vmem:[#allocation6 + $0x4a0] ss:$8 sps:$4 sm:$0xff]   ;;  %v2502_v45 = vld [vmem:[#allocation6 + $0x4b4] ss:$8 sps:$4 sm:$0xff]   ;;  %v2504_v47 = vld [vmem:[#allocation6 + $0xb0] ss:$8 sps:$4 sm:$0xff]  }
  0x59   :  { %1847 = vmatprep.subr.bf16.mxu0 %v2460_v17  ;;  %v75_v46 = vld [vmem:[#allocation3] sm:$0xff]  ;;  %v2505_v49 = vld [vmem:[#allocation6 + $0x4b0] ss:$8 sps:$4 sm:$0xff]   ;;  %v2512_v56 = vld [vmem:[#allocation6 + $0xd4] ss:$8 sps:$4 sm:$0xff]   ;;  %s2963_s3 = smov [#allocation11]  }
  0x5a   :  { %v2127_v48 = vcombine.high %v75_v46, %v75_v46  ;;  %v79_v50 = vld [vmem:[#allocation3 + $0x20] sm:$0xff]  ;;  %v2514_v57 = vld [vmem:[#allocation6 + $0x4d4] ss:$8 sps:$4 sm:$0xff]   ;;  %v2516_v58 = vld [vmem:[#allocation6 + $0xd0] ss:$8 sps:$4 sm:$0xff]   ;;  %v2126_v6 = vcombine.low %v75_v46, %v75_v46  ;;  %s2115_s10 = sshll.u32 %s2963_s3, 4  ;;  %s2116_s10 = int_to_ptr.vmem [resolvable:$true] %s2115_s10 }
  0x5b   :  { %1684 = vmatpush1.bf16.msra.mxu1 %v2462_v18  ;;  %v2506_v51 = vld [vmem:[#allocation6 + $0xc4] ss:$8 sps:$4 sm:$0xff]   ;;  %v2135_v53 = vcombine.high %v79_v50, %v79_v50  ;;  %v2510_v54 = vld [vmem:[#allocation6 + $0xc0] ss:$8 sps:$4 sm:$0xff]   ;;  %v2517_v59 = vld [vmem:[#allocation6 + $0x4d0] ss:$8 sps:$4 sm:$0xff]   ;;  %v2134_v7 = vcombine.low %v79_v50, %v79_v50  ;;  %p2931_p5 = scmp.lt.s32.totalorder %s2116_s10, %s2116_s10 }
  0x5c   :  { %1848 = vmatpush1.bf16.msra.mxu0 %v2463_v19  ;;  %1685 = vmatprep.subr.bf16.mxu1 %v2464_v20  ;;  %v2508_v52 = vld [vmem:[#allocation6 + $0x4c4] ss:$8 sps:$4 sm:$0xff]   ;;  %v2511_v55 = vld [vmem:[#allocation6 + $0x4c0] ss:$8 sps:$4 sm:$0xff]   ;;  %v2524_v0 = vld [vmem:[#allocation6 + $0xf4] ss:$8 sps:$4 sm:$0xff]  }
  0x5d   :  { %1849 = vmatprep.subr.bf16.mxu0 %v2466_v21  ;;  %1707 = vmatprep.mubr.bf16.mxu1 %v2127_v48  ;;  %v2518_v60 = vld [vmem:[#allocation6 + $0xe4] ss:$8 sps:$4 sm:$0xff]   ;;  %v2522_v62 = vld [vmem:[#allocation6 + $0xe0] ss:$8 sps:$4 sm:$0xff]   ;;  %v2526_v1 = vld [vmem:[#allocation6 + $0x4f4] ss:$8 sps:$4 sm:$0xff]  }
  0x5e   :  { %1871 = vmatprep.mubr.bf16.mxu0 %v2135_v53  ;;  %v2520_v61 = vld [vmem:[#allocation6 + $0x4e4] ss:$8 sps:$4 sm:$0xff]   ;;  %v2523_v63 = vld [vmem:[#allocation6 + $0x4e0] ss:$8 sps:$4 sm:$0xff]   ;;  %v2528_v2 = vld [vmem:[#allocation6 + $0xf0] ss:$8 sps:$4 sm:$0xff]  }
  0x5f   :  { %1686 = vmatpush1.bf16.msra.mxu1 %v2468_v22  ;;  %v2529_v3 = vld [vmem:[#allocation6 + $0x4f0] ss:$8 sps:$4 sm:$0xff]   ;;  %v2534_v4 = vld [vmem:[#allocation6 + $0x104] ss:$8 sps:$4 sm:$0xff]   ;;  %v2532_v8 = vld [vmem:[#allocation6 + $0x100] ss:$8 sps:$4 sm:$0xff]  }
  0x60   :  { %1850 = vmatpush1.bf16.msra.mxu0 %v2469_v23  ;;  %1687 = vmatprep.subr.bf16.mxu1 %v2470_v24  ;;  %v2539_v5 = vld [vmem:[#allocation6 + $0x504] ss:$8 sps:$4 sm:$0xff]   ;;  %v2537_v9 = vld [vmem:[#allocation6 + $0x500] ss:$8 sps:$4 sm:$0xff]   ;;  %v2542_v10 = vld [vmem:[#allocation6 + $0x114] ss:$8 sps:$4 sm:$0xff]  }
  0x61   :  { %1851 = vmatprep.subr.bf16.mxu0 %v2472_v25  ;;  %v2545_v11 = vld [vmem:[#allocation6 + $0x514] ss:$8 sps:$4 sm:$0xff]   ;;  %v2540_v12 = vld [vmem:[#allocation6 + $0x110] ss:$8 sps:$4 sm:$0xff]   ;;  %v2548_v14 = vld [vmem:[#allocation6 + $0x124] ss:$8 sps:$4 sm:$0xff]  }
  0x62   :  { %v2543_v13 = vld [vmem:[#allocation6 + $0x510] ss:$8 sps:$4 sm:$0xff]   ;;  %v2551_v15 = vld [vmem:[#allocation6 + $0x524] ss:$8 sps:$4 sm:$0xff]   ;;  %v2546_v16 = vld [vmem:[#allocation6 + $0x120] ss:$8 sps:$4 sm:$0xff]  }
  0x63   :  { %1688 = vmatpush1.bf16.msra.mxu1 %v2474_v26  ;;  %v2549_v17 = vld [vmem:[#allocation6 + $0x520] ss:$8 sps:$4 sm:$0xff]   ;;  %v2554_v18 = vld [vmem:[#allocation6 + $0x134] ss:$8 sps:$4 sm:$0xff]   ;;  %v2552_v20 = vld [vmem:[#allocation6 + $0x130] ss:$8 sps:$4 sm:$0xff]  }
  0x64   :  { %1852 = vmatpush1.bf16.msra.mxu0 %v2475_v27  ;;  %1689 = vmatprep.subr.bf16.mxu1 %v2476_v28  ;;  %v2557_v19 = vld [vmem:[#allocation6 + $0x534] ss:$8 sps:$4 sm:$0xff]   ;;  %v2555_v21 = vld [vmem:[#allocation6 + $0x530] ss:$8 sps:$4 sm:$0xff]   ;;  %v2560_v22 = vld [vmem:[#allocation6 + $0x144] ss:$8 sps:$4 sm:$0xff]  }
  0x65   :  { %1853 = vmatprep.subr.bf16.mxu0 %v2478_v29  ;;  %v2563_v23 = vld [vmem:[#allocation6 + $0x544] ss:$8 sps:$4 sm:$0xff]   ;;  %v2558_v24 = vld [vmem:[#allocation6 + $0x140] ss:$8 sps:$4 sm:$0xff]   ;;  %v2566_v26 = vld [vmem:[#allocation6 + $0x154] ss:$8 sps:$4 sm:$0xff]  }
  0x66   :  { %v2561_v25 = vld [vmem:[#allocation6 + $0x540] ss:$8 sps:$4 sm:$0xff]   ;;  %v2569_v27 = vld [vmem:[#allocation6 + $0x554] ss:$8 sps:$4 sm:$0xff]   ;;  %v2564_v28 = vld [vmem:[#allocation6 + $0x150] ss:$8 sps:$4 sm:$0xff]  }
  0x67   :  { %1690 = vmatpush1.bf16.msra.mxu1 %v2480_v30  ;;  %v2567_v29 = vld [vmem:[#allocation6 + $0x550] ss:$8 sps:$4 sm:$0xff]   ;;  %v2572_v30 = vld [vmem:[#allocation6 + $0x164] ss:$8 sps:$4 sm:$0xff]   ;;  %v2590_v46 = vld [vmem:[#allocation6 + $0x194] ss:$8 sps:$4 sm:$0xff]  }
  0x68   :  { %1854 = vmatpush1.bf16.msra.mxu0 %v2481_v31  ;;  %1691 = vmatprep.subr.bf16.mxu1 %v2482_v32  ;;  %v2575_v31 = vld [vmem:[#allocation6 + $0x564] ss:$8 sps:$4 sm:$0xff]   ;;  %v2588_v48 = vld [vmem:[#allocation6 + $0x190] ss:$8 sps:$4 sm:$0xff]   ;;  %v2597_v53 = vld [vmem:[#allocation6 + $0x5a0] ss:$8 sps:$4 sm:$0xff]  }
  0x69   :  { %1855 = vmatprep.subr.bf16.mxu0 %v2484_v33  ;;  %v3037_v32 = vld [vmem:[#allocation3 + $0x8] sm:$0xff]  ;;  %s2926_s11 = scalar_lea.vmem %s2116_s10, 128 }
  0x6a   :  { %v2570_v33 = vld [vmem:[#allocation6 + $0x160] ss:$8 sps:$4 sm:$0xff]   ;;  %v2596_v50 = vld [vmem:[#allocation6 + $0x1a4] ss:$8 sps:$4 sm:$0xff]   ;;  %p2927_p4 = scmp.ne.s32.totalorder %s2116_s10, %s2926_s11  ;;  %p2932_p6 = scmp.lt.s32.totalorder %s2926_s11, %s2926_s11 }
  0x6b   :  { %1692 = vmatpush1.bf16.msra.mxu1 %v2486_v34  ;;  %v2573_v34 = vld [vmem:[#allocation6 + $0x560] ss:$8 sps:$4 sm:$0xff]  }
  0x6c   :  { %1856 = vmatpush1.bf16.msra.mxu0 %v2487_v35  ;;  %1693 = vmatprep.subr.bf16.mxu1 %v2488_v36  ;;  %v2129_v35 = vcombine.high %v3037_v32, %v3037_v32  ;;  %v3041_v36 = vld [vmem:[#allocation3 + $0x28] sm:$0xff]  ;;  %p2933_p7 = por %p2932_p6, %p2931_p5 }
  0x6d   :  { %1857 = vmatprep.subr.bf16.mxu0 %v2490_v37  ;;  %v2578_v37 = vld [vmem:[#allocation6 + $0x174] ss:$8 sps:$4 sm:$0xff]  }
  0x6e   :  { %p2934_p8 = pnand %p2933_p7, %p2927_p4 }
  0x6f   :  { %1694 = vmatpush1.bf16.msra.mxu1 %v2492_v38  ;;  %v2137_v38 = vcombine.high %v3041_v36, %v3041_v36 }
  0x70   :  { %1858 = vmatpush1.bf16.msra.mxu0 %v2493_v39  ;;  %1695 = vmatprep.subr.bf16.mxu1 %v2494_v40  ;;  %v2581_v39 = vld [vmem:[#allocation6 + $0x574] ss:$8 sps:$4 sm:$0xff]   ;;  %v2576_v40 = vld [vmem:[#allocation6 + $0x170] ss:$8 sps:$4 sm:$0xff]  }
  0x71   :  { %1859 = vmatprep.subr.bf16.mxu0 %v2496_v41  ;;  %v2579_v41 = vld [vmem:[#allocation6 + $0x570] ss:$8 sps:$4 sm:$0xff]  }
  0x73   :  { %1696 = vmatpush1.bf16.msra.mxu1 %v2498_v42  ;;  %v2584_v42 = vld [vmem:[#allocation6 + $0x184] ss:$8 sps:$4 sm:$0xff]  }
  0x74   :  { %1860 = vmatpush1.bf16.msra.mxu0 %v2499_v43  ;;  %1697 = vmatprep.subr.bf16.mxu1 %v2500_v44  ;;  %v2587_v43 = vld [vmem:[#allocation6 + $0x584] ss:$8 sps:$4 sm:$0xff]   ;;  %v2582_v44 = vld [vmem:[#allocation6 + $0x180] ss:$8 sps:$4 sm:$0xff]  }
  0x75   :  { %1861 = vmatprep.subr.bf16.mxu0 %v2502_v45  ;;  %v2585_v45 = vld [vmem:[#allocation6 + $0x580] ss:$8 sps:$4 sm:$0xff]  }
  0x77   :  { %1698 = vmatpush1.bf16.msra.mxu1 %v2504_v47  ;;  %v2593_v47 = vld [vmem:[#allocation6 + $0x594] ss:$8 sps:$4 sm:$0xff]  }
  0x78   :  { %1862 = vmatpush1.bf16.msra.mxu0 %v2505_v49  ;;  %1699 = vmatprep.subr.bf16.mxu1 %v2506_v51  ;;  %v2591_v49 = vld [vmem:[#allocation6 + $0x590] ss:$8 sps:$4 sm:$0xff]   ;;  %v2599_v51 = vld [vmem:[#allocation6 + $0x5a4] ss:$8 sps:$4 sm:$0xff]  }
  0x79   :  { %1863 = vmatprep.subr.bf16.mxu0 %v2508_v52  ;;  %v2594_v52 = vld [vmem:[#allocation6 + $0x1a0] ss:$8 sps:$4 sm:$0xff]  }
  0x7b   :  { %1700 = vmatpush1.bf16.msra.mxu1 %v2510_v54  ;;  %v2602_v54 = vld [vmem:[#allocation6 + $0x1b4] ss:$8 sps:$4 sm:$0xff]  }
  0x7c   :  { %1864 = vmatpush1.bf16.msra.mxu0 %v2511_v55  ;;  %1701 = vmatprep.subr.bf16.mxu1 %v2512_v56  ;;  %v2605_v55 = vld [vmem:[#allocation6 + $0x5b4] ss:$8 sps:$4 sm:$0xff]   ;;  %v2600_v56 = vld [vmem:[#allocation6 + $0x1b0] ss:$8 sps:$4 sm:$0xff]  }
  0x7d   :  { %1865 = vmatprep.subr.bf16.mxu0 %v2514_v57  ;;  %v2603_v57 = vld [vmem:[#allocation6 + $0x5b0] ss:$8 sps:$4 sm:$0xff]  }
  0x7f   :  { %1702 = vmatpush1.bf16.msra.mxu1 %v2516_v58  ;;  %v2608_v58 = vld [vmem:[#allocation6 + $0x1c4] ss:$8 sps:$4 sm:$0xff]  }
  0x80   :  { %1866 = vmatpush1.bf16.msra.mxu0 %v2517_v59  ;;  %1703 = vmatprep.subr.bf16.mxu1 %v2518_v60  ;;  %v2611_v59 = vld [vmem:[#allocation6 + $0x5c4] ss:$8 sps:$4 sm:$0xff]   ;;  %v2606_v60 = vld [vmem:[#allocation6 + $0x1c0] ss:$8 sps:$4 sm:$0xff]  }
  0x81   :  { %1867 = vmatprep.subr.bf16.mxu0 %v2520_v61  ;;  %v2609_v61 = vld [vmem:[#allocation6 + $0x5c0] ss:$8 sps:$4 sm:$0xff]  }
  0x83   :  { %1704 = vmatpush1.bf16.msra.mxu1 %v2522_v62  ;;  %v2614_v62 = vld [vmem:[#allocation6 + $0x1d4] ss:$8 sps:$4 sm:$0xff]  }
  0x84   :  { %1868 = vmatpush1.bf16.msra.mxu0 %v2523_v63  ;;  %1705 = vmatprep.subr.bf16.mxu1 %v2524_v0  ;;  %v2617_v63 = vld [vmem:[#allocation6 + $0x5d4] ss:$8 sps:$4 sm:$0xff]   ;;  %v2612_v0 = vld [vmem:[#allocation6 + $0x1d0] ss:$8 sps:$4 sm:$0xff]  }
  0x85   :  { %1869 = vmatprep.subr.bf16.mxu0 %v2526_v1  ;;  %v2615_v1 = vld [vmem:[#allocation6 + $0x5d0] ss:$8 sps:$4 sm:$0xff]  }
  0x87   :  { %1706 = vmatpush1.bf16.msra.mxu1 %v2528_v2  ;;  %v2620_v2 = vld [vmem:[#allocation6 + $0x1e4] ss:$8 sps:$4 sm:$0xff]  }
  0x88   :  { %1870 = vmatpush1.bf16.msra.mxu0 %v2529_v3  ;;  %1716 = vmatprep.subr.bf16.mxu1 %v2534_v4  ;;  %v2623_v3 = vld [vmem:[#allocation6 + $0x5e4] ss:$8 sps:$4 sm:$0xff]   ;;  %v2618_v4 = vld [vmem:[#allocation6 + $0x1e0] ss:$8 sps:$4 sm:$0xff]  }
  0x89   :  { %1880 = vmatprep.subr.bf16.mxu0 %v2539_v5  ;;  %v2621_v5 = vld [vmem:[#allocation6 + $0x5e0] ss:$8 sps:$4 sm:$0xff]  }
  0x8a   :  { %1708 = vmatmul.mubr.bf16.vlgmr.msra.gmra.mrb[0].mxu1 %v2126_v6  ;;  %v2626_v6 = vld [vmem:[#allocation6 + $0x1f4] ss:$8 sps:$4 sm:$0xff]  }
  0x8b   :  { %1872 = vmatmul.mubr.bf16.vlgmr.msra.gmra.mrb[0].mxu0 %v2134_v7  ;;  %1717 = vmatpush1.bf16.msra.mxu1 %v2532_v8  ;;  %v2629_v7 = vld [vmem:[#allocation6 + $0x5f4] ss:$8 sps:$4 sm:$0xff]   ;;  %v2624_v8 = vld [vmem:[#allocation6 + $0x1f0] ss:$8 sps:$4 sm:$0xff]  }
  0x8c   :  { %1881 = vmatpush1.bf16.msra.mxu0 %v2537_v9  ;;  %1718 = vmatprep.subr.bf16.mxu1 %v2542_v10  ;;  %v2627_v9 = vld [vmem:[#allocation6 + $0x5f0] ss:$8 sps:$4 sm:$0xff]   ;;  %v2634_v10 = vld [vmem:[#allocation6 + $0x204] ss:$8 sps:$4 sm:$0xff]  }
  0x8d   :  { %1882 = vmatprep.subr.bf16.mxu0 %v2545_v11  ;;  %1748 = vmatprep.mubr.bf16.mxu1 %v2129_v35  ;;  %v2639_v11 = vld [vmem:[#allocation6 + $0x604] ss:$8 sps:$4 sm:$0xff]   ;;  %v2661_v35 = vld [vmem:[#allocation6 + $0x640] ss:$8 sps:$4 sm:$0xff]  }
  0x8e   :  { %1912 = vmatprep.mubr.bf16.mxu0 %v2137_v38  ;;  %v2664_v38 = vld [vmem:[#allocation6 + $0x250] ss:$8 sps:$4 sm:$0xff]  }
  0x8f   :  { %1719 = vmatpush1.bf16.msra.mxu1 %v2540_v12  ;;  %v2128_v12 = vcombine.low %v3037_v32, %v3037_v32  ;;  %v2660_v32 = vld [vmem:[#allocation6 + $0x244] ss:$8 sps:$4 sm:$0xff]  }
  0x90   :  { %1883 = vmatpush1.bf16.msra.mxu0 %v2543_v13  ;;  %1720 = vmatprep.subr.bf16.mxu1 %v2548_v14  ;;  %v2632_v13 = vld [vmem:[#allocation6 + $0x200] ss:$8 sps:$4 sm:$0xff]   ;;  %v2136_v14 = vcombine.low %v3041_v36, %v3041_v36  ;;  %v2666_v36 = vld [vmem:[#allocation6 + $0x254] ss:$8 sps:$4 sm:$0xff]  }
  0x91   :  { %1884 = vmatprep.subr.bf16.mxu0 %v2551_v15  ;;  %v2637_v15 = vld [vmem:[#allocation6 + $0x600] ss:$8 sps:$4 sm:$0xff]  }
  0x93   :  { %1721 = vmatpush1.bf16.msra.mxu1 %v2546_v16  ;;  %v2642_v16 = vld [vmem:[#allocation6 + $0x214] ss:$8 sps:$4 sm:$0xff]  }
  0x94   :  { %1885 = vmatpush1.bf16.msra.mxu0 %v2549_v17  ;;  %1722 = vmatprep.subr.bf16.mxu1 %v2554_v18  ;;  %v2645_v17 = vld [vmem:[#allocation6 + $0x614] ss:$8 sps:$4 sm:$0xff]  }
  0x95   :  { %1886 = vmatprep.subr.bf16.mxu0 %v2557_v19  ;;  %v3049_v18 = vld [vmem:[#allocation3 + $0x10] sm:$0xff] }
  0x96   :  { %v2131_v19 = vcombine.high %v3049_v18, %v3049_v18 }
  0x97   :  { %1723 = vmatpush1.bf16.msra.mxu1 %v2552_v20  ;;  %v3053_v20 = vld [vmem:[#allocation3 + $0x30] sm:$0xff] }
  0x98   :  { %1887 = vmatpush1.bf16.msra.mxu0 %v2555_v21  ;;  %1724 = vmatprep.subr.bf16.mxu1 %v2560_v22  ;;  %v2640_v21 = vld [vmem:[#allocation6 + $0x210] ss:$8 sps:$4 sm:$0xff]  }
  0x99   :  { %1888 = vmatprep.subr.bf16.mxu0 %v2563_v23  ;;  %v2643_v22 = vld [vmem:[#allocation6 + $0x610] ss:$8 sps:$4 sm:$0xff]   ;;  %v2139_v23 = vcombine.high %v3053_v20, %v3053_v20 }
  0x9b   :  { %1725 = vmatpush1.bf16.msra.mxu1 %v2558_v24  ;;  %v2648_v24 = vld [vmem:[#allocation6 + $0x224] ss:$8 sps:$4 sm:$0xff]  }
  0x9c   :  { %1889 = vmatpush1.bf16.msra.mxu0 %v2561_v25  ;;  %1726 = vmatprep.subr.bf16.mxu1 %v2566_v26  ;;  %v2651_v25 = vld [vmem:[#allocation6 + $0x624] ss:$8 sps:$4 sm:$0xff]   ;;  %v2646_v26 = vld [vmem:[#allocation6 + $0x220] ss:$8 sps:$4 sm:$0xff]  }
  0x9d   :  { %1890 = vmatprep.subr.bf16.mxu0 %v2569_v27  ;;  %v2649_v27 = vld [vmem:[#allocation6 + $0x620] ss:$8 sps:$4 sm:$0xff]  }
  0x9f   :  { %1727 = vmatpush1.bf16.msra.mxu1 %v2564_v28  ;;  %v2654_v28 = vld [vmem:[#allocation6 + $0x234] ss:$8 sps:$4 sm:$0xff]  }
  0xa0   :  { %1891 = vmatpush1.bf16.msra.mxu0 %v2567_v29  ;;  %1728 = vmatprep.subr.bf16.mxu1 %v2572_v30  ;;  %v2657_v29 = vld [vmem:[#allocation6 + $0x634] ss:$8 sps:$4 sm:$0xff]   ;;  %v2652_v30 = vld [vmem:[#allocation6 + $0x230] ss:$8 sps:$4 sm:$0xff]  }
  0xa1   :  { %1892 = vmatprep.subr.bf16.mxu0 %v2575_v31  ;;  %v2655_v31 = vld [vmem:[#allocation6 + $0x630] ss:$8 sps:$4 sm:$0xff]  }
  0xa3   :  { %1729 = vmatpush1.bf16.msra.mxu1 %v2570_v33  ;;  %v2663_v33 = vld [vmem:[#allocation6 + $0x644] ss:$8 sps:$4 sm:$0xff]  }
  0xa4   :  { %1893 = vmatpush1.bf16.msra.mxu0 %v2573_v34  ;;  %1730 = vmatprep.subr.bf16.mxu1 %v2578_v37  ;;  %v2658_v34 = vld [vmem:[#allocation6 + $0x240] ss:$8 sps:$4 sm:$0xff]   ;;  %v2669_v37 = vld [vmem:[#allocation6 + $0x654] ss:$8 sps:$4 sm:$0xff]  }
  0xa5   :  { %1894 = vmatprep.subr.bf16.mxu0 %v2581_v39  ;;  %v2667_v39 = vld [vmem:[#allocation6 + $0x650] ss:$8 sps:$4 sm:$0xff]  }
  0xa7   :  { %1731 = vmatpush1.bf16.msra.mxu1 %v2576_v40  ;;  %v2672_v40 = vld [vmem:[#allocation6 + $0x264] ss:$8 sps:$4 sm:$0xff]  }
  0xa8   :  { %1895 = vmatpush1.bf16.msra.mxu0 %v2579_v41  ;;  %1732 = vmatprep.subr.bf16.mxu1 %v2584_v42  ;;  %v2675_v41 = vld [vmem:[#allocation6 + $0x664] ss:$8 sps:$4 sm:$0xff]   ;;  %v2670_v42 = vld [vmem:[#allocation6 + $0x260] ss:$8 sps:$4 sm:$0xff]  }
  0xa9   :  { %1896 = vmatprep.subr.bf16.mxu0 %v2587_v43  ;;  %v2673_v43 = vld [vmem:[#allocation6 + $0x660] ss:$8 sps:$4 sm:$0xff]  }
  0xab   :  { %1733 = vmatpush1.bf16.msra.mxu1 %v2582_v44  ;;  %v2678_v44 = vld [vmem:[#allocation6 + $0x274] ss:$8 sps:$4 sm:$0xff]  }
  0xac   :  { %1897 = vmatpush1.bf16.msra.mxu0 %v2585_v45  ;;  %1734 = vmatprep.subr.bf16.mxu1 %v2590_v46  ;;  %v2681_v45 = vld [vmem:[#allocation6 + $0x674] ss:$8 sps:$4 sm:$0xff]   ;;  %v2676_v46 = vld [vmem:[#allocation6 + $0x270] ss:$8 sps:$4 sm:$0xff]  }
  0xad   :  { %1898 = vmatprep.subr.bf16.mxu0 %v2593_v47  ;;  %v2679_v47 = vld [vmem:[#allocation6 + $0x670] ss:$8 sps:$4 sm:$0xff]  }
  0xaf   :  { %1735 = vmatpush1.bf16.msra.mxu1 %v2588_v48  ;;  %v2684_v48 = vld [vmem:[#allocation6 + $0x284] ss:$8 sps:$4 sm:$0xff]  }
  0xb0   :  { %1899 = vmatpush1.bf16.msra.mxu0 %v2591_v49  ;;  %1736 = vmatprep.subr.bf16.mxu1 %v2596_v50  ;;  %v2687_v49 = vld [vmem:[#allocation6 + $0x684] ss:$8 sps:$4 sm:$0xff]   ;;  %v2682_v50 = vld [vmem:[#allocation6 + $0x280] ss:$8 sps:$4 sm:$0xff]  }
  0xb1   :  { %1900 = vmatprep.subr.bf16.mxu0 %v2599_v51  ;;  %v2685_v51 = vld [vmem:[#allocation6 + $0x680] ss:$8 sps:$4 sm:$0xff]  }
  0xb3   :  { %1737 = vmatpush1.bf16.msra.mxu1 %v2594_v52  ;;  %v2690_v52 = vld [vmem:[#allocation6 + $0x294] ss:$8 sps:$4 sm:$0xff]  }
  0xb4   :  { %1901 = vmatpush1.bf16.msra.mxu0 %v2597_v53  ;;  %1738 = vmatprep.subr.bf16.mxu1 %v2602_v54  ;;  %v2693_v53 = vld [vmem:[#allocation6 + $0x694] ss:$8 sps:$4 sm:$0xff]   ;;  %v2688_v54 = vld [vmem:[#allocation6 + $0x290] ss:$8 sps:$4 sm:$0xff]  }
  0xb5   :  { %1902 = vmatprep.subr.bf16.mxu0 %v2605_v55  ;;  %v2691_v55 = vld [vmem:[#allocation6 + $0x690] ss:$8 sps:$4 sm:$0xff]  }
  0xb7   :  { %1739 = vmatpush1.bf16.msra.mxu1 %v2600_v56  ;;  %v2696_v56 = vld [vmem:[#allocation6 + $0x2a4] ss:$8 sps:$4 sm:$0xff]  }
  0xb8   :  { %1903 = vmatpush1.bf16.msra.mxu0 %v2603_v57  ;;  %1740 = vmatprep.subr.bf16.mxu1 %v2608_v58  ;;  %v2699_v57 = vld [vmem:[#allocation6 + $0x6a4] ss:$8 sps:$4 sm:$0xff]   ;;  %v2694_v58 = vld [vmem:[#allocation6 + $0x2a0] ss:$8 sps:$4 sm:$0xff]  }
  0xb9   :  { %1904 = vmatprep.subr.bf16.mxu0 %v2611_v59  ;;  %v2697_v59 = vld [vmem:[#allocation6 + $0x6a0] ss:$8 sps:$4 sm:$0xff]  }
  0xbb   :  { %1741 = vmatpush1.bf16.msra.mxu1 %v2606_v60  ;;  %v2702_v60 = vld [vmem:[#allocation6 + $0x2b4] ss:$8 sps:$4 sm:$0xff]  }
  0xbc   :  { %1905 = vmatpush1.bf16.msra.mxu0 %v2609_v61  ;;  %1742 = vmatprep.subr.bf16.mxu1 %v2614_v62  ;;  %v2705_v61 = vld [vmem:[#allocation6 + $0x6b4] ss:$8 sps:$4 sm:$0xff]   ;;  %v2700_v62 = vld [vmem:[#allocation6 + $0x2b0] ss:$8 sps:$4 sm:$0xff]  }
  0xbd   :  { %1906 = vmatprep.subr.bf16.mxu0 %v2617_v63  ;;  %v2703_v63 = vld [vmem:[#allocation6 + $0x6b0] ss:$8 sps:$4 sm:$0xff]  }
  0xbf   :  { %1743 = vmatpush1.bf16.msra.mxu1 %v2612_v0  ;;  %v2708_v0 = vld [vmem:[#allocation6 + $0x2c4] ss:$8 sps:$4 sm:$0xff]  }
  0xc0   :  { %1907 = vmatpush1.bf16.msra.mxu0 %v2615_v1  ;;  %1744 = vmatprep.subr.bf16.mxu1 %v2620_v2  ;;  %v2711_v1 = vld [vmem:[#allocation6 + $0x6c4] ss:$8 sps:$4 sm:$0xff]   ;;  %v2706_v2 = vld [vmem:[#allocation6 + $0x2c0] ss:$8 sps:$4 sm:$0xff]  }
  0xc1   :  { %1908 = vmatprep.subr.bf16.mxu0 %v2623_v3  ;;  %v2709_v3 = vld [vmem:[#allocation6 + $0x6c0] ss:$8 sps:$4 sm:$0xff]  }
  0xc3   :  { %1745 = vmatpush1.bf16.msra.mxu1 %v2618_v4  ;;  %v2714_v4 = vld [vmem:[#allocation6 + $0x2d4] ss:$8 sps:$4 sm:$0xff]  }
  0xc4   :  { %1909 = vmatpush1.bf16.msra.mxu0 %v2621_v5  ;;  %1746 = vmatprep.subr.bf16.mxu1 %v2626_v6  ;;  %v2717_v5 = vld [vmem:[#allocation6 + $0x6d4] ss:$8 sps:$4 sm:$0xff]   ;;  %v2712_v6 = vld [vmem:[#allocation6 + $0x2d0] ss:$8 sps:$4 sm:$0xff]  }
  0xc5   :  { %1910 = vmatprep.subr.bf16.mxu0 %v2629_v7  ;;  %v2715_v7 = vld [vmem:[#allocation6 + $0x6d0] ss:$8 sps:$4 sm:$0xff]  }
  0xc7   :  { %1747 = vmatpush1.bf16.msra.mxu1 %v2624_v8  ;;  %v2720_v8 = vld [vmem:[#allocation6 + $0x2e4] ss:$8 sps:$4 sm:$0xff]  }
  0xc8   :  { %1911 = vmatpush1.bf16.msra.mxu0 %v2627_v9  ;;  %1757 = vmatprep.subr.bf16.mxu1 %v2634_v10  ;;  %v2723_v9 = vld [vmem:[#allocation6 + $0x6e4] ss:$8 sps:$4 sm:$0xff]   ;;  %v2718_v10 = vld [vmem:[#allocation6 + $0x2e0] ss:$8 sps:$4 sm:$0xff]  }
  0xc9   :  { %1921 = vmatprep.subr.bf16.mxu0 %v2639_v11  ;;  %v2721_v11 = vld [vmem:[#allocation6 + $0x6e0] ss:$8 sps:$4 sm:$0xff]  }
  0xca   :  { %1749 = vmatmul.mubr.bf16.vlgmr.msra.gmra.mrb[0].mxu1 %v2128_v12  ;;  %v2726_v12 = vld [vmem:[#allocation6 + $0x2f4] ss:$8 sps:$4 sm:$0xff]  }
  0xcb   :  { %1913 = vmatmul.mubr.bf16.vlgmr.msra.gmra.mrb[0].mxu0 %v2136_v14  ;;  %1758 = vmatpush1.bf16.msra.mxu1 %v2632_v13  ;;  %v2729_v13 = vld [vmem:[#allocation6 + $0x6f4] ss:$8 sps:$4 sm:$0xff]   ;;  %v2724_v14 = vld [vmem:[#allocation6 + $0x2f0] ss:$8 sps:$4 sm:$0xff]  }
  0xcc   :  { %1922 = vmatpush1.bf16.msra.mxu0 %v2637_v15  ;;  %1759 = vmatprep.subr.bf16.mxu1 %v2642_v16  ;;  %v2727_v15 = vld [vmem:[#allocation6 + $0x6f0] ss:$8 sps:$4 sm:$0xff]   ;;  %v2734_v16 = vld [vmem:[#allocation6 + $0x304] ss:$8 sps:$4 sm:$0xff]  }
  0xcd   :  { %1923 = vmatprep.subr.bf16.mxu0 %v2645_v17  ;;  %1789 = vmatprep.mubr.bf16.mxu1 %v2131_v19  ;;  %v2739_v17 = vld [vmem:[#allocation6 + $0x704] ss:$8 sps:$4 sm:$0xff]   ;;  %v2130_v19 = vcombine.low %v3049_v18, %v3049_v18 }
  0xce   :  { %1953 = vmatprep.mubr.bf16.mxu0 %v2139_v23  ;;  %v3063_v23 = vld [vmem:[#allocation3 + $0x38] sm:$0xff] }
  0xcf   :  { %1760 = vmatpush1.bf16.msra.mxu1 %v2640_v21  ;;  %v2138_v21 = vcombine.low %v3053_v20, %v3053_v20  ;;  %v2141_v18 = vcombine.high %v3063_v23, %v3063_v23  ;;  %v2740_v20 = vld [vmem:[#allocation6 + $0x310] ss:$8 sps:$4 sm:$0xff]  }
  0xd0   :  { %1924 = vmatpush1.bf16.msra.mxu0 %v2643_v22  ;;  %1761 = vmatprep.subr.bf16.mxu1 %v2648_v24  ;;  %v3061_v22 = vld [vmem:[#allocation3 + $0x18] sm:$0xff]  ;;  %v2732_v24 = vld [vmem:[#allocation6 + $0x300] ss:$8 sps:$4 sm:$0xff]  }
  0xd1   :  { %1925 = vmatprep.subr.bf16.mxu0 %v2651_v25  ;;  %v2737_v25 = vld [vmem:[#allocation6 + $0x700] ss:$8 sps:$4 sm:$0xff]  }
  0xd3   :  { %1762 = vmatpush1.bf16.msra.mxu1 %v2646_v26  ;;  %v2742_v26 = vld [vmem:[#allocation6 + $0x314] ss:$8 sps:$4 sm:$0xff]  }
  0xd4   :  { %1926 = vmatpush1.bf16.msra.mxu0 %v2649_v27  ;;  %1763 = vmatprep.subr.bf16.mxu1 %v2654_v28  ;;  %v2745_v27 = vld [vmem:[#allocation6 + $0x714] ss:$8 sps:$4 sm:$0xff]   ;;  %v2133_v28 = vcombine.high %v3061_v22, %v3061_v22 }
  0xd5   :  { %1927 = vmatprep.subr.bf16.mxu0 %v2657_v29  ;;  %v2743_v29 = vld [vmem:[#allocation6 + $0x710] ss:$8 sps:$4 sm:$0xff]  }
  0xd7   :  { %1764 = vmatpush1.bf16.msra.mxu1 %v2652_v30  ;;  %v2748_v30 = vld [vmem:[#allocation6 + $0x324] ss:$8 sps:$4 sm:$0xff]  }
  0xd8   :  { %1928 = vmatpush1.bf16.msra.mxu0 %v2655_v31  ;;  %1765 = vmatprep.subr.bf16.mxu1 %v2660_v32  ;;  %v2751_v31 = vld [vmem:[#allocation6 + $0x724] ss:$8 sps:$4 sm:$0xff]   ;;  %v2746_v32 = vld [vmem:[#allocation6 + $0x320] ss:$8 sps:$4 sm:$0xff]  }
  0xd9   :  { %1929 = vmatprep.subr.bf16.mxu0 %v2663_v33  ;;  %v2749_v33 = vld [vmem:[#allocation6 + $0x720] ss:$8 sps:$4 sm:$0xff]  }
  0xdb   :  { %1766 = vmatpush1.bf16.msra.mxu1 %v2658_v34  ;;  %v2754_v34 = vld [vmem:[#allocation6 + $0x334] ss:$8 sps:$4 sm:$0xff]  }
  0xdc   :  { %1930 = vmatpush1.bf16.msra.mxu0 %v2661_v35  ;;  %1767 = vmatprep.subr.bf16.mxu1 %v2666_v36  ;;  %v2757_v35 = vld [vmem:[#allocation6 + $0x734] ss:$8 sps:$4 sm:$0xff]   ;;  %v2752_v36 = vld [vmem:[#allocation6 + $0x330] ss:$8 sps:$4 sm:$0xff]  }
  0xdd   :  { %1931 = vmatprep.subr.bf16.mxu0 %v2669_v37  ;;  %v2755_v37 = vld [vmem:[#allocation6 + $0x730] ss:$8 sps:$4 sm:$0xff]  }
  0xdf   :  { %1768 = vmatpush1.bf16.msra.mxu1 %v2664_v38  ;;  %v2760_v38 = vld [vmem:[#allocation6 + $0x344] ss:$8 sps:$4 sm:$0xff]  }
  0xe0   :  { %1932 = vmatpush1.bf16.msra.mxu0 %v2667_v39  ;;  %1769 = vmatprep.subr.bf16.mxu1 %v2672_v40  ;;  %v2763_v39 = vld [vmem:[#allocation6 + $0x744] ss:$8 sps:$4 sm:$0xff]   ;;  %v2758_v40 = vld [vmem:[#allocation6 + $0x340] ss:$8 sps:$4 sm:$0xff]  }
  0xe1   :  { %1933 = vmatprep.subr.bf16.mxu0 %v2675_v41  ;;  %v2761_v41 = vld [vmem:[#allocation6 + $0x740] ss:$8 sps:$4 sm:$0xff]  }
  0xe3   :  { %1770 = vmatpush1.bf16.msra.mxu1 %v2670_v42  ;;  %v2766_v42 = vld [vmem:[#allocation6 + $0x354] ss:$8 sps:$4 sm:$0xff]  }
  0xe4   :  { %1934 = vmatpush1.bf16.msra.mxu0 %v2673_v43  ;;  %1771 = vmatprep.subr.bf16.mxu1 %v2678_v44  ;;  %v2769_v43 = vld [vmem:[#allocation6 + $0x754] ss:$8 sps:$4 sm:$0xff]   ;;  %v2764_v44 = vld [vmem:[#allocation6 + $0x350] ss:$8 sps:$4 sm:$0xff]  }
  0xe5   :  { %1935 = vmatprep.subr.bf16.mxu0 %v2681_v45  ;;  %v2767_v45 = vld [vmem:[#allocation6 + $0x750] ss:$8 sps:$4 sm:$0xff]  }
  0xe7   :  { %1772 = vmatpush1.bf16.msra.mxu1 %v2676_v46  ;;  %v2772_v46 = vld [vmem:[#allocation6 + $0x364] ss:$8 sps:$4 sm:$0xff]  }
  0xe8   :  { %1936 = vmatpush1.bf16.msra.mxu0 %v2679_v47  ;;  %1773 = vmatprep.subr.bf16.mxu1 %v2684_v48  ;;  %v2775_v47 = vld [vmem:[#allocation6 + $0x764] ss:$8 sps:$4 sm:$0xff]   ;;  %v2770_v48 = vld [vmem:[#allocation6 + $0x360] ss:$8 sps:$4 sm:$0xff]  }
  0xe9   :  { %1937 = vmatprep.subr.bf16.mxu0 %v2687_v49  ;;  %v2773_v49 = vld [vmem:[#allocation6 + $0x760] ss:$8 sps:$4 sm:$0xff]  }
  0xeb   :  { %1774 = vmatpush1.bf16.msra.mxu1 %v2682_v50  ;;  %v2778_v50 = vld [vmem:[#allocation6 + $0x374] ss:$8 sps:$4 sm:$0xff]  }
  0xec   :  { %1938 = vmatpush1.bf16.msra.mxu0 %v2685_v51  ;;  %1775 = vmatprep.subr.bf16.mxu1 %v2690_v52  ;;  %v2781_v51 = vld [vmem:[#allocation6 + $0x774] ss:$8 sps:$4 sm:$0xff]   ;;  %v2776_v52 = vld [vmem:[#allocation6 + $0x370] ss:$8 sps:$4 sm:$0xff]  }
  0xed   :  { %1939 = vmatprep.subr.bf16.mxu0 %v2693_v53  ;;  %v2779_v53 = vld [vmem:[#allocation6 + $0x770] ss:$8 sps:$4 sm:$0xff]  }
  0xef   :  { %1776 = vmatpush1.bf16.msra.mxu1 %v2688_v54  ;;  %v2784_v54 = vld [vmem:[#allocation6 + $0x384] ss:$8 sps:$4 sm:$0xff]  }
  0xf0   :  { %1940 = vmatpush1.bf16.msra.mxu0 %v2691_v55  ;;  %1777 = vmatprep.subr.bf16.mxu1 %v2696_v56  ;;  %v2787_v55 = vld [vmem:[#allocation6 + $0x784] ss:$8 sps:$4 sm:$0xff]   ;;  %v2782_v56 = vld [vmem:[#allocation6 + $0x380] ss:$8 sps:$4 sm:$0xff]  }
  0xf1   :  { %1941 = vmatprep.subr.bf16.mxu0 %v2699_v57  ;;  %v2785_v57 = vld [vmem:[#allocation6 + $0x780] ss:$8 sps:$4 sm:$0xff]  }
  0xf3   :  { %1778 = vmatpush1.bf16.msra.mxu1 %v2694_v58  ;;  %v2790_v58 = vld [vmem:[#allocation6 + $0x394] ss:$8 sps:$4 sm:$0xff]  }
  0xf4   :  { %1942 = vmatpush1.bf16.msra.mxu0 %v2697_v59  ;;  %1779 = vmatprep.subr.bf16.mxu1 %v2702_v60  ;;  %v2793_v59 = vld [vmem:[#allocation6 + $0x794] ss:$8 sps:$4 sm:$0xff]   ;;  %v2788_v60 = vld [vmem:[#allocation6 + $0x390] ss:$8 sps:$4 sm:$0xff]  }
  0xf5   :  { %1943 = vmatprep.subr.bf16.mxu0 %v2705_v61  ;;  %v2791_v61 = vld [vmem:[#allocation6 + $0x790] ss:$8 sps:$4 sm:$0xff]  }
  0xf7   :  { %1780 = vmatpush1.bf16.msra.mxu1 %v2700_v62  ;;  %v2796_v62 = vld [vmem:[#allocation6 + $0x3a4] ss:$8 sps:$4 sm:$0xff]  }
  0xf8   :  { %1944 = vmatpush1.bf16.msra.mxu0 %v2703_v63  ;;  %1781 = vmatprep.subr.bf16.mxu1 %v2708_v0  ;;  %v2799_v63 = vld [vmem:[#allocation6 + $0x7a4] ss:$8 sps:$4 sm:$0xff]   ;;  %v2794_v0 = vld [vmem:[#allocation6 + $0x3a0] ss:$8 sps:$4 sm:$0xff]  }
  0xf9   :  { %1945 = vmatprep.subr.bf16.mxu0 %v2711_v1  ;;  %v2797_v1 = vld [vmem:[#allocation6 + $0x7a0] ss:$8 sps:$4 sm:$0xff]  }
  0xfb   :  { %1782 = vmatpush1.bf16.msra.mxu1 %v2706_v2  ;;  %v2802_v2 = vld [vmem:[#allocation6 + $0x3b4] ss:$8 sps:$4 sm:$0xff]  }
  0xfc   :  { %1946 = vmatpush1.bf16.msra.mxu0 %v2709_v3  ;;  %1783 = vmatprep.subr.bf16.mxu1 %v2714_v4  ;;  %v2805_v3 = vld [vmem:[#allocation6 + $0x7b4] ss:$8 sps:$4 sm:$0xff]   ;;  %v2800_v4 = vld [vmem:[#allocation6 + $0x3b0] ss:$8 sps:$4 sm:$0xff]  }
  0xfd   :  { %1947 = vmatprep.subr.bf16.mxu0 %v2717_v5  ;;  %v2803_v5 = vld [vmem:[#allocation6 + $0x7b0] ss:$8 sps:$4 sm:$0xff]  }
  0xff   :  { %1784 = vmatpush1.bf16.msra.mxu1 %v2712_v6  ;;  %v2808_v6 = vld [vmem:[#allocation6 + $0x3c4] ss:$8 sps:$4 sm:$0xff]  }
 0x100   :  { %1948 = vmatpush1.bf16.msra.mxu0 %v2715_v7  ;;  %1785 = vmatprep.subr.bf16.mxu1 %v2720_v8  ;;  %v2811_v7 = vld [vmem:[#allocation6 + $0x7c4] ss:$8 sps:$4 sm:$0xff]   ;;  %v2806_v8 = vld [vmem:[#allocation6 + $0x3c0] ss:$8 sps:$4 sm:$0xff]  }
 0x101   :  { %1949 = vmatprep.subr.bf16.mxu0 %v2723_v9  ;;  %v2809_v9 = vld [vmem:[#allocation6 + $0x7c0] ss:$8 sps:$4 sm:$0xff]  }
 0x103   :  { %1786 = vmatpush1.bf16.msra.mxu1 %v2718_v10  ;;  %v2814_v10 = vld [vmem:[#allocation6 + $0x3d4] ss:$8 sps:$4 sm:$0xff]  }
 0x104   :  { %1950 = vmatpush1.bf16.msra.mxu0 %v2721_v11  ;;  %1787 = vmatprep.subr.bf16.mxu1 %v2726_v12  ;;  %v2817_v11 = vld [vmem:[#allocation6 + $0x7d4] ss:$8 sps:$4 sm:$0xff]   ;;  %v2812_v12 = vld [vmem:[#allocation6 + $0x3d0] ss:$8 sps:$4 sm:$0xff]  }
 0x105   :  { %1951 = vmatprep.subr.bf16.mxu0 %v2729_v13  ;;  %v2815_v13 = vld [vmem:[#allocation6 + $0x7d0] ss:$8 sps:$4 sm:$0xff]  }
 0x107   :  { %1788 = vmatpush1.bf16.msra.mxu1 %v2724_v14  ;;  %v2820_v14 = vld [vmem:[#allocation6 + $0x3e4] ss:$8 sps:$4 sm:$0xff]  }
 0x108   :  { %1952 = vmatpush1.bf16.msra.mxu0 %v2727_v15  ;;  %1798 = vmatprep.subr.bf16.mxu1 %v2734_v16  ;;  %v2823_v15 = vld [vmem:[#allocation6 + $0x7e4] ss:$8 sps:$4 sm:$0xff]   ;;  %v2818_v16 = vld [vmem:[#allocation6 + $0x3e0] ss:$8 sps:$4 sm:$0xff]  }
 0x109   :  { %1962 = vmatprep.subr.bf16.mxu0 %v2739_v17  ;;  %v2821_v17 = vld [vmem:[#allocation6 + $0x7e0] ss:$8 sps:$4 sm:$0xff]  }
 0x10a   :  { %1790 = vmatmul.mubr.bf16.vlgmr.msra.gmra.mrb[0].mxu1 %v2130_v19  ;;  %v2826_v19 = vld [vmem:[#allocation6 + $0x3f4] ss:$8 sps:$4 sm:$0xff]  }
 0x10b   :  { %1954 = vmatmul.mubr.bf16.vlgmr.msra.gmra.mrb[0].mxu0 %v2138_v21  ;;  %1799 = vmatpush1.bf16.msra.mxu1 %v2732_v24  ;;  %v2829_v21 = vld [vmem:[#allocation6 + $0x7f4] ss:$8 sps:$4 sm:$0xff]   ;;  %v2824_v24 = vld [vmem:[#allocation6 + $0x3f0] ss:$8 sps:$4 sm:$0xff]  }
 0x10c   :  { %1963 = vmatpush1.bf16.msra.mxu0 %v2737_v25  ;;  %1800 = vmatprep.subr.bf16.mxu1 %v2742_v26  ;;  %v2827_v25 = vld [vmem:[#allocation6 + $0x7f0] ss:$8 sps:$4 sm:$0xff]   ;;  %v2132_v26 = vcombine.low %v3061_v22, %v3061_v22 }
 0x10d   :  { %1964 = vmatprep.subr.bf16.mxu0 %v2745_v27  ;;  %1830 = vmatprep.mubr.bf16.mxu1 %v2133_v28  ;;  %v2140_v27 = vcombine.low %v3063_v23, %v3063_v23 }
 0x10e   :  { %1994 = vmatprep.mubr.bf16.mxu0 %v2141_v18 }
 0x10f   :  { %1801 = vmatpush1.bf16.msra.mxu1 %v2740_v20 }
 0x110   :  { %1965 = vmatpush1.bf16.msra.mxu0 %v2743_v29  ;;  %1802 = vmatprep.subr.bf16.mxu1 %v2748_v30 }
 0x111   :  { %1966 = vmatprep.subr.bf16.mxu0 %v2751_v31 }
 0x113   :  { %1803 = vmatpush1.bf16.msra.mxu1 %v2746_v32 }
 0x114   :  { %1967 = vmatpush1.bf16.msra.mxu0 %v2749_v33  ;;  %1804 = vmatprep.subr.bf16.mxu1 %v2754_v34 }
 0x115   :  { %1968 = vmatprep.subr.bf16.mxu0 %v2757_v35 }
 0x117   :  { %1805 = vmatpush1.bf16.msra.mxu1 %v2752_v36 }
 0x118   :  { %1969 = vmatpush1.bf16.msra.mxu0 %v2755_v37  ;;  %1806 = vmatprep.subr.bf16.mxu1 %v2760_v38 }
 0x119   :  { %1970 = vmatprep.subr.bf16.mxu0 %v2763_v39 }
 0x11b   :  { %1807 = vmatpush1.bf16.msra.mxu1 %v2758_v40 }
 0x11c   :  { %1971 = vmatpush1.bf16.msra.mxu0 %v2761_v41  ;;  %1808 = vmatprep.subr.bf16.mxu1 %v2766_v42 }
 0x11d   :  { %1972 = vmatprep.subr.bf16.mxu0 %v2769_v43 }
 0x11f   :  { %1809 = vmatpush1.bf16.msra.mxu1 %v2764_v44 }
 0x120   :  { %1973 = vmatpush1.bf16.msra.mxu0 %v2767_v45  ;;  %1810 = vmatprep.subr.bf16.mxu1 %v2772_v46 }
 0x121   :  { %1974 = vmatprep.subr.bf16.mxu0 %v2775_v47 }
 0x123   :  { %1811 = vmatpush1.bf16.msra.mxu1 %v2770_v48 }
 0x124   :  { %1975 = vmatpush1.bf16.msra.mxu0 %v2773_v49  ;;  %1812 = vmatprep.subr.bf16.mxu1 %v2778_v50 }
 0x125   :  { %1976 = vmatprep.subr.bf16.mxu0 %v2781_v51 }
 0x127   :  { %1813 = vmatpush1.bf16.msra.mxu1 %v2776_v52 }
 0x128   :  { %1977 = vmatpush1.bf16.msra.mxu0 %v2779_v53  ;;  %1814 = vmatprep.subr.bf16.mxu1 %v2784_v54 }
 0x129   :  { %1978 = vmatprep.subr.bf16.mxu0 %v2787_v55 }
 0x12b   :  { %1815 = vmatpush1.bf16.msra.mxu1 %v2782_v56 }
 0x12c   :  { %1979 = vmatpush1.bf16.msra.mxu0 %v2785_v57  ;;  %1816 = vmatprep.subr.bf16.mxu1 %v2790_v58 }
 0x12d   :  { %1980 = vmatprep.subr.bf16.mxu0 %v2793_v59 }
 0x12f   :  { %1817 = vmatpush1.bf16.msra.mxu1 %v2788_v60 }
 0x130   :  { %1981 = vmatpush1.bf16.msra.mxu0 %v2791_v61  ;;  %1818 = vmatprep.subr.bf16.mxu1 %v2796_v62 }
 0x131   :  { %1982 = vmatprep.subr.bf16.mxu0 %v2799_v63 }
 0x133   :  { %1819 = vmatpush1.bf16.msra.mxu1 %v2794_v0 }
 0x134   :  { %1983 = vmatpush1.bf16.msra.mxu0 %v2797_v1  ;;  %1820 = vmatprep.subr.bf16.mxu1 %v2802_v2 }
 0x135   :  { %1984 = vmatprep.subr.bf16.mxu0 %v2805_v3 }
 0x137   :  { %1821 = vmatpush1.bf16.msra.mxu1 %v2800_v4  ;;  %v2962_v4 = vmov 1966171168  }
 0x138   :  { %1985 = vmatpush1.bf16.msra.mxu0 %v2803_v5  ;;  %1822 = vmatprep.subr.bf16.mxu1 %v2808_v6  ;;  %v2054_v5 = vunpack.c.l.s4 %v2962_v4  ;;  %v2056_v6 = vlaneseq }
 0x139   :  { %1986 = vmatprep.subr.bf16.mxu0 %v2811_v7 }
 0x13a   :  { %v2055_v7 = vunpack.c.0.s8 %v2054_v5 }
 0x13b   :  { %1823 = vmatpush1.bf16.msra.mxu1 %v2806_v8  ;;  %v2057_v8 = vshrl.u32 %v2056_v6, 7 }
 0x13c   :  { %1987 = vmatpush1.bf16.msra.mxu0 %v2809_v9  ;;  %1824 = vmatprep.subr.bf16.mxu1 %v2814_v10 }
 0x13d   :  { %1988 = vmatprep.subr.bf16.mxu0 %v2817_v11  ;;  %v2058_v10 = vsub.s32 %v2055_v7, %v2057_v8 }
 0x13f   :  { %1825 = vmatpush1.bf16.msra.mxu1 %v2812_v12 }
 0x140   :  { %1989 = vmatpush1.bf16.msra.mxu0 %v2815_v13  ;;  %1826 = vmatprep.subr.bf16.mxu1 %v2820_v14  ;;  %v2045_v14 = vld [vmem:[#allocation8] sm:$0x3] }
 0x141   :  { %1990 = vmatprep.subr.bf16.mxu0 %v2823_v15 }
 0x143   :  { %1827 = vmatpush1.bf16.msra.mxu1 %v2818_v16  ;;  %v2076_v16 = vsub.s32 1, %v2057_v8 }
 0x144   :  { %1991 = vmatpush1.bf16.msra.mxu0 %v2821_v17  ;;  %1828 = vmatprep.subr.bf16.mxu1 %v2826_v19  ;;  %v2072_v17 = vsub.s32 0, %v2057_v8  ;;  %v2082_v19 = vld [vmem:[#allocation9] sm:$0x3] }
 0x145   :  { %1992 = vmatprep.subr.bf16.mxu0 %v2829_v21 }
 0x147   :  { %1829 = vmatpush1.bf16.msra.mxu1 %v2824_v24 }
 0x148   :  { %1993 = vmatpush1.bf16.msra.mxu0 %v2827_v25 }
 0x14a   :  { %1831 = vmatmul.mubr.bf16.vlgmr.msra.gmra.mrb[0].mxu1 %v2132_v26  ;;  %v2087_v26 = vrot.slane %v2082_v19, %v2072_v17 }
 0x14b   :  { %1995 = vmatmul.mubr.bf16.vlgmr.msra.gmra.mrb[0].mxu0 %v2140_v27  ;;  %v2091_v27 = vrot.slane %v2082_v19, %v2076_v16 }
 0x21d   :  { %v1832_v28 = vpop.f32.mrb[0].mxu1 }
 0x21e   :  { %v1996_v18 = vpop.f32.mrb[0].mxu0  ;;  %v1834_v29 = vpop.f32.mrb[1].mxu1 }
 0x21f   :  { %v2400_v20 = vadd.f32 %v1996_v18, %v1832_v28  ;;  %v1998_v30 = vpop.f32.mrb[1].mxu0  ;;  %v1836_v32 = vpop.f32.mrb[2].mxu1 }
 0x220   :  { %v2401_v31 = vadd.f32 %v1998_v30, %v1834_v29  ;;  %v2000_v33 = vpop.f32.mrb[2].mxu0  ;;  %v1837_v35 = vpop.f32.mrb[3].mxu1 }
 0x221   :  { %v2012_v34 = vrot.slane %v2400_v20, 4  ;;  %v2001_v36 = vpop.f32.mrb[3].mxu0 }
 0x222   :  { %v2018_v37 = vrot.slane %v2401_v31, 4 }
 0x223   :  { %v2013_v22 = vadd.f32 %v2400_v20, %v2012_v34 }
 0x224   :  { %v2019_v38 = vadd.f32 %v2401_v31, %v2018_v37 }
 0x225   :  { %v2014_v39 = vrot.slane %v2013_v22, 2 }
 0x226   :  { %v2020_v23 = vrot.slane %v2019_v38, 2 }
 0x227   :  { %v2015_v40 = vadd.f32 %v2014_v39, %v2013_v22 }
 0x228   :  { %v2021_v41 = vadd.f32 %v2020_v23, %v2019_v38 }
 0x229   :  { %v2016_v42 = vrot.slane %v2015_v40, 1 }
 0x22a   :  { %v2022_v43 = vrot.slane %v2021_v41, 1 }
 0x22b   :  { %v2017_v44 = vadd.f32 %v2016_v42, %v2015_v40 }
 0x22c   :  { %v2023_v45 = vadd.f32 %v2022_v43, %v2021_v41 }
 0x22d   :  { %v2025_v46 = vmul.f32 0.125, %v2017_v44 }
 0x22e   :  { %v2026_v47 = vmul.f32 0.125, %v2023_v45 }
 0x22f   :  { %v2027_v48 = vsub.f32 %v2400_v20, %v2025_v46 }
 0x230   :  { %v2028_v49 = vsub.f32 %v2401_v31, %v2026_v47 }
 0x231   :  { %v2029_v50 = vmul.f32 %v2027_v48, %v2027_v48 }
 0x232   :  { %v2030_v51 = vmul.f32 %v2028_v49, %v2028_v49 }
 0x233   :  { %v2031_v52 = vrot.slane %v2029_v50, 4 }
 0x234   :  { %v2037_v53 = vrot.slane %v2030_v51, 4 }
 0x235   :  { %v2032_v54 = vadd.f32 %v2031_v52, %v2029_v50 }
 0x236   :  { %v2038_v55 = vadd.f32 %v2037_v53, %v2030_v51 }
 0x237   :  { %v2033_v56 = vrot.slane %v2032_v54, 2 }
 0x238   :  { %v2039_v57 = vrot.slane %v2038_v55, 2 }
 0x239   :  { %v2034_v58 = vadd.f32 %v2033_v56, %v2032_v54 }
 0x23a   :  { %v2040_v59 = vadd.f32 %v2039_v57, %v2038_v55 }
 0x23b   :  { %v2035_v60 = vrot.slane %v2034_v58, 1 }
 0x23c   :  { %v2041_v61 = vrot.slane %v2040_v59, 1 }
 0x23d   :  { %v2036_v62 = vadd.f32 %v2035_v60, %v2034_v58 }
 0x23e   :  { %v2042_v63 = vadd.f32 %v2041_v61, %v2040_v59 }
 0x23f   :  { %v2043_v0 = vmul.f32 0.125, %v2036_v62 }
 0x240   :  { %v2044_v1 = vmul.f32 0.125, %v2042_v63 }
 0x241   :  { %v2046_v2 = vadd.f32 1e-05, %v2043_v0 }
 0x242   :  { %v2047_v3 = vadd.f32 1e-05, %v2044_v1 }
 0x243   :  { %2834 = vrsqrt.f32 %v2046_v2 }
 0x244   :  { %2836 = vrsqrt.f32 %v2047_v3 }
 0x24d   :  { %v2835_v9 = vpop.eup %2834 }
 0x24e   :  { %v2837_v11 = vpop.eup %2836 }
 0x24f   :  { %v2052_v12 = vcombine.low %v2835_v9, %v2837_v11 }
 0x251   :  { %v2059_v13 = vrot.slane %v2052_v12, %v2058_v10 }
 0x253   :  { %v2066_v15 = vrot.slane %v2059_v13, %v2058_v10 }
 0x255   :  { %v2068_v21 = vmul.f32 %v2066_v15, %v2045_v14 }
 0x257   :  { %v2077_v24 = vrot.slane %v2068_v21, %v2076_v16  ;;  %v2073_v25 = vrot.slane %v2068_v21, %v2072_v17 }
 0x259   :  { %v2081_v28 = vmul.f32 %v2077_v24, %v2028_v49  ;;  %v2080_v18 = vmul.f32 %v2073_v25, %v2027_v48 }
 0x25b   :  { %v2094_v20 = vadd.f32 %v2087_v26, %v2080_v18  ;;  %v2095_v29 = vadd.f32 %v2091_v27, %v2081_v28 }
 0x25d   :  { %v2096_v30 = vmul.f32 0.2, %v2094_v20  ;;  %v2097_v31 = vmul.f32 0.2, %v2095_v29 }
 0x25f   :  { %v2098_v32 = vmax.f32 %v2094_v20, %v2096_v30  ;;  %v2099_v33 = vmax.f32 %v2095_v29, %v2097_v31 }
 0x261   :  { %v2399_v34 = vpack.c.bf16 %v2099_v33, %v2098_v32 }
 0x263   :  { %2108 = vst [vmem:[#allocation11] sm:$0xff] %v2399_v34 }
 0x264   :  { %2937 = shalt.err (!%p2934_p8)
}
 0x265   :  { %s2938_s1 = scalar_lea.hbm %s3089_s4, 128 }
 0x266   :  { %p2939_p9 = scmp.ne.s32.totalorder %s3089_s4, %s2938_s1  ;;  %p2942_p10 = scmp.lt.u32.totalorder %s2938_s1, %s3089_s4 }
 0x268   :  { %p2944_p11 = pnand %p2942_p10, %p2939_p9 }
 0x26a   :  { %2947 = shalt.err (!%p2944_p11)
}
 0x26b   :  { %2118 = dma.vmem_to_hbm [thread:$0]  %s2116_s10, 128, %s3089_s4, [#allocation5]  }
 0x26c   :  { %2954 = dma.done.wait [#allocation5], 128  }
 0x26d   :  { %2955 = vsyncadd [#allocation5], 4294967168 }
 0x26e   :  { %2122 = vsyncpa [#allocation4], 1 }
 0x26f   :  { %2123 = vsyncpa [#allocation7], 1 }
 0x270   :  { %2124 = vsyncpa [#allocation10], 1 }
 0x271   :  { %2125 = vsyncpa [#allocation5], 1 }

// kernel: discriminator_forward.9
= control target key start
LH: loop header
LB: loop body
LE: loop exit
PB: predicated region body
PF: predicated region fallthrough
CT: control target
= control target key end

     0   :  { %8 = vsyncpa [#allocation4], 0  ;;  %s744_s0 = inlined_call_operand.hbm [shape: bf16[2,512], index: 0, kind: input, shape index: {}]   ;;  %s745_s1 = inlined_call_operand.hbm [shape: bf16[512,128], index: 1, kind: input, shape index: {}]   ;;  %s746_s2 = inlined_call_operand.hbm [shape: f32[1,128], index: 2, kind: input, shape index: {}]   ;;  %s747_s3 = inlined_call_operand.hbm [shape: f32[2,128], index: 3, kind: output, shape index: {}]  }
   0x1   :  { %9 = vsyncpa [#allocation7], 0 }
   0x2   :  { %10 = vsyncpa [#allocation5], 0  ;;  %s668_s12 = smov [#allocation6]   ;;  %s574_s16 = scalar_lea.hbm %s745_s1, 4096 }
   0x3   :  { %s26_s13 = sshll.u32 %s668_s12, 4  ;;  %p575_p0 = scmp.ne.s32.totalorder %s745_s1, %s574_s16  ;;  %s27_s13 = int_to_ptr.vmem [resolvable:$true] %s26_s13 }
   0x4   :  { %p578_p1 = scmp.lt.u32.totalorder %s574_s16, %s745_s1 }
   0x6   :  { %p580_p2 = pnand %p578_p1, %p575_p0 }
   0x8   :  { %583 = shalt.err (!%p580_p2)
}
   0x9   :  { %s584_s21 = scalar_lea.vmem %s27_s13, 4096  ;;  %p589_p4 = scmp.lt.s32.totalorder %s27_s13, %s27_s13 }
   0xa   :  { %p585_p3 = scmp.ne.s32.totalorder %s27_s13, %s584_s21  ;;  %p590_p5 = scmp.lt.s32.totalorder %s584_s21, %s584_s21 }
   0xc   :  { %p591_p6 = por %p590_p5, %p589_p4 }
   0xe   :  { %p592_p7 = pnand %p591_p6, %p585_p3 }
  0x10   :  { %595 = shalt.err (!%p592_p7)
}
  0x11   :  { %s669_s22 = smov 64   ;;  %s670_s23 = smov 4  }
  0x12   :  { %32 = dma.hbm_to_vmem [thread:$0]  %s745_s1, 4096, %s27_s13, [#allocation7], %s669_s22, %s669_s22, %s670_s23  }
  0x13   :  { %s671_s26 = smov [#allocation3]   ;;  %s672_s28 = smov [#allocation8]  }
  0x14   :  { %s17_s27 = sshll.u32 %s671_s26, 4  ;;  %s39_s29 = sshll.u32 %s672_s28, 4  ;;  %s18_s27 = int_to_ptr.vmem [resolvable:$true] %s17_s27  ;;  %s40_s29 = int_to_ptr.vmem [resolvable:$true] %s39_s29 }
  0x15   :  { %s596_s5 = scalar_lea.hbm %s744_s0, 64 }
  0x16   :  { %p597_p8 = scmp.ne.s32.totalorder %s744_s0, %s596_s5  ;;  %p600_p9 = scmp.lt.u32.totalorder %s596_s5, %s744_s0 }
  0x18   :  { %p602_p10 = pnand %p600_p9, %p597_p8 }
  0x1a   :  { %605 = shalt.err (!%p602_p10)
}
  0x1b   :  { %s606_s1 = scalar_lea.vmem %s18_s27, 64  ;;  %p611_p12 = scmp.lt.s32.totalorder %s18_s27, %s18_s27 }
  0x1c   :  { %p607_p11 = scmp.ne.s32.totalorder %s18_s27, %s606_s1  ;;  %p612_p13 = scmp.lt.s32.totalorder %s606_s1, %s606_s1 }
  0x1e   :  { %p613_p0 = por %p612_p13, %p611_p12 }
  0x20   :  { %p614_p1 = pnand %p613_p0, %p607_p11 }
  0x22   :  { %617 = shalt.err (!%p614_p1)
}
  0x23   :  { %20 = dma.hbm_to_vmem [thread:$0]  %s744_s0, 64, %s18_s27, [#allocation4]  }
  0x24   :  { %s618_s14 = scalar_lea.hbm %s746_s2, 16 }
  0x25   :  { %p619_p2 = scmp.ne.s32.totalorder %s746_s2, %s618_s14  ;;  %p622_p3 = scmp.lt.u32.totalorder %s618_s14, %s746_s2 }
  0x27   :  { %p624_p4 = pnand %p622_p3, %p619_p2 }
  0x29   :  { %627 = shalt.err (!%p624_p4)
}
  0x2a   :  { %s628_s19 = scalar_lea.vmem %s40_s29, 16  ;;  %s632_s20 = scalar_lea.vmem %s40_s29, 32 }
  0x2b   :  { %p629_p5 = scmp.ne.s32.totalorder %s40_s29, %s628_s19  ;;  %p633_p6 = scmp.lt.s32.totalorder %s40_s29, %s40_s29 }
  0x2c   :  { %p634_p7 = scmp.lt.s32.totalorder %s632_s20, %s628_s19 }
  0x2e   :  { %p635_p8 = por %p634_p7, %p633_p6 }
  0x30   :  { %p636_p9 = pnand %p635_p8, %p629_p5 }
  0x32   :  { %639 = shalt.err (!%p636_p9)
}
  0x33   :  { %42 = dma.hbm_to_vmem [thread:$0]  %s746_s2, 16, %s40_s29, [#allocation7]  }
  0x34   :  { %662 = dma.done.wait [#allocation4], 64  }
  0x35   :  { %663 = vsyncadd [#allocation4], 4294967232 }
  0x36   :  { %664 = dma.done.wait [#allocation7], 4112  }
  0x37   :  { %665 = vsyncadd [#allocation7], 4294963184  ;;  %v542_v0 = vld [vmem:[#allocation6 + $0x40] sm:$0xff]   ;;  %v546_v4 = vld [vmem:[#allocation6 + $0x48] sm:$0xff]   ;;  %v673_v22 = vmov 1966171168   ;;  %v136_v24 = vlaneseq }
  0x38   :  { %v543_v1 = vld [vmem:[#allocation6 + $0xc0] sm:$0xff]   ;;  %490 = vmatprep.subr.bf16.mxu0 %v542_v0  ;;  %v547_v5 = vld [vmem:[#allocation6 + $0xc8] sm:$0xff]   ;;  %v550_v8 = vld [vmem:[#allocation6 + $0x50] sm:$0xff]   ;;  %v134_v23 = vunpack.c.l.s4 %v673_v22  ;;  %v674_v44 = vmov 0.0   ;;  %s675_s2 = smov [#allocation9]  }
  0x39   :  { %v544_v2 = vld [vmem:[#allocation6] sm:$0xff]   ;;  %512 = vmatprep.subr.bf16.mxu1 %v543_v1  ;;  %v548_v6 = vld [vmem:[#allocation6 + $0x8] sm:$0xff]   ;;  %v551_v9 = vld [vmem:[#allocation6 + $0xd0] sm:$0xff]   ;;  %v137_v30 = vshrl.u32 %v136_v24, 7  ;;  %57 = vst [vmem:[#allocation2] sm:$0x3] %v674_v44 }
  0x3a   :  { %v545_v3 = vld [vmem:[#allocation6 + $0x80] sm:$0xff]   ;;  %491 = vmatpush3.bf16.msra.mxu0 %v544_v2  ;;  %v549_v7 = vld [vmem:[#allocation6 + $0x88] sm:$0xff]   ;;  %v552_v10 = vld [vmem:[#allocation6 + $0x10] sm:$0xff]   ;;  %v135_v29 = vunpack.c.0.s8 %v134_v23  ;;  %s446_s22 = sshll.u32 %s675_s2, 4  ;;  %s447_s22 = int_to_ptr.vmem [resolvable:$true] %s446_s22 }
  0x3b   :  { %513 = vmatpush3.bf16.msra.mxu1 %v545_v3  ;;  %492 = vmatprep.subr.bf16.mxu0 %v546_v4  ;;  %v553_v11 = vld [vmem:[#allocation6 + $0x90] sm:$0xff]   ;;  %v554_v12 = vld [vmem:[#allocation6 + $0x58] sm:$0xff]   ;;  %v558_v16 = vld [vmem:[#allocation6 + $0x60] sm:$0xff]   ;;  %s640_s23 = scalar_lea.vmem %s447_s22, 32  ;;  %p645_p11 = scmp.lt.s32.totalorder %s447_s22, %s447_s22 }
  0x3c   :  { %514 = vmatprep.subr.bf16.mxu1 %v547_v5  ;;  %v555_v13 = vld [vmem:[#allocation6 + $0xd8] sm:$0xff]   ;;  %v559_v17 = vld [vmem:[#allocation6 + $0xe0] sm:$0xff]   ;;  %v562_v20 = vld [vmem:[#allocation6 + $0x68] sm:$0xff]   ;;  %v138_v35 = vsub.s32 %v135_v29, %v137_v30  ;;  %p641_p10 = scmp.ne.s32.totalorder %s447_s22, %s640_s23  ;;  %p646_p12 = scmp.lt.s32.totalorder %s640_s23, %s640_s23 }
  0x3d   :  { %v556_v14 = vld [vmem:[#allocation6 + $0x18] sm:$0xff]   ;;  %v560_v18 = vld [vmem:[#allocation6 + $0x20] sm:$0xff]   ;;  %v563_v21 = vld [vmem:[#allocation6 + $0xe8] sm:$0xff]  }
  0x3e   :  { %493 = vmatpush3.bf16.msra.mxu0 %v548_v6  ;;  %v557_v15 = vld [vmem:[#allocation6 + $0x98] sm:$0xff]   ;;  %v561_v19 = vld [vmem:[#allocation6 + $0xa0] sm:$0xff]   ;;  %v564_v25 = vld [vmem:[#allocation6 + $0x28] sm:$0xff]   ;;  %p647_p13 = por %p646_p12, %p645_p11 }
  0x3f   :  { %515 = vmatpush3.bf16.msra.mxu1 %v549_v7  ;;  %494 = vmatprep.subr.bf16.mxu0 %v550_v8  ;;  %v565_v26 = vld [vmem:[#allocation6 + $0xa8] sm:$0xff]   ;;  %v566_v27 = vld [vmem:[#allocation6 + $0x70] sm:$0xff]   ;;  %v570_v33 = vld [vmem:[#allocation6 + $0x78] sm:$0xff]  }
  0x40   :  { %516 = vmatprep.subr.bf16.mxu1 %v551_v9  ;;  %v567_v28 = vld [vmem:[#allocation6 + $0xf0] sm:$0xff]   ;;  %v571_v34 = vld [vmem:[#allocation6 + $0xf8] sm:$0xff]   ;;  %v489_v58 = vld [vmem:[#allocation8] ss:$0 sm:$0xff]  ;;  %p648_p0 = pnand %p647_p13, %p641_p10 }
  0x41   :  { %v568_v31 = vld [vmem:[#allocation6 + $0x30] sm:$0xff]   ;;  %v572_v36 = vld [vmem:[#allocation6 + $0x38] sm:$0xff]  }
  0x42   :  { %495 = vmatpush3.bf16.msra.mxu0 %v552_v10  ;;  %v569_v32 = vld [vmem:[#allocation6 + $0xb0] sm:$0xff]   ;;  %v573_v37 = vld [vmem:[#allocation6 + $0xb8] sm:$0xff]  }
  0x43   :  { %517 = vmatpush3.bf16.msra.mxu1 %v553_v11  ;;  %496 = vmatprep.subr.bf16.mxu0 %v554_v12  ;;  %v456_v38 = vld.sshfl [vmem:[#allocation3] sm:$0x33 pattern:$0x75316420]  ;;  %v58_v54 = vld [vmem:[#allocation2] sm:$0x3] }
  0x44   :  { %518 = vmatprep.subr.bf16.mxu1 %v555_v13  ;;  %v132_v39 = vcombine.high %v456_v38, %v456_v38  ;;  %v139_v40 = vrot.slane %v456_v38, %v138_v35 }
  0x46   :  { %497 = vmatpush3.bf16.msra.mxu0 %v556_v14  ;;  %v146_v41 = vrot.slane %v132_v39, %v138_v35  ;;  %v147_v42 = vcombine.high %v139_v40, %v139_v40 }
  0x47   :  { %519 = vmatpush3.bf16.msra.mxu1 %v557_v15  ;;  %498 = vmatprep.subr.bf16.mxu0 %v558_v16 }
  0x48   :  { %520 = vmatprep.subr.bf16.mxu1 %v559_v17  ;;  %377 = vmatprep.mubr.bf16.mxu0 %v146_v41  ;;  %v148_v43 = vcombine.high %v146_v41, %v146_v41 }
  0x4a   :  { %499 = vmatpush3.bf16.msra.mxu0 %v560_v18  ;;  %417 = vmatprep.mubr.bf16.mxu1 %v148_v43 }
  0x4b   :  { %521 = vmatpush3.bf16.msra.mxu1 %v561_v19  ;;  %500 = vmatprep.subr.bf16.mxu0 %v562_v20 }
  0x4c   :  { %522 = vmatprep.subr.bf16.mxu1 %v563_v21 }
  0x4e   :  { %501 = vmatpush3.bf16.msra.mxu0 %v564_v25 }
  0x4f   :  { %523 = vmatpush3.bf16.msra.mxu1 %v565_v26  ;;  %502 = vmatprep.subr.bf16.mxu0 %v566_v27 }
  0x50   :  { %524 = vmatprep.subr.bf16.mxu1 %v567_v28 }
  0x52   :  { %503 = vmatpush3.bf16.msra.mxu0 %v568_v31 }
  0x53   :  { %525 = vmatpush3.bf16.msra.mxu1 %v569_v32  ;;  %504 = vmatprep.subr.bf16.mxu0 %v570_v33 }
  0x54   :  { %526 = vmatprep.subr.bf16.mxu1 %v571_v34 }
  0x56   :  { %505 = vmatpush3.bf16.msra.mxu0 %v572_v36 }
  0x57   :  { %527 = vmatpush3.bf16.msra.mxu1 %v573_v37 }
  0x59   :  { %378 = vmatmul.mubr.bf16.vlgmr.msra.gmra.mrb[0].mxu0 %v139_v40 }
  0x5a   :  { %418 = vmatmul.mubr.bf16.vlgmr.msra.gmra.mrb[0].mxu1 %v147_v42 }
 0x12c   :  { %v506_v45 = vpop.f32.mrb[0].mxu0 }
 0x12d   :  { %v507_v46 = vpop.f32.mrb[1].mxu0  ;;  %v528_v47 = vpop.f32.mrb[0].mxu1 }
 0x12e   :  { %v508_v48 = vadd.f32 %v507_v46, %v506_v45  ;;  %v509_v49 = vpop.f32.mrb[2].mxu0  ;;  %v529_v50 = vpop.f32.mrb[1].mxu1 }
 0x12f   :  { %v510_v51 = vpop.f32.mrb[3].mxu0  ;;  %v530_v52 = vadd.f32 %v529_v50, %v528_v47  ;;  %v531_v53 = vpop.f32.mrb[2].mxu1 }
 0x130   :  { %v532_v55 = vpop.f32.mrb[3].mxu1 }
 0x131   :  { %v420_v56 = vadd.f32 %v530_v52, %v508_v48 }
 0x133   :  { %v425_v57 = vadd.f32 %v420_v56, %v58_v54 }
 0x135   :  { %426 = vst [vmem:[#allocation2] sm:$0x3] %v425_v57 }
 0x13c   :  { %v430_v59 = vld [vmem:[#allocation2] sm:$0x3] }
 0x13d   :  { %v438_v60 = vadd.f32 %v489_v58, %v430_v59 }
 0x13f   :  { %439 = vst [vmem:[#allocation9] sm:$0x3] %v438_v60 }
 0x140   :  { %651 = shalt.err (!%p648_p0)
}
 0x141   :  { %s652_s26 = scalar_lea.hbm %s747_s3, 32 }
 0x142   :  { %p653_p1 = scmp.ne.s32.totalorder %s747_s3, %s652_s26  ;;  %p656_p2 = scmp.lt.u32.totalorder %s652_s26, %s747_s3 }
 0x144   :  { %p658_p3 = pnand %p656_p2, %p653_p1 }
 0x146   :  { %661 = shalt.err (!%p658_p3)
}
 0x147   :  { %449 = dma.vmem_to_hbm [thread:$0]  %s447_s22, 32, %s747_s3, [#allocation5]  }
 0x148   :  { %666 = dma.done.wait [#allocation5], 32  }
 0x149   :  { %667 = vsyncadd [#allocation5], 4294967264 }
 0x14a   :  { %453 = vsyncpa [#allocation4], 1 }
 0x14b   :  { %454 = vsyncpa [#allocation7], 1 }
 0x14c   :  { %455 = vsyncpa [#allocation5], 1 }

// kernel: discriminator_forward.8
= control target key start
LH: loop header
LB: loop body
LE: loop exit
PB: predicated region body
PF: predicated region fallthrough
CT: control target
= control target key end

     0   :  { %9 = vsyncpa [#allocation4], 0  ;;  %s11240_s0 = inlined_call_operand.hbm [shape: bf16[2,4096], index: 0, kind: input, shape index: {}]   ;;  %s11241_s1 = inlined_call_operand.hbm [shape: bf16[4096,512], index: 1, kind: input, shape index: {}]   ;;  %s11242_s2 = inlined_call_operand.hbm [shape: f32[1,512], index: 2, kind: input, shape index: {}]   ;;  %s11243_s3 = inlined_call_operand.hbm [shape: f32[1,512], index: 3, kind: input, shape index: {}]   ;;  %s11244_s4 = inlined_call_operand.hbm [shape: bf16[2,512], index: 4, kind: output, shape index: {}]  }
   0x1   :  { %10 = vsyncpa [#allocation7], 0 }
   0x2   :  { %11 = vsyncpa [#allocation10], 0 }
   0x3   :  { %12 = vsyncpa [#allocation5], 0  ;;  %s10939_s15 = smov [#allocation6]   ;;  %s10821_s19 = scalar_lea.hbm %s11241_s1, 131072 }
   0x4   :  { %s28_s16 = sshll.u32 %s10939_s15, 4  ;;  %p10822_p0 = scmp.ne.s32.totalorder %s11241_s1, %s10821_s19  ;;  %s29_s16 = int_to_ptr.vmem [resolvable:$true] %s28_s16 }
   0x5   :  { %p10825_p1 = scmp.lt.u32.totalorder %s10821_s19, %s11241_s1 }
   0x7   :  { %p10827_p2 = pnand %p10825_p1, %p10822_p0 }
   0x9   :  { %10830 = shalt.err (!%p10827_p2)
}
   0xa   :  { %s10831_s24 = scalar_lea.vmem %s29_s16, 131072  ;;  %p10836_p4 = scmp.lt.s32.totalorder %s29_s16, %s29_s16 }
   0xb   :  { %p10832_p3 = scmp.ne.s32.totalorder %s29_s16, %s10831_s24  ;;  %p10837_p5 = scmp.lt.s32.totalorder %s10831_s24, %s10831_s24 }
   0xd   :  { %p10838_p6 = por %p10837_p5, %p10836_p4 }
   0xf   :  { %p10839_p7 = pnand %p10838_p6, %p10832_p3 }
  0x11   :  { %10842 = shalt.err (!%p10839_p7)
}
  0x12   :  { %s10940_s25 = smov 256   ;;  %s10941_s26 = smov 16  }
  0x13   :  { %34 = dma.hbm_to_vmem [thread:$0]  %s11241_s1, 131072, %s29_s16, [#allocation7], %s10940_s25, %s10940_s25, %s10941_s26  }
  0x14   :  { %s10942_s29 = smov [#allocation3]   ;;  %s10943_s5 = smov [#allocation8]  }
  0x15   :  { %s19_s30 = sshll.u32 %s10942_s29, 4  ;;  %s41_s6 = sshll.u32 %s10943_s5, 4  ;;  %s20_s30 = int_to_ptr.vmem [resolvable:$true] %s19_s30  ;;  %s42_s6 = int_to_ptr.vmem [resolvable:$true] %s41_s6 }
  0x16   :  { %s10843_s9 = scalar_lea.hbm %s11240_s0, 512 }
  0x17   :  { %p10844_p8 = scmp.ne.s32.totalorder %s11240_s0, %s10843_s9  ;;  %p10847_p9 = scmp.lt.u32.totalorder %s10843_s9, %s11240_s0 }
  0x19   :  { %p10849_p10 = pnand %p10847_p9, %p10844_p8 }
  0x1b   :  { %10852 = shalt.err (!%p10849_p10)
}
  0x1c   :  { %s10853_s1 = scalar_lea.vmem %s20_s30, 512  ;;  %p10858_p12 = scmp.lt.s32.totalorder %s20_s30, %s20_s30 }
  0x1d   :  { %p10854_p11 = scmp.ne.s32.totalorder %s20_s30, %s10853_s1  ;;  %p10859_p13 = scmp.lt.s32.totalorder %s10853_s1, %s10853_s1 }
  0x1f   :  { %p10860_p0 = por %p10859_p13, %p10858_p12 }
  0x21   :  { %p10861_p1 = pnand %p10860_p0, %p10854_p11 }
  0x23   :  { %10864 = shalt.err (!%p10861_p1)
}
  0x24   :  { %22 = dma.hbm_to_vmem [thread:$0]  %s11240_s0, 512, %s20_s30, [#allocation4]  }
  0x25   :  { %s10865_s18 = scalar_lea.hbm %s11242_s2, 64 }
  0x26   :  { %p10866_p2 = scmp.ne.s32.totalorder %s11242_s2, %s10865_s18  ;;  %p10869_p3 = scmp.lt.u32.totalorder %s10865_s18, %s11242_s2 }
  0x28   :  { %p10871_p4 = pnand %p10869_p3, %p10866_p2 }
  0x2a   :  { %10874 = shalt.err (!%p10871_p4)
}
  0x2b   :  { %s10875_s23 = scalar_lea.vmem %s42_s6, 64  ;;  %p10880_p6 = scmp.lt.s32.totalorder %s42_s6, %s42_s6 }
  0x2c   :  { %p10876_p5 = scmp.ne.s32.totalorder %s42_s6, %s10875_s23  ;;  %p10881_p7 = scmp.lt.s32.totalorder %s10875_s23, %s10875_s23 }
  0x2e   :  { %p10882_p8 = por %p10881_p7, %p10880_p6 }
  0x30   :  { %p10883_p9 = pnand %p10882_p8, %p10876_p5 }
  0x32   :  { %10886 = shalt.err (!%p10883_p9)
}
  0x33   :  { %44 = dma.hbm_to_vmem [thread:$0]  %s11242_s2, 64, %s42_s6, [#allocation7]  }
  0x34   :  { %s10944_s25 = smov [#allocation9]   ;;  %s10887_s29 = scalar_lea.hbm %s11243_s3, 64 }
  0x35   :  { %s51_s26 = sshll.u32 %s10944_s25, 4  ;;  %p10888_p10 = scmp.ne.s32.totalorder %s11243_s3, %s10887_s29  ;;  %s52_s26 = int_to_ptr.vmem [resolvable:$true] %s51_s26 }
  0x36   :  { %p10891_p11 = scmp.lt.u32.totalorder %s10887_s29, %s11243_s3 }
  0x38   :  { %p10893_p12 = pnand %p10891_p11, %p10888_p10 }
  0x3a   :  { %10896 = shalt.err (!%p10893_p12)
}
  0x3b   :  { %s10897_s9 = scalar_lea.vmem %s52_s26, 64  ;;  %p10902_p0 = scmp.lt.s32.totalorder %s52_s26, %s52_s26 }
  0x3c   :  { %p10898_p13 = scmp.ne.s32.totalorder %s52_s26, %s10897_s9  ;;  %p10903_p1 = scmp.lt.s32.totalorder %s10897_s9, %s10897_s9 }
  0x3e   :  { %p10904_p2 = por %p10903_p1, %p10902_p0 }
  0x40   :  { %p10905_p3 = pnand %p10904_p2, %p10898_p13 }
  0x42   :  { %10908 = shalt.err (!%p10905_p3)
}
  0x43   :  { %54 = dma.hbm_to_vmem [thread:$0]  %s11243_s3, 64, %s52_s26, [#allocation10]  }
  0x44   :  { %10931 = dma.done.wait [#allocation4], 512  }
  0x45   :  { %10932 = vsyncadd [#allocation4], 4294966784 }
  0x46   :  { %10933 = dma.done.wait [#allocation7], 131136  }
  0x47   :  { %10934 = vsyncadd [#allocation7], 4294836160 }
  0x48   :  { %10935 = dma.done.wait [#allocation10], 64  }
  0x49   :  { %10936 = vsyncadd [#allocation10], 4294967232  ;;  %v9271_v0 = vld [vmem:[#allocation6 + $0x4] ss:$16 sps:$4 sm:$0xff]   ;;  %v9273_v1 = vld [vmem:[#allocation6 + $0xc] ss:$16 sps:$4 sm:$0xff]   ;;  %v1109_v38 = vlaneseq }
  0x4a   :  { %6453 = vmatprep.subr.bf16.mxu0 %v9271_v0  ;;  %v9275_v2 = vld [vmem:[#allocation6] ss:$16 sps:$4 sm:$0xff]   ;;  %v9276_v3 = vld [vmem:[#allocation6 + $0x8] ss:$16 sps:$4 sm:$0xff]   ;;  %7109 = vmatprep.subr.bf16.mxu1 %v9273_v1  ;;  %v9277_v4 = vld [vmem:[#allocation6 + $0x24] ss:$16 sps:$4 sm:$0xff]  }
  0x4b   :  { %6454 = vmatpush1.bf16.msra.mxu0 %v9275_v2  ;;  %7110 = vmatpush1.bf16.msra.mxu1 %v9276_v3  ;;  %v9279_v5 = vld [vmem:[#allocation6 + $0x2c] ss:$16 sps:$4 sm:$0xff]   ;;  %v9281_v6 = vld [vmem:[#allocation6 + $0x20] ss:$16 sps:$4 sm:$0xff]   ;;  %v9282_v7 = vld [vmem:[#allocation6 + $0x28] ss:$16 sps:$4 sm:$0xff]  }
  0x4c   :  { %6455 = vmatprep.subr.bf16.mxu0 %v9277_v4  ;;  %7111 = vmatprep.subr.bf16.mxu1 %v9279_v5  ;;  %v9283_v8 = vld [vmem:[#allocation6 + $0x44] ss:$16 sps:$4 sm:$0xff]   ;;  %v9285_v9 = vld [vmem:[#allocation6 + $0x4c] ss:$16 sps:$4 sm:$0xff]   ;;  %v9287_v10 = vld [vmem:[#allocation6 + $0x40] ss:$16 sps:$4 sm:$0xff]  }
  0x4d   :  { %v9288_v11 = vld [vmem:[#allocation6 + $0x48] ss:$16 sps:$4 sm:$0xff]   ;;  %v9289_v12 = vld [vmem:[#allocation6 + $0x64] ss:$16 sps:$4 sm:$0xff]   ;;  %v9291_v13 = vld [vmem:[#allocation6 + $0x6c] ss:$16 sps:$4 sm:$0xff]  }
  0x4e   :  { %v9293_v14 = vld [vmem:[#allocation6 + $0x60] ss:$16 sps:$4 sm:$0xff]   ;;  %v9294_v15 = vld [vmem:[#allocation6 + $0x68] ss:$16 sps:$4 sm:$0xff]   ;;  %v9295_v16 = vld [vmem:[#allocation6 + $0x84] ss:$16 sps:$4 sm:$0xff]  }
  0x4f   :  { %6456 = vmatpush1.bf16.msra.mxu0 %v9281_v6  ;;  %7112 = vmatpush1.bf16.msra.mxu1 %v9282_v7  ;;  %v9297_v17 = vld [vmem:[#allocation6 + $0x8c] ss:$16 sps:$4 sm:$0xff]   ;;  %v9299_v18 = vld [vmem:[#allocation6 + $0x80] ss:$16 sps:$4 sm:$0xff]   ;;  %v9300_v19 = vld [vmem:[#allocation6 + $0x88] ss:$16 sps:$4 sm:$0xff]  }
  0x50   :  { %6457 = vmatprep.subr.bf16.mxu0 %v9283_v8  ;;  %7113 = vmatprep.subr.bf16.mxu1 %v9285_v9  ;;  %v9301_v20 = vld [vmem:[#allocation6 + $0xa4] ss:$16 sps:$4 sm:$0xff]   ;;  %v9303_v21 = vld [vmem:[#allocation6 + $0xac] ss:$16 sps:$4 sm:$0xff]   ;;  %v9305_v22 = vld [vmem:[#allocation6 + $0xa0] ss:$16 sps:$4 sm:$0xff]  }
  0x51   :  { %v9306_v23 = vld [vmem:[#allocation6 + $0xa8] ss:$16 sps:$4 sm:$0xff]   ;;  %v9307_v24 = vld [vmem:[#allocation6 + $0xc4] ss:$16 sps:$4 sm:$0xff]   ;;  %v9309_v25 = vld [vmem:[#allocation6 + $0xcc] ss:$16 sps:$4 sm:$0xff]  }
  0x52   :  { %v9311_v26 = vld [vmem:[#allocation6 + $0xc0] ss:$16 sps:$4 sm:$0xff]   ;;  %v9312_v27 = vld [vmem:[#allocation6 + $0xc8] ss:$16 sps:$4 sm:$0xff]   ;;  %v9313_v28 = vld [vmem:[#allocation6 + $0xe4] ss:$16 sps:$4 sm:$0xff]  }
  0x53   :  { %6458 = vmatpush1.bf16.msra.mxu0 %v9287_v10  ;;  %7114 = vmatpush1.bf16.msra.mxu1 %v9288_v11  ;;  %v9315_v29 = vld [vmem:[#allocation6 + $0xec] ss:$16 sps:$4 sm:$0xff]   ;;  %v9317_v30 = vld [vmem:[#allocation6 + $0xe0] ss:$16 sps:$4 sm:$0xff]   ;;  %v9318_v31 = vld [vmem:[#allocation6 + $0xe8] ss:$16 sps:$4 sm:$0xff]  }
  0x54   :  { %6459 = vmatprep.subr.bf16.mxu0 %v9289_v12  ;;  %7115 = vmatprep.subr.bf16.mxu1 %v9291_v13  ;;  %v9319_v32 = vld [vmem:[#allocation6 + $0x104] ss:$16 sps:$4 sm:$0xff]   ;;  %v9321_v33 = vld [vmem:[#allocation6 + $0x10c] ss:$16 sps:$4 sm:$0xff]   ;;  %v9323_v34 = vld [vmem:[#allocation6 + $0x100] ss:$16 sps:$4 sm:$0xff]  }
  0x55   :  { %v9324_v35 = vld [vmem:[#allocation6 + $0x108] ss:$16 sps:$4 sm:$0xff]   ;;  %v10945_v36 = vmov 1966171168   ;;  %v9325_v39 = vld [vmem:[#allocation6 + $0x124] ss:$16 sps:$4 sm:$0xff]  }
  0x56   :  { %v1107_v37 = vunpack.c.l.s4 %v10945_v36  ;;  %v9327_v40 = vld [vmem:[#allocation6 + $0x12c] ss:$16 sps:$4 sm:$0xff]   ;;  %v9329_v41 = vld [vmem:[#allocation6 + $0x120] ss:$16 sps:$4 sm:$0xff]   ;;  %v11021_v43 = vshrl.u32 %v1109_v38, 7  ;;  %vm7815_vm0 = vcmask 1041408  }
  0x57   :  { %6460 = vmatpush1.bf16.msra.mxu0 %v9293_v14  ;;  %7116 = vmatpush1.bf16.msra.mxu1 %v9294_v15  ;;  %v9330_v44 = vld [vmem:[#allocation6 + $0x128] ss:$16 sps:$4 sm:$0xff]   ;;  %v9331_v45 = vld [vmem:[#allocation6 + $0x144] ss:$16 sps:$4 sm:$0xff]   ;;  %v9333_v46 = vld [vmem:[#allocation6 + $0x14c] ss:$16 sps:$4 sm:$0xff]  }
  0x58   :  { %6461 = vmatprep.subr.bf16.mxu0 %v9295_v16  ;;  %7117 = vmatprep.subr.bf16.mxu1 %v9297_v17  ;;  %v1108_v42 = vunpack.c.0.s8 %v1107_v37  ;;  %v9335_v47 = vld [vmem:[#allocation6 + $0x140] ss:$16 sps:$4 sm:$0xff]   ;;  %v9336_v48 = vld [vmem:[#allocation6 + $0x148] ss:$16 sps:$4 sm:$0xff]   ;;  %v9337_v50 = vld [vmem:[#allocation6 + $0x164] ss:$16 sps:$4 sm:$0xff]  }
  0x59   :  { %v9339_v51 = vld [vmem:[#allocation6 + $0x16c] ss:$16 sps:$4 sm:$0xff]   ;;  %v11026_v52 = vld [vmem:[#allocation3] sm:$0xff]  ;;  %v9342_v55 = vld [vmem:[#allocation6 + $0x168] ss:$16 sps:$4 sm:$0xff]   ;;  %s10947_s3 = smov [#allocation11]  }
  0x5a   :  { %v11024_v49 = vsub.s32 %v1108_v42, %v11021_v43  ;;  %v9341_v53 = vld [vmem:[#allocation6 + $0x160] ss:$16 sps:$4 sm:$0xff]   ;;  %v9343_v56 = vld [vmem:[#allocation6 + $0x184] ss:$16 sps:$4 sm:$0xff]   ;;  %v9345_v57 = vld [vmem:[#allocation6 + $0x18c] ss:$16 sps:$4 sm:$0xff]  }
  0x5b   :  { %6462 = vmatpush1.bf16.msra.mxu0 %v9299_v18  ;;  %7118 = vmatpush1.bf16.msra.mxu1 %v9300_v19  ;;  %v9347_v59 = vld [vmem:[#allocation6 + $0x180] ss:$16 sps:$4 sm:$0xff]   ;;  %v9348_v61 = vld [vmem:[#allocation6 + $0x188] ss:$16 sps:$4 sm:$0xff]   ;;  %v9349_v62 = vld [vmem:[#allocation6 + $0x1a4] ss:$16 sps:$4 sm:$0xff]  }
  0x5c   :  { %6463 = vmatprep.subr.bf16.mxu0 %v9301_v20  ;;  %7119 = vmatprep.subr.bf16.mxu1 %v9303_v21  ;;  %v1112_v54 = vrot.slane %v11026_v52, %v11024_v49  ;;  %v9351_v63 = vld [vmem:[#allocation6 + $0x1ac] ss:$16 sps:$4 sm:$0xff]   ;;  %v9353_v0 = vld [vmem:[#allocation6 + $0x1a0] ss:$16 sps:$4 sm:$0xff]   ;;  %v9354_v1 = vld [vmem:[#allocation6 + $0x1a8] ss:$16 sps:$4 sm:$0xff]  }
  0x5d   :  { %v9355_v2 = vld [vmem:[#allocation6 + $0x1c4] ss:$16 sps:$4 sm:$0xff]   ;;  %v9357_v3 = vld [vmem:[#allocation6 + $0x1cc] ss:$16 sps:$4 sm:$0xff]   ;;  %v9359_v4 = vld [vmem:[#allocation6 + $0x1c0] ss:$16 sps:$4 sm:$0xff]  }
  0x5e   :  { %v1120_v58 = vcombine.high %v1112_v54, %v1112_v54  ;;  %v9360_v5 = vld [vmem:[#allocation6 + $0x1c8] ss:$16 sps:$4 sm:$0xff]   ;;  %v9361_v6 = vld [vmem:[#allocation6 + $0x1e4] ss:$16 sps:$4 sm:$0xff]   ;;  %v9363_v7 = vld [vmem:[#allocation6 + $0x1ec] ss:$16 sps:$4 sm:$0xff]   ;;  %v11032_v13 = vrot.slane %v1112_v54, %v11024_v49 }
  0x5f   :  { %6464 = vmatpush1.bf16.msra.mxu0 %v9305_v22  ;;  %7120 = vmatpush1.bf16.msra.mxu1 %v9306_v23  ;;  %v9365_v8 = vld [vmem:[#allocation6 + $0x1e0] ss:$16 sps:$4 sm:$0xff]   ;;  %v9366_v9 = vld [vmem:[#allocation6 + $0x1e8] ss:$16 sps:$4 sm:$0xff]   ;;  %v9369_v10 = vld [vmem:[#allocation6 + $0x204] ss:$16 sps:$4 sm:$0xff]  }
  0x60   :  { %6465 = vmatprep.subr.bf16.mxu0 %v9307_v24  ;;  %7121 = vmatprep.subr.bf16.mxu1 %v9309_v25  ;;  %v1142_v60 = vrot.slane %v1120_v58, %v11024_v49  ;;  %v9372_v11 = vld [vmem:[#allocation6 + $0x20c] ss:$16 sps:$4 sm:$0xff]   ;;  %v9367_v12 = vld [vmem:[#allocation6 + $0x200] ss:$16 sps:$4 sm:$0xff]   ;;  %v9370_v14 = vld [vmem:[#allocation6 + $0x208] ss:$16 sps:$4 sm:$0xff]  }
  0x61   :  { %v9375_v15 = vld [vmem:[#allocation6 + $0x224] ss:$16 sps:$4 sm:$0xff]   ;;  %v9378_v16 = vld [vmem:[#allocation6 + $0x22c] ss:$16 sps:$4 sm:$0xff]   ;;  %v9373_v18 = vld [vmem:[#allocation6 + $0x220] ss:$16 sps:$4 sm:$0xff]  }
  0x62   :  { %6485 = vmatprep.mubr.bf16.mxu0 %v1142_v60  ;;  %7141 = vmatprep.mubr.bf16.mxu1 %v1142_v60  ;;  %v1152_v17 = vcombine.high %v1142_v60, %v1142_v60  ;;  %v9376_v19 = vld [vmem:[#allocation6 + $0x228] ss:$16 sps:$4 sm:$0xff]   ;;  %v9381_v20 = vld [vmem:[#allocation6 + $0x244] ss:$16 sps:$4 sm:$0xff]   ;;  %v9384_v21 = vld [vmem:[#allocation6 + $0x24c] ss:$16 sps:$4 sm:$0xff]  }
  0x63   :  { %6466 = vmatpush1.bf16.msra.mxu0 %v9311_v26  ;;  %7122 = vmatpush1.bf16.msra.mxu1 %v9312_v27  ;;  %v9379_v22 = vld [vmem:[#allocation6 + $0x240] ss:$16 sps:$4 sm:$0xff]   ;;  %v9382_v23 = vld [vmem:[#allocation6 + $0x248] ss:$16 sps:$4 sm:$0xff]   ;;  %v9387_v24 = vld [vmem:[#allocation6 + $0x264] ss:$16 sps:$4 sm:$0xff]  }
  0x64   :  { %6467 = vmatprep.subr.bf16.mxu0 %v9313_v28  ;;  %7123 = vmatprep.subr.bf16.mxu1 %v9315_v29  ;;  %v9390_v25 = vld [vmem:[#allocation6 + $0x26c] ss:$16 sps:$4 sm:$0xff]   ;;  %v9385_v26 = vld [vmem:[#allocation6 + $0x260] ss:$16 sps:$4 sm:$0xff]   ;;  %v9388_v27 = vld [vmem:[#allocation6 + $0x268] ss:$16 sps:$4 sm:$0xff]  }
  0x65   :  { %v9393_v28 = vld [vmem:[#allocation6 + $0x284] ss:$16 sps:$4 sm:$0xff]   ;;  %v9396_v29 = vld [vmem:[#allocation6 + $0x28c] ss:$16 sps:$4 sm:$0xff]   ;;  %v9403_v38 = vld [vmem:[#allocation6 + $0x2c0] ss:$16 sps:$4 sm:$0xff]  }
  0x66   :  { %v9405_v36 = vld [vmem:[#allocation6 + $0x2c4] ss:$16 sps:$4 sm:$0xff]   ;;  %v9408_v37 = vld [vmem:[#allocation6 + $0x2cc] ss:$16 sps:$4 sm:$0xff]   ;;  %v9409_v42 = vld [vmem:[#allocation6 + $0x2e0] ss:$16 sps:$4 sm:$0xff]  }
  0x67   :  { %6468 = vmatpush1.bf16.msra.mxu0 %v9317_v30  ;;  %7124 = vmatpush1.bf16.msra.mxu1 %v9318_v31  ;;  %v9391_v30 = vld [vmem:[#allocation6 + $0x280] ss:$16 sps:$4 sm:$0xff]   ;;  %v9394_v31 = vld [vmem:[#allocation6 + $0x288] ss:$16 sps:$4 sm:$0xff]   ;;  %v9438_v60 = vld [vmem:[#allocation6 + $0x36c] ss:$16 sps:$4 sm:$0xff]  }
  0x68   :  { %6469 = vmatprep.subr.bf16.mxu0 %v9319_v32  ;;  %7125 = vmatprep.subr.bf16.mxu1 %v9321_v33  ;;  %v9399_v32 = vld [vmem:[#allocation6 + $0x2a4] ss:$16 sps:$4 sm:$0xff]   ;;  %v9402_v33 = vld [vmem:[#allocation6 + $0x2ac] ss:$16 sps:$4 sm:$0xff]   ;;  %v9424_v54 = vld [vmem:[#allocation6 + $0x328] ss:$16 sps:$4 sm:$0xff]  }
  0x69   :  { %v9430_v58 = vld [vmem:[#allocation6 + $0x348] ss:$16 sps:$4 sm:$0xff]   ;;  %s8103_s10 = sshll.u32 %s10947_s3, 4  ;;  %s8104_s10 = int_to_ptr.vmem [resolvable:$true] %s8103_s10 }
  0x6a   :  { %s10909_s11 = scalar_lea.vmem %s8104_s10, 64  ;;  %p10914_p5 = scmp.lt.s32.totalorder %s8104_s10, %s8104_s10 }
  0x6b   :  { %6470 = vmatpush1.bf16.msra.mxu0 %v9323_v34  ;;  %7126 = vmatpush1.bf16.msra.mxu1 %v9324_v35  ;;  %v9397_v34 = vld [vmem:[#allocation6 + $0x2a0] ss:$16 sps:$4 sm:$0xff]   ;;  %v9400_v35 = vld [vmem:[#allocation6 + $0x2a8] ss:$16 sps:$4 sm:$0xff]   ;;  %p10910_p4 = scmp.ne.s32.totalorder %s8104_s10, %s10909_s11  ;;  %p10915_p6 = scmp.lt.s32.totalorder %s10909_s11, %s10909_s11 }
  0x6c   :  { %6471 = vmatprep.subr.bf16.mxu0 %v9325_v39  ;;  %7127 = vmatprep.subr.bf16.mxu1 %v9327_v40  ;;  %v9406_v39 = vld [vmem:[#allocation6 + $0x2c8] ss:$16 sps:$4 sm:$0xff]   ;;  %v9411_v40 = vld [vmem:[#allocation6 + $0x2e4] ss:$16 sps:$4 sm:$0xff]  }
  0x6d   :  { %p10916_p7 = por %p10915_p6, %p10914_p5 }
  0x6f   :  { %6472 = vmatpush1.bf16.msra.mxu0 %v9329_v41  ;;  %7128 = vmatpush1.bf16.msra.mxu1 %v9330_v44  ;;  %v9414_v41 = vld [vmem:[#allocation6 + $0x2ec] ss:$16 sps:$4 sm:$0xff]   ;;  %v9412_v44 = vld [vmem:[#allocation6 + $0x2e8] ss:$16 sps:$4 sm:$0xff]   ;;  %p10917_p8 = pnand %p10916_p7, %p10910_p4 }
  0x70   :  { %6473 = vmatprep.subr.bf16.mxu0 %v9331_v45  ;;  %7129 = vmatprep.subr.bf16.mxu1 %v9333_v46  ;;  %v9417_v45 = vld [vmem:[#allocation6 + $0x304] ss:$16 sps:$4 sm:$0xff]   ;;  %v9420_v46 = vld [vmem:[#allocation6 + $0x30c] ss:$16 sps:$4 sm:$0xff]  }
  0x73   :  { %6474 = vmatpush1.bf16.msra.mxu0 %v9335_v47  ;;  %7130 = vmatpush1.bf16.msra.mxu1 %v9336_v48  ;;  %v9415_v47 = vld [vmem:[#allocation6 + $0x300] ss:$16 sps:$4 sm:$0xff]   ;;  %v9418_v48 = vld [vmem:[#allocation6 + $0x308] ss:$16 sps:$4 sm:$0xff]  }
  0x74   :  { %6475 = vmatprep.subr.bf16.mxu0 %v9337_v50  ;;  %7131 = vmatprep.subr.bf16.mxu1 %v9339_v51  ;;  %v9423_v50 = vld [vmem:[#allocation6 + $0x324] ss:$16 sps:$4 sm:$0xff]   ;;  %v9426_v51 = vld [vmem:[#allocation6 + $0x32c] ss:$16 sps:$4 sm:$0xff]  }
  0x77   :  { %6476 = vmatpush1.bf16.msra.mxu0 %v9341_v53  ;;  %7132 = vmatpush1.bf16.msra.mxu1 %v9342_v55  ;;  %v9421_v53 = vld [vmem:[#allocation6 + $0x320] ss:$16 sps:$4 sm:$0xff]   ;;  %v9429_v55 = vld [vmem:[#allocation6 + $0x344] ss:$16 sps:$4 sm:$0xff]  }
  0x78   :  { %6477 = vmatprep.subr.bf16.mxu0 %v9343_v56  ;;  %7133 = vmatprep.subr.bf16.mxu1 %v9345_v57  ;;  %v9432_v56 = vld [vmem:[#allocation6 + $0x34c] ss:$16 sps:$4 sm:$0xff]   ;;  %v9427_v57 = vld [vmem:[#allocation6 + $0x340] ss:$16 sps:$4 sm:$0xff]  }
  0x7b   :  { %6478 = vmatpush1.bf16.msra.mxu0 %v9347_v59  ;;  %7134 = vmatpush1.bf16.msra.mxu1 %v9348_v61  ;;  %v9435_v59 = vld [vmem:[#allocation6 + $0x364] ss:$16 sps:$4 sm:$0xff]   ;;  %v9433_v61 = vld [vmem:[#allocation6 + $0x360] ss:$16 sps:$4 sm:$0xff]  }
  0x7c   :  { %6479 = vmatprep.subr.bf16.mxu0 %v9349_v62  ;;  %7135 = vmatprep.subr.bf16.mxu1 %v9351_v63  ;;  %v9436_v62 = vld [vmem:[#allocation6 + $0x368] ss:$16 sps:$4 sm:$0xff]   ;;  %v9441_v63 = vld [vmem:[#allocation6 + $0x384] ss:$16 sps:$4 sm:$0xff]  }
  0x7f   :  { %6480 = vmatpush1.bf16.msra.mxu0 %v9353_v0  ;;  %7136 = vmatpush1.bf16.msra.mxu1 %v9354_v1  ;;  %v9444_v0 = vld [vmem:[#allocation6 + $0x38c] ss:$16 sps:$4 sm:$0xff]   ;;  %v9439_v1 = vld [vmem:[#allocation6 + $0x380] ss:$16 sps:$4 sm:$0xff]  }
  0x80   :  { %6481 = vmatprep.subr.bf16.mxu0 %v9355_v2  ;;  %7137 = vmatprep.subr.bf16.mxu1 %v9357_v3  ;;  %v9442_v2 = vld [vmem:[#allocation6 + $0x388] ss:$16 sps:$4 sm:$0xff]   ;;  %v9447_v3 = vld [vmem:[#allocation6 + $0x3a4] ss:$16 sps:$4 sm:$0xff]  }
  0x83   :  { %6482 = vmatpush1.bf16.msra.mxu0 %v9359_v4  ;;  %7138 = vmatpush1.bf16.msra.mxu1 %v9360_v5  ;;  %v9450_v4 = vld [vmem:[#allocation6 + $0x3ac] ss:$16 sps:$4 sm:$0xff]   ;;  %v9445_v5 = vld [vmem:[#allocation6 + $0x3a0] ss:$16 sps:$4 sm:$0xff]  }
  0x84   :  { %6483 = vmatprep.subr.bf16.mxu0 %v9361_v6  ;;  %7139 = vmatprep.subr.bf16.mxu1 %v9363_v7  ;;  %v9448_v6 = vld [vmem:[#allocation6 + $0x3a8] ss:$16 sps:$4 sm:$0xff]   ;;  %v9453_v7 = vld [vmem:[#allocation6 + $0x3c4] ss:$16 sps:$4 sm:$0xff]  }
  0x87   :  { %6484 = vmatpush1.bf16.msra.mxu0 %v9365_v8  ;;  %7140 = vmatpush1.bf16.msra.mxu1 %v9366_v9  ;;  %v9456_v8 = vld [vmem:[#allocation6 + $0x3cc] ss:$16 sps:$4 sm:$0xff]   ;;  %v1105_v9 = vcombine.high %v11026_v52, %v11026_v52 }
  0x88   :  { %6494 = vmatprep.subr.bf16.mxu0 %v9369_v10  ;;  %7150 = vmatprep.subr.bf16.mxu1 %v9372_v11  ;;  %v9451_v10 = vld [vmem:[#allocation6 + $0x3c0] ss:$16 sps:$4 sm:$0xff]   ;;  %v9454_v11 = vld [vmem:[#allocation6 + $0x3c8] ss:$16 sps:$4 sm:$0xff]  }
  0x8a   :  { %6486 = vmatmul.mubr.bf16.vlgmr.msra.gmra.mrb[0].mxu0 %v11032_v13  ;;  %7142 = vmatmul.mubr.bf16.vlgmr.msra.gmra.mrb[0].mxu1 %v11032_v13 }
  0x8b   :  { %6495 = vmatpush1.bf16.msra.mxu0 %v9367_v12  ;;  %7151 = vmatpush1.bf16.msra.mxu1 %v9370_v14  ;;  %v9459_v12 = vld [vmem:[#allocation6 + $0x3e4] ss:$16 sps:$4 sm:$0xff]   ;;  %v9462_v14 = vld [vmem:[#allocation6 + $0x3ec] ss:$16 sps:$4 sm:$0xff]  }
  0x8c   :  { %6496 = vmatprep.subr.bf16.mxu0 %v9375_v15  ;;  %7152 = vmatprep.subr.bf16.mxu1 %v9378_v16  ;;  %v11039_v15 = vrot.slane %v1105_v9, %v11024_v49  ;;  %v9457_v16 = vld [vmem:[#allocation6 + $0x3e0] ss:$16 sps:$4 sm:$0xff]   ;;  %v9538_v9 = vld [vmem:[#allocation6 + $0x588] ss:$16 sps:$4 sm:$0xff]  }
  0x8d   :  { %6526 = vmatprep.mubr.bf16.mxu0 %v1152_v17  ;;  %7182 = vmatprep.mubr.bf16.mxu1 %v1152_v17  ;;  %v9460_v17 = vld [vmem:[#allocation6 + $0x3e8] ss:$16 sps:$4 sm:$0xff]  }
  0x8e   :  { %v1121_v52 = vcombine.high %v11039_v15, %v11039_v15 }
  0x8f   :  { %6497 = vmatpush1.bf16.msra.mxu0 %v9373_v18  ;;  %7153 = vmatpush1.bf16.msra.mxu1 %v9376_v19  ;;  %v9465_v18 = vld [vmem:[#allocation6 + $0x404] ss:$16 sps:$4 sm:$0xff]   ;;  %v9468_v19 = vld [vmem:[#allocation6 + $0x40c] ss:$16 sps:$4 sm:$0xff]  }
  0x90   :  { %6498 = vmatprep.subr.bf16.mxu0 %v9381_v20  ;;  %7154 = vmatprep.subr.bf16.mxu1 %v9384_v21  ;;  %v9463_v20 = vld [vmem:[#allocation6 + $0x400] ss:$16 sps:$4 sm:$0xff]   ;;  %v1150_v21 = vcombine.high %v11032_v13, %v11032_v13  ;;  %v9480_v13 = vld [vmem:[#allocation6 + $0x44c] ss:$16 sps:$4 sm:$0xff]  }
  0x93   :  { %6499 = vmatpush1.bf16.msra.mxu0 %v9379_v22  ;;  %7155 = vmatpush1.bf16.msra.mxu1 %v9382_v23  ;;  %v9466_v22 = vld [vmem:[#allocation6 + $0x408] ss:$16 sps:$4 sm:$0xff]   ;;  %v9471_v23 = vld [vmem:[#allocation6 + $0x424] ss:$16 sps:$4 sm:$0xff]  }
  0x94   :  { %6500 = vmatprep.subr.bf16.mxu0 %v9387_v24  ;;  %7156 = vmatprep.subr.bf16.mxu1 %v9390_v25  ;;  %v9474_v24 = vld [vmem:[#allocation6 + $0x42c] ss:$16 sps:$4 sm:$0xff]   ;;  %v11046_v25 = vrot.slane %v1121_v52, %v11024_v49  ;;  %v9555_v52 = vld [vmem:[#allocation6 + $0x5e4] ss:$16 sps:$4 sm:$0xff]  }
  0x97   :  { %6501 = vmatpush1.bf16.msra.mxu0 %v9385_v26  ;;  %7157 = vmatpush1.bf16.msra.mxu1 %v9388_v27  ;;  %v9469_v26 = vld [vmem:[#allocation6 + $0x420] ss:$16 sps:$4 sm:$0xff]   ;;  %v9472_v27 = vld [vmem:[#allocation6 + $0x428] ss:$16 sps:$4 sm:$0xff]  }
  0x98   :  { %6502 = vmatprep.subr.bf16.mxu0 %v9393_v28  ;;  %7158 = vmatprep.subr.bf16.mxu1 %v9396_v29  ;;  %v9477_v28 = vld [vmem:[#allocation6 + $0x444] ss:$16 sps:$4 sm:$0xff]   ;;  %v9475_v29 = vld [vmem:[#allocation6 + $0x440] ss:$16 sps:$4 sm:$0xff]  }
  0x9b   :  { %6503 = vmatpush1.bf16.msra.mxu0 %v9391_v30  ;;  %7159 = vmatpush1.bf16.msra.mxu1 %v9394_v31  ;;  %v9478_v30 = vld [vmem:[#allocation6 + $0x448] ss:$16 sps:$4 sm:$0xff]   ;;  %v9483_v31 = vld [vmem:[#allocation6 + $0x464] ss:$16 sps:$4 sm:$0xff]  }
  0x9c   :  { %6504 = vmatprep.subr.bf16.mxu0 %v9399_v32  ;;  %7160 = vmatprep.subr.bf16.mxu1 %v9402_v33  ;;  %v9486_v32 = vld [vmem:[#allocation6 + $0x46c] ss:$16 sps:$4 sm:$0xff]   ;;  %v9481_v33 = vld [vmem:[#allocation6 + $0x460] ss:$16 sps:$4 sm:$0xff]  }
  0x9f   :  { %6505 = vmatpush1.bf16.msra.mxu0 %v9397_v34  ;;  %7161 = vmatpush1.bf16.msra.mxu1 %v9400_v35  ;;  %v9484_v34 = vld [vmem:[#allocation6 + $0x468] ss:$16 sps:$4 sm:$0xff]   ;;  %v9489_v35 = vld [vmem:[#allocation6 + $0x484] ss:$16 sps:$4 sm:$0xff]  }
  0xa0   :  { %6506 = vmatprep.subr.bf16.mxu0 %v9405_v36  ;;  %7162 = vmatprep.subr.bf16.mxu1 %v9408_v37  ;;  %v9492_v36 = vld [vmem:[#allocation6 + $0x48c] ss:$16 sps:$4 sm:$0xff]   ;;  %v9487_v37 = vld [vmem:[#allocation6 + $0x480] ss:$16 sps:$4 sm:$0xff]  }
  0xa3   :  { %6507 = vmatpush1.bf16.msra.mxu0 %v9403_v38  ;;  %7163 = vmatpush1.bf16.msra.mxu1 %v9406_v39  ;;  %v9490_v38 = vld [vmem:[#allocation6 + $0x488] ss:$16 sps:$4 sm:$0xff]   ;;  %v9495_v39 = vld [vmem:[#allocation6 + $0x4a4] ss:$16 sps:$4 sm:$0xff]  }
  0xa4   :  { %6508 = vmatprep.subr.bf16.mxu0 %v9411_v40  ;;  %7164 = vmatprep.subr.bf16.mxu1 %v9414_v41  ;;  %v9498_v40 = vld [vmem:[#allocation6 + $0x4ac] ss:$16 sps:$4 sm:$0xff]   ;;  %v9493_v41 = vld [vmem:[#allocation6 + $0x4a0] ss:$16 sps:$4 sm:$0xff]  }
  0xa7   :  { %6509 = vmatpush1.bf16.msra.mxu0 %v9409_v42  ;;  %7165 = vmatpush1.bf16.msra.mxu1 %v9412_v44  ;;  %v9496_v42 = vld [vmem:[#allocation6 + $0x4a8] ss:$16 sps:$4 sm:$0xff]   ;;  %v9501_v44 = vld [vmem:[#allocation6 + $0x4c4] ss:$16 sps:$4 sm:$0xff]  }
  0xa8   :  { %6510 = vmatprep.subr.bf16.mxu0 %v9417_v45  ;;  %7166 = vmatprep.subr.bf16.mxu1 %v9420_v46  ;;  %v9504_v45 = vld [vmem:[#allocation6 + $0x4cc] ss:$16 sps:$4 sm:$0xff]   ;;  %v9499_v46 = vld [vmem:[#allocation6 + $0x4c0] ss:$16 sps:$4 sm:$0xff]  }
  0xab   :  { %6511 = vmatpush1.bf16.msra.mxu0 %v9415_v47  ;;  %7167 = vmatpush1.bf16.msra.mxu1 %v9418_v48  ;;  %v9502_v47 = vld [vmem:[#allocation6 + $0x4c8] ss:$16 sps:$4 sm:$0xff]   ;;  %v9507_v48 = vld [vmem:[#allocation6 + $0x4e4] ss:$16 sps:$4 sm:$0xff]  }
  0xac   :  { %6512 = vmatprep.subr.bf16.mxu0 %v9423_v50  ;;  %7168 = vmatprep.subr.bf16.mxu1 %v9426_v51  ;;  %v9510_v50 = vld [vmem:[#allocation6 + $0x4ec] ss:$16 sps:$4 sm:$0xff]   ;;  %v9505_v51 = vld [vmem:[#allocation6 + $0x4e0] ss:$16 sps:$4 sm:$0xff]  }
  0xaf   :  { %6513 = vmatpush1.bf16.msra.mxu0 %v9421_v53  ;;  %7169 = vmatpush1.bf16.msra.mxu1 %v9424_v54  ;;  %v9508_v53 = vld [vmem:[#allocation6 + $0x4e8] ss:$16 sps:$4 sm:$0xff]   ;;  %v9513_v54 = vld [vmem:[#allocation6 + $0x504] ss:$16 sps:$4 sm:$0xff]  }
  0xb0   :  { %6514 = vmatprep.subr.bf16.mxu0 %v9429_v55  ;;  %7170 = vmatprep.subr.bf16.mxu1 %v9432_v56  ;;  %v9516_v55 = vld [vmem:[#allocation6 + $0x50c] ss:$16 sps:$4 sm:$0xff]   ;;  %v9511_v56 = vld [vmem:[#allocation6 + $0x500] ss:$16 sps:$4 sm:$0xff]  }
  0xb3   :  { %6515 = vmatpush1.bf16.msra.mxu0 %v9427_v57  ;;  %7171 = vmatpush1.bf16.msra.mxu1 %v9430_v58  ;;  %v9514_v57 = vld [vmem:[#allocation6 + $0x508] ss:$16 sps:$4 sm:$0xff]   ;;  %v9519_v58 = vld [vmem:[#allocation6 + $0x524] ss:$16 sps:$4 sm:$0xff]  }
  0xb4   :  { %6516 = vmatprep.subr.bf16.mxu0 %v9435_v59  ;;  %7172 = vmatprep.subr.bf16.mxu1 %v9438_v60  ;;  %v9522_v59 = vld [vmem:[#allocation6 + $0x52c] ss:$16 sps:$4 sm:$0xff]   ;;  %v9517_v60 = vld [vmem:[#allocation6 + $0x520] ss:$16 sps:$4 sm:$0xff]  }
  0xb7   :  { %6517 = vmatpush1.bf16.msra.mxu0 %v9433_v61  ;;  %7173 = vmatpush1.bf16.msra.mxu1 %v9436_v62  ;;  %v9520_v61 = vld [vmem:[#allocation6 + $0x528] ss:$16 sps:$4 sm:$0xff]   ;;  %v9525_v62 = vld [vmem:[#allocation6 + $0x544] ss:$16 sps:$4 sm:$0xff]  }
  0xb8   :  { %6518 = vmatprep.subr.bf16.mxu0 %v9441_v63  ;;  %7174 = vmatprep.subr.bf16.mxu1 %v9444_v0  ;;  %v9528_v63 = vld [vmem:[#allocation6 + $0x54c] ss:$16 sps:$4 sm:$0xff]   ;;  %v9523_v0 = vld [vmem:[#allocation6 + $0x540] ss:$16 sps:$4 sm:$0xff]  }
  0xbb   :  { %6519 = vmatpush1.bf16.msra.mxu0 %v9439_v1  ;;  %7175 = vmatpush1.bf16.msra.mxu1 %v9442_v2  ;;  %v9526_v1 = vld [vmem:[#allocation6 + $0x548] ss:$16 sps:$4 sm:$0xff]   ;;  %v9531_v2 = vld [vmem:[#allocation6 + $0x564] ss:$16 sps:$4 sm:$0xff]  }
  0xbc   :  { %6520 = vmatprep.subr.bf16.mxu0 %v9447_v3  ;;  %7176 = vmatprep.subr.bf16.mxu1 %v9450_v4  ;;  %v9534_v3 = vld [vmem:[#allocation6 + $0x56c] ss:$16 sps:$4 sm:$0xff]   ;;  %v9529_v4 = vld [vmem:[#allocation6 + $0x560] ss:$16 sps:$4 sm:$0xff]  }
  0xbf   :  { %6521 = vmatpush1.bf16.msra.mxu0 %v9445_v5  ;;  %7177 = vmatpush1.bf16.msra.mxu1 %v9448_v6  ;;  %v9532_v5 = vld [vmem:[#allocation6 + $0x568] ss:$16 sps:$4 sm:$0xff]   ;;  %v9537_v6 = vld [vmem:[#allocation6 + $0x584] ss:$16 sps:$4 sm:$0xff]  }
  0xc0   :  { %6522 = vmatprep.subr.bf16.mxu0 %v9453_v7  ;;  %7178 = vmatprep.subr.bf16.mxu1 %v9456_v8  ;;  %v9540_v7 = vld [vmem:[#allocation6 + $0x58c] ss:$16 sps:$4 sm:$0xff]   ;;  %v9535_v8 = vld [vmem:[#allocation6 + $0x580] ss:$16 sps:$4 sm:$0xff]  }
  0xc3   :  { %6523 = vmatpush1.bf16.msra.mxu0 %v9451_v10  ;;  %7179 = vmatpush1.bf16.msra.mxu1 %v9454_v11  ;;  %v9543_v10 = vld [vmem:[#allocation6 + $0x5a4] ss:$16 sps:$4 sm:$0xff]   ;;  %v9546_v11 = vld [vmem:[#allocation6 + $0x5ac] ss:$16 sps:$4 sm:$0xff]  }
  0xc4   :  { %6524 = vmatprep.subr.bf16.mxu0 %v9459_v12  ;;  %7180 = vmatprep.subr.bf16.mxu1 %v9462_v14  ;;  %v9541_v12 = vld [vmem:[#allocation6 + $0x5a0] ss:$16 sps:$4 sm:$0xff]   ;;  %v9544_v14 = vld [vmem:[#allocation6 + $0x5a8] ss:$16 sps:$4 sm:$0xff]  }
  0xc7   :  { %6525 = vmatpush1.bf16.msra.mxu0 %v9457_v16  ;;  %7181 = vmatpush1.bf16.msra.mxu1 %v9460_v17  ;;  %v9549_v16 = vld [vmem:[#allocation6 + $0x5c4] ss:$16 sps:$4 sm:$0xff]   ;;  %v9552_v17 = vld [vmem:[#allocation6 + $0x5cc] ss:$16 sps:$4 sm:$0xff]  }
  0xc8   :  { %6535 = vmatprep.subr.bf16.mxu0 %v9465_v18  ;;  %7191 = vmatprep.subr.bf16.mxu1 %v9468_v19  ;;  %v9547_v18 = vld [vmem:[#allocation6 + $0x5c0] ss:$16 sps:$4 sm:$0xff]   ;;  %v9550_v19 = vld [vmem:[#allocation6 + $0x5c8] ss:$16 sps:$4 sm:$0xff]  }
  0xca   :  { %6527 = vmatmul.mubr.bf16.vlgmr.msra.gmra.mrb[0].mxu0 %v1150_v21  ;;  %7183 = vmatmul.mubr.bf16.vlgmr.msra.gmra.mrb[0].mxu1 %v1150_v21  ;;  %v9553_v21 = vld [vmem:[#allocation6 + $0x5e0] ss:$16 sps:$4 sm:$0xff]  }
  0xcb   :  { %6536 = vmatpush1.bf16.msra.mxu0 %v9463_v20  ;;  %7192 = vmatpush1.bf16.msra.mxu1 %v9466_v22  ;;  %v9558_v20 = vld [vmem:[#allocation6 + $0x5ec] ss:$16 sps:$4 sm:$0xff]   ;;  %v9556_v22 = vld [vmem:[#allocation6 + $0x5e8] ss:$16 sps:$4 sm:$0xff]  }
  0xcc   :  { %6537 = vmatprep.subr.bf16.mxu0 %v9471_v23  ;;  %7193 = vmatprep.subr.bf16.mxu1 %v9474_v24  ;;  %v9562_v23 = vld [vmem:[#allocation6 + $0x604] ss:$16 sps:$4 sm:$0xff]   ;;  %v9565_v24 = vld [vmem:[#allocation6 + $0x60c] ss:$16 sps:$4 sm:$0xff]  }
  0xcd   :  { %6567 = vmatprep.mubr.bf16.mxu0 %v11046_v25  ;;  %7223 = vmatprep.mubr.bf16.mxu1 %v11046_v25 }
  0xcf   :  { %6538 = vmatpush1.bf16.msra.mxu0 %v9469_v26  ;;  %7194 = vmatpush1.bf16.msra.mxu1 %v9472_v27  ;;  %v9560_v26 = vld [vmem:[#allocation6 + $0x600] ss:$16 sps:$4 sm:$0xff]   ;;  %v11052_v27 = vrot.slane %v11039_v15, %v11024_v49  ;;  %v9574_v15 = vld [vmem:[#allocation6 + $0x644] ss:$16 sps:$4 sm:$0xff]  }
  0xd0   :  { %6539 = vmatprep.subr.bf16.mxu0 %v9477_v28  ;;  %7195 = vmatprep.subr.bf16.mxu1 %v9480_v13  ;;  %v9563_v28 = vld [vmem:[#allocation6 + $0x608] ss:$16 sps:$4 sm:$0xff]   ;;  %v9568_v13 = vld [vmem:[#allocation6 + $0x624] ss:$16 sps:$4 sm:$0xff]  }
  0xd3   :  { %6540 = vmatpush1.bf16.msra.mxu0 %v9475_v29  ;;  %7196 = vmatpush1.bf16.msra.mxu1 %v9478_v30  ;;  %v9571_v29 = vld [vmem:[#allocation6 + $0x62c] ss:$16 sps:$4 sm:$0xff]   ;;  %v1153_v30 = vcombine.high %v11046_v25, %v11046_v25  ;;  %v9580_v25 = vld [vmem:[#allocation6 + $0x664] ss:$16 sps:$4 sm:$0xff]  }
  0xd4   :  { %6541 = vmatprep.subr.bf16.mxu0 %v9483_v31  ;;  %7197 = vmatprep.subr.bf16.mxu1 %v9486_v32  ;;  %v9566_v31 = vld [vmem:[#allocation6 + $0x620] ss:$16 sps:$4 sm:$0xff]   ;;  %v9569_v32 = vld [vmem:[#allocation6 + $0x628] ss:$16 sps:$4 sm:$0xff]  }
  0xd7   :  { %6542 = vmatpush1.bf16.msra.mxu0 %v9481_v33  ;;  %7198 = vmatpush1.bf16.msra.mxu1 %v9484_v34  ;;  %v9577_v33 = vld [vmem:[#allocation6 + $0x64c] ss:$16 sps:$4 sm:$0xff]   ;;  %v9572_v34 = vld [vmem:[#allocation6 + $0x640] ss:$16 sps:$4 sm:$0xff]  }
  0xd8   :  { %6543 = vmatprep.subr.bf16.mxu0 %v9489_v35  ;;  %7199 = vmatprep.subr.bf16.mxu1 %v9492_v36  ;;  %v9575_v35 = vld [vmem:[#allocation6 + $0x648] ss:$16 sps:$4 sm:$0xff]   ;;  %v9583_v36 = vld [vmem:[#allocation6 + $0x66c] ss:$16 sps:$4 sm:$0xff]  }
  0xdb   :  { %6544 = vmatpush1.bf16.msra.mxu0 %v9487_v37  ;;  %7200 = vmatpush1.bf16.msra.mxu1 %v9490_v38  ;;  %v9578_v37 = vld [vmem:[#allocation6 + $0x660] ss:$16 sps:$4 sm:$0xff]   ;;  %v9581_v38 = vld [vmem:[#allocation6 + $0x668] ss:$16 sps:$4 sm:$0xff]  }
  0xdc   :  { %6545 = vmatprep.subr.bf16.mxu0 %v9495_v39  ;;  %7201 = vmatprep.subr.bf16.mxu1 %v9498_v40  ;;  %v9586_v39 = vld [vmem:[#allocation6 + $0x684] ss:$16 sps:$4 sm:$0xff]   ;;  %v9589_v40 = vld [vmem:[#allocation6 + $0x68c] ss:$16 sps:$4 sm:$0xff]  }
  0xdf   :  { %6546 = vmatpush1.bf16.msra.mxu0 %v9493_v41  ;;  %7202 = vmatpush1.bf16.msra.mxu1 %v9496_v42  ;;  %v9584_v41 = vld [vmem:[#allocation6 + $0x680] ss:$16 sps:$4 sm:$0xff]   ;;  %v9587_v42 = vld [vmem:[#allocation6 + $0x688] ss:$16 sps:$4 sm:$0xff]  }
  0xe0   :  { %6547 = vmatprep.subr.bf16.mxu0 %v9501_v44  ;;  %7203 = vmatprep.subr.bf16.mxu1 %v9504_v45  ;;  %v9592_v44 = vld [vmem:[#allocation6 + $0x6a4] ss:$16 sps:$4 sm:$0xff]   ;;  %v9595_v45 = vld [vmem:[#allocation6 + $0x6ac] ss:$16 sps:$4 sm:$0xff]  }
  0xe3   :  { %6548 = vmatpush1.bf16.msra.mxu0 %v9499_v46  ;;  %7204 = vmatpush1.bf16.msra.mxu1 %v9502_v47  ;;  %v9590_v46 = vld [vmem:[#allocation6 + $0x6a0] ss:$16 sps:$4 sm:$0xff]   ;;  %v9593_v47 = vld [vmem:[#allocation6 + $0x6a8] ss:$16 sps:$4 sm:$0xff]  }
  0xe4   :  { %6549 = vmatprep.subr.bf16.mxu0 %v9507_v48  ;;  %7205 = vmatprep.subr.bf16.mxu1 %v9510_v50  ;;  %v9598_v48 = vld [vmem:[#allocation6 + $0x6c4] ss:$16 sps:$4 sm:$0xff]   ;;  %v9601_v50 = vld [vmem:[#allocation6 + $0x6cc] ss:$16 sps:$4 sm:$0xff]  }
  0xe7   :  { %6550 = vmatpush1.bf16.msra.mxu0 %v9505_v51  ;;  %7206 = vmatpush1.bf16.msra.mxu1 %v9508_v53  ;;  %v9596_v51 = vld [vmem:[#allocation6 + $0x6c0] ss:$16 sps:$4 sm:$0xff]   ;;  %v9599_v53 = vld [vmem:[#allocation6 + $0x6c8] ss:$16 sps:$4 sm:$0xff]  }
  0xe8   :  { %6551 = vmatprep.subr.bf16.mxu0 %v9513_v54  ;;  %7207 = vmatprep.subr.bf16.mxu1 %v9516_v55  ;;  %v9604_v54 = vld [vmem:[#allocation6 + $0x6e4] ss:$16 sps:$4 sm:$0xff]   ;;  %v9607_v55 = vld [vmem:[#allocation6 + $0x6ec] ss:$16 sps:$4 sm:$0xff]  }
  0xeb   :  { %6552 = vmatpush1.bf16.msra.mxu0 %v9511_v56  ;;  %7208 = vmatpush1.bf16.msra.mxu1 %v9514_v57  ;;  %v9602_v56 = vld [vmem:[#allocation6 + $0x6e0] ss:$16 sps:$4 sm:$0xff]   ;;  %v9605_v57 = vld [vmem:[#allocation6 + $0x6e8] ss:$16 sps:$4 sm:$0xff]  }
  0xec   :  { %6553 = vmatprep.subr.bf16.mxu0 %v9519_v58  ;;  %7209 = vmatprep.subr.bf16.mxu1 %v9522_v59  ;;  %v9610_v58 = vld [vmem:[#allocation6 + $0x704] ss:$16 sps:$4 sm:$0xff]   ;;  %v9613_v59 = vld [vmem:[#allocation6 + $0x70c] ss:$16 sps:$4 sm:$0xff]  }
  0xef   :  { %6554 = vmatpush1.bf16.msra.mxu0 %v9517_v60  ;;  %7210 = vmatpush1.bf16.msra.mxu1 %v9520_v61  ;;  %v9608_v60 = vld [vmem:[#allocation6 + $0x700] ss:$16 sps:$4 sm:$0xff]   ;;  %v9611_v61 = vld [vmem:[#allocation6 + $0x708] ss:$16 sps:$4 sm:$0xff]  }
  0xf0   :  { %6555 = vmatprep.subr.bf16.mxu0 %v9525_v62  ;;  %7211 = vmatprep.subr.bf16.mxu1 %v9528_v63  ;;  %v9616_v62 = vld [vmem:[#allocation6 + $0x724] ss:$16 sps:$4 sm:$0xff]   ;;  %v9619_v63 = vld [vmem:[#allocation6 + $0x72c] ss:$16 sps:$4 sm:$0xff]  }
  0xf3   :  { %6556 = vmatpush1.bf16.msra.mxu0 %v9523_v0  ;;  %7212 = vmatpush1.bf16.msra.mxu1 %v9526_v1  ;;  %v9614_v0 = vld [vmem:[#allocation6 + $0x720] ss:$16 sps:$4 sm:$0xff]   ;;  %v9617_v1 = vld [vmem:[#allocation6 + $0x728] ss:$16 sps:$4 sm:$0xff]  }
  0xf4   :  { %6557 = vmatprep.subr.bf16.mxu0 %v9531_v2  ;;  %7213 = vmatprep.subr.bf16.mxu1 %v9534_v3  ;;  %v9622_v2 = vld [vmem:[#allocation6 + $0x744] ss:$16 sps:$4 sm:$0xff]   ;;  %v9625_v3 = vld [vmem:[#allocation6 + $0x74c] ss:$16 sps:$4 sm:$0xff]  }
  0xf7   :  { %6558 = vmatpush1.bf16.msra.mxu0 %v9529_v4  ;;  %7214 = vmatpush1.bf16.msra.mxu1 %v9532_v5  ;;  %v9620_v4 = vld [vmem:[#allocation6 + $0x740] ss:$16 sps:$4 sm:$0xff]   ;;  %v9623_v5 = vld [vmem:[#allocation6 + $0x748] ss:$16 sps:$4 sm:$0xff]  }
  0xf8   :  { %6559 = vmatprep.subr.bf16.mxu0 %v9537_v6  ;;  %7215 = vmatprep.subr.bf16.mxu1 %v9540_v7  ;;  %v9628_v6 = vld [vmem:[#allocation6 + $0x764] ss:$16 sps:$4 sm:$0xff]   ;;  %v9631_v7 = vld [vmem:[#allocation6 + $0x76c] ss:$16 sps:$4 sm:$0xff]  }
  0xfb   :  { %6560 = vmatpush1.bf16.msra.mxu0 %v9535_v8  ;;  %7216 = vmatpush1.bf16.msra.mxu1 %v9538_v9  ;;  %v9626_v8 = vld [vmem:[#allocation6 + $0x760] ss:$16 sps:$4 sm:$0xff]   ;;  %v9629_v9 = vld [vmem:[#allocation6 + $0x768] ss:$16 sps:$4 sm:$0xff]  }
  0xfc   :  { %6561 = vmatprep.subr.bf16.mxu0 %v9543_v10  ;;  %7217 = vmatprep.subr.bf16.mxu1 %v9546_v11  ;;  %v9634_v10 = vld [vmem:[#allocation6 + $0x784] ss:$16 sps:$4 sm:$0xff]   ;;  %v9637_v11 = vld [vmem:[#allocation6 + $0x78c] ss:$16 sps:$4 sm:$0xff]  }
  0xff   :  { %6562 = vmatpush1.bf16.msra.mxu0 %v9541_v12  ;;  %7218 = vmatpush1.bf16.msra.mxu1 %v9544_v14  ;;  %v9632_v12 = vld [vmem:[#allocation6 + $0x780] ss:$16 sps:$4 sm:$0xff]   ;;  %v9635_v14 = vld [vmem:[#allocation6 + $0x788] ss:$16 sps:$4 sm:$0xff]  }
 0x100   :  { %6563 = vmatprep.subr.bf16.mxu0 %v9549_v16  ;;  %7219 = vmatprep.subr.bf16.mxu1 %v9552_v17  ;;  %v9640_v16 = vld [vmem:[#allocation6 + $0x7a4] ss:$16 sps:$4 sm:$0xff]   ;;  %v9643_v17 = vld [vmem:[#allocation6 + $0x7ac] ss:$16 sps:$4 sm:$0xff]  }
 0x103   :  { %6564 = vmatpush1.bf16.msra.mxu0 %v9547_v18  ;;  %7220 = vmatpush1.bf16.msra.mxu1 %v9550_v19  ;;  %v9638_v18 = vld [vmem:[#allocation6 + $0x7a0] ss:$16 sps:$4 sm:$0xff]   ;;  %v9641_v19 = vld [vmem:[#allocation6 + $0x7a8] ss:$16 sps:$4 sm:$0xff]  }
 0x104   :  { %6565 = vmatprep.subr.bf16.mxu0 %v9555_v52  ;;  %7221 = vmatprep.subr.bf16.mxu1 %v9558_v20  ;;  %v9646_v52 = vld [vmem:[#allocation6 + $0x7c4] ss:$16 sps:$4 sm:$0xff]   ;;  %v9649_v20 = vld [vmem:[#allocation6 + $0x7cc] ss:$16 sps:$4 sm:$0xff]  }
 0x107   :  { %6566 = vmatpush1.bf16.msra.mxu0 %v9553_v21  ;;  %7222 = vmatpush1.bf16.msra.mxu1 %v9556_v22  ;;  %v11058_v21 = vld.sshfl [vmem:[#allocation3 + $0x8] sm:$0xff pattern:$0x75316420]  ;;  %v9644_v22 = vld [vmem:[#allocation6 + $0x7c0] ss:$16 sps:$4 sm:$0xff]  }
 0x108   :  { %6576 = vmatprep.subr.bf16.mxu0 %v9562_v23  ;;  %7232 = vmatprep.subr.bf16.mxu1 %v9565_v24  ;;  %v9647_v23 = vld [vmem:[#allocation6 + $0x7c8] ss:$16 sps:$4 sm:$0xff]   ;;  %v9652_v24 = vld [vmem:[#allocation6 + $0x7e4] ss:$16 sps:$4 sm:$0xff]  }
 0x10a   :  { %6568 = vmatmul.mubr.bf16.vlgmr.msra.gmra.mrb[0].mxu0 %v11052_v27  ;;  %7224 = vmatmul.mubr.bf16.vlgmr.msra.gmra.mrb[0].mxu1 %v11052_v27 }
 0x10b   :  { %6577 = vmatpush1.bf16.msra.mxu0 %v9560_v26  ;;  %7233 = vmatpush1.bf16.msra.mxu1 %v9563_v28  ;;  %v9655_v26 = vld [vmem:[#allocation6 + $0x7ec] ss:$16 sps:$4 sm:$0xff]   ;;  %v9650_v28 = vld [vmem:[#allocation6 + $0x7e0] ss:$16 sps:$4 sm:$0xff]  }
 0x10c   :  { %6578 = vmatprep.subr.bf16.mxu0 %v9568_v13  ;;  %7234 = vmatprep.subr.bf16.mxu1 %v9571_v29  ;;  %v9653_v13 = vld [vmem:[#allocation6 + $0x7e8] ss:$16 sps:$4 sm:$0xff]   ;;  %v9658_v29 = vld [vmem:[#allocation6 + $0x804] ss:$16 sps:$4 sm:$0xff]  }
 0x10d   :  { %6608 = vmatprep.mubr.bf16.mxu0 %v1153_v30  ;;  %7264 = vmatprep.mubr.bf16.mxu1 %v1153_v30  ;;  %v9661_v30 = vld [vmem:[#allocation6 + $0x80c] ss:$16 sps:$4 sm:$0xff]  }
 0x10f   :  { %6579 = vmatpush1.bf16.msra.mxu0 %v9566_v31  ;;  %7235 = vmatpush1.bf16.msra.mxu1 %v9569_v32  ;;  %v1169_v31 = vcombine.high %v11058_v21, %v11058_v21  ;;  %v1151_v32 = vcombine.high %v11052_v27, %v11052_v27  ;;  %v9670_v27 = vld [vmem:[#allocation6 + $0x844] ss:$16 sps:$4 sm:$0xff]  }
 0x110   :  { %6580 = vmatprep.subr.bf16.mxu0 %v9574_v15  ;;  %7236 = vmatprep.subr.bf16.mxu1 %v9577_v33  ;;  %v9656_v15 = vld [vmem:[#allocation6 + $0x800] ss:$16 sps:$4 sm:$0xff]   ;;  %v9659_v33 = vld [vmem:[#allocation6 + $0x808] ss:$16 sps:$4 sm:$0xff]  }
 0x113   :  { %6581 = vmatpush1.bf16.msra.mxu0 %v9572_v34  ;;  %7237 = vmatpush1.bf16.msra.mxu1 %v9575_v35  ;;  %v9664_v34 = vld [vmem:[#allocation6 + $0x824] ss:$16 sps:$4 sm:$0xff]   ;;  %v9667_v35 = vld [vmem:[#allocation6 + $0x82c] ss:$16 sps:$4 sm:$0xff]  }
 0x114   :  { %6582 = vmatprep.subr.bf16.mxu0 %v9580_v25  ;;  %7238 = vmatprep.subr.bf16.mxu1 %v9583_v36  ;;  %v11065_v25 = vrot.slane %v1169_v31, %v11024_v49  ;;  %v9662_v36 = vld [vmem:[#allocation6 + $0x820] ss:$16 sps:$4 sm:$0xff]   ;;  %v9748_v31 = vld [vmem:[#allocation6 + $0x9e4] ss:$16 sps:$4 sm:$0xff]  }
 0x117   :  { %6583 = vmatpush1.bf16.msra.mxu0 %v9578_v37  ;;  %7239 = vmatpush1.bf16.msra.mxu1 %v9581_v38  ;;  %v9665_v37 = vld [vmem:[#allocation6 + $0x828] ss:$16 sps:$4 sm:$0xff]   ;;  %v9673_v38 = vld [vmem:[#allocation6 + $0x84c] ss:$16 sps:$4 sm:$0xff]  }
 0x118   :  { %6584 = vmatprep.subr.bf16.mxu0 %v9586_v39  ;;  %7240 = vmatprep.subr.bf16.mxu1 %v9589_v40  ;;  %v9668_v39 = vld [vmem:[#allocation6 + $0x840] ss:$16 sps:$4 sm:$0xff]   ;;  %v9671_v40 = vld [vmem:[#allocation6 + $0x848] ss:$16 sps:$4 sm:$0xff]  }
 0x11b   :  { %6585 = vmatpush1.bf16.msra.mxu0 %v9584_v41  ;;  %7241 = vmatpush1.bf16.msra.mxu1 %v9587_v42  ;;  %v9676_v41 = vld [vmem:[#allocation6 + $0x864] ss:$16 sps:$4 sm:$0xff]   ;;  %v9679_v42 = vld [vmem:[#allocation6 + $0x86c] ss:$16 sps:$4 sm:$0xff]  }
 0x11c   :  { %6586 = vmatprep.subr.bf16.mxu0 %v9592_v44  ;;  %7242 = vmatprep.subr.bf16.mxu1 %v9595_v45  ;;  %v9674_v44 = vld [vmem:[#allocation6 + $0x860] ss:$16 sps:$4 sm:$0xff]   ;;  %v9677_v45 = vld [vmem:[#allocation6 + $0x868] ss:$16 sps:$4 sm:$0xff]  }
 0x11f   :  { %6587 = vmatpush1.bf16.msra.mxu0 %v9590_v46  ;;  %7243 = vmatpush1.bf16.msra.mxu1 %v9593_v47  ;;  %v9682_v46 = vld [vmem:[#allocation6 + $0x884] ss:$16 sps:$4 sm:$0xff]   ;;  %v9685_v47 = vld [vmem:[#allocation6 + $0x88c] ss:$16 sps:$4 sm:$0xff]  }
 0x120   :  { %6588 = vmatprep.subr.bf16.mxu0 %v9598_v48  ;;  %7244 = vmatprep.subr.bf16.mxu1 %v9601_v50  ;;  %v9680_v48 = vld [vmem:[#allocation6 + $0x880] ss:$16 sps:$4 sm:$0xff]   ;;  %v9683_v50 = vld [vmem:[#allocation6 + $0x888] ss:$16 sps:$4 sm:$0xff]  }
 0x123   :  { %6589 = vmatpush1.bf16.msra.mxu0 %v9596_v51  ;;  %7245 = vmatpush1.bf16.msra.mxu1 %v9599_v53  ;;  %v9688_v51 = vld [vmem:[#allocation6 + $0x8a4] ss:$16 sps:$4 sm:$0xff]   ;;  %v9691_v53 = vld [vmem:[#allocation6 + $0x8ac] ss:$16 sps:$4 sm:$0xff]  }
 0x124   :  { %6590 = vmatprep.subr.bf16.mxu0 %v9604_v54  ;;  %7246 = vmatprep.subr.bf16.mxu1 %v9607_v55  ;;  %v9686_v54 = vld [vmem:[#allocation6 + $0x8a0] ss:$16 sps:$4 sm:$0xff]   ;;  %v9689_v55 = vld [vmem:[#allocation6 + $0x8a8] ss:$16 sps:$4 sm:$0xff]  }
 0x127   :  { %6591 = vmatpush1.bf16.msra.mxu0 %v9602_v56  ;;  %7247 = vmatpush1.bf16.msra.mxu1 %v9605_v57  ;;  %v9694_v56 = vld [vmem:[#allocation6 + $0x8c4] ss:$16 sps:$4 sm:$0xff]   ;;  %v9697_v57 = vld [vmem:[#allocation6 + $0x8cc] ss:$16 sps:$4 sm:$0xff]  }
 0x128   :  { %6592 = vmatprep.subr.bf16.mxu0 %v9610_v58  ;;  %7248 = vmatprep.subr.bf16.mxu1 %v9613_v59  ;;  %v9692_v58 = vld [vmem:[#allocation6 + $0x8c0] ss:$16 sps:$4 sm:$0xff]   ;;  %v9695_v59 = vld [vmem:[#allocation6 + $0x8c8] ss:$16 sps:$4 sm:$0xff]  }
 0x12b   :  { %6593 = vmatpush1.bf16.msra.mxu0 %v9608_v60  ;;  %7249 = vmatpush1.bf16.msra.mxu1 %v9611_v61  ;;  %v9700_v60 = vld [vmem:[#allocation6 + $0x8e4] ss:$16 sps:$4 sm:$0xff]   ;;  %v9703_v61 = vld [vmem:[#allocation6 + $0x8ec] ss:$16 sps:$4 sm:$0xff]  }
 0x12c   :  { %6594 = vmatprep.subr.bf16.mxu0 %v9616_v62  ;;  %7250 = vmatprep.subr.bf16.mxu1 %v9619_v63  ;;  %v9698_v62 = vld [vmem:[#allocation6 + $0x8e0] ss:$16 sps:$4 sm:$0xff]   ;;  %v9701_v63 = vld [vmem:[#allocation6 + $0x8e8] ss:$16 sps:$4 sm:$0xff]  }
 0x12f   :  { %6595 = vmatpush1.bf16.msra.mxu0 %v9614_v0  ;;  %7251 = vmatpush1.bf16.msra.mxu1 %v9617_v1  ;;  %v9706_v0 = vld [vmem:[#allocation6 + $0x904] ss:$16 sps:$4 sm:$0xff]   ;;  %v9709_v1 = vld [vmem:[#allocation6 + $0x90c] ss:$16 sps:$4 sm:$0xff]  }
 0x130   :  { %6596 = vmatprep.subr.bf16.mxu0 %v9622_v2  ;;  %7252 = vmatprep.subr.bf16.mxu1 %v9625_v3  ;;  %v9704_v2 = vld [vmem:[#allocation6 + $0x900] ss:$16 sps:$4 sm:$0xff]   ;;  %v9707_v3 = vld [vmem:[#allocation6 + $0x908] ss:$16 sps:$4 sm:$0xff]  }
 0x133   :  { %6597 = vmatpush1.bf16.msra.mxu0 %v9620_v4  ;;  %7253 = vmatpush1.bf16.msra.mxu1 %v9623_v5  ;;  %v9712_v4 = vld [vmem:[#allocation6 + $0x924] ss:$16 sps:$4 sm:$0xff]   ;;  %v9715_v5 = vld [vmem:[#allocation6 + $0x92c] ss:$16 sps:$4 sm:$0xff]  }
 0x134   :  { %6598 = vmatprep.subr.bf16.mxu0 %v9628_v6  ;;  %7254 = vmatprep.subr.bf16.mxu1 %v9631_v7  ;;  %v9710_v6 = vld [vmem:[#allocation6 + $0x920] ss:$16 sps:$4 sm:$0xff]   ;;  %v9713_v7 = vld [vmem:[#allocation6 + $0x928] ss:$16 sps:$4 sm:$0xff]  }
 0x137   :  { %6599 = vmatpush1.bf16.msra.mxu0 %v9626_v8  ;;  %7255 = vmatpush1.bf16.msra.mxu1 %v9629_v9  ;;  %v9718_v8 = vld [vmem:[#allocation6 + $0x944] ss:$16 sps:$4 sm:$0xff]   ;;  %v9721_v9 = vld [vmem:[#allocation6 + $0x94c] ss:$16 sps:$4 sm:$0xff]  }
 0x138   :  { %6600 = vmatprep.subr.bf16.mxu0 %v9634_v10  ;;  %7256 = vmatprep.subr.bf16.mxu1 %v9637_v11  ;;  %v9716_v10 = vld [vmem:[#allocation6 + $0x940] ss:$16 sps:$4 sm:$0xff]   ;;  %v9719_v11 = vld [vmem:[#allocation6 + $0x948] ss:$16 sps:$4 sm:$0xff]  }
 0x13b   :  { %6601 = vmatpush1.bf16.msra.mxu0 %v9632_v12  ;;  %7257 = vmatpush1.bf16.msra.mxu1 %v9635_v14  ;;  %v9724_v12 = vld [vmem:[#allocation6 + $0x964] ss:$16 sps:$4 sm:$0xff]   ;;  %v9727_v14 = vld [vmem:[#allocation6 + $0x96c] ss:$16 sps:$4 sm:$0xff]  }
 0x13c   :  { %6602 = vmatprep.subr.bf16.mxu0 %v9640_v16  ;;  %7258 = vmatprep.subr.bf16.mxu1 %v9643_v17  ;;  %v9722_v16 = vld [vmem:[#allocation6 + $0x960] ss:$16 sps:$4 sm:$0xff]   ;;  %v9725_v17 = vld [vmem:[#allocation6 + $0x968] ss:$16 sps:$4 sm:$0xff]  }
 0x13f   :  { %6603 = vmatpush1.bf16.msra.mxu0 %v9638_v18  ;;  %7259 = vmatpush1.bf16.msra.mxu1 %v9641_v19  ;;  %v9730_v18 = vld [vmem:[#allocation6 + $0x984] ss:$16 sps:$4 sm:$0xff]   ;;  %v9733_v19 = vld [vmem:[#allocation6 + $0x98c] ss:$16 sps:$4 sm:$0xff]  }
 0x140   :  { %6604 = vmatprep.subr.bf16.mxu0 %v9646_v52  ;;  %7260 = vmatprep.subr.bf16.mxu1 %v9649_v20  ;;  %v9728_v52 = vld [vmem:[#allocation6 + $0x980] ss:$16 sps:$4 sm:$0xff]   ;;  %v9731_v20 = vld [vmem:[#allocation6 + $0x988] ss:$16 sps:$4 sm:$0xff]  }
 0x143   :  { %6605 = vmatpush1.bf16.msra.mxu0 %v9644_v22  ;;  %7261 = vmatpush1.bf16.msra.mxu1 %v9647_v23  ;;  %v9736_v22 = vld [vmem:[#allocation6 + $0x9a4] ss:$16 sps:$4 sm:$0xff]   ;;  %v9739_v23 = vld [vmem:[#allocation6 + $0x9ac] ss:$16 sps:$4 sm:$0xff]  }
 0x144   :  { %6606 = vmatprep.subr.bf16.mxu0 %v9652_v24  ;;  %7262 = vmatprep.subr.bf16.mxu1 %v9655_v26  ;;  %v9734_v24 = vld [vmem:[#allocation6 + $0x9a0] ss:$16 sps:$4 sm:$0xff]   ;;  %v9737_v26 = vld [vmem:[#allocation6 + $0x9a8] ss:$16 sps:$4 sm:$0xff]  }
 0x147   :  { %6607 = vmatpush1.bf16.msra.mxu0 %v9650_v28  ;;  %7263 = vmatpush1.bf16.msra.mxu1 %v9653_v13  ;;  %v9742_v28 = vld [vmem:[#allocation6 + $0x9c4] ss:$16 sps:$4 sm:$0xff]   ;;  %v9745_v13 = vld [vmem:[#allocation6 + $0x9cc] ss:$16 sps:$4 sm:$0xff]  }
 0x148   :  { %6617 = vmatprep.subr.bf16.mxu0 %v9658_v29  ;;  %7273 = vmatprep.subr.bf16.mxu1 %v9661_v30  ;;  %v9740_v29 = vld [vmem:[#allocation6 + $0x9c0] ss:$16 sps:$4 sm:$0xff]   ;;  %v9743_v30 = vld [vmem:[#allocation6 + $0x9c8] ss:$16 sps:$4 sm:$0xff]  }
 0x14a   :  { %6609 = vmatmul.mubr.bf16.vlgmr.msra.gmra.mrb[0].mxu0 %v1151_v32  ;;  %7265 = vmatmul.mubr.bf16.vlgmr.msra.gmra.mrb[0].mxu1 %v1151_v32  ;;  %v9751_v32 = vld [vmem:[#allocation6 + $0x9ec] ss:$16 sps:$4 sm:$0xff]  }
 0x14b   :  { %6618 = vmatpush1.bf16.msra.mxu0 %v9656_v15  ;;  %7274 = vmatpush1.bf16.msra.mxu1 %v9659_v33  ;;  %v9746_v15 = vld [vmem:[#allocation6 + $0x9e0] ss:$16 sps:$4 sm:$0xff]   ;;  %v9749_v33 = vld [vmem:[#allocation6 + $0x9e8] ss:$16 sps:$4 sm:$0xff]  }
 0x14c   :  { %6619 = vmatprep.subr.bf16.mxu0 %v9664_v34  ;;  %7275 = vmatprep.subr.bf16.mxu1 %v9667_v35  ;;  %v9754_v34 = vld [vmem:[#allocation6 + $0xa04] ss:$16 sps:$4 sm:$0xff]   ;;  %v9757_v35 = vld [vmem:[#allocation6 + $0xa0c] ss:$16 sps:$4 sm:$0xff]  }
 0x14d   :  { %6649 = vmatprep.mubr.bf16.mxu0 %v11065_v25  ;;  %7305 = vmatprep.mubr.bf16.mxu1 %v11065_v25 }
 0x14f   :  { %6620 = vmatpush1.bf16.msra.mxu0 %v9662_v36  ;;  %7276 = vmatpush1.bf16.msra.mxu1 %v9665_v37  ;;  %v11071_v36 = vrot.slane %v11058_v21, %v11024_v49  ;;  %v9752_v37 = vld [vmem:[#allocation6 + $0xa00] ss:$16 sps:$4 sm:$0xff]   ;;  %v9761_v21 = vld [vmem:[#allocation6 + $0xa28] ss:$16 sps:$4 sm:$0xff]  }
 0x150   :  { %6621 = vmatprep.subr.bf16.mxu0 %v9670_v27  ;;  %7277 = vmatprep.subr.bf16.mxu1 %v9673_v38  ;;  %v9755_v27 = vld [vmem:[#allocation6 + $0xa08] ss:$16 sps:$4 sm:$0xff]   ;;  %v9760_v38 = vld [vmem:[#allocation6 + $0xa24] ss:$16 sps:$4 sm:$0xff]  }
 0x153   :  { %6622 = vmatpush1.bf16.msra.mxu0 %v9668_v39  ;;  %7278 = vmatpush1.bf16.msra.mxu1 %v9671_v40  ;;  %v9763_v39 = vld [vmem:[#allocation6 + $0xa2c] ss:$16 sps:$4 sm:$0xff]   ;;  %v1201_v40 = vcombine.high %v11065_v25, %v11065_v25  ;;  %v9772_v25 = vld [vmem:[#allocation6 + $0xa64] ss:$16 sps:$4 sm:$0xff]  }
 0x154   :  { %6623 = vmatprep.subr.bf16.mxu0 %v9676_v41  ;;  %7279 = vmatprep.subr.bf16.mxu1 %v9679_v42  ;;  %v9758_v41 = vld [vmem:[#allocation6 + $0xa20] ss:$16 sps:$4 sm:$0xff]   ;;  %v9766_v42 = vld [vmem:[#allocation6 + $0xa44] ss:$16 sps:$4 sm:$0xff]  }
 0x157   :  { %6624 = vmatpush1.bf16.msra.mxu0 %v9674_v44  ;;  %7280 = vmatpush1.bf16.msra.mxu1 %v9677_v45  ;;  %v9769_v44 = vld [vmem:[#allocation6 + $0xa4c] ss:$16 sps:$4 sm:$0xff]   ;;  %v9764_v45 = vld [vmem:[#allocation6 + $0xa40] ss:$16 sps:$4 sm:$0xff]  }
 0x158   :  { %6625 = vmatprep.subr.bf16.mxu0 %v9682_v46  ;;  %7281 = vmatprep.subr.bf16.mxu1 %v9685_v47  ;;  %v9767_v46 = vld [vmem:[#allocation6 + $0xa48] ss:$16 sps:$4 sm:$0xff]   ;;  %v9775_v47 = vld [vmem:[#allocation6 + $0xa6c] ss:$16 sps:$4 sm:$0xff]  }
 0x15b   :  { %6626 = vmatpush1.bf16.msra.mxu0 %v9680_v48  ;;  %7282 = vmatpush1.bf16.msra.mxu1 %v9683_v50  ;;  %v9770_v48 = vld [vmem:[#allocation6 + $0xa60] ss:$16 sps:$4 sm:$0xff]   ;;  %v9773_v50 = vld [vmem:[#allocation6 + $0xa68] ss:$16 sps:$4 sm:$0xff]  }
 0x15c   :  { %6627 = vmatprep.subr.bf16.mxu0 %v9688_v51  ;;  %7283 = vmatprep.subr.bf16.mxu1 %v9691_v53  ;;  %v9778_v51 = vld [vmem:[#allocation6 + $0xa84] ss:$16 sps:$4 sm:$0xff]   ;;  %v9781_v53 = vld [vmem:[#allocation6 + $0xa8c] ss:$16 sps:$4 sm:$0xff]  }
 0x15f   :  { %6628 = vmatpush1.bf16.msra.mxu0 %v9686_v54  ;;  %7284 = vmatpush1.bf16.msra.mxu1 %v9689_v55  ;;  %v9776_v54 = vld [vmem:[#allocation6 + $0xa80] ss:$16 sps:$4 sm:$0xff]   ;;  %v9779_v55 = vld [vmem:[#allocation6 + $0xa88] ss:$16 sps:$4 sm:$0xff]  }
 0x160   :  { %6629 = vmatprep.subr.bf16.mxu0 %v9694_v56  ;;  %7285 = vmatprep.subr.bf16.mxu1 %v9697_v57  ;;  %v9784_v56 = vld [vmem:[#allocation6 + $0xaa4] ss:$16 sps:$4 sm:$0xff]   ;;  %v9787_v57 = vld [vmem:[#allocation6 + $0xaac] ss:$16 sps:$4 sm:$0xff]  }
 0x163   :  { %6630 = vmatpush1.bf16.msra.mxu0 %v9692_v58  ;;  %7286 = vmatpush1.bf16.msra.mxu1 %v9695_v59  ;;  %v9782_v58 = vld [vmem:[#allocation6 + $0xaa0] ss:$16 sps:$4 sm:$0xff]   ;;  %v9785_v59 = vld [vmem:[#allocation6 + $0xaa8] ss:$16 sps:$4 sm:$0xff]  }
 0x164   :  { %6631 = vmatprep.subr.bf16.mxu0 %v9700_v60  ;;  %7287 = vmatprep.subr.bf16.mxu1 %v9703_v61  ;;  %v9790_v60 = vld [vmem:[#allocation6 + $0xac4] ss:$16 sps:$4 sm:$0xff]   ;;  %v9793_v61 = vld [vmem:[#allocation6 + $0xacc] ss:$16 sps:$4 sm:$0xff]  }
 0x167   :  { %6632 = vmatpush1.bf16.msra.mxu0 %v9698_v62  ;;  %7288 = vmatpush1.bf16.msra.mxu1 %v9701_v63  ;;  %v9788_v62 = vld [vmem:[#allocation6 + $0xac0] ss:$16 sps:$4 sm:$0xff]   ;;  %v9791_v63 = vld [vmem:[#allocation6 + $0xac8] ss:$16 sps:$4 sm:$0xff]  }
 0x168   :  { %6633 = vmatprep.subr.bf16.mxu0 %v9706_v0  ;;  %7289 = vmatprep.subr.bf16.mxu1 %v9709_v1  ;;  %v9796_v0 = vld [vmem:[#allocation6 + $0xae4] ss:$16 sps:$4 sm:$0xff]   ;;  %v9799_v1 = vld [vmem:[#allocation6 + $0xaec] ss:$16 sps:$4 sm:$0xff]  }
 0x16b   :  { %6634 = vmatpush1.bf16.msra.mxu0 %v9704_v2  ;;  %7290 = vmatpush1.bf16.msra.mxu1 %v9707_v3  ;;  %v9794_v2 = vld [vmem:[#allocation6 + $0xae0] ss:$16 sps:$4 sm:$0xff]   ;;  %v9797_v3 = vld [vmem:[#allocation6 + $0xae8] ss:$16 sps:$4 sm:$0xff]  }
 0x16c   :  { %6635 = vmatprep.subr.bf16.mxu0 %v9712_v4  ;;  %7291 = vmatprep.subr.bf16.mxu1 %v9715_v5  ;;  %v9802_v4 = vld [vmem:[#allocation6 + $0xb04] ss:$16 sps:$4 sm:$0xff]   ;;  %v9805_v5 = vld [vmem:[#allocation6 + $0xb0c] ss:$16 sps:$4 sm:$0xff]  }
 0x16f   :  { %6636 = vmatpush1.bf16.msra.mxu0 %v9710_v6  ;;  %7292 = vmatpush1.bf16.msra.mxu1 %v9713_v7  ;;  %v9800_v6 = vld [vmem:[#allocation6 + $0xb00] ss:$16 sps:$4 sm:$0xff]   ;;  %v9803_v7 = vld [vmem:[#allocation6 + $0xb08] ss:$16 sps:$4 sm:$0xff]  }
 0x170   :  { %6637 = vmatprep.subr.bf16.mxu0 %v9718_v8  ;;  %7293 = vmatprep.subr.bf16.mxu1 %v9721_v9  ;;  %v9808_v8 = vld [vmem:[#allocation6 + $0xb24] ss:$16 sps:$4 sm:$0xff]   ;;  %v9811_v9 = vld [vmem:[#allocation6 + $0xb2c] ss:$16 sps:$4 sm:$0xff]  }
 0x173   :  { %6638 = vmatpush1.bf16.msra.mxu0 %v9716_v10  ;;  %7294 = vmatpush1.bf16.msra.mxu1 %v9719_v11  ;;  %v9806_v10 = vld [vmem:[#allocation6 + $0xb20] ss:$16 sps:$4 sm:$0xff]   ;;  %v9809_v11 = vld [vmem:[#allocation6 + $0xb28] ss:$16 sps:$4 sm:$0xff]  }
 0x174   :  { %6639 = vmatprep.subr.bf16.mxu0 %v9724_v12  ;;  %7295 = vmatprep.subr.bf16.mxu1 %v9727_v14  ;;  %v9814_v12 = vld [vmem:[#allocation6 + $0xb44] ss:$16 sps:$4 sm:$0xff]   ;;  %v9817_v14 = vld [vmem:[#allocation6 + $0xb4c] ss:$16 sps:$4 sm:$0xff]  }
 0x177   :  { %6640 = vmatpush1.bf16.msra.mxu0 %v9722_v16  ;;  %7296 = vmatpush1.bf16.msra.mxu1 %v9725_v17  ;;  %v9812_v16 = vld [vmem:[#allocation6 + $0xb40] ss:$16 sps:$4 sm:$0xff]   ;;  %v9815_v17 = vld [vmem:[#allocation6 + $0xb48] ss:$16 sps:$4 sm:$0xff]  }
 0x178   :  { %6641 = vmatprep.subr.bf16.mxu0 %v9730_v18  ;;  %7297 = vmatprep.subr.bf16.mxu1 %v9733_v19  ;;  %v9820_v18 = vld [vmem:[#allocation6 + $0xb64] ss:$16 sps:$4 sm:$0xff]   ;;  %v9823_v19 = vld [vmem:[#allocation6 + $0xb6c] ss:$16 sps:$4 sm:$0xff]  }
 0x17b   :  { %6642 = vmatpush1.bf16.msra.mxu0 %v9728_v52  ;;  %7298 = vmatpush1.bf16.msra.mxu1 %v9731_v20  ;;  %v9818_v52 = vld [vmem:[#allocation6 + $0xb60] ss:$16 sps:$4 sm:$0xff]   ;;  %v9821_v20 = vld [vmem:[#allocation6 + $0xb68] ss:$16 sps:$4 sm:$0xff]  }
 0x17c   :  { %6643 = vmatprep.subr.bf16.mxu0 %v9736_v22  ;;  %7299 = vmatprep.subr.bf16.mxu1 %v9739_v23  ;;  %v9826_v22 = vld [vmem:[#allocation6 + $0xb84] ss:$16 sps:$4 sm:$0xff]   ;;  %v9829_v23 = vld [vmem:[#allocation6 + $0xb8c] ss:$16 sps:$4 sm:$0xff]  }
 0x17f   :  { %6644 = vmatpush1.bf16.msra.mxu0 %v9734_v24  ;;  %7300 = vmatpush1.bf16.msra.mxu1 %v9737_v26  ;;  %v9824_v24 = vld [vmem:[#allocation6 + $0xb80] ss:$16 sps:$4 sm:$0xff]   ;;  %v9827_v26 = vld [vmem:[#allocation6 + $0xb88] ss:$16 sps:$4 sm:$0xff]  }
 0x180   :  { %6645 = vmatprep.subr.bf16.mxu0 %v9742_v28  ;;  %7301 = vmatprep.subr.bf16.mxu1 %v9745_v13  ;;  %v9832_v28 = vld [vmem:[#allocation6 + $0xba4] ss:$16 sps:$4 sm:$0xff]   ;;  %v9835_v13 = vld [vmem:[#allocation6 + $0xbac] ss:$16 sps:$4 sm:$0xff]  }
 0x183   :  { %6646 = vmatpush1.bf16.msra.mxu0 %v9740_v29  ;;  %7302 = vmatpush1.bf16.msra.mxu1 %v9743_v30  ;;  %v9830_v29 = vld [vmem:[#allocation6 + $0xba0] ss:$16 sps:$4 sm:$0xff]   ;;  %v9833_v30 = vld [vmem:[#allocation6 + $0xba8] ss:$16 sps:$4 sm:$0xff]  }
 0x184   :  { %6647 = vmatprep.subr.bf16.mxu0 %v9748_v31  ;;  %7303 = vmatprep.subr.bf16.mxu1 %v9751_v32  ;;  %v9838_v31 = vld [vmem:[#allocation6 + $0xbc4] ss:$16 sps:$4 sm:$0xff]   ;;  %v9841_v32 = vld [vmem:[#allocation6 + $0xbcc] ss:$16 sps:$4 sm:$0xff]  }
 0x187   :  { %6648 = vmatpush1.bf16.msra.mxu0 %v9746_v15  ;;  %7304 = vmatpush1.bf16.msra.mxu1 %v9749_v33  ;;  %v10819_v15 = vld [vmem:[#allocation3 + $0x8] sm:$0xff] }
 0x188   :  { %6658 = vmatprep.subr.bf16.mxu0 %v9754_v34  ;;  %7314 = vmatprep.subr.bf16.mxu1 %v9757_v35  ;;  %v1154_v33 = vcombine.high %v10819_v15, %v10819_v15  ;;  %v9836_v34 = vld [vmem:[#allocation6 + $0xbc0] ss:$16 sps:$4 sm:$0xff]   ;;  %v9839_v35 = vld [vmem:[#allocation6 + $0xbc8] ss:$16 sps:$4 sm:$0xff]  }
 0x189   :  { %v9920_v15 = vld [vmem:[#allocation6 + $0xd80] ss:$16 sps:$4 sm:$0xff]  }
 0x18a   :  { %6650 = vmatmul.mubr.bf16.vlgmr.msra.gmra.mrb[0].mxu0 %v11071_v36  ;;  %7306 = vmatmul.mubr.bf16.vlgmr.msra.gmra.mrb[0].mxu1 %v11071_v36 }
 0x18b   :  { %6659 = vmatpush1.bf16.msra.mxu0 %v9752_v37  ;;  %7315 = vmatpush1.bf16.msra.mxu1 %v9755_v27  ;;  %v9844_v37 = vld [vmem:[#allocation6 + $0xbe4] ss:$16 sps:$4 sm:$0xff]   ;;  %v9847_v27 = vld [vmem:[#allocation6 + $0xbec] ss:$16 sps:$4 sm:$0xff]  }
 0x18c   :  { %6660 = vmatprep.subr.bf16.mxu0 %v9760_v38  ;;  %7316 = vmatprep.subr.bf16.mxu1 %v9763_v39  ;;  %v11078_v38 = vrot.slane %v1154_v33, %v11024_v49  ;;  %v9842_v39 = vld [vmem:[#allocation6 + $0xbe0] ss:$16 sps:$4 sm:$0xff]   ;;  %v9923_v33 = vld [vmem:[#allocation6 + $0xd88] ss:$16 sps:$4 sm:$0xff]  }
 0x18d   :  { %6690 = vmatprep.mubr.bf16.mxu0 %v1201_v40  ;;  %7346 = vmatprep.mubr.bf16.mxu1 %v1201_v40  ;;  %v9845_v40 = vld [vmem:[#allocation6 + $0xbe8] ss:$16 sps:$4 sm:$0xff]  }
 0x18f   :  { %6661 = vmatpush1.bf16.msra.mxu0 %v9758_v41  ;;  %7317 = vmatpush1.bf16.msra.mxu1 %v9761_v21  ;;  %v9850_v41 = vld [vmem:[#allocation6 + $0xc04] ss:$16 sps:$4 sm:$0xff]   ;;  %v9853_v21 = vld [vmem:[#allocation6 + $0xc0c] ss:$16 sps:$4 sm:$0xff]  }
 0x190   :  { %6662 = vmatprep.subr.bf16.mxu0 %v9766_v42  ;;  %7318 = vmatprep.subr.bf16.mxu1 %v9769_v44  ;;  %v1170_v42 = vcombine.high %v11078_v38, %v11078_v38  ;;  %v1199_v44 = vcombine.high %v11071_v36, %v11071_v36  ;;  %v9862_v36 = vld [vmem:[#allocation6 + $0xc44] ss:$16 sps:$4 sm:$0xff]  }
 0x193   :  { %6663 = vmatpush1.bf16.msra.mxu0 %v9764_v45  ;;  %7319 = vmatpush1.bf16.msra.mxu1 %v9767_v46  ;;  %v9848_v45 = vld [vmem:[#allocation6 + $0xc00] ss:$16 sps:$4 sm:$0xff]   ;;  %v9851_v46 = vld [vmem:[#allocation6 + $0xc08] ss:$16 sps:$4 sm:$0xff]  }
 0x194   :  { %6664 = vmatprep.subr.bf16.mxu0 %v9772_v25  ;;  %7320 = vmatprep.subr.bf16.mxu1 %v9775_v47  ;;  %v9856_v25 = vld [vmem:[#allocation6 + $0xc24] ss:$16 sps:$4 sm:$0xff]   ;;  %v9859_v47 = vld [vmem:[#allocation6 + $0xc2c] ss:$16 sps:$4 sm:$0xff]  }
 0x197   :  { %6665 = vmatpush1.bf16.msra.mxu0 %v9770_v48  ;;  %7321 = vmatpush1.bf16.msra.mxu1 %v9773_v50  ;;  %v11085_v48 = vrot.slane %v1170_v42, %v11024_v49  ;;  %v9854_v50 = vld [vmem:[#allocation6 + $0xc20] ss:$16 sps:$4 sm:$0xff]   ;;  %v9940_v42 = vld [vmem:[#allocation6 + $0xde4] ss:$16 sps:$4 sm:$0xff]  }
 0x198   :  { %6666 = vmatprep.subr.bf16.mxu0 %v9778_v51  ;;  %7322 = vmatprep.subr.bf16.mxu1 %v9781_v53  ;;  %v9857_v51 = vld [vmem:[#allocation6 + $0xc28] ss:$16 sps:$4 sm:$0xff]   ;;  %v9865_v53 = vld [vmem:[#allocation6 + $0xc4c] ss:$16 sps:$4 sm:$0xff]  }
 0x19b   :  { %6667 = vmatpush1.bf16.msra.mxu0 %v9776_v54  ;;  %7323 = vmatpush1.bf16.msra.mxu1 %v9779_v55  ;;  %v9860_v54 = vld [vmem:[#allocation6 + $0xc40] ss:$16 sps:$4 sm:$0xff]   ;;  %v9863_v55 = vld [vmem:[#allocation6 + $0xc48] ss:$16 sps:$4 sm:$0xff]  }
 0x19c   :  { %6668 = vmatprep.subr.bf16.mxu0 %v9784_v56  ;;  %7324 = vmatprep.subr.bf16.mxu1 %v9787_v57  ;;  %v9868_v56 = vld [vmem:[#allocation6 + $0xc64] ss:$16 sps:$4 sm:$0xff]   ;;  %v9871_v57 = vld [vmem:[#allocation6 + $0xc6c] ss:$16 sps:$4 sm:$0xff]  }
 0x19f   :  { %6669 = vmatpush1.bf16.msra.mxu0 %v9782_v58  ;;  %7325 = vmatpush1.bf16.msra.mxu1 %v9785_v59  ;;  %v9866_v58 = vld [vmem:[#allocation6 + $0xc60] ss:$16 sps:$4 sm:$0xff]   ;;  %v9869_v59 = vld [vmem:[#allocation6 + $0xc68] ss:$16 sps:$4 sm:$0xff]  }
 0x1a0   :  { %6670 = vmatprep.subr.bf16.mxu0 %v9790_v60  ;;  %7326 = vmatprep.subr.bf16.mxu1 %v9793_v61  ;;  %v9874_v60 = vld [vmem:[#allocation6 + $0xc84] ss:$16 sps:$4 sm:$0xff]   ;;  %v9877_v61 = vld [vmem:[#allocation6 + $0xc8c] ss:$16 sps:$4 sm:$0xff]  }
 0x1a3   :  { %6671 = vmatpush1.bf16.msra.mxu0 %v9788_v62  ;;  %7327 = vmatpush1.bf16.msra.mxu1 %v9791_v63  ;;  %v9872_v62 = vld [vmem:[#allocation6 + $0xc80] ss:$16 sps:$4 sm:$0xff]   ;;  %v9875_v63 = vld [vmem:[#allocation6 + $0xc88] ss:$16 sps:$4 sm:$0xff]  }
 0x1a4   :  { %6672 = vmatprep.subr.bf16.mxu0 %v9796_v0  ;;  %7328 = vmatprep.subr.bf16.mxu1 %v9799_v1  ;;  %v9880_v0 = vld [vmem:[#allocation6 + $0xca4] ss:$16 sps:$4 sm:$0xff]   ;;  %v9883_v1 = vld [vmem:[#allocation6 + $0xcac] ss:$16 sps:$4 sm:$0xff]  }
 0x1a7   :  { %6673 = vmatpush1.bf16.msra.mxu0 %v9794_v2  ;;  %7329 = vmatpush1.bf16.msra.mxu1 %v9797_v3  ;;  %v9878_v2 = vld [vmem:[#allocation6 + $0xca0] ss:$16 sps:$4 sm:$0xff]   ;;  %v9881_v3 = vld [vmem:[#allocation6 + $0xca8] ss:$16 sps:$4 sm:$0xff]  }
 0x1a8   :  { %6674 = vmatprep.subr.bf16.mxu0 %v9802_v4  ;;  %7330 = vmatprep.subr.bf16.mxu1 %v9805_v5  ;;  %v9886_v4 = vld [vmem:[#allocation6 + $0xcc4] ss:$16 sps:$4 sm:$0xff]   ;;  %v9889_v5 = vld [vmem:[#allocation6 + $0xccc] ss:$16 sps:$4 sm:$0xff]  }
 0x1ab   :  { %6675 = vmatpush1.bf16.msra.mxu0 %v9800_v6  ;;  %7331 = vmatpush1.bf16.msra.mxu1 %v9803_v7  ;;  %v9884_v6 = vld [vmem:[#allocation6 + $0xcc0] ss:$16 sps:$4 sm:$0xff]   ;;  %v9887_v7 = vld [vmem:[#allocation6 + $0xcc8] ss:$16 sps:$4 sm:$0xff]  }
 0x1ac   :  { %6676 = vmatprep.subr.bf16.mxu0 %v9808_v8  ;;  %7332 = vmatprep.subr.bf16.mxu1 %v9811_v9  ;;  %v9892_v8 = vld [vmem:[#allocation6 + $0xce4] ss:$16 sps:$4 sm:$0xff]   ;;  %v9895_v9 = vld [vmem:[#allocation6 + $0xcec] ss:$16 sps:$4 sm:$0xff]  }
 0x1af   :  { %6677 = vmatpush1.bf16.msra.mxu0 %v9806_v10  ;;  %7333 = vmatpush1.bf16.msra.mxu1 %v9809_v11  ;;  %v9890_v10 = vld [vmem:[#allocation6 + $0xce0] ss:$16 sps:$4 sm:$0xff]   ;;  %v9893_v11 = vld [vmem:[#allocation6 + $0xce8] ss:$16 sps:$4 sm:$0xff]  }
 0x1b0   :  { %6678 = vmatprep.subr.bf16.mxu0 %v9814_v12  ;;  %7334 = vmatprep.subr.bf16.mxu1 %v9817_v14  ;;  %v9898_v12 = vld [vmem:[#allocation6 + $0xd04] ss:$16 sps:$4 sm:$0xff]   ;;  %v9901_v14 = vld [vmem:[#allocation6 + $0xd0c] ss:$16 sps:$4 sm:$0xff]  }
 0x1b3   :  { %6679 = vmatpush1.bf16.msra.mxu0 %v9812_v16  ;;  %7335 = vmatpush1.bf16.msra.mxu1 %v9815_v17  ;;  %v9896_v16 = vld [vmem:[#allocation6 + $0xd00] ss:$16 sps:$4 sm:$0xff]   ;;  %v9899_v17 = vld [vmem:[#allocation6 + $0xd08] ss:$16 sps:$4 sm:$0xff]  }
 0x1b4   :  { %6680 = vmatprep.subr.bf16.mxu0 %v9820_v18  ;;  %7336 = vmatprep.subr.bf16.mxu1 %v9823_v19  ;;  %v9904_v18 = vld [vmem:[#allocation6 + $0xd24] ss:$16 sps:$4 sm:$0xff]   ;;  %v9907_v19 = vld [vmem:[#allocation6 + $0xd2c] ss:$16 sps:$4 sm:$0xff]  }
 0x1b7   :  { %6681 = vmatpush1.bf16.msra.mxu0 %v9818_v52  ;;  %7337 = vmatpush1.bf16.msra.mxu1 %v9821_v20  ;;  %v9902_v52 = vld [vmem:[#allocation6 + $0xd20] ss:$16 sps:$4 sm:$0xff]   ;;  %v9905_v20 = vld [vmem:[#allocation6 + $0xd28] ss:$16 sps:$4 sm:$0xff]  }
 0x1b8   :  { %6682 = vmatprep.subr.bf16.mxu0 %v9826_v22  ;;  %7338 = vmatprep.subr.bf16.mxu1 %v9829_v23  ;;  %v9910_v22 = vld [vmem:[#allocation6 + $0xd44] ss:$16 sps:$4 sm:$0xff]   ;;  %v9913_v23 = vld [vmem:[#allocation6 + $0xd4c] ss:$16 sps:$4 sm:$0xff]  }
 0x1bb   :  { %6683 = vmatpush1.bf16.msra.mxu0 %v9824_v24  ;;  %7339 = vmatpush1.bf16.msra.mxu1 %v9827_v26  ;;  %v9908_v24 = vld [vmem:[#allocation6 + $0xd40] ss:$16 sps:$4 sm:$0xff]   ;;  %v9911_v26 = vld [vmem:[#allocation6 + $0xd48] ss:$16 sps:$4 sm:$0xff]  }
 0x1bc   :  { %6684 = vmatprep.subr.bf16.mxu0 %v9832_v28  ;;  %7340 = vmatprep.subr.bf16.mxu1 %v9835_v13  ;;  %v9916_v28 = vld [vmem:[#allocation6 + $0xd64] ss:$16 sps:$4 sm:$0xff]   ;;  %v9919_v13 = vld [vmem:[#allocation6 + $0xd6c] ss:$16 sps:$4 sm:$0xff]  }
 0x1bf   :  { %6685 = vmatpush1.bf16.msra.mxu0 %v9830_v29  ;;  %7341 = vmatpush1.bf16.msra.mxu1 %v9833_v30  ;;  %v9914_v29 = vld [vmem:[#allocation6 + $0xd60] ss:$16 sps:$4 sm:$0xff]   ;;  %v9917_v30 = vld [vmem:[#allocation6 + $0xd68] ss:$16 sps:$4 sm:$0xff]  }
 0x1c0   :  { %6686 = vmatprep.subr.bf16.mxu0 %v9838_v31  ;;  %7342 = vmatprep.subr.bf16.mxu1 %v9841_v32  ;;  %v9922_v31 = vld [vmem:[#allocation6 + $0xd84] ss:$16 sps:$4 sm:$0xff]   ;;  %v9925_v32 = vld [vmem:[#allocation6 + $0xd8c] ss:$16 sps:$4 sm:$0xff]  }
 0x1c3   :  { %6687 = vmatpush1.bf16.msra.mxu0 %v9836_v34  ;;  %7343 = vmatpush1.bf16.msra.mxu1 %v9839_v35  ;;  %v9928_v34 = vld [vmem:[#allocation6 + $0xda4] ss:$16 sps:$4 sm:$0xff]   ;;  %v9931_v35 = vld [vmem:[#allocation6 + $0xdac] ss:$16 sps:$4 sm:$0xff]  }
 0x1c4   :  { %6688 = vmatprep.subr.bf16.mxu0 %v9844_v37  ;;  %7344 = vmatprep.subr.bf16.mxu1 %v9847_v27  ;;  %v9926_v37 = vld [vmem:[#allocation6 + $0xda0] ss:$16 sps:$4 sm:$0xff]   ;;  %v9929_v27 = vld [vmem:[#allocation6 + $0xda8] ss:$16 sps:$4 sm:$0xff]  }
 0x1c7   :  { %6689 = vmatpush1.bf16.msra.mxu0 %v9842_v39  ;;  %7345 = vmatpush1.bf16.msra.mxu1 %v9845_v40  ;;  %v9934_v39 = vld [vmem:[#allocation6 + $0xdc4] ss:$16 sps:$4 sm:$0xff]   ;;  %v9937_v40 = vld [vmem:[#allocation6 + $0xdcc] ss:$16 sps:$4 sm:$0xff]  }
 0x1c8   :  { %6699 = vmatprep.subr.bf16.mxu0 %v9850_v41  ;;  %7355 = vmatprep.subr.bf16.mxu1 %v9853_v21  ;;  %v9932_v41 = vld [vmem:[#allocation6 + $0xdc0] ss:$16 sps:$4 sm:$0xff]   ;;  %v9935_v21 = vld [vmem:[#allocation6 + $0xdc8] ss:$16 sps:$4 sm:$0xff]  }
 0x1ca   :  { %6691 = vmatmul.mubr.bf16.vlgmr.msra.gmra.mrb[0].mxu0 %v1199_v44  ;;  %7347 = vmatmul.mubr.bf16.vlgmr.msra.gmra.mrb[0].mxu1 %v1199_v44  ;;  %v9943_v44 = vld [vmem:[#allocation6 + $0xdec] ss:$16 sps:$4 sm:$0xff]  }
 0x1cb   :  { %6700 = vmatpush1.bf16.msra.mxu0 %v9848_v45  ;;  %7356 = vmatpush1.bf16.msra.mxu1 %v9851_v46  ;;  %v9938_v45 = vld [vmem:[#allocation6 + $0xde0] ss:$16 sps:$4 sm:$0xff]   ;;  %v9941_v46 = vld [vmem:[#allocation6 + $0xde8] ss:$16 sps:$4 sm:$0xff]  }
 0x1cc   :  { %6701 = vmatprep.subr.bf16.mxu0 %v9856_v25  ;;  %7357 = vmatprep.subr.bf16.mxu1 %v9859_v47  ;;  %v9947_v25 = vld [vmem:[#allocation6 + $0xe04] ss:$16 sps:$4 sm:$0xff]   ;;  %v9950_v47 = vld [vmem:[#allocation6 + $0xe0c] ss:$16 sps:$4 sm:$0xff]  }
 0x1cd   :  { %6731 = vmatprep.mubr.bf16.mxu0 %v11085_v48  ;;  %7387 = vmatprep.mubr.bf16.mxu1 %v11085_v48 }
 0x1cf   :  { %6702 = vmatpush1.bf16.msra.mxu0 %v9854_v50  ;;  %7358 = vmatpush1.bf16.msra.mxu1 %v9857_v51  ;;  %v11091_v50 = vrot.slane %v11078_v38, %v11024_v49  ;;  %v9945_v51 = vld [vmem:[#allocation6 + $0xe00] ss:$16 sps:$4 sm:$0xff]   ;;  %v9954_v38 = vld [vmem:[#allocation6 + $0xe28] ss:$16 sps:$4 sm:$0xff]  }
 0x1d0   :  { %6703 = vmatprep.subr.bf16.mxu0 %v9862_v36  ;;  %7359 = vmatprep.subr.bf16.mxu1 %v9865_v53  ;;  %v9948_v36 = vld [vmem:[#allocation6 + $0xe08] ss:$16 sps:$4 sm:$0xff]   ;;  %v9953_v53 = vld [vmem:[#allocation6 + $0xe24] ss:$16 sps:$4 sm:$0xff]  }
 0x1d3   :  { %6704 = vmatpush1.bf16.msra.mxu0 %v9860_v54  ;;  %7360 = vmatpush1.bf16.msra.mxu1 %v9863_v55  ;;  %v9956_v54 = vld [vmem:[#allocation6 + $0xe2c] ss:$16 sps:$4 sm:$0xff]   ;;  %v1202_v55 = vcombine.high %v11085_v48, %v11085_v48  ;;  %v9965_v48 = vld [vmem:[#allocation6 + $0xe64] ss:$16 sps:$4 sm:$0xff]  }
 0x1d4   :  { %6705 = vmatprep.subr.bf16.mxu0 %v9868_v56  ;;  %7361 = vmatprep.subr.bf16.mxu1 %v9871_v57  ;;  %v9951_v56 = vld [vmem:[#allocation6 + $0xe20] ss:$16 sps:$4 sm:$0xff]   ;;  %v9959_v57 = vld [vmem:[#allocation6 + $0xe44] ss:$16 sps:$4 sm:$0xff]  }
 0x1d7   :  { %6706 = vmatpush1.bf16.msra.mxu0 %v9866_v58  ;;  %7362 = vmatpush1.bf16.msra.mxu1 %v9869_v59  ;;  %v9962_v58 = vld [vmem:[#allocation6 + $0xe4c] ss:$16 sps:$4 sm:$0xff]   ;;  %v9957_v59 = vld [vmem:[#allocation6 + $0xe40] ss:$16 sps:$4 sm:$0xff]  }
 0x1d8   :  { %6707 = vmatprep.subr.bf16.mxu0 %v9874_v60  ;;  %7363 = vmatprep.subr.bf16.mxu1 %v9877_v61  ;;  %v9960_v60 = vld [vmem:[#allocation6 + $0xe48] ss:$16 sps:$4 sm:$0xff]   ;;  %v9968_v61 = vld [vmem:[#allocation6 + $0xe6c] ss:$16 sps:$4 sm:$0xff]  }
 0x1db   :  { %6708 = vmatpush1.bf16.msra.mxu0 %v9872_v62  ;;  %7364 = vmatpush1.bf16.msra.mxu1 %v9875_v63  ;;  %v9963_v62 = vld [vmem:[#allocation6 + $0xe60] ss:$16 sps:$4 sm:$0xff]   ;;  %v9966_v63 = vld [vmem:[#allocation6 + $0xe68] ss:$16 sps:$4 sm:$0xff]  }
 0x1dc   :  { %6709 = vmatprep.subr.bf16.mxu0 %v9880_v0  ;;  %7365 = vmatprep.subr.bf16.mxu1 %v9883_v1  ;;  %v9971_v0 = vld [vmem:[#allocation6 + $0xe84] ss:$16 sps:$4 sm:$0xff]   ;;  %v9974_v1 = vld [vmem:[#allocation6 + $0xe8c] ss:$16 sps:$4 sm:$0xff]  }
 0x1df   :  { %6710 = vmatpush1.bf16.msra.mxu0 %v9878_v2  ;;  %7366 = vmatpush1.bf16.msra.mxu1 %v9881_v3  ;;  %v9969_v2 = vld [vmem:[#allocation6 + $0xe80] ss:$16 sps:$4 sm:$0xff]   ;;  %v9972_v3 = vld [vmem:[#allocation6 + $0xe88] ss:$16 sps:$4 sm:$0xff]  }
 0x1e0   :  { %6711 = vmatprep.subr.bf16.mxu0 %v9886_v4  ;;  %7367 = vmatprep.subr.bf16.mxu1 %v9889_v5  ;;  %v9977_v4 = vld [vmem:[#allocation6 + $0xea4] ss:$16 sps:$4 sm:$0xff]   ;;  %v9980_v5 = vld [vmem:[#allocation6 + $0xeac] ss:$16 sps:$4 sm:$0xff]  }
 0x1e3   :  { %6712 = vmatpush1.bf16.msra.mxu0 %v9884_v6  ;;  %7368 = vmatpush1.bf16.msra.mxu1 %v9887_v7  ;;  %v9975_v6 = vld [vmem:[#allocation6 + $0xea0] ss:$16 sps:$4 sm:$0xff]   ;;  %v9978_v7 = vld [vmem:[#allocation6 + $0xea8] ss:$16 sps:$4 sm:$0xff]  }
 0x1e4   :  { %6713 = vmatprep.subr.bf16.mxu0 %v9892_v8  ;;  %7369 = vmatprep.subr.bf16.mxu1 %v9895_v9  ;;  %v9983_v8 = vld [vmem:[#allocation6 + $0xec4] ss:$16 sps:$4 sm:$0xff]   ;;  %v9986_v9 = vld [vmem:[#allocation6 + $0xecc] ss:$16 sps:$4 sm:$0xff]  }
 0x1e7   :  { %6714 = vmatpush1.bf16.msra.mxu0 %v9890_v10  ;;  %7370 = vmatpush1.bf16.msra.mxu1 %v9893_v11  ;;  %v9981_v10 = vld [vmem:[#allocation6 + $0xec0] ss:$16 sps:$4 sm:$0xff]   ;;  %v9984_v11 = vld [vmem:[#allocation6 + $0xec8] ss:$16 sps:$4 sm:$0xff]  }
 0x1e8   :  { %6715 = vmatprep.subr.bf16.mxu0 %v9898_v12  ;;  %7371 = vmatprep.subr.bf16.mxu1 %v9901_v14  ;;  %v9989_v12 = vld [vmem:[#allocation6 + $0xee4] ss:$16 sps:$4 sm:$0xff]   ;;  %v9992_v14 = vld [vmem:[#allocation6 + $0xeec] ss:$16 sps:$4 sm:$0xff]  }
 0x1eb   :  { %6716 = vmatpush1.bf16.msra.mxu0 %v9896_v16  ;;  %7372 = vmatpush1.bf16.msra.mxu1 %v9899_v17  ;;  %v9987_v16 = vld [vmem:[#allocation6 + $0xee0] ss:$16 sps:$4 sm:$0xff]   ;;  %v9990_v17 = vld [vmem:[#allocation6 + $0xee8] ss:$16 sps:$4 sm:$0xff]  }
 0x1ec   :  { %6717 = vmatprep.subr.bf16.mxu0 %v9904_v18  ;;  %7373 = vmatprep.subr.bf16.mxu1 %v9907_v19  ;;  %v9995_v18 = vld [vmem:[#allocation6 + $0xf04] ss:$16 sps:$4 sm:$0xff]   ;;  %v9998_v19 = vld [vmem:[#allocation6 + $0xf0c] ss:$16 sps:$4 sm:$0xff]  }
 0x1ef   :  { %6718 = vmatpush1.bf16.msra.mxu0 %v9902_v52  ;;  %7374 = vmatpush1.bf16.msra.mxu1 %v9905_v20  ;;  %v9993_v52 = vld [vmem:[#allocation6 + $0xf00] ss:$16 sps:$4 sm:$0xff]   ;;  %v9996_v20 = vld [vmem:[#allocation6 + $0xf08] ss:$16 sps:$4 sm:$0xff]  }
 0x1f0   :  { %6719 = vmatprep.subr.bf16.mxu0 %v9910_v22  ;;  %7375 = vmatprep.subr.bf16.mxu1 %v9913_v23  ;;  %v10001_v22 = vld [vmem:[#allocation6 + $0xf24] ss:$16 sps:$4 sm:$0xff]   ;;  %v10004_v23 = vld [vmem:[#allocation6 + $0xf2c] ss:$16 sps:$4 sm:$0xff]  }
 0x1f3   :  { %6720 = vmatpush1.bf16.msra.mxu0 %v9908_v24  ;;  %7376 = vmatpush1.bf16.msra.mxu1 %v9911_v26  ;;  %v9999_v24 = vld [vmem:[#allocation6 + $0xf20] ss:$16 sps:$4 sm:$0xff]   ;;  %v10002_v26 = vld [vmem:[#allocation6 + $0xf28] ss:$16 sps:$4 sm:$0xff]  }
 0x1f4   :  { %6721 = vmatprep.subr.bf16.mxu0 %v9916_v28  ;;  %7377 = vmatprep.subr.bf16.mxu1 %v9919_v13  ;;  %v10007_v28 = vld [vmem:[#allocation6 + $0xf44] ss:$16 sps:$4 sm:$0xff]   ;;  %v10010_v13 = vld [vmem:[#allocation6 + $0xf4c] ss:$16 sps:$4 sm:$0xff]  }
 0x1f7   :  { %6722 = vmatpush1.bf16.msra.mxu0 %v9914_v29  ;;  %7378 = vmatpush1.bf16.msra.mxu1 %v9917_v30  ;;  %v10005_v29 = vld [vmem:[#allocation6 + $0xf40] ss:$16 sps:$4 sm:$0xff]   ;;  %v10008_v30 = vld [vmem:[#allocation6 + $0xf48] ss:$16 sps:$4 sm:$0xff]  }
 0x1f8   :  { %6723 = vmatprep.subr.bf16.mxu0 %v9922_v31  ;;  %7379 = vmatprep.subr.bf16.mxu1 %v9925_v32  ;;  %v10013_v31 = vld [vmem:[#allocation6 + $0xf64] ss:$16 sps:$4 sm:$0xff]   ;;  %v10016_v32 = vld [vmem:[#allocation6 + $0xf6c] ss:$16 sps:$4 sm:$0xff]  }
 0x1fb   :  { %6724 = vmatpush1.bf16.msra.mxu0 %v9920_v15  ;;  %7380 = vmatpush1.bf16.msra.mxu1 %v9923_v33  ;;  %v10011_v15 = vld [vmem:[#allocation6 + $0xf60] ss:$16 sps:$4 sm:$0xff]   ;;  %v10014_v33 = vld [vmem:[#allocation6 + $0xf68] ss:$16 sps:$4 sm:$0xff]  }
 0x1fc   :  { %6725 = vmatprep.subr.bf16.mxu0 %v9928_v34  ;;  %7381 = vmatprep.subr.bf16.mxu1 %v9931_v35  ;;  %v10019_v34 = vld [vmem:[#allocation6 + $0xf84] ss:$16 sps:$4 sm:$0xff]   ;;  %v10022_v35 = vld [vmem:[#allocation6 + $0xf8c] ss:$16 sps:$4 sm:$0xff]  }
 0x1ff   :  { %6726 = vmatpush1.bf16.msra.mxu0 %v9926_v37  ;;  %7382 = vmatpush1.bf16.msra.mxu1 %v9929_v27  ;;  %v10017_v37 = vld [vmem:[#allocation6 + $0xf80] ss:$16 sps:$4 sm:$0xff]   ;;  %v10020_v27 = vld [vmem:[#allocation6 + $0xf88] ss:$16 sps:$4 sm:$0xff]  }
 0x200   :  { %6727 = vmatprep.subr.bf16.mxu0 %v9934_v39  ;;  %7383 = vmatprep.subr.bf16.mxu1 %v9937_v40  ;;  %v10025_v39 = vld [vmem:[#allocation6 + $0xfa4] ss:$16 sps:$4 sm:$0xff]   ;;  %v10028_v40 = vld [vmem:[#allocation6 + $0xfac] ss:$16 sps:$4 sm:$0xff]  }
 0x203   :  { %6728 = vmatpush1.bf16.msra.mxu0 %v9932_v41  ;;  %7384 = vmatpush1.bf16.msra.mxu1 %v9935_v21  ;;  %v10023_v41 = vld [vmem:[#allocation6 + $0xfa0] ss:$16 sps:$4 sm:$0xff]   ;;  %v10026_v21 = vld [vmem:[#allocation6 + $0xfa8] ss:$16 sps:$4 sm:$0xff]  }
 0x204   :  { %6729 = vmatprep.subr.bf16.mxu0 %v9940_v42  ;;  %7385 = vmatprep.subr.bf16.mxu1 %v9943_v44  ;;  %v10031_v42 = vld [vmem:[#allocation6 + $0xfc4] ss:$16 sps:$4 sm:$0xff]   ;;  %v10034_v44 = vld [vmem:[#allocation6 + $0xfcc] ss:$16 sps:$4 sm:$0xff]  }
 0x207   :  { %6730 = vmatpush1.bf16.msra.mxu0 %v9938_v45  ;;  %7386 = vmatpush1.bf16.msra.mxu1 %v9941_v46  ;;  %v11097_v45 = vld [vmem:[#allocation3 + $0x10] sm:$0xff] }
 0x208   :  { %6740 = vmatprep.subr.bf16.mxu0 %v9947_v25  ;;  %7396 = vmatprep.subr.bf16.mxu1 %v9950_v47  ;;  %v10029_v46 = vld [vmem:[#allocation6 + $0xfc0] ss:$16 sps:$4 sm:$0xff]   ;;  %v10032_v25 = vld [vmem:[#allocation6 + $0xfc8] ss:$16 sps:$4 sm:$0xff]   ;;  %v10037_v47 = vld [vmem:[#allocation6 + $0xfe4] ss:$16 sps:$4 sm:$0xff]  }
 0x20a   :  { %6732 = vmatmul.mubr.bf16.vlgmr.msra.gmra.mrb[0].mxu0 %v11091_v50  ;;  %7388 = vmatmul.mubr.bf16.vlgmr.msra.gmra.mrb[0].mxu1 %v11091_v50 }
 0x20b   :  { %6741 = vmatpush1.bf16.msra.mxu0 %v9945_v51  ;;  %7397 = vmatpush1.bf16.msra.mxu1 %v9948_v36  ;;  %v10040_v51 = vld [vmem:[#allocation6 + $0xfec] ss:$16 sps:$4 sm:$0xff]   ;;  %v11101_v36 = vrot.slane %v11097_v45, %v11024_v49 }
 0x20c   :  { %6742 = vmatprep.subr.bf16.mxu0 %v9953_v53  ;;  %7398 = vmatprep.subr.bf16.mxu1 %v9956_v54  ;;  %v10035_v53 = vld [vmem:[#allocation6 + $0xfe0] ss:$16 sps:$4 sm:$0xff]   ;;  %v10038_v54 = vld [vmem:[#allocation6 + $0xfe8] ss:$16 sps:$4 sm:$0xff]  }
 0x20d   :  { %6772 = vmatprep.mubr.bf16.mxu0 %v1202_v55  ;;  %7428 = vmatprep.mubr.bf16.mxu1 %v1202_v55  ;;  %v10043_v55 = vld [vmem:[#allocation6 + $0x1004] ss:$16 sps:$4 sm:$0xff]  }
 0x20f   :  { %6743 = vmatpush1.bf16.msra.mxu0 %v9951_v56  ;;  %7399 = vmatpush1.bf16.msra.mxu1 %v9954_v38  ;;  %v10046_v56 = vld [vmem:[#allocation6 + $0x100c] ss:$16 sps:$4 sm:$0xff]   ;;  %v1218_v38 = vcombine.high %v11101_v36, %v11101_v36 }
 0x210   :  { %6744 = vmatprep.subr.bf16.mxu0 %v9959_v57  ;;  %7400 = vmatprep.subr.bf16.mxu1 %v9962_v58  ;;  %v1200_v57 = vcombine.high %v11091_v50, %v11091_v50  ;;  %v10041_v58 = vld [vmem:[#allocation6 + $0x1000] ss:$16 sps:$4 sm:$0xff]   ;;  %v10055_v50 = vld [vmem:[#allocation6 + $0x1044] ss:$16 sps:$4 sm:$0xff]  }
 0x213   :  { %6745 = vmatpush1.bf16.msra.mxu0 %v9957_v59  ;;  %7401 = vmatpush1.bf16.msra.mxu1 %v9960_v60  ;;  %v10044_v59 = vld [vmem:[#allocation6 + $0x1008] ss:$16 sps:$4 sm:$0xff]   ;;  %v10049_v60 = vld [vmem:[#allocation6 + $0x1024] ss:$16 sps:$4 sm:$0xff]  }
 0x214   :  { %6746 = vmatprep.subr.bf16.mxu0 %v9965_v48  ;;  %7402 = vmatprep.subr.bf16.mxu1 %v9968_v61  ;;  %v10052_v48 = vld [vmem:[#allocation6 + $0x102c] ss:$16 sps:$4 sm:$0xff]   ;;  %v11108_v61 = vrot.slane %v1218_v38, %v11024_v49  ;;  %v10128_v38 = vld [vmem:[#allocation6 + $0x11c8] ss:$16 sps:$4 sm:$0xff]  }
 0x217   :  { %6747 = vmatpush1.bf16.msra.mxu0 %v9963_v62  ;;  %7403 = vmatpush1.bf16.msra.mxu1 %v9966_v63  ;;  %v10047_v62 = vld [vmem:[#allocation6 + $0x1020] ss:$16 sps:$4 sm:$0xff]   ;;  %v10050_v63 = vld [vmem:[#allocation6 + $0x1028] ss:$16 sps:$4 sm:$0xff]  }
 0x218   :  { %6748 = vmatprep.subr.bf16.mxu0 %v9971_v0  ;;  %7404 = vmatprep.subr.bf16.mxu1 %v9974_v1  ;;  %v10058_v0 = vld [vmem:[#allocation6 + $0x104c] ss:$16 sps:$4 sm:$0xff]   ;;  %v10053_v1 = vld [vmem:[#allocation6 + $0x1040] ss:$16 sps:$4 sm:$0xff]  }
 0x21b   :  { %6749 = vmatpush1.bf16.msra.mxu0 %v9969_v2  ;;  %7405 = vmatpush1.bf16.msra.mxu1 %v9972_v3  ;;  %v10056_v2 = vld [vmem:[#allocation6 + $0x1048] ss:$16 sps:$4 sm:$0xff]   ;;  %v10061_v3 = vld [vmem:[#allocation6 + $0x1064] ss:$16 sps:$4 sm:$0xff]  }
 0x21c   :  { %6750 = vmatprep.subr.bf16.mxu0 %v9977_v4  ;;  %7406 = vmatprep.subr.bf16.mxu1 %v9980_v5  ;;  %v10064_v4 = vld [vmem:[#allocation6 + $0x106c] ss:$16 sps:$4 sm:$0xff]   ;;  %v10059_v5 = vld [vmem:[#allocation6 + $0x1060] ss:$16 sps:$4 sm:$0xff]  }
 0x21f   :  { %6751 = vmatpush1.bf16.msra.mxu0 %v9975_v6  ;;  %7407 = vmatpush1.bf16.msra.mxu1 %v9978_v7  ;;  %v10062_v6 = vld [vmem:[#allocation6 + $0x1068] ss:$16 sps:$4 sm:$0xff]   ;;  %v10067_v7 = vld [vmem:[#allocation6 + $0x1084] ss:$16 sps:$4 sm:$0xff]  }
 0x220   :  { %6752 = vmatprep.subr.bf16.mxu0 %v9983_v8  ;;  %7408 = vmatprep.subr.bf16.mxu1 %v9986_v9  ;;  %v10070_v8 = vld [vmem:[#allocation6 + $0x108c] ss:$16 sps:$4 sm:$0xff]   ;;  %v10065_v9 = vld [vmem:[#allocation6 + $0x1080] ss:$16 sps:$4 sm:$0xff]  }
 0x223   :  { %6753 = vmatpush1.bf16.msra.mxu0 %v9981_v10  ;;  %7409 = vmatpush1.bf16.msra.mxu1 %v9984_v11  ;;  %v10068_v10 = vld [vmem:[#allocation6 + $0x1088] ss:$16 sps:$4 sm:$0xff]   ;;  %v10073_v11 = vld [vmem:[#allocation6 + $0x10a4] ss:$16 sps:$4 sm:$0xff]  }
 0x224   :  { %6754 = vmatprep.subr.bf16.mxu0 %v9989_v12  ;;  %7410 = vmatprep.subr.bf16.mxu1 %v9992_v14  ;;  %v10076_v12 = vld [vmem:[#allocation6 + $0x10ac] ss:$16 sps:$4 sm:$0xff]   ;;  %v10071_v14 = vld [vmem:[#allocation6 + $0x10a0] ss:$16 sps:$4 sm:$0xff]  }
 0x227   :  { %6755 = vmatpush1.bf16.msra.mxu0 %v9987_v16  ;;  %7411 = vmatpush1.bf16.msra.mxu1 %v9990_v17  ;;  %v10074_v16 = vld [vmem:[#allocation6 + $0x10a8] ss:$16 sps:$4 sm:$0xff]   ;;  %v10079_v17 = vld [vmem:[#allocation6 + $0x10c4] ss:$16 sps:$4 sm:$0xff]  }
 0x228   :  { %6756 = vmatprep.subr.bf16.mxu0 %v9995_v18  ;;  %7412 = vmatprep.subr.bf16.mxu1 %v9998_v19  ;;  %v10082_v18 = vld [vmem:[#allocation6 + $0x10cc] ss:$16 sps:$4 sm:$0xff]   ;;  %v10077_v19 = vld [vmem:[#allocation6 + $0x10c0] ss:$16 sps:$4 sm:$0xff]  }
 0x22b   :  { %6757 = vmatpush1.bf16.msra.mxu0 %v9993_v52  ;;  %7413 = vmatpush1.bf16.msra.mxu1 %v9996_v20  ;;  %v10080_v52 = vld [vmem:[#allocation6 + $0x10c8] ss:$16 sps:$4 sm:$0xff]   ;;  %v10085_v20 = vld [vmem:[#allocation6 + $0x10e4] ss:$16 sps:$4 sm:$0xff]  }
 0x22c   :  { %6758 = vmatprep.subr.bf16.mxu0 %v10001_v22  ;;  %7414 = vmatprep.subr.bf16.mxu1 %v10004_v23  ;;  %v10088_v22 = vld [vmem:[#allocation6 + $0x10ec] ss:$16 sps:$4 sm:$0xff]   ;;  %v10083_v23 = vld [vmem:[#allocation6 + $0x10e0] ss:$16 sps:$4 sm:$0xff]  }
 0x22f   :  { %6759 = vmatpush1.bf16.msra.mxu0 %v9999_v24  ;;  %7415 = vmatpush1.bf16.msra.mxu1 %v10002_v26  ;;  %v10086_v24 = vld [vmem:[#allocation6 + $0x10e8] ss:$16 sps:$4 sm:$0xff]   ;;  %v10091_v26 = vld [vmem:[#allocation6 + $0x1104] ss:$16 sps:$4 sm:$0xff]  }
 0x230   :  { %6760 = vmatprep.subr.bf16.mxu0 %v10007_v28  ;;  %7416 = vmatprep.subr.bf16.mxu1 %v10010_v13  ;;  %v10094_v28 = vld [vmem:[#allocation6 + $0x110c] ss:$16 sps:$4 sm:$0xff]   ;;  %v10089_v13 = vld [vmem:[#allocation6 + $0x1100] ss:$16 sps:$4 sm:$0xff]  }
 0x233   :  { %6761 = vmatpush1.bf16.msra.mxu0 %v10005_v29  ;;  %7417 = vmatpush1.bf16.msra.mxu1 %v10008_v30  ;;  %v10092_v29 = vld [vmem:[#allocation6 + $0x1108] ss:$16 sps:$4 sm:$0xff]   ;;  %v10097_v30 = vld [vmem:[#allocation6 + $0x1124] ss:$16 sps:$4 sm:$0xff]  }
 0x234   :  { %6762 = vmatprep.subr.bf16.mxu0 %v10013_v31  ;;  %7418 = vmatprep.subr.bf16.mxu1 %v10016_v32  ;;  %v10100_v31 = vld [vmem:[#allocation6 + $0x112c] ss:$16 sps:$4 sm:$0xff]   ;;  %v10095_v32 = vld [vmem:[#allocation6 + $0x1120] ss:$16 sps:$4 sm:$0xff]  }
 0x237   :  { %6763 = vmatpush1.bf16.msra.mxu0 %v10011_v15  ;;  %7419 = vmatpush1.bf16.msra.mxu1 %v10014_v33  ;;  %v10098_v15 = vld [vmem:[#allocation6 + $0x1128] ss:$16 sps:$4 sm:$0xff]   ;;  %v10103_v33 = vld [vmem:[#allocation6 + $0x1144] ss:$16 sps:$4 sm:$0xff]  }
 0x238   :  { %6764 = vmatprep.subr.bf16.mxu0 %v10019_v34  ;;  %7420 = vmatprep.subr.bf16.mxu1 %v10022_v35  ;;  %v10106_v34 = vld [vmem:[#allocation6 + $0x114c] ss:$16 sps:$4 sm:$0xff]   ;;  %v10101_v35 = vld [vmem:[#allocation6 + $0x1140] ss:$16 sps:$4 sm:$0xff]  }
 0x23b   :  { %6765 = vmatpush1.bf16.msra.mxu0 %v10017_v37  ;;  %7421 = vmatpush1.bf16.msra.mxu1 %v10020_v27  ;;  %v10104_v37 = vld [vmem:[#allocation6 + $0x1148] ss:$16 sps:$4 sm:$0xff]   ;;  %v10109_v27 = vld [vmem:[#allocation6 + $0x1164] ss:$16 sps:$4 sm:$0xff]  }
 0x23c   :  { %6766 = vmatprep.subr.bf16.mxu0 %v10025_v39  ;;  %7422 = vmatprep.subr.bf16.mxu1 %v10028_v40  ;;  %v10112_v39 = vld [vmem:[#allocation6 + $0x116c] ss:$16 sps:$4 sm:$0xff]   ;;  %v10107_v40 = vld [vmem:[#allocation6 + $0x1160] ss:$16 sps:$4 sm:$0xff]  }
 0x23f   :  { %6767 = vmatpush1.bf16.msra.mxu0 %v10023_v41  ;;  %7423 = vmatpush1.bf16.msra.mxu1 %v10026_v21  ;;  %v10110_v41 = vld [vmem:[#allocation6 + $0x1168] ss:$16 sps:$4 sm:$0xff]   ;;  %v10115_v21 = vld [vmem:[#allocation6 + $0x1184] ss:$16 sps:$4 sm:$0xff]  }
 0x240   :  { %6768 = vmatprep.subr.bf16.mxu0 %v10031_v42  ;;  %7424 = vmatprep.subr.bf16.mxu1 %v10034_v44  ;;  %v10118_v42 = vld [vmem:[#allocation6 + $0x118c] ss:$16 sps:$4 sm:$0xff]   ;;  %v10113_v44 = vld [vmem:[#allocation6 + $0x1180] ss:$16 sps:$4 sm:$0xff]  }
 0x243   :  { %6769 = vmatpush1.bf16.msra.mxu0 %v10029_v46  ;;  %7425 = vmatpush1.bf16.msra.mxu1 %v10032_v25  ;;  %v10116_v46 = vld [vmem:[#allocation6 + $0x1188] ss:$16 sps:$4 sm:$0xff]   ;;  %v10121_v25 = vld [vmem:[#allocation6 + $0x11a4] ss:$16 sps:$4 sm:$0xff]  }
 0x244   :  { %6770 = vmatprep.subr.bf16.mxu0 %v10037_v47  ;;  %7426 = vmatprep.subr.bf16.mxu1 %v10040_v51  ;;  %v10124_v47 = vld [vmem:[#allocation6 + $0x11ac] ss:$16 sps:$4 sm:$0xff]   ;;  %v10119_v51 = vld [vmem:[#allocation6 + $0x11a0] ss:$16 sps:$4 sm:$0xff]  }
 0x247   :  { %6771 = vmatpush1.bf16.msra.mxu0 %v10035_v53  ;;  %7427 = vmatpush1.bf16.msra.mxu1 %v10038_v54  ;;  %v10122_v53 = vld [vmem:[#allocation6 + $0x11a8] ss:$16 sps:$4 sm:$0xff]   ;;  %v10127_v54 = vld [vmem:[#allocation6 + $0x11c4] ss:$16 sps:$4 sm:$0xff]  }
 0x248   :  { %6781 = vmatprep.subr.bf16.mxu0 %v10043_v55  ;;  %7437 = vmatprep.subr.bf16.mxu1 %v10046_v56  ;;  %v10130_v55 = vld [vmem:[#allocation6 + $0x11cc] ss:$16 sps:$4 sm:$0xff]   ;;  %v10125_v56 = vld [vmem:[#allocation6 + $0x11c0] ss:$16 sps:$4 sm:$0xff]  }
 0x24a   :  { %6773 = vmatmul.mubr.bf16.vlgmr.msra.gmra.mrb[0].mxu0 %v1200_v57  ;;  %7429 = vmatmul.mubr.bf16.vlgmr.msra.gmra.mrb[0].mxu1 %v1200_v57  ;;  %v10133_v57 = vld [vmem:[#allocation6 + $0x11e4] ss:$16 sps:$4 sm:$0xff]  }
 0x24b   :  { %6782 = vmatpush1.bf16.msra.mxu0 %v10041_v58  ;;  %7438 = vmatpush1.bf16.msra.mxu1 %v10044_v59  ;;  %v10136_v58 = vld [vmem:[#allocation6 + $0x11ec] ss:$16 sps:$4 sm:$0xff]   ;;  %v10131_v59 = vld [vmem:[#allocation6 + $0x11e0] ss:$16 sps:$4 sm:$0xff]  }
 0x24c   :  { %6783 = vmatprep.subr.bf16.mxu0 %v10049_v60  ;;  %7439 = vmatprep.subr.bf16.mxu1 %v10052_v48  ;;  %v10134_v60 = vld [vmem:[#allocation6 + $0x11e8] ss:$16 sps:$4 sm:$0xff]   ;;  %v10139_v48 = vld [vmem:[#allocation6 + $0x1204] ss:$16 sps:$4 sm:$0xff]  }
 0x24d   :  { %6813 = vmatprep.mubr.bf16.mxu0 %v11108_v61  ;;  %7469 = vmatprep.mubr.bf16.mxu1 %v11108_v61 }
 0x24f   :  { %6784 = vmatpush1.bf16.msra.mxu0 %v10047_v62  ;;  %7440 = vmatpush1.bf16.msra.mxu1 %v10050_v63  ;;  %v10142_v62 = vld [vmem:[#allocation6 + $0x120c] ss:$16 sps:$4 sm:$0xff]   ;;  %v11114_v63 = vrot.slane %v11101_v36, %v11024_v49  ;;  %v10146_v36 = vld [vmem:[#allocation6 + $0x1228] ss:$16 sps:$4 sm:$0xff]  }
 0x250   :  { %6785 = vmatprep.subr.bf16.mxu0 %v10055_v50  ;;  %7441 = vmatprep.subr.bf16.mxu1 %v10058_v0  ;;  %v10137_v50 = vld [vmem:[#allocation6 + $0x1200] ss:$16 sps:$4 sm:$0xff]   ;;  %v10140_v0 = vld [vmem:[#allocation6 + $0x1208] ss:$16 sps:$4 sm:$0xff]  }
 0x253   :  { %6786 = vmatpush1.bf16.msra.mxu0 %v10053_v1  ;;  %7442 = vmatpush1.bf16.msra.mxu1 %v10056_v2  ;;  %v10145_v1 = vld [vmem:[#allocation6 + $0x1224] ss:$16 sps:$4 sm:$0xff]   ;;  %v10148_v2 = vld [vmem:[#allocation6 + $0x122c] ss:$16 sps:$4 sm:$0xff]  }
 0x254   :  { %6787 = vmatprep.subr.bf16.mxu0 %v10061_v3  ;;  %7443 = vmatprep.subr.bf16.mxu1 %v10064_v4  ;;  %v1250_v3 = vcombine.high %v11108_v61, %v11108_v61  ;;  %v10143_v4 = vld [vmem:[#allocation6 + $0x1220] ss:$16 sps:$4 sm:$0xff]   ;;  %v10157_v61 = vld [vmem:[#allocation6 + $0x1264] ss:$16 sps:$4 sm:$0xff]  }
 0x257   :  { %6788 = vmatpush1.bf16.msra.mxu0 %v10059_v5  ;;  %7444 = vmatpush1.bf16.msra.mxu1 %v10062_v6  ;;  %v10151_v5 = vld [vmem:[#allocation6 + $0x1244] ss:$16 sps:$4 sm:$0xff]   ;;  %v10154_v6 = vld [vmem:[#allocation6 + $0x124c] ss:$16 sps:$4 sm:$0xff]  }
 0x258   :  { %6789 = vmatprep.subr.bf16.mxu0 %v10067_v7  ;;  %7445 = vmatprep.subr.bf16.mxu1 %v10070_v8  ;;  %v10149_v7 = vld [vmem:[#allocation6 + $0x1240] ss:$16 sps:$4 sm:$0xff]   ;;  %v10152_v8 = vld [vmem:[#allocation6 + $0x1248] ss:$16 sps:$4 sm:$0xff]  }
 0x25b   :  { %6790 = vmatpush1.bf16.msra.mxu0 %v10065_v9  ;;  %7446 = vmatpush1.bf16.msra.mxu1 %v10068_v10  ;;  %v10160_v9 = vld [vmem:[#allocation6 + $0x126c] ss:$16 sps:$4 sm:$0xff]   ;;  %v10155_v10 = vld [vmem:[#allocation6 + $0x1260] ss:$16 sps:$4 sm:$0xff]  }
 0x25c   :  { %6791 = vmatprep.subr.bf16.mxu0 %v10073_v11  ;;  %7447 = vmatprep.subr.bf16.mxu1 %v10076_v12  ;;  %v10158_v11 = vld [vmem:[#allocation6 + $0x1268] ss:$16 sps:$4 sm:$0xff]   ;;  %v10163_v12 = vld [vmem:[#allocation6 + $0x1284] ss:$16 sps:$4 sm:$0xff]  }
 0x25f   :  { %6792 = vmatpush1.bf16.msra.mxu0 %v10071_v14  ;;  %7448 = vmatpush1.bf16.msra.mxu1 %v10074_v16  ;;  %v10166_v14 = vld [vmem:[#allocation6 + $0x128c] ss:$16 sps:$4 sm:$0xff]   ;;  %v10161_v16 = vld [vmem:[#allocation6 + $0x1280] ss:$16 sps:$4 sm:$0xff]  }
 0x260   :  { %6793 = vmatprep.subr.bf16.mxu0 %v10079_v17  ;;  %7449 = vmatprep.subr.bf16.mxu1 %v10082_v18  ;;  %v10164_v17 = vld [vmem:[#allocation6 + $0x1288] ss:$16 sps:$4 sm:$0xff]   ;;  %v10169_v18 = vld [vmem:[#allocation6 + $0x12a4] ss:$16 sps:$4 sm:$0xff]  }
 0x263   :  { %6794 = vmatpush1.bf16.msra.mxu0 %v10077_v19  ;;  %7450 = vmatpush1.bf16.msra.mxu1 %v10080_v52  ;;  %v10172_v19 = vld [vmem:[#allocation6 + $0x12ac] ss:$16 sps:$4 sm:$0xff]   ;;  %v10167_v52 = vld [vmem:[#allocation6 + $0x12a0] ss:$16 sps:$4 sm:$0xff]  }
 0x264   :  { %6795 = vmatprep.subr.bf16.mxu0 %v10085_v20  ;;  %7451 = vmatprep.subr.bf16.mxu1 %v10088_v22  ;;  %v10170_v20 = vld [vmem:[#allocation6 + $0x12a8] ss:$16 sps:$4 sm:$0xff]   ;;  %v10175_v22 = vld [vmem:[#allocation6 + $0x12c4] ss:$16 sps:$4 sm:$0xff]  }
 0x267   :  { %6796 = vmatpush1.bf16.msra.mxu0 %v10083_v23  ;;  %7452 = vmatpush1.bf16.msra.mxu1 %v10086_v24  ;;  %v10178_v23 = vld [vmem:[#allocation6 + $0x12cc] ss:$16 sps:$4 sm:$0xff]   ;;  %v10173_v24 = vld [vmem:[#allocation6 + $0x12c0] ss:$16 sps:$4 sm:$0xff]  }
 0x268   :  { %6797 = vmatprep.subr.bf16.mxu0 %v10091_v26  ;;  %7453 = vmatprep.subr.bf16.mxu1 %v10094_v28  ;;  %v10176_v26 = vld [vmem:[#allocation6 + $0x12c8] ss:$16 sps:$4 sm:$0xff]   ;;  %v10181_v28 = vld [vmem:[#allocation6 + $0x12e4] ss:$16 sps:$4 sm:$0xff]  }
 0x26b   :  { %6798 = vmatpush1.bf16.msra.mxu0 %v10089_v13  ;;  %7454 = vmatpush1.bf16.msra.mxu1 %v10092_v29  ;;  %v10184_v13 = vld [vmem:[#allocation6 + $0x12ec] ss:$16 sps:$4 sm:$0xff]   ;;  %v10179_v29 = vld [vmem:[#allocation6 + $0x12e0] ss:$16 sps:$4 sm:$0xff]  }
 0x26c   :  { %6799 = vmatprep.subr.bf16.mxu0 %v10097_v30  ;;  %7455 = vmatprep.subr.bf16.mxu1 %v10100_v31  ;;  %v10182_v30 = vld [vmem:[#allocation6 + $0x12e8] ss:$16 sps:$4 sm:$0xff]   ;;  %v10187_v31 = vld [vmem:[#allocation6 + $0x1304] ss:$16 sps:$4 sm:$0xff]  }
 0x26f   :  { %6800 = vmatpush1.bf16.msra.mxu0 %v10095_v32  ;;  %7456 = vmatpush1.bf16.msra.mxu1 %v10098_v15  ;;  %v10190_v32 = vld [vmem:[#allocation6 + $0x130c] ss:$16 sps:$4 sm:$0xff]   ;;  %v10185_v15 = vld [vmem:[#allocation6 + $0x1300] ss:$16 sps:$4 sm:$0xff]  }
 0x270   :  { %6801 = vmatprep.subr.bf16.mxu0 %v10103_v33  ;;  %7457 = vmatprep.subr.bf16.mxu1 %v10106_v34  ;;  %v10188_v33 = vld [vmem:[#allocation6 + $0x1308] ss:$16 sps:$4 sm:$0xff]   ;;  %v10193_v34 = vld [vmem:[#allocation6 + $0x1324] ss:$16 sps:$4 sm:$0xff]  }
 0x273   :  { %6802 = vmatpush1.bf16.msra.mxu0 %v10101_v35  ;;  %7458 = vmatpush1.bf16.msra.mxu1 %v10104_v37  ;;  %v10196_v35 = vld [vmem:[#allocation6 + $0x132c] ss:$16 sps:$4 sm:$0xff]   ;;  %v10191_v37 = vld [vmem:[#allocation6 + $0x1320] ss:$16 sps:$4 sm:$0xff]  }
 0x274   :  { %6803 = vmatprep.subr.bf16.mxu0 %v10109_v27  ;;  %7459 = vmatprep.subr.bf16.mxu1 %v10112_v39  ;;  %v10194_v27 = vld [vmem:[#allocation6 + $0x1328] ss:$16 sps:$4 sm:$0xff]   ;;  %v10199_v39 = vld [vmem:[#allocation6 + $0x1344] ss:$16 sps:$4 sm:$0xff]  }
 0x277   :  { %6804 = vmatpush1.bf16.msra.mxu0 %v10107_v40  ;;  %7460 = vmatpush1.bf16.msra.mxu1 %v10110_v41  ;;  %v10202_v40 = vld [vmem:[#allocation6 + $0x134c] ss:$16 sps:$4 sm:$0xff]   ;;  %v10197_v41 = vld [vmem:[#allocation6 + $0x1340] ss:$16 sps:$4 sm:$0xff]  }
 0x278   :  { %6805 = vmatprep.subr.bf16.mxu0 %v10115_v21  ;;  %7461 = vmatprep.subr.bf16.mxu1 %v10118_v42  ;;  %v10200_v21 = vld [vmem:[#allocation6 + $0x1348] ss:$16 sps:$4 sm:$0xff]   ;;  %v10205_v42 = vld [vmem:[#allocation6 + $0x1364] ss:$16 sps:$4 sm:$0xff]  }
 0x27b   :  { %6806 = vmatpush1.bf16.msra.mxu0 %v10113_v44  ;;  %7462 = vmatpush1.bf16.msra.mxu1 %v10116_v46  ;;  %v10208_v44 = vld [vmem:[#allocation6 + $0x136c] ss:$16 sps:$4 sm:$0xff]   ;;  %v10203_v46 = vld [vmem:[#allocation6 + $0x1360] ss:$16 sps:$4 sm:$0xff]  }
 0x27c   :  { %6807 = vmatprep.subr.bf16.mxu0 %v10121_v25  ;;  %7463 = vmatprep.subr.bf16.mxu1 %v10124_v47  ;;  %v10206_v25 = vld [vmem:[#allocation6 + $0x1368] ss:$16 sps:$4 sm:$0xff]   ;;  %v10211_v47 = vld [vmem:[#allocation6 + $0x1384] ss:$16 sps:$4 sm:$0xff]  }
 0x27f   :  { %6808 = vmatpush1.bf16.msra.mxu0 %v10119_v51  ;;  %7464 = vmatpush1.bf16.msra.mxu1 %v10122_v53  ;;  %v10214_v51 = vld [vmem:[#allocation6 + $0x138c] ss:$16 sps:$4 sm:$0xff]   ;;  %v10209_v53 = vld [vmem:[#allocation6 + $0x1380] ss:$16 sps:$4 sm:$0xff]  }
 0x280   :  { %6809 = vmatprep.subr.bf16.mxu0 %v10127_v54  ;;  %7465 = vmatprep.subr.bf16.mxu1 %v10130_v55  ;;  %v10212_v54 = vld [vmem:[#allocation6 + $0x1388] ss:$16 sps:$4 sm:$0xff]   ;;  %v10217_v55 = vld [vmem:[#allocation6 + $0x13a4] ss:$16 sps:$4 sm:$0xff]  }
 0x283   :  { %6810 = vmatpush1.bf16.msra.mxu0 %v10125_v56  ;;  %7466 = vmatpush1.bf16.msra.mxu1 %v10128_v38  ;;  %v10220_v56 = vld [vmem:[#allocation6 + $0x13ac] ss:$16 sps:$4 sm:$0xff]   ;;  %v10215_v38 = vld [vmem:[#allocation6 + $0x13a0] ss:$16 sps:$4 sm:$0xff]  }
 0x284   :  { %6811 = vmatprep.subr.bf16.mxu0 %v10133_v57  ;;  %7467 = vmatprep.subr.bf16.mxu1 %v10136_v58  ;;  %v10218_v57 = vld [vmem:[#allocation6 + $0x13a8] ss:$16 sps:$4 sm:$0xff]   ;;  %v10223_v58 = vld [vmem:[#allocation6 + $0x13c4] ss:$16 sps:$4 sm:$0xff]  }
 0x287   :  { %6812 = vmatpush1.bf16.msra.mxu0 %v10131_v59  ;;  %7468 = vmatpush1.bf16.msra.mxu1 %v10134_v60  ;;  %v10226_v59 = vld [vmem:[#allocation6 + $0x13cc] ss:$16 sps:$4 sm:$0xff]   ;;  %v1203_v60 = vcombine.high %v11097_v45, %v11097_v45 }
 0x288   :  { %6822 = vmatprep.subr.bf16.mxu0 %v10139_v48  ;;  %7478 = vmatprep.subr.bf16.mxu1 %v10142_v62  ;;  %v10221_v48 = vld [vmem:[#allocation6 + $0x13c0] ss:$16 sps:$4 sm:$0xff]   ;;  %v10224_v62 = vld [vmem:[#allocation6 + $0x13c8] ss:$16 sps:$4 sm:$0xff]  }
 0x28a   :  { %6814 = vmatmul.mubr.bf16.vlgmr.msra.gmra.mrb[0].mxu0 %v11114_v63  ;;  %7470 = vmatmul.mubr.bf16.vlgmr.msra.gmra.mrb[0].mxu1 %v11114_v63 }
 0x28b   :  { %6823 = vmatpush1.bf16.msra.mxu0 %v10137_v50  ;;  %7479 = vmatpush1.bf16.msra.mxu1 %v10140_v0  ;;  %v10229_v50 = vld [vmem:[#allocation6 + $0x13e4] ss:$16 sps:$4 sm:$0xff]   ;;  %v10232_v0 = vld [vmem:[#allocation6 + $0x13ec] ss:$16 sps:$4 sm:$0xff]  }
 0x28c   :  { %6824 = vmatprep.subr.bf16.mxu0 %v10145_v1  ;;  %7480 = vmatprep.subr.bf16.mxu1 %v10148_v2  ;;  %v11123_v1 = vrot.slane %v1203_v60, %v11024_v49  ;;  %v10227_v2 = vld [vmem:[#allocation6 + $0x13e0] ss:$16 sps:$4 sm:$0xff]   ;;  %v10308_v60 = vld [vmem:[#allocation6 + $0x1588] ss:$16 sps:$4 sm:$0xff]  }
 0x28d   :  { %6854 = vmatprep.mubr.bf16.mxu0 %v1250_v3  ;;  %7510 = vmatprep.mubr.bf16.mxu1 %v1250_v3  ;;  %v10230_v3 = vld [vmem:[#allocation6 + $0x13e8] ss:$16 sps:$4 sm:$0xff]  }
 0x28e   :  { %v1219_v45 = vcombine.high %v11123_v1, %v11123_v1 }
 0x28f   :  { %6825 = vmatpush1.bf16.msra.mxu0 %v10143_v4  ;;  %7481 = vmatpush1.bf16.msra.mxu1 %v10146_v36  ;;  %v10235_v4 = vld [vmem:[#allocation6 + $0x1404] ss:$16 sps:$4 sm:$0xff]   ;;  %v10238_v36 = vld [vmem:[#allocation6 + $0x140c] ss:$16 sps:$4 sm:$0xff]  }
 0x290   :  { %6826 = vmatprep.subr.bf16.mxu0 %v10151_v5  ;;  %7482 = vmatprep.subr.bf16.mxu1 %v10154_v6  ;;  %v1248_v5 = vcombine.high %v11114_v63, %v11114_v63  ;;  %v10233_v6 = vld [vmem:[#allocation6 + $0x1400] ss:$16 sps:$4 sm:$0xff]   ;;  %v10247_v63 = vld [vmem:[#allocation6 + $0x1444] ss:$16 sps:$4 sm:$0xff]  }
 0x293   :  { %6827 = vmatpush1.bf16.msra.mxu0 %v10149_v7  ;;  %7483 = vmatpush1.bf16.msra.mxu1 %v10152_v8  ;;  %v10236_v7 = vld [vmem:[#allocation6 + $0x1408] ss:$16 sps:$4 sm:$0xff]   ;;  %v10241_v8 = vld [vmem:[#allocation6 + $0x1424] ss:$16 sps:$4 sm:$0xff]  }
 0x294   :  { %6828 = vmatprep.subr.bf16.mxu0 %v10157_v61  ;;  %7484 = vmatprep.subr.bf16.mxu1 %v10160_v9  ;;  %v10244_v61 = vld [vmem:[#allocation6 + $0x142c] ss:$16 sps:$4 sm:$0xff]   ;;  %v11130_v9 = vrot.slane %v1219_v45, %v11024_v49  ;;  %v10325_v45 = vld [vmem:[#allocation6 + $0x15e4] ss:$16 sps:$4 sm:$0xff]  }
 0x297   :  { %6829 = vmatpush1.bf16.msra.mxu0 %v10155_v10  ;;  %7485 = vmatpush1.bf16.msra.mxu1 %v10158_v11  ;;  %v10239_v10 = vld [vmem:[#allocation6 + $0x1420] ss:$16 sps:$4 sm:$0xff]   ;;  %v10242_v11 = vld [vmem:[#allocation6 + $0x1428] ss:$16 sps:$4 sm:$0xff]  }
 0x298   :  { %6830 = vmatprep.subr.bf16.mxu0 %v10163_v12  ;;  %7486 = vmatprep.subr.bf16.mxu1 %v10166_v14  ;;  %v10250_v12 = vld [vmem:[#allocation6 + $0x144c] ss:$16 sps:$4 sm:$0xff]   ;;  %v10245_v14 = vld [vmem:[#allocation6 + $0x1440] ss:$16 sps:$4 sm:$0xff]  }
 0x29b   :  { %6831 = vmatpush1.bf16.msra.mxu0 %v10161_v16  ;;  %7487 = vmatpush1.bf16.msra.mxu1 %v10164_v17  ;;  %v10248_v16 = vld [vmem:[#allocation6 + $0x1448] ss:$16 sps:$4 sm:$0xff]   ;;  %v10253_v17 = vld [vmem:[#allocation6 + $0x1464] ss:$16 sps:$4 sm:$0xff]  }
 0x29c   :  { %6832 = vmatprep.subr.bf16.mxu0 %v10169_v18  ;;  %7488 = vmatprep.subr.bf16.mxu1 %v10172_v19  ;;  %v10256_v18 = vld [vmem:[#allocation6 + $0x146c] ss:$16 sps:$4 sm:$0xff]   ;;  %v10251_v19 = vld [vmem:[#allocation6 + $0x1460] ss:$16 sps:$4 sm:$0xff]  }
 0x29f   :  { %6833 = vmatpush1.bf16.msra.mxu0 %v10167_v52  ;;  %7489 = vmatpush1.bf16.msra.mxu1 %v10170_v20  ;;  %v10254_v52 = vld [vmem:[#allocation6 + $0x1468] ss:$16 sps:$4 sm:$0xff]   ;;  %v10259_v20 = vld [vmem:[#allocation6 + $0x1484] ss:$16 sps:$4 sm:$0xff]  }
 0x2a0   :  { %6834 = vmatprep.subr.bf16.mxu0 %v10175_v22  ;;  %7490 = vmatprep.subr.bf16.mxu1 %v10178_v23  ;;  %v10262_v22 = vld [vmem:[#allocation6 + $0x148c] ss:$16 sps:$4 sm:$0xff]   ;;  %v10257_v23 = vld [vmem:[#allocation6 + $0x1480] ss:$16 sps:$4 sm:$0xff]  }
 0x2a3   :  { %6835 = vmatpush1.bf16.msra.mxu0 %v10173_v24  ;;  %7491 = vmatpush1.bf16.msra.mxu1 %v10176_v26  ;;  %v10260_v24 = vld [vmem:[#allocation6 + $0x1488] ss:$16 sps:$4 sm:$0xff]   ;;  %v10265_v26 = vld [vmem:[#allocation6 + $0x14a4] ss:$16 sps:$4 sm:$0xff]  }
 0x2a4   :  { %6836 = vmatprep.subr.bf16.mxu0 %v10181_v28  ;;  %7492 = vmatprep.subr.bf16.mxu1 %v10184_v13  ;;  %v10268_v28 = vld [vmem:[#allocation6 + $0x14ac] ss:$16 sps:$4 sm:$0xff]   ;;  %v10263_v13 = vld [vmem:[#allocation6 + $0x14a0] ss:$16 sps:$4 sm:$0xff]  }
 0x2a7   :  { %6837 = vmatpush1.bf16.msra.mxu0 %v10179_v29  ;;  %7493 = vmatpush1.bf16.msra.mxu1 %v10182_v30  ;;  %v10266_v29 = vld [vmem:[#allocation6 + $0x14a8] ss:$16 sps:$4 sm:$0xff]   ;;  %v10271_v30 = vld [vmem:[#allocation6 + $0x14c4] ss:$16 sps:$4 sm:$0xff]  }
 0x2a8   :  { %6838 = vmatprep.subr.bf16.mxu0 %v10187_v31  ;;  %7494 = vmatprep.subr.bf16.mxu1 %v10190_v32  ;;  %v10274_v31 = vld [vmem:[#allocation6 + $0x14cc] ss:$16 sps:$4 sm:$0xff]   ;;  %v10269_v32 = vld [vmem:[#allocation6 + $0x14c0] ss:$16 sps:$4 sm:$0xff]  }
 0x2ab   :  { %6839 = vmatpush1.bf16.msra.mxu0 %v10185_v15  ;;  %7495 = vmatpush1.bf16.msra.mxu1 %v10188_v33  ;;  %v10272_v15 = vld [vmem:[#allocation6 + $0x14c8] ss:$16 sps:$4 sm:$0xff]   ;;  %v10277_v33 = vld [vmem:[#allocation6 + $0x14e4] ss:$16 sps:$4 sm:$0xff]  }
 0x2ac   :  { %6840 = vmatprep.subr.bf16.mxu0 %v10193_v34  ;;  %7496 = vmatprep.subr.bf16.mxu1 %v10196_v35  ;;  %v10280_v34 = vld [vmem:[#allocation6 + $0x14ec] ss:$16 sps:$4 sm:$0xff]   ;;  %v10275_v35 = vld [vmem:[#allocation6 + $0x14e0] ss:$16 sps:$4 sm:$0xff]  }
 0x2af   :  { %6841 = vmatpush1.bf16.msra.mxu0 %v10191_v37  ;;  %7497 = vmatpush1.bf16.msra.mxu1 %v10194_v27  ;;  %v10278_v37 = vld [vmem:[#allocation6 + $0x14e8] ss:$16 sps:$4 sm:$0xff]   ;;  %v10283_v27 = vld [vmem:[#allocation6 + $0x1504] ss:$16 sps:$4 sm:$0xff]  }
 0x2b0   :  { %6842 = vmatprep.subr.bf16.mxu0 %v10199_v39  ;;  %7498 = vmatprep.subr.bf16.mxu1 %v10202_v40  ;;  %v10286_v39 = vld [vmem:[#allocation6 + $0x150c] ss:$16 sps:$4 sm:$0xff]   ;;  %v10281_v40 = vld [vmem:[#allocation6 + $0x1500] ss:$16 sps:$4 sm:$0xff]  }
 0x2b3   :  { %6843 = vmatpush1.bf16.msra.mxu0 %v10197_v41  ;;  %7499 = vmatpush1.bf16.msra.mxu1 %v10200_v21  ;;  %v10284_v41 = vld [vmem:[#allocation6 + $0x1508] ss:$16 sps:$4 sm:$0xff]   ;;  %v10289_v21 = vld [vmem:[#allocation6 + $0x1524] ss:$16 sps:$4 sm:$0xff]  }
 0x2b4   :  { %6844 = vmatprep.subr.bf16.mxu0 %v10205_v42  ;;  %7500 = vmatprep.subr.bf16.mxu1 %v10208_v44  ;;  %v10292_v42 = vld [vmem:[#allocation6 + $0x152c] ss:$16 sps:$4 sm:$0xff]   ;;  %v10287_v44 = vld [vmem:[#allocation6 + $0x1520] ss:$16 sps:$4 sm:$0xff]  }
 0x2b7   :  { %6845 = vmatpush1.bf16.msra.mxu0 %v10203_v46  ;;  %7501 = vmatpush1.bf16.msra.mxu1 %v10206_v25  ;;  %v10290_v46 = vld [vmem:[#allocation6 + $0x1528] ss:$16 sps:$4 sm:$0xff]   ;;  %v10295_v25 = vld [vmem:[#allocation6 + $0x1544] ss:$16 sps:$4 sm:$0xff]  }
 0x2b8   :  { %6846 = vmatprep.subr.bf16.mxu0 %v10211_v47  ;;  %7502 = vmatprep.subr.bf16.mxu1 %v10214_v51  ;;  %v10298_v47 = vld [vmem:[#allocation6 + $0x154c] ss:$16 sps:$4 sm:$0xff]   ;;  %v10293_v51 = vld [vmem:[#allocation6 + $0x1540] ss:$16 sps:$4 sm:$0xff]  }
 0x2bb   :  { %6847 = vmatpush1.bf16.msra.mxu0 %v10209_v53  ;;  %7503 = vmatpush1.bf16.msra.mxu1 %v10212_v54  ;;  %v10296_v53 = vld [vmem:[#allocation6 + $0x1548] ss:$16 sps:$4 sm:$0xff]   ;;  %v10301_v54 = vld [vmem:[#allocation6 + $0x1564] ss:$16 sps:$4 sm:$0xff]  }
 0x2bc   :  { %6848 = vmatprep.subr.bf16.mxu0 %v10217_v55  ;;  %7504 = vmatprep.subr.bf16.mxu1 %v10220_v56  ;;  %v10304_v55 = vld [vmem:[#allocation6 + $0x156c] ss:$16 sps:$4 sm:$0xff]   ;;  %v10299_v56 = vld [vmem:[#allocation6 + $0x1560] ss:$16 sps:$4 sm:$0xff]  }
 0x2bf   :  { %6849 = vmatpush1.bf16.msra.mxu0 %v10215_v38  ;;  %7505 = vmatpush1.bf16.msra.mxu1 %v10218_v57  ;;  %v10302_v38 = vld [vmem:[#allocation6 + $0x1568] ss:$16 sps:$4 sm:$0xff]   ;;  %v10307_v57 = vld [vmem:[#allocation6 + $0x1584] ss:$16 sps:$4 sm:$0xff]  }
 0x2c0   :  { %6850 = vmatprep.subr.bf16.mxu0 %v10223_v58  ;;  %7506 = vmatprep.subr.bf16.mxu1 %v10226_v59  ;;  %v10310_v58 = vld [vmem:[#allocation6 + $0x158c] ss:$16 sps:$4 sm:$0xff]   ;;  %v10305_v59 = vld [vmem:[#allocation6 + $0x1580] ss:$16 sps:$4 sm:$0xff]  }
 0x2c3   :  { %6851 = vmatpush1.bf16.msra.mxu0 %v10221_v48  ;;  %7507 = vmatpush1.bf16.msra.mxu1 %v10224_v62  ;;  %v10313_v48 = vld [vmem:[#allocation6 + $0x15a4] ss:$16 sps:$4 sm:$0xff]   ;;  %v10316_v62 = vld [vmem:[#allocation6 + $0x15ac] ss:$16 sps:$4 sm:$0xff]  }
 0x2c4   :  { %6852 = vmatprep.subr.bf16.mxu0 %v10229_v50  ;;  %7508 = vmatprep.subr.bf16.mxu1 %v10232_v0  ;;  %v10311_v50 = vld [vmem:[#allocation6 + $0x15a0] ss:$16 sps:$4 sm:$0xff]   ;;  %v10314_v0 = vld [vmem:[#allocation6 + $0x15a8] ss:$16 sps:$4 sm:$0xff]  }
 0x2c7   :  { %6853 = vmatpush1.bf16.msra.mxu0 %v10227_v2  ;;  %7509 = vmatpush1.bf16.msra.mxu1 %v10230_v3  ;;  %v10319_v2 = vld [vmem:[#allocation6 + $0x15c4] ss:$16 sps:$4 sm:$0xff]   ;;  %v10322_v3 = vld [vmem:[#allocation6 + $0x15cc] ss:$16 sps:$4 sm:$0xff]  }
 0x2c8   :  { %6863 = vmatprep.subr.bf16.mxu0 %v10235_v4  ;;  %7519 = vmatprep.subr.bf16.mxu1 %v10238_v36  ;;  %v10317_v4 = vld [vmem:[#allocation6 + $0x15c0] ss:$16 sps:$4 sm:$0xff]   ;;  %v10320_v36 = vld [vmem:[#allocation6 + $0x15c8] ss:$16 sps:$4 sm:$0xff]  }
 0x2ca   :  { %6855 = vmatmul.mubr.bf16.vlgmr.msra.gmra.mrb[0].mxu0 %v1248_v5  ;;  %7511 = vmatmul.mubr.bf16.vlgmr.msra.gmra.mrb[0].mxu1 %v1248_v5  ;;  %v10328_v5 = vld [vmem:[#allocation6 + $0x15ec] ss:$16 sps:$4 sm:$0xff]  }
 0x2cb   :  { %6864 = vmatpush1.bf16.msra.mxu0 %v10233_v6  ;;  %7520 = vmatpush1.bf16.msra.mxu1 %v10236_v7  ;;  %v10323_v6 = vld [vmem:[#allocation6 + $0x15e0] ss:$16 sps:$4 sm:$0xff]   ;;  %v10326_v7 = vld [vmem:[#allocation6 + $0x15e8] ss:$16 sps:$4 sm:$0xff]  }
 0x2cc   :  { %6865 = vmatprep.subr.bf16.mxu0 %v10241_v8  ;;  %7521 = vmatprep.subr.bf16.mxu1 %v10244_v61  ;;  %v10332_v8 = vld [vmem:[#allocation6 + $0x1604] ss:$16 sps:$4 sm:$0xff]   ;;  %v10335_v61 = vld [vmem:[#allocation6 + $0x160c] ss:$16 sps:$4 sm:$0xff]  }
 0x2cd   :  { %6895 = vmatprep.mubr.bf16.mxu0 %v11130_v9  ;;  %7551 = vmatprep.mubr.bf16.mxu1 %v11130_v9 }
 0x2cf   :  { %6866 = vmatpush1.bf16.msra.mxu0 %v10239_v10  ;;  %7522 = vmatpush1.bf16.msra.mxu1 %v10242_v11  ;;  %v11136_v10 = vrot.slane %v11123_v1, %v11024_v49  ;;  %v10330_v11 = vld [vmem:[#allocation6 + $0x1600] ss:$16 sps:$4 sm:$0xff]   ;;  %v10339_v1 = vld [vmem:[#allocation6 + $0x1628] ss:$16 sps:$4 sm:$0xff]  }
 0x2d0   :  { %6867 = vmatprep.subr.bf16.mxu0 %v10247_v63  ;;  %7523 = vmatprep.subr.bf16.mxu1 %v10250_v12  ;;  %v10333_v63 = vld [vmem:[#allocation6 + $0x1608] ss:$16 sps:$4 sm:$0xff]   ;;  %v10338_v12 = vld [vmem:[#allocation6 + $0x1624] ss:$16 sps:$4 sm:$0xff]  }
 0x2d3   :  { %6868 = vmatpush1.bf16.msra.mxu0 %v10245_v14  ;;  %7524 = vmatpush1.bf16.msra.mxu1 %v10248_v16  ;;  %v10341_v14 = vld [vmem:[#allocation6 + $0x162c] ss:$16 sps:$4 sm:$0xff]   ;;  %v1251_v16 = vcombine.high %v11130_v9, %v11130_v9  ;;  %v10350_v9 = vld [vmem:[#allocation6 + $0x1664] ss:$16 sps:$4 sm:$0xff]  }
 0x2d4   :  { %6869 = vmatprep.subr.bf16.mxu0 %v10253_v17  ;;  %7525 = vmatprep.subr.bf16.mxu1 %v10256_v18  ;;  %v10336_v17 = vld [vmem:[#allocation6 + $0x1620] ss:$16 sps:$4 sm:$0xff]   ;;  %v10344_v18 = vld [vmem:[#allocation6 + $0x1644] ss:$16 sps:$4 sm:$0xff]  }
 0x2d7   :  { %6870 = vmatpush1.bf16.msra.mxu0 %v10251_v19  ;;  %7526 = vmatpush1.bf16.msra.mxu1 %v10254_v52  ;;  %v10347_v19 = vld [vmem:[#allocation6 + $0x164c] ss:$16 sps:$4 sm:$0xff]   ;;  %v10342_v52 = vld [vmem:[#allocation6 + $0x1640] ss:$16 sps:$4 sm:$0xff]  }
 0x2d8   :  { %6871 = vmatprep.subr.bf16.mxu0 %v10259_v20  ;;  %7527 = vmatprep.subr.bf16.mxu1 %v10262_v22  ;;  %v10345_v20 = vld [vmem:[#allocation6 + $0x1648] ss:$16 sps:$4 sm:$0xff]   ;;  %v10353_v22 = vld [vmem:[#allocation6 + $0x166c] ss:$16 sps:$4 sm:$0xff]  }
 0x2db   :  { %6872 = vmatpush1.bf16.msra.mxu0 %v10257_v23  ;;  %7528 = vmatpush1.bf16.msra.mxu1 %v10260_v24  ;;  %v10348_v23 = vld [vmem:[#allocation6 + $0x1660] ss:$16 sps:$4 sm:$0xff]   ;;  %v10351_v24 = vld [vmem:[#allocation6 + $0x1668] ss:$16 sps:$4 sm:$0xff]  }
 0x2dc   :  { %6873 = vmatprep.subr.bf16.mxu0 %v10265_v26  ;;  %7529 = vmatprep.subr.bf16.mxu1 %v10268_v28  ;;  %v10356_v26 = vld [vmem:[#allocation6 + $0x1684] ss:$16 sps:$4 sm:$0xff]   ;;  %v10359_v28 = vld [vmem:[#allocation6 + $0x168c] ss:$16 sps:$4 sm:$0xff]  }
 0x2df   :  { %6874 = vmatpush1.bf16.msra.mxu0 %v10263_v13  ;;  %7530 = vmatpush1.bf16.msra.mxu1 %v10266_v29  ;;  %v10354_v13 = vld [vmem:[#allocation6 + $0x1680] ss:$16 sps:$4 sm:$0xff]   ;;  %v10357_v29 = vld [vmem:[#allocation6 + $0x1688] ss:$16 sps:$4 sm:$0xff]  }
 0x2e0   :  { %6875 = vmatprep.subr.bf16.mxu0 %v10271_v30  ;;  %7531 = vmatprep.subr.bf16.mxu1 %v10274_v31  ;;  %v10362_v30 = vld [vmem:[#allocation6 + $0x16a4] ss:$16 sps:$4 sm:$0xff]   ;;  %v10365_v31 = vld [vmem:[#allocation6 + $0x16ac] ss:$16 sps:$4 sm:$0xff]  }
 0x2e3   :  { %6876 = vmatpush1.bf16.msra.mxu0 %v10269_v32  ;;  %7532 = vmatpush1.bf16.msra.mxu1 %v10272_v15  ;;  %v10360_v32 = vld [vmem:[#allocation6 + $0x16a0] ss:$16 sps:$4 sm:$0xff]   ;;  %v10363_v15 = vld [vmem:[#allocation6 + $0x16a8] ss:$16 sps:$4 sm:$0xff]  }
 0x2e4   :  { %6877 = vmatprep.subr.bf16.mxu0 %v10277_v33  ;;  %7533 = vmatprep.subr.bf16.mxu1 %v10280_v34  ;;  %v10368_v33 = vld [vmem:[#allocation6 + $0x16c4] ss:$16 sps:$4 sm:$0xff]   ;;  %v10371_v34 = vld [vmem:[#allocation6 + $0x16cc] ss:$16 sps:$4 sm:$0xff]  }
 0x2e7   :  { %6878 = vmatpush1.bf16.msra.mxu0 %v10275_v35  ;;  %7534 = vmatpush1.bf16.msra.mxu1 %v10278_v37  ;;  %v10366_v35 = vld [vmem:[#allocation6 + $0x16c0] ss:$16 sps:$4 sm:$0xff]   ;;  %v10369_v37 = vld [vmem:[#allocation6 + $0x16c8] ss:$16 sps:$4 sm:$0xff]  }
 0x2e8   :  { %6879 = vmatprep.subr.bf16.mxu0 %v10283_v27  ;;  %7535 = vmatprep.subr.bf16.mxu1 %v10286_v39  ;;  %v10374_v27 = vld [vmem:[#allocation6 + $0x16e4] ss:$16 sps:$4 sm:$0xff]   ;;  %v10377_v39 = vld [vmem:[#allocation6 + $0x16ec] ss:$16 sps:$4 sm:$0xff]  }
 0x2eb   :  { %6880 = vmatpush1.bf16.msra.mxu0 %v10281_v40  ;;  %7536 = vmatpush1.bf16.msra.mxu1 %v10284_v41  ;;  %v10372_v40 = vld [vmem:[#allocation6 + $0x16e0] ss:$16 sps:$4 sm:$0xff]   ;;  %v10375_v41 = vld [vmem:[#allocation6 + $0x16e8] ss:$16 sps:$4 sm:$0xff]  }
 0x2ec   :  { %6881 = vmatprep.subr.bf16.mxu0 %v10289_v21  ;;  %7537 = vmatprep.subr.bf16.mxu1 %v10292_v42  ;;  %v10380_v21 = vld [vmem:[#allocation6 + $0x1704] ss:$16 sps:$4 sm:$0xff]   ;;  %v10383_v42 = vld [vmem:[#allocation6 + $0x170c] ss:$16 sps:$4 sm:$0xff]  }
 0x2ef   :  { %6882 = vmatpush1.bf16.msra.mxu0 %v10287_v44  ;;  %7538 = vmatpush1.bf16.msra.mxu1 %v10290_v46  ;;  %v10378_v44 = vld [vmem:[#allocation6 + $0x1700] ss:$16 sps:$4 sm:$0xff]   ;;  %v10381_v46 = vld [vmem:[#allocation6 + $0x1708] ss:$16 sps:$4 sm:$0xff]  }
 0x2f0   :  { %6883 = vmatprep.subr.bf16.mxu0 %v10295_v25  ;;  %7539 = vmatprep.subr.bf16.mxu1 %v10298_v47  ;;  %v10386_v25 = vld [vmem:[#allocation6 + $0x1724] ss:$16 sps:$4 sm:$0xff]   ;;  %v10389_v47 = vld [vmem:[#allocation6 + $0x172c] ss:$16 sps:$4 sm:$0xff]  }
 0x2f3   :  { %6884 = vmatpush1.bf16.msra.mxu0 %v10293_v51  ;;  %7540 = vmatpush1.bf16.msra.mxu1 %v10296_v53  ;;  %v10384_v51 = vld [vmem:[#allocation6 + $0x1720] ss:$16 sps:$4 sm:$0xff]   ;;  %v10387_v53 = vld [vmem:[#allocation6 + $0x1728] ss:$16 sps:$4 sm:$0xff]  }
 0x2f4   :  { %6885 = vmatprep.subr.bf16.mxu0 %v10301_v54  ;;  %7541 = vmatprep.subr.bf16.mxu1 %v10304_v55  ;;  %v10392_v54 = vld [vmem:[#allocation6 + $0x1744] ss:$16 sps:$4 sm:$0xff]   ;;  %v10395_v55 = vld [vmem:[#allocation6 + $0x174c] ss:$16 sps:$4 sm:$0xff]  }
 0x2f7   :  { %6886 = vmatpush1.bf16.msra.mxu0 %v10299_v56  ;;  %7542 = vmatpush1.bf16.msra.mxu1 %v10302_v38  ;;  %v10390_v56 = vld [vmem:[#allocation6 + $0x1740] ss:$16 sps:$4 sm:$0xff]   ;;  %v10393_v38 = vld [vmem:[#allocation6 + $0x1748] ss:$16 sps:$4 sm:$0xff]  }
 0x2f8   :  { %6887 = vmatprep.subr.bf16.mxu0 %v10307_v57  ;;  %7543 = vmatprep.subr.bf16.mxu1 %v10310_v58  ;;  %v10398_v57 = vld [vmem:[#allocation6 + $0x1764] ss:$16 sps:$4 sm:$0xff]   ;;  %v10401_v58 = vld [vmem:[#allocation6 + $0x176c] ss:$16 sps:$4 sm:$0xff]  }
 0x2fb   :  { %6888 = vmatpush1.bf16.msra.mxu0 %v10305_v59  ;;  %7544 = vmatpush1.bf16.msra.mxu1 %v10308_v60  ;;  %v10396_v59 = vld [vmem:[#allocation6 + $0x1760] ss:$16 sps:$4 sm:$0xff]   ;;  %v10399_v60 = vld [vmem:[#allocation6 + $0x1768] ss:$16 sps:$4 sm:$0xff]  }
 0x2fc   :  { %6889 = vmatprep.subr.bf16.mxu0 %v10313_v48  ;;  %7545 = vmatprep.subr.bf16.mxu1 %v10316_v62  ;;  %v10404_v48 = vld [vmem:[#allocation6 + $0x1784] ss:$16 sps:$4 sm:$0xff]   ;;  %v10407_v62 = vld [vmem:[#allocation6 + $0x178c] ss:$16 sps:$4 sm:$0xff]  }
 0x2ff   :  { %6890 = vmatpush1.bf16.msra.mxu0 %v10311_v50  ;;  %7546 = vmatpush1.bf16.msra.mxu1 %v10314_v0  ;;  %v10402_v50 = vld [vmem:[#allocation6 + $0x1780] ss:$16 sps:$4 sm:$0xff]   ;;  %v10405_v0 = vld [vmem:[#allocation6 + $0x1788] ss:$16 sps:$4 sm:$0xff]  }
 0x300   :  { %6891 = vmatprep.subr.bf16.mxu0 %v10319_v2  ;;  %7547 = vmatprep.subr.bf16.mxu1 %v10322_v3  ;;  %v10410_v2 = vld [vmem:[#allocation6 + $0x17a4] ss:$16 sps:$4 sm:$0xff]   ;;  %v10413_v3 = vld [vmem:[#allocation6 + $0x17ac] ss:$16 sps:$4 sm:$0xff]  }
 0x303   :  { %6892 = vmatpush1.bf16.msra.mxu0 %v10317_v4  ;;  %7548 = vmatpush1.bf16.msra.mxu1 %v10320_v36  ;;  %v10408_v4 = vld [vmem:[#allocation6 + $0x17a0] ss:$16 sps:$4 sm:$0xff]   ;;  %v10411_v36 = vld [vmem:[#allocation6 + $0x17a8] ss:$16 sps:$4 sm:$0xff]  }
 0x304   :  { %6893 = vmatprep.subr.bf16.mxu0 %v10325_v45  ;;  %7549 = vmatprep.subr.bf16.mxu1 %v10328_v5  ;;  %v10416_v45 = vld [vmem:[#allocation6 + $0x17c4] ss:$16 sps:$4 sm:$0xff]   ;;  %v10419_v5 = vld [vmem:[#allocation6 + $0x17cc] ss:$16 sps:$4 sm:$0xff]  }
 0x307   :  { %6894 = vmatpush1.bf16.msra.mxu0 %v10323_v6  ;;  %7550 = vmatpush1.bf16.msra.mxu1 %v10326_v7  ;;  %v11142_v6 = vld [vmem:[#allocation3 + $0x18] sm:$0xff]  ;;  %v10414_v7 = vld [vmem:[#allocation6 + $0x17c0] ss:$16 sps:$4 sm:$0xff]  }
 0x308   :  { %6904 = vmatprep.subr.bf16.mxu0 %v10332_v8  ;;  %7560 = vmatprep.subr.bf16.mxu1 %v10335_v61  ;;  %v10417_v8 = vld [vmem:[#allocation6 + $0x17c8] ss:$16 sps:$4 sm:$0xff]   ;;  %v10422_v61 = vld [vmem:[#allocation6 + $0x17e4] ss:$16 sps:$4 sm:$0xff]  }
 0x30a   :  { %6896 = vmatmul.mubr.bf16.vlgmr.msra.gmra.mrb[0].mxu0 %v11136_v10  ;;  %7552 = vmatmul.mubr.bf16.vlgmr.msra.gmra.mrb[0].mxu1 %v11136_v10 }
 0x30b   :  { %6905 = vmatpush1.bf16.msra.mxu0 %v10330_v11  ;;  %7561 = vmatpush1.bf16.msra.mxu1 %v10333_v63  ;;  %v10425_v11 = vld [vmem:[#allocation6 + $0x17ec] ss:$16 sps:$4 sm:$0xff]   ;;  %v11146_v63 = vrot.slane %v11142_v6, %v11024_v49 }
 0x30c   :  { %6906 = vmatprep.subr.bf16.mxu0 %v10338_v12  ;;  %7562 = vmatprep.subr.bf16.mxu1 %v10341_v14  ;;  %v10420_v12 = vld [vmem:[#allocation6 + $0x17e0] ss:$16 sps:$4 sm:$0xff]   ;;  %v10423_v14 = vld [vmem:[#allocation6 + $0x17e8] ss:$16 sps:$4 sm:$0xff]  }
 0x30d   :  { %6936 = vmatprep.mubr.bf16.mxu0 %v1251_v16  ;;  %7592 = vmatprep.mubr.bf16.mxu1 %v1251_v16  ;;  %v10428_v16 = vld [vmem:[#allocation6 + $0x1804] ss:$16 sps:$4 sm:$0xff]  }
 0x30f   :  { %6907 = vmatpush1.bf16.msra.mxu0 %v10336_v17  ;;  %7563 = vmatpush1.bf16.msra.mxu1 %v10339_v1  ;;  %v10431_v17 = vld [vmem:[#allocation6 + $0x180c] ss:$16 sps:$4 sm:$0xff]   ;;  %v1267_v1 = vcombine.high %v11146_v63, %v11146_v63 }
 0x310   :  { %6908 = vmatprep.subr.bf16.mxu0 %v10344_v18  ;;  %7564 = vmatprep.subr.bf16.mxu1 %v10347_v19  ;;  %v1249_v18 = vcombine.high %v11136_v10, %v11136_v10  ;;  %v10426_v19 = vld [vmem:[#allocation6 + $0x1800] ss:$16 sps:$4 sm:$0xff]   ;;  %v10440_v10 = vld [vmem:[#allocation6 + $0x1844] ss:$16 sps:$4 sm:$0xff]  }
 0x313   :  { %6909 = vmatpush1.bf16.msra.mxu0 %v10342_v52  ;;  %7565 = vmatpush1.bf16.msra.mxu1 %v10345_v20  ;;  %v10429_v52 = vld [vmem:[#allocation6 + $0x1808] ss:$16 sps:$4 sm:$0xff]   ;;  %v10434_v20 = vld [vmem:[#allocation6 + $0x1824] ss:$16 sps:$4 sm:$0xff]  }
 0x314   :  { %6910 = vmatprep.subr.bf16.mxu0 %v10350_v9  ;;  %7566 = vmatprep.subr.bf16.mxu1 %v10353_v22  ;;  %v10437_v9 = vld [vmem:[#allocation6 + $0x182c] ss:$16 sps:$4 sm:$0xff]   ;;  %v11153_v22 = vrot.slane %v1267_v1, %v11024_v49  ;;  %v10513_v1 = vld [vmem:[#allocation6 + $0x19c8] ss:$16 sps:$4 sm:$0xff]  }
 0x317   :  { %6911 = vmatpush1.bf16.msra.mxu0 %v10348_v23  ;;  %7567 = vmatpush1.bf16.msra.mxu1 %v10351_v24  ;;  %v10432_v23 = vld [vmem:[#allocation6 + $0x1820] ss:$16 sps:$4 sm:$0xff]   ;;  %v10435_v24 = vld [vmem:[#allocation6 + $0x1828] ss:$16 sps:$4 sm:$0xff]  }
 0x318   :  { %6912 = vmatprep.subr.bf16.mxu0 %v10356_v26  ;;  %7568 = vmatprep.subr.bf16.mxu1 %v10359_v28  ;;  %v10443_v26 = vld [vmem:[#allocation6 + $0x184c] ss:$16 sps:$4 sm:$0xff]   ;;  %v10438_v28 = vld [vmem:[#allocation6 + $0x1840] ss:$16 sps:$4 sm:$0xff]  }
 0x31b   :  { %6913 = vmatpush1.bf16.msra.mxu0 %v10354_v13  ;;  %7569 = vmatpush1.bf16.msra.mxu1 %v10357_v29  ;;  %v10441_v13 = vld [vmem:[#allocation6 + $0x1848] ss:$16 sps:$4 sm:$0xff]   ;;  %v10446_v29 = vld [vmem:[#allocation6 + $0x1864] ss:$16 sps:$4 sm:$0xff]  }
 0x31c   :  { %6914 = vmatprep.subr.bf16.mxu0 %v10362_v30  ;;  %7570 = vmatprep.subr.bf16.mxu1 %v10365_v31  ;;  %v10449_v30 = vld [vmem:[#allocation6 + $0x186c] ss:$16 sps:$4 sm:$0xff]   ;;  %v10444_v31 = vld [vmem:[#allocation6 + $0x1860] ss:$16 sps:$4 sm:$0xff]  }
 0x31f   :  { %6915 = vmatpush1.bf16.msra.mxu0 %v10360_v32  ;;  %7571 = vmatpush1.bf16.msra.mxu1 %v10363_v15  ;;  %v10447_v32 = vld [vmem:[#allocation6 + $0x1868] ss:$16 sps:$4 sm:$0xff]   ;;  %v10452_v15 = vld [vmem:[#allocation6 + $0x1884] ss:$16 sps:$4 sm:$0xff]  }
 0x320   :  { %6916 = vmatprep.subr.bf16.mxu0 %v10368_v33  ;;  %7572 = vmatprep.subr.bf16.mxu1 %v10371_v34  ;;  %v10455_v33 = vld [vmem:[#allocation6 + $0x188c] ss:$16 sps:$4 sm:$0xff]   ;;  %v10450_v34 = vld [vmem:[#allocation6 + $0x1880] ss:$16 sps:$4 sm:$0xff]  }
 0x323   :  { %6917 = vmatpush1.bf16.msra.mxu0 %v10366_v35  ;;  %7573 = vmatpush1.bf16.msra.mxu1 %v10369_v37  ;;  %v10453_v35 = vld [vmem:[#allocation6 + $0x1888] ss:$16 sps:$4 sm:$0xff]   ;;  %v10458_v37 = vld [vmem:[#allocation6 + $0x18a4] ss:$16 sps:$4 sm:$0xff]  }
 0x324   :  { %6918 = vmatprep.subr.bf16.mxu0 %v10374_v27  ;;  %7574 = vmatprep.subr.bf16.mxu1 %v10377_v39  ;;  %v10461_v27 = vld [vmem:[#allocation6 + $0x18ac] ss:$16 sps:$4 sm:$0xff]   ;;  %v10456_v39 = vld [vmem:[#allocation6 + $0x18a0] ss:$16 sps:$4 sm:$0xff]  }
 0x327   :  { %6919 = vmatpush1.bf16.msra.mxu0 %v10372_v40  ;;  %7575 = vmatpush1.bf16.msra.mxu1 %v10375_v41  ;;  %v10459_v40 = vld [vmem:[#allocation6 + $0x18a8] ss:$16 sps:$4 sm:$0xff]   ;;  %v10464_v41 = vld [vmem:[#allocation6 + $0x18c4] ss:$16 sps:$4 sm:$0xff]  }
 0x328   :  { %6920 = vmatprep.subr.bf16.mxu0 %v10380_v21  ;;  %7576 = vmatprep.subr.bf16.mxu1 %v10383_v42  ;;  %v10467_v21 = vld [vmem:[#allocation6 + $0x18cc] ss:$16 sps:$4 sm:$0xff]   ;;  %v10462_v42 = vld [vmem:[#allocation6 + $0x18c0] ss:$16 sps:$4 sm:$0xff]  }
 0x32b   :  { %6921 = vmatpush1.bf16.msra.mxu0 %v10378_v44  ;;  %7577 = vmatpush1.bf16.msra.mxu1 %v10381_v46  ;;  %v10465_v44 = vld [vmem:[#allocation6 + $0x18c8] ss:$16 sps:$4 sm:$0xff]   ;;  %v10470_v46 = vld [vmem:[#allocation6 + $0x18e4] ss:$16 sps:$4 sm:$0xff]  }
 0x32c   :  { %6922 = vmatprep.subr.bf16.mxu0 %v10386_v25  ;;  %7578 = vmatprep.subr.bf16.mxu1 %v10389_v47  ;;  %v10473_v25 = vld [vmem:[#allocation6 + $0x18ec] ss:$16 sps:$4 sm:$0xff]   ;;  %v10468_v47 = vld [vmem:[#allocation6 + $0x18e0] ss:$16 sps:$4 sm:$0xff]  }
 0x32f   :  { %6923 = vmatpush1.bf16.msra.mxu0 %v10384_v51  ;;  %7579 = vmatpush1.bf16.msra.mxu1 %v10387_v53  ;;  %v10471_v51 = vld [vmem:[#allocation6 + $0x18e8] ss:$16 sps:$4 sm:$0xff]   ;;  %v10476_v53 = vld [vmem:[#allocation6 + $0x1904] ss:$16 sps:$4 sm:$0xff]  }
 0x330   :  { %6924 = vmatprep.subr.bf16.mxu0 %v10392_v54  ;;  %7580 = vmatprep.subr.bf16.mxu1 %v10395_v55  ;;  %v10479_v54 = vld [vmem:[#allocation6 + $0x190c] ss:$16 sps:$4 sm:$0xff]   ;;  %v10474_v55 = vld [vmem:[#allocation6 + $0x1900] ss:$16 sps:$4 sm:$0xff]  }
 0x333   :  { %6925 = vmatpush1.bf16.msra.mxu0 %v10390_v56  ;;  %7581 = vmatpush1.bf16.msra.mxu1 %v10393_v38  ;;  %v10477_v56 = vld [vmem:[#allocation6 + $0x1908] ss:$16 sps:$4 sm:$0xff]   ;;  %v10482_v38 = vld [vmem:[#allocation6 + $0x1924] ss:$16 sps:$4 sm:$0xff]  }
 0x334   :  { %6926 = vmatprep.subr.bf16.mxu0 %v10398_v57  ;;  %7582 = vmatprep.subr.bf16.mxu1 %v10401_v58  ;;  %v10485_v57 = vld [vmem:[#allocation6 + $0x192c] ss:$16 sps:$4 sm:$0xff]   ;;  %v10480_v58 = vld [vmem:[#allocation6 + $0x1920] ss:$16 sps:$4 sm:$0xff]  }
 0x337   :  { %6927 = vmatpush1.bf16.msra.mxu0 %v10396_v59  ;;  %7583 = vmatpush1.bf16.msra.mxu1 %v10399_v60  ;;  %v10483_v59 = vld [vmem:[#allocation6 + $0x1928] ss:$16 sps:$4 sm:$0xff]   ;;  %v10488_v60 = vld [vmem:[#allocation6 + $0x1944] ss:$16 sps:$4 sm:$0xff]  }
 0x338   :  { %6928 = vmatprep.subr.bf16.mxu0 %v10404_v48  ;;  %7584 = vmatprep.subr.bf16.mxu1 %v10407_v62  ;;  %v10491_v48 = vld [vmem:[#allocation6 + $0x194c] ss:$16 sps:$4 sm:$0xff]   ;;  %v10486_v62 = vld [vmem:[#allocation6 + $0x1940] ss:$16 sps:$4 sm:$0xff]  }
 0x33b   :  { %6929 = vmatpush1.bf16.msra.mxu0 %v10402_v50  ;;  %7585 = vmatpush1.bf16.msra.mxu1 %v10405_v0  ;;  %v10489_v50 = vld [vmem:[#allocation6 + $0x1948] ss:$16 sps:$4 sm:$0xff]   ;;  %v10494_v0 = vld [vmem:[#allocation6 + $0x1964] ss:$16 sps:$4 sm:$0xff]  }
 0x33c   :  { %6930 = vmatprep.subr.bf16.mxu0 %v10410_v2  ;;  %7586 = vmatprep.subr.bf16.mxu1 %v10413_v3  ;;  %v10497_v2 = vld [vmem:[#allocation6 + $0x196c] ss:$16 sps:$4 sm:$0xff]   ;;  %v10492_v3 = vld [vmem:[#allocation6 + $0x1960] ss:$16 sps:$4 sm:$0xff]  }
 0x33f   :  { %6931 = vmatpush1.bf16.msra.mxu0 %v10408_v4  ;;  %7587 = vmatpush1.bf16.msra.mxu1 %v10411_v36  ;;  %v10495_v4 = vld [vmem:[#allocation6 + $0x1968] ss:$16 sps:$4 sm:$0xff]   ;;  %v10500_v36 = vld [vmem:[#allocation6 + $0x1984] ss:$16 sps:$4 sm:$0xff]  }
 0x340   :  { %6932 = vmatprep.subr.bf16.mxu0 %v10416_v45  ;;  %7588 = vmatprep.subr.bf16.mxu1 %v10419_v5  ;;  %v10503_v45 = vld [vmem:[#allocation6 + $0x198c] ss:$16 sps:$4 sm:$0xff]   ;;  %v10498_v5 = vld [vmem:[#allocation6 + $0x1980] ss:$16 sps:$4 sm:$0xff]  }
 0x343   :  { %6933 = vmatpush1.bf16.msra.mxu0 %v10414_v7  ;;  %7589 = vmatpush1.bf16.msra.mxu1 %v10417_v8  ;;  %v10501_v7 = vld [vmem:[#allocation6 + $0x1988] ss:$16 sps:$4 sm:$0xff]   ;;  %v10506_v8 = vld [vmem:[#allocation6 + $0x19a4] ss:$16 sps:$4 sm:$0xff]  }
 0x344   :  { %6934 = vmatprep.subr.bf16.mxu0 %v10422_v61  ;;  %7590 = vmatprep.subr.bf16.mxu1 %v10425_v11  ;;  %v10509_v61 = vld [vmem:[#allocation6 + $0x19ac] ss:$16 sps:$4 sm:$0xff]   ;;  %v10504_v11 = vld [vmem:[#allocation6 + $0x19a0] ss:$16 sps:$4 sm:$0xff]  }
 0x347   :  { %6935 = vmatpush1.bf16.msra.mxu0 %v10420_v12  ;;  %7591 = vmatpush1.bf16.msra.mxu1 %v10423_v14  ;;  %v10507_v12 = vld [vmem:[#allocation6 + $0x19a8] ss:$16 sps:$4 sm:$0xff]   ;;  %v10512_v14 = vld [vmem:[#allocation6 + $0x19c4] ss:$16 sps:$4 sm:$0xff]  }
 0x348   :  { %6945 = vmatprep.subr.bf16.mxu0 %v10428_v16  ;;  %7601 = vmatprep.subr.bf16.mxu1 %v10431_v17  ;;  %v10515_v16 = vld [vmem:[#allocation6 + $0x19cc] ss:$16 sps:$4 sm:$0xff]   ;;  %v10510_v17 = vld [vmem:[#allocation6 + $0x19c0] ss:$16 sps:$4 sm:$0xff]  }
 0x34a   :  { %6937 = vmatmul.mubr.bf16.vlgmr.msra.gmra.mrb[0].mxu0 %v1249_v18  ;;  %7593 = vmatmul.mubr.bf16.vlgmr.msra.gmra.mrb[0].mxu1 %v1249_v18  ;;  %v10518_v18 = vld [vmem:[#allocation6 + $0x19e4] ss:$16 sps:$4 sm:$0xff]  }
 0x34b   :  { %6946 = vmatpush1.bf16.msra.mxu0 %v10426_v19  ;;  %7602 = vmatpush1.bf16.msra.mxu1 %v10429_v52  ;;  %v10521_v19 = vld [vmem:[#allocation6 + $0x19ec] ss:$16 sps:$4 sm:$0xff]   ;;  %v10516_v52 = vld [vmem:[#allocation6 + $0x19e0] ss:$16 sps:$4 sm:$0xff]  }
 0x34c   :  { %6947 = vmatprep.subr.bf16.mxu0 %v10434_v20  ;;  %7603 = vmatprep.subr.bf16.mxu1 %v10437_v9  ;;  %v10519_v20 = vld [vmem:[#allocation6 + $0x19e8] ss:$16 sps:$4 sm:$0xff]   ;;  %v10524_v9 = vld [vmem:[#allocation6 + $0x1a04] ss:$16 sps:$4 sm:$0xff]  }
 0x34d   :  { %6977 = vmatprep.mubr.bf16.mxu0 %v11153_v22  ;;  %7633 = vmatprep.mubr.bf16.mxu1 %v11153_v22 }
 0x34f   :  { %6948 = vmatpush1.bf16.msra.mxu0 %v10432_v23  ;;  %7604 = vmatpush1.bf16.msra.mxu1 %v10435_v24  ;;  %v10527_v23 = vld [vmem:[#allocation6 + $0x1a0c] ss:$16 sps:$4 sm:$0xff]   ;;  %v11159_v24 = vrot.slane %v11146_v63, %v11024_v49  ;;  %v10531_v63 = vld [vmem:[#allocation6 + $0x1a28] ss:$16 sps:$4 sm:$0xff]  }
 0x350   :  { %6949 = vmatprep.subr.bf16.mxu0 %v10440_v10  ;;  %7605 = vmatprep.subr.bf16.mxu1 %v10443_v26  ;;  %v10522_v10 = vld [vmem:[#allocation6 + $0x1a00] ss:$16 sps:$4 sm:$0xff]   ;;  %v10525_v26 = vld [vmem:[#allocation6 + $0x1a08] ss:$16 sps:$4 sm:$0xff]  }
 0x353   :  { %6950 = vmatpush1.bf16.msra.mxu0 %v10438_v28  ;;  %7606 = vmatpush1.bf16.msra.mxu1 %v10441_v13  ;;  %v10530_v28 = vld [vmem:[#allocation6 + $0x1a24] ss:$16 sps:$4 sm:$0xff]   ;;  %v10533_v13 = vld [vmem:[#allocation6 + $0x1a2c] ss:$16 sps:$4 sm:$0xff]  }
 0x354   :  { %6951 = vmatprep.subr.bf16.mxu0 %v10446_v29  ;;  %7607 = vmatprep.subr.bf16.mxu1 %v10449_v30  ;;  %v1299_v29 = vcombine.high %v11153_v22, %v11153_v22  ;;  %v10528_v30 = vld [vmem:[#allocation6 + $0x1a20] ss:$16 sps:$4 sm:$0xff]   ;;  %v10542_v22 = vld [vmem:[#allocation6 + $0x1a64] ss:$16 sps:$4 sm:$0xff]  }
 0x357   :  { %6952 = vmatpush1.bf16.msra.mxu0 %v10444_v31  ;;  %7608 = vmatpush1.bf16.msra.mxu1 %v10447_v32  ;;  %v10536_v31 = vld [vmem:[#allocation6 + $0x1a44] ss:$16 sps:$4 sm:$0xff]   ;;  %v10539_v32 = vld [vmem:[#allocation6 + $0x1a4c] ss:$16 sps:$4 sm:$0xff]  }
 0x358   :  { %6953 = vmatprep.subr.bf16.mxu0 %v10452_v15  ;;  %7609 = vmatprep.subr.bf16.mxu1 %v10455_v33  ;;  %v10534_v15 = vld [vmem:[#allocation6 + $0x1a40] ss:$16 sps:$4 sm:$0xff]   ;;  %v10537_v33 = vld [vmem:[#allocation6 + $0x1a48] ss:$16 sps:$4 sm:$0xff]  }
 0x35b   :  { %6954 = vmatpush1.bf16.msra.mxu0 %v10450_v34  ;;  %7610 = vmatpush1.bf16.msra.mxu1 %v10453_v35  ;;  %v10545_v34 = vld [vmem:[#allocation6 + $0x1a6c] ss:$16 sps:$4 sm:$0xff]   ;;  %v10540_v35 = vld [vmem:[#allocation6 + $0x1a60] ss:$16 sps:$4 sm:$0xff]  }
 0x35c   :  { %6955 = vmatprep.subr.bf16.mxu0 %v10458_v37  ;;  %7611 = vmatprep.subr.bf16.mxu1 %v10461_v27  ;;  %v10543_v37 = vld [vmem:[#allocation6 + $0x1a68] ss:$16 sps:$4 sm:$0xff]   ;;  %v10548_v27 = vld [vmem:[#allocation6 + $0x1a84] ss:$16 sps:$4 sm:$0xff]  }
 0x35f   :  { %6956 = vmatpush1.bf16.msra.mxu0 %v10456_v39  ;;  %7612 = vmatpush1.bf16.msra.mxu1 %v10459_v40  ;;  %v10551_v39 = vld [vmem:[#allocation6 + $0x1a8c] ss:$16 sps:$4 sm:$0xff]   ;;  %v10546_v40 = vld [vmem:[#allocation6 + $0x1a80] ss:$16 sps:$4 sm:$0xff]  }
 0x360   :  { %6957 = vmatprep.subr.bf16.mxu0 %v10464_v41  ;;  %7613 = vmatprep.subr.bf16.mxu1 %v10467_v21  ;;  %v10549_v41 = vld [vmem:[#allocation6 + $0x1a88] ss:$16 sps:$4 sm:$0xff]   ;;  %v10554_v21 = vld [vmem:[#allocation6 + $0x1aa4] ss:$16 sps:$4 sm:$0xff]  }
 0x363   :  { %6958 = vmatpush1.bf16.msra.mxu0 %v10462_v42  ;;  %7614 = vmatpush1.bf16.msra.mxu1 %v10465_v44  ;;  %v10557_v42 = vld [vmem:[#allocation6 + $0x1aac] ss:$16 sps:$4 sm:$0xff]   ;;  %v10552_v44 = vld [vmem:[#allocation6 + $0x1aa0] ss:$16 sps:$4 sm:$0xff]  }
 0x364   :  { %6959 = vmatprep.subr.bf16.mxu0 %v10470_v46  ;;  %7615 = vmatprep.subr.bf16.mxu1 %v10473_v25  ;;  %v10555_v46 = vld [vmem:[#allocation6 + $0x1aa8] ss:$16 sps:$4 sm:$0xff]   ;;  %v10560_v25 = vld [vmem:[#allocation6 + $0x1ac4] ss:$16 sps:$4 sm:$0xff]  }
 0x367   :  { %6960 = vmatpush1.bf16.msra.mxu0 %v10468_v47  ;;  %7616 = vmatpush1.bf16.msra.mxu1 %v10471_v51  ;;  %v10563_v47 = vld [vmem:[#allocation6 + $0x1acc] ss:$16 sps:$4 sm:$0xff]   ;;  %v10558_v51 = vld [vmem:[#allocation6 + $0x1ac0] ss:$16 sps:$4 sm:$0xff]  }
 0x368   :  { %6961 = vmatprep.subr.bf16.mxu0 %v10476_v53  ;;  %7617 = vmatprep.subr.bf16.mxu1 %v10479_v54  ;;  %v10561_v53 = vld [vmem:[#allocation6 + $0x1ac8] ss:$16 sps:$4 sm:$0xff]   ;;  %v10566_v54 = vld [vmem:[#allocation6 + $0x1ae4] ss:$16 sps:$4 sm:$0xff]  }
 0x36b   :  { %6962 = vmatpush1.bf16.msra.mxu0 %v10474_v55  ;;  %7618 = vmatpush1.bf16.msra.mxu1 %v10477_v56  ;;  %v10569_v55 = vld [vmem:[#allocation6 + $0x1aec] ss:$16 sps:$4 sm:$0xff]   ;;  %v10564_v56 = vld [vmem:[#allocation6 + $0x1ae0] ss:$16 sps:$4 sm:$0xff]  }
 0x36c   :  { %6963 = vmatprep.subr.bf16.mxu0 %v10482_v38  ;;  %7619 = vmatprep.subr.bf16.mxu1 %v10485_v57  ;;  %v10567_v38 = vld [vmem:[#allocation6 + $0x1ae8] ss:$16 sps:$4 sm:$0xff]   ;;  %v10572_v57 = vld [vmem:[#allocation6 + $0x1b04] ss:$16 sps:$4 sm:$0xff]  }
 0x36f   :  { %6964 = vmatpush1.bf16.msra.mxu0 %v10480_v58  ;;  %7620 = vmatpush1.bf16.msra.mxu1 %v10483_v59  ;;  %v10575_v58 = vld [vmem:[#allocation6 + $0x1b0c] ss:$16 sps:$4 sm:$0xff]   ;;  %v10570_v59 = vld [vmem:[#allocation6 + $0x1b00] ss:$16 sps:$4 sm:$0xff]  }
 0x370   :  { %6965 = vmatprep.subr.bf16.mxu0 %v10488_v60  ;;  %7621 = vmatprep.subr.bf16.mxu1 %v10491_v48  ;;  %v10573_v60 = vld [vmem:[#allocation6 + $0x1b08] ss:$16 sps:$4 sm:$0xff]   ;;  %v10578_v48 = vld [vmem:[#allocation6 + $0x1b24] ss:$16 sps:$4 sm:$0xff]  }
 0x373   :  { %6966 = vmatpush1.bf16.msra.mxu0 %v10486_v62  ;;  %7622 = vmatpush1.bf16.msra.mxu1 %v10489_v50  ;;  %v10581_v62 = vld [vmem:[#allocation6 + $0x1b2c] ss:$16 sps:$4 sm:$0xff]   ;;  %v10576_v50 = vld [vmem:[#allocation6 + $0x1b20] ss:$16 sps:$4 sm:$0xff]  }
 0x374   :  { %6967 = vmatprep.subr.bf16.mxu0 %v10494_v0  ;;  %7623 = vmatprep.subr.bf16.mxu1 %v10497_v2  ;;  %v10579_v0 = vld [vmem:[#allocation6 + $0x1b28] ss:$16 sps:$4 sm:$0xff]   ;;  %v10584_v2 = vld [vmem:[#allocation6 + $0x1b44] ss:$16 sps:$4 sm:$0xff]  }
 0x377   :  { %6968 = vmatpush1.bf16.msra.mxu0 %v10492_v3  ;;  %7624 = vmatpush1.bf16.msra.mxu1 %v10495_v4  ;;  %v10587_v3 = vld [vmem:[#allocation6 + $0x1b4c] ss:$16 sps:$4 sm:$0xff]   ;;  %v10582_v4 = vld [vmem:[#allocation6 + $0x1b40] ss:$16 sps:$4 sm:$0xff]  }
 0x378   :  { %6969 = vmatprep.subr.bf16.mxu0 %v10500_v36  ;;  %7625 = vmatprep.subr.bf16.mxu1 %v10503_v45  ;;  %v10585_v36 = vld [vmem:[#allocation6 + $0x1b48] ss:$16 sps:$4 sm:$0xff]   ;;  %v10590_v45 = vld [vmem:[#allocation6 + $0x1b64] ss:$16 sps:$4 sm:$0xff]  }
 0x37b   :  { %6970 = vmatpush1.bf16.msra.mxu0 %v10498_v5  ;;  %7626 = vmatpush1.bf16.msra.mxu1 %v10501_v7  ;;  %v10593_v5 = vld [vmem:[#allocation6 + $0x1b6c] ss:$16 sps:$4 sm:$0xff]   ;;  %v10588_v7 = vld [vmem:[#allocation6 + $0x1b60] ss:$16 sps:$4 sm:$0xff]  }
 0x37c   :  { %6971 = vmatprep.subr.bf16.mxu0 %v10506_v8  ;;  %7627 = vmatprep.subr.bf16.mxu1 %v10509_v61  ;;  %v10591_v8 = vld [vmem:[#allocation6 + $0x1b68] ss:$16 sps:$4 sm:$0xff]   ;;  %v10596_v61 = vld [vmem:[#allocation6 + $0x1b84] ss:$16 sps:$4 sm:$0xff]  }
 0x37f   :  { %6972 = vmatpush1.bf16.msra.mxu0 %v10504_v11  ;;  %7628 = vmatpush1.bf16.msra.mxu1 %v10507_v12  ;;  %v10599_v11 = vld [vmem:[#allocation6 + $0x1b8c] ss:$16 sps:$4 sm:$0xff]   ;;  %v10594_v12 = vld [vmem:[#allocation6 + $0x1b80] ss:$16 sps:$4 sm:$0xff]  }
 0x380   :  { %6973 = vmatprep.subr.bf16.mxu0 %v10512_v14  ;;  %7629 = vmatprep.subr.bf16.mxu1 %v10515_v16  ;;  %v10597_v14 = vld [vmem:[#allocation6 + $0x1b88] ss:$16 sps:$4 sm:$0xff]   ;;  %v10602_v16 = vld [vmem:[#allocation6 + $0x1ba4] ss:$16 sps:$4 sm:$0xff]  }
 0x383   :  { %6974 = vmatpush1.bf16.msra.mxu0 %v10510_v17  ;;  %7630 = vmatpush1.bf16.msra.mxu1 %v10513_v1  ;;  %v10605_v17 = vld [vmem:[#allocation6 + $0x1bac] ss:$16 sps:$4 sm:$0xff]   ;;  %v10600_v1 = vld [vmem:[#allocation6 + $0x1ba0] ss:$16 sps:$4 sm:$0xff]  }
 0x384   :  { %6975 = vmatprep.subr.bf16.mxu0 %v10518_v18  ;;  %7631 = vmatprep.subr.bf16.mxu1 %v10521_v19  ;;  %v10603_v18 = vld [vmem:[#allocation6 + $0x1ba8] ss:$16 sps:$4 sm:$0xff]   ;;  %v10608_v19 = vld [vmem:[#allocation6 + $0x1bc4] ss:$16 sps:$4 sm:$0xff]  }
 0x387   :  { %6976 = vmatpush1.bf16.msra.mxu0 %v10516_v52  ;;  %7632 = vmatpush1.bf16.msra.mxu1 %v10519_v20  ;;  %v10611_v52 = vld [vmem:[#allocation6 + $0x1bcc] ss:$16 sps:$4 sm:$0xff]   ;;  %v1252_v20 = vcombine.high %v11142_v6, %v11142_v6 }
 0x388   :  { %6986 = vmatprep.subr.bf16.mxu0 %v10524_v9  ;;  %7642 = vmatprep.subr.bf16.mxu1 %v10527_v23  ;;  %v10606_v9 = vld [vmem:[#allocation6 + $0x1bc0] ss:$16 sps:$4 sm:$0xff]   ;;  %v10609_v23 = vld [vmem:[#allocation6 + $0x1bc8] ss:$16 sps:$4 sm:$0xff]  }
 0x38a   :  { %6978 = vmatmul.mubr.bf16.vlgmr.msra.gmra.mrb[0].mxu0 %v11159_v24  ;;  %7634 = vmatmul.mubr.bf16.vlgmr.msra.gmra.mrb[0].mxu1 %v11159_v24 }
 0x38b   :  { %6987 = vmatpush1.bf16.msra.mxu0 %v10522_v10  ;;  %7643 = vmatpush1.bf16.msra.mxu1 %v10525_v26  ;;  %v10614_v10 = vld [vmem:[#allocation6 + $0x1be4] ss:$16 sps:$4 sm:$0xff]   ;;  %v10617_v26 = vld [vmem:[#allocation6 + $0x1bec] ss:$16 sps:$4 sm:$0xff]  }
 0x38c   :  { %6988 = vmatprep.subr.bf16.mxu0 %v10530_v28  ;;  %7644 = vmatprep.subr.bf16.mxu1 %v10533_v13  ;;  %v11168_v28 = vrot.slane %v1252_v20, %v11024_v49  ;;  %v10612_v13 = vld [vmem:[#allocation6 + $0x1be0] ss:$16 sps:$4 sm:$0xff]   ;;  %v10693_v20 = vld [vmem:[#allocation6 + $0x1d88] ss:$16 sps:$4 sm:$0xff]  }
 0x38d   :  { %7018 = vmatprep.mubr.bf16.mxu0 %v1299_v29  ;;  %7674 = vmatprep.mubr.bf16.mxu1 %v1299_v29  ;;  %v10615_v29 = vld [vmem:[#allocation6 + $0x1be8] ss:$16 sps:$4 sm:$0xff]  }
 0x38e   :  { %v1268_v6 = vcombine.high %v11168_v28, %v11168_v28 }
 0x38f   :  { %6989 = vmatpush1.bf16.msra.mxu0 %v10528_v30  ;;  %7645 = vmatpush1.bf16.msra.mxu1 %v10531_v63  ;;  %v10620_v30 = vld [vmem:[#allocation6 + $0x1c04] ss:$16 sps:$4 sm:$0xff]   ;;  %v10623_v63 = vld [vmem:[#allocation6 + $0x1c0c] ss:$16 sps:$4 sm:$0xff]  }
 0x390   :  { %6990 = vmatprep.subr.bf16.mxu0 %v10536_v31  ;;  %7646 = vmatprep.subr.bf16.mxu1 %v10539_v32  ;;  %v1297_v31 = vcombine.high %v11159_v24, %v11159_v24  ;;  %v10618_v32 = vld [vmem:[#allocation6 + $0x1c00] ss:$16 sps:$4 sm:$0xff]   ;;  %v10632_v24 = vld [vmem:[#allocation6 + $0x1c44] ss:$16 sps:$4 sm:$0xff]  }
 0x393   :  { %6991 = vmatpush1.bf16.msra.mxu0 %v10534_v15  ;;  %7647 = vmatpush1.bf16.msra.mxu1 %v10537_v33  ;;  %v10621_v15 = vld [vmem:[#allocation6 + $0x1c08] ss:$16 sps:$4 sm:$0xff]   ;;  %v10626_v33 = vld [vmem:[#allocation6 + $0x1c24] ss:$16 sps:$4 sm:$0xff]  }
 0x394   :  { %6992 = vmatprep.subr.bf16.mxu0 %v10542_v22  ;;  %7648 = vmatprep.subr.bf16.mxu1 %v10545_v34  ;;  %v10629_v22 = vld [vmem:[#allocation6 + $0x1c2c] ss:$16 sps:$4 sm:$0xff]   ;;  %v11175_v34 = vrot.slane %v1268_v6, %v11024_v49  ;;  %v10710_v6 = vld [vmem:[#allocation6 + $0x1de4] ss:$16 sps:$4 sm:$0xff]  }
 0x397   :  { %6993 = vmatpush1.bf16.msra.mxu0 %v10540_v35  ;;  %7649 = vmatpush1.bf16.msra.mxu1 %v10543_v37  ;;  %v10624_v35 = vld [vmem:[#allocation6 + $0x1c20] ss:$16 sps:$4 sm:$0xff]   ;;  %v10627_v37 = vld [vmem:[#allocation6 + $0x1c28] ss:$16 sps:$4 sm:$0xff]  }
 0x398   :  { %6994 = vmatprep.subr.bf16.mxu0 %v10548_v27  ;;  %7650 = vmatprep.subr.bf16.mxu1 %v10551_v39  ;;  %v10635_v27 = vld [vmem:[#allocation6 + $0x1c4c] ss:$16 sps:$4 sm:$0xff]   ;;  %v10630_v39 = vld [vmem:[#allocation6 + $0x1c40] ss:$16 sps:$4 sm:$0xff]  }
 0x39b   :  { %6995 = vmatpush1.bf16.msra.mxu0 %v10546_v40  ;;  %7651 = vmatpush1.bf16.msra.mxu1 %v10549_v41  ;;  %v10633_v40 = vld [vmem:[#allocation6 + $0x1c48] ss:$16 sps:$4 sm:$0xff]   ;;  %v10638_v41 = vld [vmem:[#allocation6 + $0x1c64] ss:$16 sps:$4 sm:$0xff]  }
 0x39c   :  { %6996 = vmatprep.subr.bf16.mxu0 %v10554_v21  ;;  %7652 = vmatprep.subr.bf16.mxu1 %v10557_v42  ;;  %v10641_v21 = vld [vmem:[#allocation6 + $0x1c6c] ss:$16 sps:$4 sm:$0xff]   ;;  %v10636_v42 = vld [vmem:[#allocation6 + $0x1c60] ss:$16 sps:$4 sm:$0xff]  }
 0x39f   :  { %6997 = vmatpush1.bf16.msra.mxu0 %v10552_v44  ;;  %7653 = vmatpush1.bf16.msra.mxu1 %v10555_v46  ;;  %v10639_v44 = vld [vmem:[#allocation6 + $0x1c68] ss:$16 sps:$4 sm:$0xff]   ;;  %v10644_v46 = vld [vmem:[#allocation6 + $0x1c84] ss:$16 sps:$4 sm:$0xff]  }
 0x3a0   :  { %6998 = vmatprep.subr.bf16.mxu0 %v10560_v25  ;;  %7654 = vmatprep.subr.bf16.mxu1 %v10563_v47  ;;  %v10647_v25 = vld [vmem:[#allocation6 + $0x1c8c] ss:$16 sps:$4 sm:$0xff]   ;;  %v10642_v47 = vld [vmem:[#allocation6 + $0x1c80] ss:$16 sps:$4 sm:$0xff]  }
 0x3a3   :  { %6999 = vmatpush1.bf16.msra.mxu0 %v10558_v51  ;;  %7655 = vmatpush1.bf16.msra.mxu1 %v10561_v53  ;;  %v10645_v51 = vld [vmem:[#allocation6 + $0x1c88] ss:$16 sps:$4 sm:$0xff]   ;;  %v10650_v53 = vld [vmem:[#allocation6 + $0x1ca4] ss:$16 sps:$4 sm:$0xff]  }
 0x3a4   :  { %7000 = vmatprep.subr.bf16.mxu0 %v10566_v54  ;;  %7656 = vmatprep.subr.bf16.mxu1 %v10569_v55  ;;  %v10653_v54 = vld [vmem:[#allocation6 + $0x1cac] ss:$16 sps:$4 sm:$0xff]   ;;  %v10648_v55 = vld [vmem:[#allocation6 + $0x1ca0] ss:$16 sps:$4 sm:$0xff]  }
 0x3a7   :  { %7001 = vmatpush1.bf16.msra.mxu0 %v10564_v56  ;;  %7657 = vmatpush1.bf16.msra.mxu1 %v10567_v38  ;;  %v10651_v56 = vld [vmem:[#allocation6 + $0x1ca8] ss:$16 sps:$4 sm:$0xff]   ;;  %v10656_v38 = vld [vmem:[#allocation6 + $0x1cc4] ss:$16 sps:$4 sm:$0xff]  }
 0x3a8   :  { %7002 = vmatprep.subr.bf16.mxu0 %v10572_v57  ;;  %7658 = vmatprep.subr.bf16.mxu1 %v10575_v58  ;;  %v10659_v57 = vld [vmem:[#allocation6 + $0x1ccc] ss:$16 sps:$4 sm:$0xff]   ;;  %v10654_v58 = vld [vmem:[#allocation6 + $0x1cc0] ss:$16 sps:$4 sm:$0xff]  }
 0x3ab   :  { %7003 = vmatpush1.bf16.msra.mxu0 %v10570_v59  ;;  %7659 = vmatpush1.bf16.msra.mxu1 %v10573_v60  ;;  %v10657_v59 = vld [vmem:[#allocation6 + $0x1cc8] ss:$16 sps:$4 sm:$0xff]   ;;  %v10662_v60 = vld [vmem:[#allocation6 + $0x1ce4] ss:$16 sps:$4 sm:$0xff]  }
 0x3ac   :  { %7004 = vmatprep.subr.bf16.mxu0 %v10578_v48  ;;  %7660 = vmatprep.subr.bf16.mxu1 %v10581_v62  ;;  %v10665_v48 = vld [vmem:[#allocation6 + $0x1cec] ss:$16 sps:$4 sm:$0xff]   ;;  %v10660_v62 = vld [vmem:[#allocation6 + $0x1ce0] ss:$16 sps:$4 sm:$0xff]  }
 0x3af   :  { %7005 = vmatpush1.bf16.msra.mxu0 %v10576_v50  ;;  %7661 = vmatpush1.bf16.msra.mxu1 %v10579_v0  ;;  %v10663_v50 = vld [vmem:[#allocation6 + $0x1ce8] ss:$16 sps:$4 sm:$0xff]   ;;  %v10668_v0 = vld [vmem:[#allocation6 + $0x1d04] ss:$16 sps:$4 sm:$0xff]  }
 0x3b0   :  { %7006 = vmatprep.subr.bf16.mxu0 %v10584_v2  ;;  %7662 = vmatprep.subr.bf16.mxu1 %v10587_v3  ;;  %v10671_v2 = vld [vmem:[#allocation6 + $0x1d0c] ss:$16 sps:$4 sm:$0xff]   ;;  %v10666_v3 = vld [vmem:[#allocation6 + $0x1d00] ss:$16 sps:$4 sm:$0xff]  }
 0x3b3   :  { %7007 = vmatpush1.bf16.msra.mxu0 %v10582_v4  ;;  %7663 = vmatpush1.bf16.msra.mxu1 %v10585_v36  ;;  %v10669_v4 = vld [vmem:[#allocation6 + $0x1d08] ss:$16 sps:$4 sm:$0xff]   ;;  %v10674_v36 = vld [vmem:[#allocation6 + $0x1d24] ss:$16 sps:$4 sm:$0xff]  }
 0x3b4   :  { %7008 = vmatprep.subr.bf16.mxu0 %v10590_v45  ;;  %7664 = vmatprep.subr.bf16.mxu1 %v10593_v5  ;;  %v10677_v45 = vld [vmem:[#allocation6 + $0x1d2c] ss:$16 sps:$4 sm:$0xff]   ;;  %v10672_v5 = vld [vmem:[#allocation6 + $0x1d20] ss:$16 sps:$4 sm:$0xff]  }
 0x3b7   :  { %7009 = vmatpush1.bf16.msra.mxu0 %v10588_v7  ;;  %7665 = vmatpush1.bf16.msra.mxu1 %v10591_v8  ;;  %v10675_v7 = vld [vmem:[#allocation6 + $0x1d28] ss:$16 sps:$4 sm:$0xff]   ;;  %v10680_v8 = vld [vmem:[#allocation6 + $0x1d44] ss:$16 sps:$4 sm:$0xff]  }
 0x3b8   :  { %7010 = vmatprep.subr.bf16.mxu0 %v10596_v61  ;;  %7666 = vmatprep.subr.bf16.mxu1 %v10599_v11  ;;  %v10683_v61 = vld [vmem:[#allocation6 + $0x1d4c] ss:$16 sps:$4 sm:$0xff]   ;;  %v10678_v11 = vld [vmem:[#allocation6 + $0x1d40] ss:$16 sps:$4 sm:$0xff]  }
 0x3bb   :  { %7011 = vmatpush1.bf16.msra.mxu0 %v10594_v12  ;;  %7667 = vmatpush1.bf16.msra.mxu1 %v10597_v14  ;;  %v10681_v12 = vld [vmem:[#allocation6 + $0x1d48] ss:$16 sps:$4 sm:$0xff]   ;;  %v10686_v14 = vld [vmem:[#allocation6 + $0x1d64] ss:$16 sps:$4 sm:$0xff]  }
 0x3bc   :  { %7012 = vmatprep.subr.bf16.mxu0 %v10602_v16  ;;  %7668 = vmatprep.subr.bf16.mxu1 %v10605_v17  ;;  %v10689_v16 = vld [vmem:[#allocation6 + $0x1d6c] ss:$16 sps:$4 sm:$0xff]   ;;  %v10684_v17 = vld [vmem:[#allocation6 + $0x1d60] ss:$16 sps:$4 sm:$0xff]  }
 0x3bf   :  { %7013 = vmatpush1.bf16.msra.mxu0 %v10600_v1  ;;  %7669 = vmatpush1.bf16.msra.mxu1 %v10603_v18  ;;  %v10687_v1 = vld [vmem:[#allocation6 + $0x1d68] ss:$16 sps:$4 sm:$0xff]   ;;  %v10692_v18 = vld [vmem:[#allocation6 + $0x1d84] ss:$16 sps:$4 sm:$0xff]  }
 0x3c0   :  { %7014 = vmatprep.subr.bf16.mxu0 %v10608_v19  ;;  %7670 = vmatprep.subr.bf16.mxu1 %v10611_v52  ;;  %v10695_v19 = vld [vmem:[#allocation6 + $0x1d8c] ss:$16 sps:$4 sm:$0xff]   ;;  %v10690_v52 = vld [vmem:[#allocation6 + $0x1d80] ss:$16 sps:$4 sm:$0xff]  }
 0x3c3   :  { %7015 = vmatpush1.bf16.msra.mxu0 %v10606_v9  ;;  %7671 = vmatpush1.bf16.msra.mxu1 %v10609_v23  ;;  %v10698_v9 = vld [vmem:[#allocation6 + $0x1da4] ss:$16 sps:$4 sm:$0xff]   ;;  %v10701_v23 = vld [vmem:[#allocation6 + $0x1dac] ss:$16 sps:$4 sm:$0xff]  }
 0x3c4   :  { %7016 = vmatprep.subr.bf16.mxu0 %v10614_v10  ;;  %7672 = vmatprep.subr.bf16.mxu1 %v10617_v26  ;;  %v10696_v10 = vld [vmem:[#allocation6 + $0x1da0] ss:$16 sps:$4 sm:$0xff]   ;;  %v10699_v26 = vld [vmem:[#allocation6 + $0x1da8] ss:$16 sps:$4 sm:$0xff]  }
 0x3c7   :  { %7017 = vmatpush1.bf16.msra.mxu0 %v10612_v13  ;;  %7673 = vmatpush1.bf16.msra.mxu1 %v10615_v29  ;;  %v10704_v13 = vld [vmem:[#allocation6 + $0x1dc4] ss:$16 sps:$4 sm:$0xff]   ;;  %v10707_v29 = vld [vmem:[#allocation6 + $0x1dcc] ss:$16 sps:$4 sm:$0xff]  }
 0x3c8   :  { %7027 = vmatprep.subr.bf16.mxu0 %v10620_v30  ;;  %7683 = vmatprep.subr.bf16.mxu1 %v10623_v63  ;;  %v10702_v30 = vld [vmem:[#allocation6 + $0x1dc0] ss:$16 sps:$4 sm:$0xff]   ;;  %v10705_v63 = vld [vmem:[#allocation6 + $0x1dc8] ss:$16 sps:$4 sm:$0xff]  }
 0x3ca   :  { %7019 = vmatmul.mubr.bf16.vlgmr.msra.gmra.mrb[0].mxu0 %v1297_v31  ;;  %7675 = vmatmul.mubr.bf16.vlgmr.msra.gmra.mrb[0].mxu1 %v1297_v31  ;;  %v10713_v31 = vld [vmem:[#allocation6 + $0x1dec] ss:$16 sps:$4 sm:$0xff]  }
 0x3cb   :  { %7028 = vmatpush1.bf16.msra.mxu0 %v10618_v32  ;;  %7684 = vmatpush1.bf16.msra.mxu1 %v10621_v15  ;;  %v10708_v32 = vld [vmem:[#allocation6 + $0x1de0] ss:$16 sps:$4 sm:$0xff]   ;;  %v10711_v15 = vld [vmem:[#allocation6 + $0x1de8] ss:$16 sps:$4 sm:$0xff]  }
 0x3cc   :  { %7029 = vmatprep.subr.bf16.mxu0 %v10626_v33  ;;  %7685 = vmatprep.subr.bf16.mxu1 %v10629_v22  ;;  %v10717_v33 = vld [vmem:[#allocation6 + $0x1e04] ss:$16 sps:$4 sm:$0xff]   ;;  %v10720_v22 = vld [vmem:[#allocation6 + $0x1e0c] ss:$16 sps:$4 sm:$0xff]  }
 0x3cd   :  { %7059 = vmatprep.mubr.bf16.mxu0 %v11175_v34  ;;  %7715 = vmatprep.mubr.bf16.mxu1 %v11175_v34 }
 0x3cf   :  { %7030 = vmatpush1.bf16.msra.mxu0 %v10624_v35  ;;  %7686 = vmatpush1.bf16.msra.mxu1 %v10627_v37  ;;  %v11181_v35 = vrot.slane %v11168_v28, %v11024_v49  ;;  %v10715_v37 = vld [vmem:[#allocation6 + $0x1e00] ss:$16 sps:$4 sm:$0xff]   ;;  %v10724_v28 = vld [vmem:[#allocation6 + $0x1e28] ss:$16 sps:$4 sm:$0xff]  }
 0x3d0   :  { %7031 = vmatprep.subr.bf16.mxu0 %v10632_v24  ;;  %7687 = vmatprep.subr.bf16.mxu1 %v10635_v27  ;;  %v10718_v24 = vld [vmem:[#allocation6 + $0x1e08] ss:$16 sps:$4 sm:$0xff]   ;;  %v10723_v27 = vld [vmem:[#allocation6 + $0x1e24] ss:$16 sps:$4 sm:$0xff]  }
 0x3d3   :  { %7032 = vmatpush1.bf16.msra.mxu0 %v10630_v39  ;;  %7688 = vmatpush1.bf16.msra.mxu1 %v10633_v40  ;;  %v10726_v39 = vld [vmem:[#allocation6 + $0x1e2c] ss:$16 sps:$4 sm:$0xff]   ;;  %v1300_v40 = vcombine.high %v11175_v34, %v11175_v34  ;;  %v10735_v34 = vld [vmem:[#allocation6 + $0x1e64] ss:$16 sps:$4 sm:$0xff]  }
 0x3d4   :  { %7033 = vmatprep.subr.bf16.mxu0 %v10638_v41  ;;  %7689 = vmatprep.subr.bf16.mxu1 %v10641_v21  ;;  %v10721_v41 = vld [vmem:[#allocation6 + $0x1e20] ss:$16 sps:$4 sm:$0xff]   ;;  %v10729_v21 = vld [vmem:[#allocation6 + $0x1e44] ss:$16 sps:$4 sm:$0xff]  }
 0x3d7   :  { %7034 = vmatpush1.bf16.msra.mxu0 %v10636_v42  ;;  %7690 = vmatpush1.bf16.msra.mxu1 %v10639_v44  ;;  %v10732_v42 = vld [vmem:[#allocation6 + $0x1e4c] ss:$16 sps:$4 sm:$0xff]   ;;  %v10727_v44 = vld [vmem:[#allocation6 + $0x1e40] ss:$16 sps:$4 sm:$0xff]  }
 0x3d8   :  { %7035 = vmatprep.subr.bf16.mxu0 %v10644_v46  ;;  %7691 = vmatprep.subr.bf16.mxu1 %v10647_v25  ;;  %v10730_v46 = vld [vmem:[#allocation6 + $0x1e48] ss:$16 sps:$4 sm:$0xff]   ;;  %v10738_v25 = vld [vmem:[#allocation6 + $0x1e6c] ss:$16 sps:$4 sm:$0xff]  }
 0x3db   :  { %7036 = vmatpush1.bf16.msra.mxu0 %v10642_v47  ;;  %7692 = vmatpush1.bf16.msra.mxu1 %v10645_v51  ;;  %v10733_v47 = vld [vmem:[#allocation6 + $0x1e60] ss:$16 sps:$4 sm:$0xff]   ;;  %v10736_v51 = vld [vmem:[#allocation6 + $0x1e68] ss:$16 sps:$4 sm:$0xff]  }
 0x3dc   :  { %7037 = vmatprep.subr.bf16.mxu0 %v10650_v53  ;;  %7693 = vmatprep.subr.bf16.mxu1 %v10653_v54  ;;  %v10741_v53 = vld [vmem:[#allocation6 + $0x1e84] ss:$16 sps:$4 sm:$0xff]   ;;  %v10744_v54 = vld [vmem:[#allocation6 + $0x1e8c] ss:$16 sps:$4 sm:$0xff]  }
 0x3df   :  { %7038 = vmatpush1.bf16.msra.mxu0 %v10648_v55  ;;  %7694 = vmatpush1.bf16.msra.mxu1 %v10651_v56  ;;  %v10739_v55 = vld [vmem:[#allocation6 + $0x1e80] ss:$16 sps:$4 sm:$0xff]   ;;  %v10742_v56 = vld [vmem:[#allocation6 + $0x1e88] ss:$16 sps:$4 sm:$0xff]  }
 0x3e0   :  { %7039 = vmatprep.subr.bf16.mxu0 %v10656_v38  ;;  %7695 = vmatprep.subr.bf16.mxu1 %v10659_v57  ;;  %v10747_v38 = vld [vmem:[#allocation6 + $0x1ea4] ss:$16 sps:$4 sm:$0xff]   ;;  %v10750_v57 = vld [vmem:[#allocation6 + $0x1eac] ss:$16 sps:$4 sm:$0xff]  }
 0x3e3   :  { %7040 = vmatpush1.bf16.msra.mxu0 %v10654_v58  ;;  %7696 = vmatpush1.bf16.msra.mxu1 %v10657_v59  ;;  %v10745_v58 = vld [vmem:[#allocation6 + $0x1ea0] ss:$16 sps:$4 sm:$0xff]   ;;  %v10748_v59 = vld [vmem:[#allocation6 + $0x1ea8] ss:$16 sps:$4 sm:$0xff]  }
 0x3e4   :  { %7041 = vmatprep.subr.bf16.mxu0 %v10662_v60  ;;  %7697 = vmatprep.subr.bf16.mxu1 %v10665_v48  ;;  %v10753_v60 = vld [vmem:[#allocation6 + $0x1ec4] ss:$16 sps:$4 sm:$0xff]   ;;  %v10756_v48 = vld [vmem:[#allocation6 + $0x1ecc] ss:$16 sps:$4 sm:$0xff]  }
 0x3e7   :  { %7042 = vmatpush1.bf16.msra.mxu0 %v10660_v62  ;;  %7698 = vmatpush1.bf16.msra.mxu1 %v10663_v50  ;;  %v10751_v62 = vld [vmem:[#allocation6 + $0x1ec0] ss:$16 sps:$4 sm:$0xff]   ;;  %v10754_v50 = vld [vmem:[#allocation6 + $0x1ec8] ss:$16 sps:$4 sm:$0xff]  }
 0x3e8   :  { %7043 = vmatprep.subr.bf16.mxu0 %v10668_v0  ;;  %7699 = vmatprep.subr.bf16.mxu1 %v10671_v2  ;;  %v10759_v0 = vld [vmem:[#allocation6 + $0x1ee4] ss:$16 sps:$4 sm:$0xff]   ;;  %v10762_v2 = vld [vmem:[#allocation6 + $0x1eec] ss:$16 sps:$4 sm:$0xff]  }
 0x3eb   :  { %7044 = vmatpush1.bf16.msra.mxu0 %v10666_v3  ;;  %7700 = vmatpush1.bf16.msra.mxu1 %v10669_v4  ;;  %v10757_v3 = vld [vmem:[#allocation6 + $0x1ee0] ss:$16 sps:$4 sm:$0xff]   ;;  %v10760_v4 = vld [vmem:[#allocation6 + $0x1ee8] ss:$16 sps:$4 sm:$0xff]  }
 0x3ec   :  { %7045 = vmatprep.subr.bf16.mxu0 %v10674_v36  ;;  %7701 = vmatprep.subr.bf16.mxu1 %v10677_v45  ;;  %v10765_v36 = vld [vmem:[#allocation6 + $0x1f04] ss:$16 sps:$4 sm:$0xff]   ;;  %v10768_v45 = vld [vmem:[#allocation6 + $0x1f0c] ss:$16 sps:$4 sm:$0xff]  }
 0x3ef   :  { %7046 = vmatpush1.bf16.msra.mxu0 %v10672_v5  ;;  %7702 = vmatpush1.bf16.msra.mxu1 %v10675_v7  ;;  %v10763_v5 = vld [vmem:[#allocation6 + $0x1f00] ss:$16 sps:$4 sm:$0xff]   ;;  %v10766_v7 = vld [vmem:[#allocation6 + $0x1f08] ss:$16 sps:$4 sm:$0xff]  }
 0x3f0   :  { %7047 = vmatprep.subr.bf16.mxu0 %v10680_v8  ;;  %7703 = vmatprep.subr.bf16.mxu1 %v10683_v61  ;;  %v10771_v8 = vld [vmem:[#allocation6 + $0x1f24] ss:$16 sps:$4 sm:$0xff]   ;;  %v10774_v61 = vld [vmem:[#allocation6 + $0x1f2c] ss:$16 sps:$4 sm:$0xff]  }
 0x3f3   :  { %7048 = vmatpush1.bf16.msra.mxu0 %v10678_v11  ;;  %7704 = vmatpush1.bf16.msra.mxu1 %v10681_v12  ;;  %v10769_v11 = vld [vmem:[#allocation6 + $0x1f20] ss:$16 sps:$4 sm:$0xff]   ;;  %v10772_v12 = vld [vmem:[#allocation6 + $0x1f28] ss:$16 sps:$4 sm:$0xff]  }
 0x3f4   :  { %7049 = vmatprep.subr.bf16.mxu0 %v10686_v14  ;;  %7705 = vmatprep.subr.bf16.mxu1 %v10689_v16  ;;  %v10777_v14 = vld [vmem:[#allocation6 + $0x1f44] ss:$16 sps:$4 sm:$0xff]   ;;  %v10780_v16 = vld [vmem:[#allocation6 + $0x1f4c] ss:$16 sps:$4 sm:$0xff]  }
 0x3f7   :  { %7050 = vmatpush1.bf16.msra.mxu0 %v10684_v17  ;;  %7706 = vmatpush1.bf16.msra.mxu1 %v10687_v1  ;;  %v10775_v17 = vld [vmem:[#allocation6 + $0x1f40] ss:$16 sps:$4 sm:$0xff]   ;;  %v10778_v1 = vld [vmem:[#allocation6 + $0x1f48] ss:$16 sps:$4 sm:$0xff]  }
 0x3f8   :  { %7051 = vmatprep.subr.bf16.mxu0 %v10692_v18  ;;  %7707 = vmatprep.subr.bf16.mxu1 %v10695_v19  ;;  %v10783_v18 = vld [vmem:[#allocation6 + $0x1f64] ss:$16 sps:$4 sm:$0xff]   ;;  %v10786_v19 = vld [vmem:[#allocation6 + $0x1f6c] ss:$16 sps:$4 sm:$0xff]  }
 0x3fb   :  { %7052 = vmatpush1.bf16.msra.mxu0 %v10690_v52  ;;  %7708 = vmatpush1.bf16.msra.mxu1 %v10693_v20  ;;  %v10781_v52 = vld [vmem:[#allocation6 + $0x1f60] ss:$16 sps:$4 sm:$0xff]   ;;  %v10784_v20 = vld [vmem:[#allocation6 + $0x1f68] ss:$16 sps:$4 sm:$0xff]  }
 0x3fc   :  { %7053 = vmatprep.subr.bf16.mxu0 %v10698_v9  ;;  %7709 = vmatprep.subr.bf16.mxu1 %v10701_v23  ;;  %v10789_v9 = vld [vmem:[#allocation6 + $0x1f84] ss:$16 sps:$4 sm:$0xff]   ;;  %v10792_v23 = vld [vmem:[#allocation6 + $0x1f8c] ss:$16 sps:$4 sm:$0xff]  }
 0x3ff   :  { %7054 = vmatpush1.bf16.msra.mxu0 %v10696_v10  ;;  %7710 = vmatpush1.bf16.msra.mxu1 %v10699_v26  ;;  %v10787_v10 = vld [vmem:[#allocation6 + $0x1f80] ss:$16 sps:$4 sm:$0xff]   ;;  %v10790_v26 = vld [vmem:[#allocation6 + $0x1f88] ss:$16 sps:$4 sm:$0xff]  }
 0x400   :  { %7055 = vmatprep.subr.bf16.mxu0 %v10704_v13  ;;  %7711 = vmatprep.subr.bf16.mxu1 %v10707_v29  ;;  %v10795_v13 = vld [vmem:[#allocation6 + $0x1fa4] ss:$16 sps:$4 sm:$0xff]   ;;  %v10798_v29 = vld [vmem:[#allocation6 + $0x1fac] ss:$16 sps:$4 sm:$0xff]  }
 0x403   :  { %7056 = vmatpush1.bf16.msra.mxu0 %v10702_v30  ;;  %7712 = vmatpush1.bf16.msra.mxu1 %v10705_v63  ;;  %v10793_v30 = vld [vmem:[#allocation6 + $0x1fa0] ss:$16 sps:$4 sm:$0xff]   ;;  %v10796_v63 = vld [vmem:[#allocation6 + $0x1fa8] ss:$16 sps:$4 sm:$0xff]  }
 0x404   :  { %7057 = vmatprep.subr.bf16.mxu0 %v10710_v6  ;;  %7713 = vmatprep.subr.bf16.mxu1 %v10713_v31  ;;  %v10801_v6 = vld [vmem:[#allocation6 + $0x1fc4] ss:$16 sps:$4 sm:$0xff]   ;;  %v10804_v31 = vld [vmem:[#allocation6 + $0x1fcc] ss:$16 sps:$4 sm:$0xff]  }
 0x407   :  { %7058 = vmatpush1.bf16.msra.mxu0 %v10708_v32  ;;  %7714 = vmatpush1.bf16.msra.mxu1 %v10711_v15  ;;  %v10799_v32 = vld [vmem:[#allocation6 + $0x1fc0] ss:$16 sps:$4 sm:$0xff]   ;;  %v10802_v15 = vld [vmem:[#allocation6 + $0x1fc8] ss:$16 sps:$4 sm:$0xff]  }
 0x408   :  { %7068 = vmatprep.subr.bf16.mxu0 %v10717_v33  ;;  %7724 = vmatprep.subr.bf16.mxu1 %v10720_v22  ;;  %v10807_v33 = vld [vmem:[#allocation6 + $0x1fe4] ss:$16 sps:$4 sm:$0xff]   ;;  %v10810_v22 = vld [vmem:[#allocation6 + $0x1fec] ss:$16 sps:$4 sm:$0xff]  }
 0x40a   :  { %7060 = vmatmul.mubr.bf16.vlgmr.msra.gmra.mrb[0].mxu0 %v11181_v35  ;;  %7716 = vmatmul.mubr.bf16.vlgmr.msra.gmra.mrb[0].mxu1 %v11181_v35 }
 0x40b   :  { %7069 = vmatpush1.bf16.msra.mxu0 %v10715_v37  ;;  %7725 = vmatpush1.bf16.msra.mxu1 %v10718_v24  ;;  %v10805_v37 = vld [vmem:[#allocation6 + $0x1fe0] ss:$16 sps:$4 sm:$0xff]   ;;  %v10808_v24 = vld [vmem:[#allocation6 + $0x1fe8] ss:$16 sps:$4 sm:$0xff]  }
 0x40c   :  { %7070 = vmatprep.subr.bf16.mxu0 %v10723_v27  ;;  %7726 = vmatprep.subr.bf16.mxu1 %v10726_v39  ;;  %v1298_v27 = vcombine.high %v11181_v35, %v11181_v35  ;;  %v10946_v39 = vmov 1983009808  }
 0x40d   :  { %7100 = vmatprep.mubr.bf16.mxu0 %v1300_v40  ;;  %7756 = vmatprep.mubr.bf16.mxu1 %v1300_v40  ;;  %v7772_v40 = vunpack.c.l.s4 %v10946_v39 }
 0x40f   :  { %7071 = vmatpush1.bf16.msra.mxu0 %v10721_v41  ;;  %7727 = vmatpush1.bf16.msra.mxu1 %v10724_v28  ;;  %v7773_v41 = vunpack.c.0.s8 %v7772_v40 }
 0x410   :  { %7072 = vmatprep.subr.bf16.mxu0 %v10729_v21  ;;  %7728 = vmatprep.subr.bf16.mxu1 %v10732_v42 }
 0x411   :  { %v11190_v42 = vsub.s32 %v7773_v41, %v11021_v43 }
 0x413   :  { %7073 = vmatpush1.bf16.msra.mxu0 %v10727_v44  ;;  %7729 = vmatpush1.bf16.msra.mxu1 %v10730_v46 }
 0x414   :  { %7074 = vmatprep.subr.bf16.mxu0 %v10735_v34  ;;  %7730 = vmatprep.subr.bf16.mxu1 %v10738_v25 }
 0x417   :  { %7075 = vmatpush1.bf16.msra.mxu0 %v10733_v47  ;;  %7731 = vmatpush1.bf16.msra.mxu1 %v10736_v51 }
 0x418   :  { %7076 = vmatprep.subr.bf16.mxu0 %v10741_v53  ;;  %7732 = vmatprep.subr.bf16.mxu1 %v10744_v54 }
 0x41b   :  { %7077 = vmatpush1.bf16.msra.mxu0 %v10739_v55  ;;  %7733 = vmatpush1.bf16.msra.mxu1 %v10742_v56 }
 0x41c   :  { %7078 = vmatprep.subr.bf16.mxu0 %v10747_v38  ;;  %7734 = vmatprep.subr.bf16.mxu1 %v10750_v57 }
 0x41f   :  { %7079 = vmatpush1.bf16.msra.mxu0 %v10745_v58  ;;  %7735 = vmatpush1.bf16.msra.mxu1 %v10748_v59 }
 0x420   :  { %7080 = vmatprep.subr.bf16.mxu0 %v10753_v60  ;;  %7736 = vmatprep.subr.bf16.mxu1 %v10756_v48 }
 0x423   :  { %7081 = vmatpush1.bf16.msra.mxu0 %v10751_v62  ;;  %7737 = vmatpush1.bf16.msra.mxu1 %v10754_v50 }
 0x424   :  { %7082 = vmatprep.subr.bf16.mxu0 %v10759_v0  ;;  %7738 = vmatprep.subr.bf16.mxu1 %v10762_v2 }
 0x427   :  { %7083 = vmatpush1.bf16.msra.mxu0 %v10757_v3  ;;  %7739 = vmatpush1.bf16.msra.mxu1 %v10760_v4 }
 0x428   :  { %7084 = vmatprep.subr.bf16.mxu0 %v10765_v36  ;;  %7740 = vmatprep.subr.bf16.mxu1 %v10768_v45 }
 0x42b   :  { %7085 = vmatpush1.bf16.msra.mxu0 %v10763_v5  ;;  %7741 = vmatpush1.bf16.msra.mxu1 %v10766_v7 }
 0x42c   :  { %7086 = vmatprep.subr.bf16.mxu0 %v10771_v8  ;;  %7742 = vmatprep.subr.bf16.mxu1 %v10774_v61 }
 0x42f   :  { %7087 = vmatpush1.bf16.msra.mxu0 %v10769_v11  ;;  %7743 = vmatpush1.bf16.msra.mxu1 %v10772_v12 }
 0x430   :  { %7088 = vmatprep.subr.bf16.mxu0 %v10777_v14  ;;  %7744 = vmatprep.subr.bf16.mxu1 %v10780_v16 }
 0x433   :  { %7089 = vmatpush1.bf16.msra.mxu0 %v10775_v17  ;;  %7745 = vmatpush1.bf16.msra.mxu1 %v10778_v1 }
 0x434   :  { %7090 = vmatprep.subr.bf16.mxu0 %v10783_v18  ;;  %7746 = vmatprep.subr.bf16.mxu1 %v10786_v19 }
 0x437   :  { %7091 = vmatpush1.bf16.msra.mxu0 %v10781_v52  ;;  %7747 = vmatpush1.bf16.msra.mxu1 %v10784_v20 }
 0x438   :  { %7092 = vmatprep.subr.bf16.mxu0 %v10789_v9  ;;  %7748 = vmatprep.subr.bf16.mxu1 %v10792_v23 }
 0x43b   :  { %7093 = vmatpush1.bf16.msra.mxu0 %v10787_v10  ;;  %7749 = vmatpush1.bf16.msra.mxu1 %v10790_v26 }
 0x43c   :  { %7094 = vmatprep.subr.bf16.mxu0 %v10795_v13  ;;  %7750 = vmatprep.subr.bf16.mxu1 %v10798_v29 }
 0x43f   :  { %7095 = vmatpush1.bf16.msra.mxu0 %v10793_v30  ;;  %7751 = vmatpush1.bf16.msra.mxu1 %v10796_v63 }
 0x440   :  { %7096 = vmatprep.subr.bf16.mxu0 %v10801_v6  ;;  %7752 = vmatprep.subr.bf16.mxu1 %v10804_v31 }
 0x443   :  { %7097 = vmatpush1.bf16.msra.mxu0 %v10799_v32  ;;  %7753 = vmatpush1.bf16.msra.mxu1 %v10802_v15 }
 0x444   :  { %7098 = vmatprep.subr.bf16.mxu0 %v10807_v33  ;;  %7754 = vmatprep.subr.bf16.mxu1 %v10810_v22 }
 0x447   :  { %7099 = vmatpush1.bf16.msra.mxu0 %v10805_v37  ;;  %7755 = vmatpush1.bf16.msra.mxu1 %v10808_v24 }
 0x44a   :  { %7101 = vmatmul.mubr.bf16.vlgmr.msra.gmra.mrb[0].mxu0 %v1298_v27  ;;  %7757 = vmatmul.mubr.bf16.vlgmr.msra.gmra.mrb[0].mxu1 %v1298_v27 }
 0x51d   :  { %v7102_v28 = vpop.f32.mrb[0].mxu0  ;;  %v7758_v21 = vpop.f32.mrb[0].mxu1 }
 0x51e   :  { %v7104_v44 = vpop.f32.mrb[1].mxu0  ;;  %v7760_v46 = vpop.f32.mrb[1].mxu1 }
 0x51f   :  { %v7769_v34 = vcombine.low %v7102_v28, %v7104_v44  ;;  %v7770_v25 = vcombine.low %v7758_v21, %v7760_v46  ;;  %v7106_v47 = vpop.f32.mrb[2].mxu0  ;;  %v7762_v51 = vpop.f32.mrb[2].mxu1 }
 0x520   :  { %v7107_v53 = vpop.f32.mrb[3].mxu0  ;;  %v7763_v35 = vpop.f32.mrb[3].mxu1 }
 0x521   :  { %v7777_v54 = vrot.slane %v7769_v34, %v11190_v42  ;;  %v7784_v55 = vrot.slane %v7770_v25, %v11190_v42 }
 0x523   :  { %v7785_v56 = vcombine.low %v7777_v54, %v7784_v55  ;;  %v9141_v38 = vcombine.low %v7784_v55, %v7784_v55 }
 0x525   :  { %v7801_v57 = vrot.slane %v7785_v56, %v11190_v42  ;;  %v7808_v58 = vrot.slane %v9141_v38, %v11190_v42 }
 0x527   :  { %v7809_v59 = vcombine.high %v7801_v57, %v7801_v57  ;;  %v7810_v60 = vcombine.high %v7808_v58, %v7808_v58  ;;  %v7816_v48 = vsel %vm7815_vm0, %v7801_v57, 0.0  ;;  %v7830_v62 = vsel %vm7815_vm0, %v7808_v58, 0.0 }
 0x528   :  { %v7817_v50 = vrot.slane %v7816_v48, 4  ;;  %v7831_v0 = vrot.slane %v7830_v62, 4 }
 0x529   :  { %v7823_v2 = vsel %vm7815_vm0, %v7809_v59, 0.0  ;;  %v7837_v3 = vsel %vm7815_vm0, %v7810_v60, 0.0 }
 0x52a   :  { %v7818_v4 = vadd.f32 %v7817_v50, %v7816_v48  ;;  %v7824_v36 = vrot.slane %v7823_v2, 4  ;;  %v7832_v45 = vadd.f32 %v7831_v0, %v7830_v62  ;;  %v7838_v5 = vrot.slane %v7837_v3, 4 }
 0x52c   :  { %v7819_v7 = vrot.slane %v7818_v4, 2  ;;  %v7825_v8 = vadd.f32 %v7824_v36, %v7823_v2  ;;  %v7833_v61 = vrot.slane %v7832_v45, 2  ;;  %v7839_v11 = vadd.f32 %v7838_v5, %v7837_v3 }
 0x52e   :  { %v7820_v12 = vadd.f32 %v7819_v7, %v7818_v4  ;;  %v7826_v14 = vrot.slane %v7825_v8, 2  ;;  %v7834_v16 = vadd.f32 %v7833_v61, %v7832_v45  ;;  %v7840_v17 = vrot.slane %v7839_v11, 2 }
 0x530   :  { %v7821_v1 = vrot.slane %v7820_v12, 1  ;;  %v7827_v18 = vadd.f32 %v7826_v14, %v7825_v8  ;;  %v7835_v19 = vrot.slane %v7834_v16, 1  ;;  %v7841_v52 = vadd.f32 %v7840_v17, %v7839_v11 }
 0x532   :  { %v7822_v20 = vadd.f32 %v7821_v1, %v7820_v12  ;;  %v7828_v9 = vrot.slane %v7827_v18, 1  ;;  %v7836_v23 = vadd.f32 %v7835_v19, %v7834_v16  ;;  %v7842_v10 = vrot.slane %v7841_v52, 1 }
 0x534   :  { %v7829_v26 = vadd.f32 %v7828_v9, %v7827_v18  ;;  %v7843_v13 = vadd.f32 %v7842_v10, %v7841_v52  ;;  %v7845_v29 = vmul.f32 0.5, %v7822_v20  ;;  %v7847_v63 = vmul.f32 0.5, %v7836_v23  ;;  %v8002_v10 = vld [vmem:[#allocation9] sm:$0xf] }
 0x536   :  { %v7846_v30 = vmul.f32 0.5, %v7829_v26  ;;  %v7848_v6 = vmul.f32 0.5, %v7843_v13  ;;  %v7969_v26 = vsub.s32 0, %v11021_v43  ;;  %v7973_v13 = vsub.s32 1, %v11021_v43 }
 0x538   :  { %v7853_v31 = vcombine.low %v7845_v29, %v7846_v30  ;;  %v7854_v32 = vcombine.low %v7847_v63, %v7848_v6  ;;  %v7977_v63 = vsub.s32 2, %v11021_v43  ;;  %v7981_v6 = vsub.s32 3, %v11021_v43 }
 0x53a   :  { %v7861_v15 = vrot.slane %v7853_v31, %v11190_v42  ;;  %v7868_v33 = vrot.slane %v7854_v32, %v11190_v42  ;;  %v8007_v31 = vrot.slane %v8002_v10, %v7969_v26 }
 0x53c   :  { %v7869_v22 = vcombine.low %v7861_v15, %v7868_v33  ;;  %v8011_v15 = vrot.slane %v8002_v10, %v7973_v13  ;;  %v8015_v33 = vrot.slane %v8002_v10, %v7977_v63 }
 0x53e   :  { %v11202_v37 = vsub.f32 %v7785_v56, %v7869_v22  ;;  %v8019_v22 = vrot.slane %v8002_v10, %v7981_v6 }
 0x540   :  { %v7872_v24 = vmul.f32 %v11202_v37, %v11202_v37 }
 0x542   :  { %v7874_v27 = vcombine.high %v7872_v24, %v7872_v24  ;;  %v7881_v39 = vrot.slane %v7872_v24, %v11190_v42  ;;  %v7927_v24 = vld [vmem:[#allocation8] sm:$0xf] }
 0x544   :  { %v7888_v40 = vrot.slane %v7874_v27, %v11190_v42  ;;  %v7889_v41 = vcombine.high %v7881_v39, %v7881_v39  ;;  %v7895_v28 = vsel %vm7815_vm0, %v7881_v39, 0.0 }
 0x545   :  { %v7896_v21 = vrot.slane %v7895_v28, 4 }
 0x546   :  { %v7890_v44 = vcombine.high %v7888_v40, %v7888_v40  ;;  %v7902_v46 = vsel %vm7815_vm0, %v7889_v41, 0.0  ;;  %v7909_v34 = vsel %vm7815_vm0, %v7888_v40, 0.0  ;;  %v8020_v40 = vcombine.low %v8007_v31, %v8011_v15 }
 0x547   :  { %v7897_v25 = vadd.f32 %v7896_v21, %v7895_v28  ;;  %v7903_v47 = vrot.slane %v7902_v46, 4  ;;  %v7910_v51 = vrot.slane %v7909_v34, 4  ;;  %v8021_v41 = vcombine.low %v8015_v33, %v8019_v22 }
 0x548   :  { %v7916_v53 = vsel %vm7815_vm0, %v7890_v44, 0.0 }
 0x549   :  { %v7898_v35 = vrot.slane %v7897_v25, 2  ;;  %v7904_v54 = vadd.f32 %v7903_v47, %v7902_v46  ;;  %v7911_v55 = vadd.f32 %v7910_v51, %v7909_v34  ;;  %v7917_v56 = vrot.slane %v7916_v53, 4 }
 0x54a   :  { %v8028_v47 = vrot.slane %v8020_v40, %v11190_v42  ;;  %v8035_v43 = vrot.slane %v8021_v41, %v11190_v42 }
 0x54b   :  { %v7899_v38 = vadd.f32 %v7898_v35, %v7897_v25  ;;  %v7905_v57 = vrot.slane %v7904_v54, 2  ;;  %v7912_v58 = vrot.slane %v7911_v55, 2  ;;  %v7918_v59 = vadd.f32 %v7917_v56, %v7916_v53 }
 0x54d   :  { %v7900_v60 = vrot.slane %v7899_v38, 1  ;;  %v7906_v48 = vadd.f32 %v7905_v57, %v7904_v54  ;;  %v7913_v62 = vadd.f32 %v7912_v58, %v7911_v55  ;;  %v7919_v50 = vrot.slane %v7918_v59, 2 }
 0x54e   :  { %v8036_v54 = vcombine.low %v8028_v47, %v8035_v43 }
 0x54f   :  { %v7901_v0 = vadd.f32 %v7900_v60, %v7899_v38  ;;  %v7907_v2 = vrot.slane %v7906_v48, 1  ;;  %v7914_v3 = vrot.slane %v7913_v62, 1  ;;  %v7920_v4 = vadd.f32 %v7919_v50, %v7918_v59 }
 0x551   :  { %v7908_v36 = vadd.f32 %v7907_v2, %v7906_v48  ;;  %v7915_v45 = vadd.f32 %v7914_v3, %v7913_v62  ;;  %v7921_v5 = vrot.slane %v7920_v4, 1  ;;  %v7923_v7 = vmul.f32 0.5, %v7901_v0 }
 0x553   :  { %v7922_v8 = vadd.f32 %v7921_v5, %v7920_v4  ;;  %v7924_v61 = vmul.f32 0.5, %v7908_v36  ;;  %v7925_v11 = vmul.f32 0.5, %v7915_v45  ;;  %v7928_v12 = vadd.f32 1e-05, %v7923_v7 }
 0x555   :  { %v7926_v14 = vmul.f32 0.5, %v7922_v8  ;;  %v7929_v16 = vadd.f32 1e-05, %v7924_v61  ;;  %v7930_v17 = vadd.f32 1e-05, %v7925_v11  ;;  %10811 = vrsqrt.f32 %v7928_v12 }
 0x557   :  { %v7931_v1 = vadd.f32 1e-05, %v7926_v14  ;;  %10813 = vrsqrt.f32 %v7929_v16 }
 0x558   :  { %10815 = vrsqrt.f32 %v7930_v17 }
 0x559   :  { %10817 = vrsqrt.f32 %v7931_v1 }
 0x55f   :  { %v10812_v18 = vpop.eup %10811 }
 0x561   :  { %v10814_v19 = vpop.eup %10813 }
 0x562   :  { %v10816_v52 = vpop.eup %10815  ;;  %v7940_v20 = vcombine.low %v10812_v18, %v10814_v19 }
 0x563   :  { %v10818_v9 = vpop.eup %10817 }
 0x564   :  { %v7941_v23 = vcombine.low %v10816_v52, %v10818_v9  ;;  %v7948_v29 = vrot.slane %v7940_v20, %v11024_v49 }
 0x566   :  { %v7955_v30 = vrot.slane %v7941_v23, %v11024_v49 }
 0x568   :  { %v7956_v32 = vcombine.low %v7948_v29, %v7955_v30 }
 0x56a   :  { %v7963_v27 = vrot.slane %v7956_v32, %v11024_v49 }
 0x56c   :  { %v7965_v39 = vmul.f32 %v7963_v27, %v7927_v24 }
 0x56e   :  { %v7970_v28 = vrot.slane %v7965_v39, %v7969_v26  ;;  %v7974_v21 = vrot.slane %v7965_v39, %v7973_v13  ;;  %v7978_v44 = vrot.slane %v7965_v39, %v7977_v63  ;;  %v7982_v46 = vrot.slane %v7965_v39, %v7981_v6 }
 0x570   :  { %v7983_v34 = vcombine.low %v7970_v28, %v7974_v21  ;;  %v7984_v25 = vcombine.low %v7978_v44, %v7982_v46 }
 0x572   :  { %v7991_v51 = vrot.slane %v7983_v34, %v11190_v42  ;;  %v7998_v53 = vrot.slane %v7984_v25, %v11190_v42 }
 0x574   :  { %v7999_v35 = vcombine.low %v7991_v51, %v7998_v53 }
 0x576   :  { %v8001_v55 = vmul.f32 %v7999_v35, %v11202_v37 }
 0x578   :  { %v8038_v56 = vadd.f32 %v8036_v54, %v8001_v55 }
 0x57a   :  { %v8039_v38 = vmul.f32 0.2, %v8038_v56 }
 0x57c   :  { %v8040_v57 = vmax.f32 %v8038_v56, %v8039_v38 }
 0x57e   :  { %v8042_v58 = vcombine.high %v8040_v57, %v8040_v57  ;;  %v8049_v59 = vrot.slane %v8040_v57, %v11190_v42 }
 0x580   :  { %v8056_v60 = vrot.slane %v8042_v58, %v11190_v42  ;;  %v8057_v48 = vcombine.high %v8049_v59, %v8049_v59 }
 0x582   :  { %v8058_v62 = vcombine.high %v8056_v60, %v8056_v60  ;;  %v9138_v50 = vpack.c.bf16 %v8057_v48, %v8049_v59 }
 0x584   :  { %v9139_v0 = vpack.c.bf16 %v8058_v62, %v8056_v60  ;;  %v8079_v2 = vrot.slane %v9138_v50, %v11024_v49 }
 0x586   :  { %v8086_v3 = vrot.slane %v9139_v0, %v11024_v49 }
 0x588   :  { %v8087_v4 = vcombine.low %v8079_v2, %v8086_v3 }
 0x58a   :  { %9140 = vst.sshfl [vmem:[#allocation11] sm:$0x55 pattern:$0x73625140] %v8087_v4 }
 0x58b   :  { %10920 = shalt.err (!%p10917_p8)
}
 0x58c   :  { %s10921_s1 = scalar_lea.hbm %s11244_s4, 64 }
 0x58d   :  { %p10922_p9 = scmp.ne.s32.totalorder %s11244_s4, %s10921_s1  ;;  %p10925_p10 = scmp.lt.u32.totalorder %s10921_s1, %s11244_s4 }
 0x58f   :  { %p10927_p11 = pnand %p10925_p10, %p10922_p9 }
 0x591   :  { %10930 = shalt.err (!%p10927_p11)
}
 0x592   :  { %8106 = dma.vmem_to_hbm [thread:$0]  %s8104_s10, 64, %s11244_s4, [#allocation5]  }
 0x593   :  { %10937 = dma.done.wait [#allocation5], 64  }
 0x594   :  { %10938 = vsyncadd [#allocation5], 4294967232 }
 0x595   :  { %8110 = vsyncpa [#allocation4], 1 }
 0x596   :  { %8111 = vsyncpa [#allocation7], 1 }
 0x597   :  { %8112 = vsyncpa [#allocation10], 1 }
 0x598   :  { %8113 = vsyncpa [#allocation5], 1 }

</bundles_post_ra>
